<compile_context>
chip_gen: v6e
topology: v6e:2x2x1
jax: 0.10.0
libtpu: 0.0.40
codegen_flags: <defaults>
</compile_context>

<pallas_src>
import functools
import math

import jax
import jax.numpy as jnp
import numpy as np
from jax.experimental import pallas as pl
from jax.experimental.pallas import tpu as pltpu

# ---------------------------------------------------------------- constants
B = 2            # batch
C_IN = 3         # image channels
IM_HW = 14       # image spatial size (gives a 7x7 feature map)
PATCH = 2        # patch size of the vision stand-in
GRID = IM_HW // PATCH            # 7
N_PATCH = GRID * GRID            # 49  == im_feature_size
PATCH_ROWS = 56                  # 49 padded up to a multiple of 8 sublanes
PATCH_DIM = C_IN * PATCH * PATCH # 12
C_IM = 64                        # vision feature channels (attention seq len)
IM_FEAT = 49                     # im_feature_size
H_VIS = 576                      # vision_lstm hidden
H_DIR = 192                      # direct_lstm hidden
HIDDEN = H_VIS + H_DIR           # 768 == hidden_size
EMB = 32                         # direction embedding size
SALI_IN = 8
SALI_OUT = 224

VMEM_SPEC = pl.BlockSpec(memory_space=pltpu.MemorySpace.VMEM)
ANY_SPEC = pl.BlockSpec(memory_space=pl.ANY)


# ---------------------------------------------------------------- fused kernel
def _fused_forward_kernel(
        # runtime inputs
        patches_ref, direction_ref, h0_ref, c0_ref, hh0_ref, cc0_ref,
        # vision stand-in (patch embedding)
        vis_w_ref, vis_b_ref,
        # h_fc (weight split along the cat(h_0, hh_0) axis)
        hfc_wh_ref, hfc_whh_ref, hfc_b_ref,
        # attention_layer_vision (linear_out split along cat(weighted, h) axis)
        att_win_ref, att_wout_a_ref, att_wout_b_ref,
        # vision_lstm: per-gate fused [x|h] weights stay in HBM (pl.ANY); bias in VMEM
        vl_w_hbm_ref, vl_b_ref,
        # direction embedding + direct_lstm
        demb_w_ref, demb_b_ref, dl_w_ref, dl_b_ref,
        # decoder_2_action_full (first weight split along cat(h_1, hh_1) axis)
        dec_w1h_ref, dec_w1hh_ref, dec_b1_ref,
        dec_w2_ref, dec_b2_ref, dec_w3_ref, dec_b3_ref,
        # saliency fc + bilinear interpolation matrices
        fc_w1_ref, fc_b1_ref, fc_w2_ref, fc_b2_ref,
        interp_h_ref, interp_wt_ref,
        # outputs
        h1_ref, c1_ref, hh1_ref, cc1_ref, out_ref, sal_hbm_ref,
        # scratch
        vl_w_vmem, sal_vmem, dma_sem):
    f32 = jnp.float32
    bf16 = jnp.bfloat16

    def bdot(x, w):      # f32 activation x bf16 weight -> f32 accumulate (MXU bf16 path)
        return jnp.dot(x.astype(bf16), w, preferred_element_type=f32)

    def fdot(a, b):      # f32 x f32 -> f32
        return jnp.dot(a, b, preferred_element_type=f32)

    # -- 0. kick off the big vision-LSTM weight DMA; it overlaps everything below.
    vl_copy = pltpu.make_async_copy(vl_w_hbm_ref, vl_w_vmem, dma_sem.at[0])
    vl_copy.start()

    # -- 1. h_fc(cat(h_0, hh_0)) + ReLU
    h_feat = jnp.maximum(
        bdot(h0_ref[...], hfc_wh_ref[...])
        + bdot(hh0_ref[...], hfc_whh_ref[...])
        + hfc_b_ref[...], 0.0)                                            # (B, 49)

    # -- 2. patch embedding (single matmul, vis_w pushed once) + SoftDotAttention
    feat_all = bdot(patches_ref[...], vis_w_ref[...]) + vis_b_ref[...]    # (B*56, 64)
    target = bdot(h_feat, att_win_ref[...])                               # (B, 49)
    weighted_rows = []
    for b in range(B):
        feat_b = feat_all[b * PATCH_ROWS:b * PATCH_ROWS + N_PATCH, :]     # (49, 64)
        scores = fdot(target[b:b + 1], feat_b)                            # (1, 64)
        m = jnp.max(scores, axis=-1, keepdims=True)
        e = jnp.exp(scores - m)
        attn = e * pl.reciprocal(jnp.sum(e, axis=-1, keepdims=True),
                                 approx=True)                             # (1, 64)
        # weighted_context_b = attn @ context_b = attn @ feat_b^T -> (1, 49)
        weighted_rows.append(
            jax.lax.dot_general(attn, feat_b, (((1,), (1,)), ((), ())),
                                preferred_element_type=f32))
    weighted = jnp.concatenate(weighted_rows, axis=0)                     # (B, 49)

    # tanh(linear_out(cat(weighted, h)))  -- weight pre-split, no concat needed
    input_lstm_0 = jnp.tanh(bdot(weighted, att_wout_a_ref[...])
                            + bdot(h_feat, att_wout_b_ref[...]))          # (B, 49)
    # nn.Dropout(p=0.2): identity in eval mode.

    # -- 3. saliency head early (independent of both LSTMs); its HBM store is a
    #       manual async copy that overlaps the LSTM / decoder compute below.
    s = jnp.maximum(bdot(input_lstm_0, fc_w1_ref[...]) + fc_b1_ref[...], 0.0)
    s = jnp.maximum(bdot(s, fc_w2_ref[...]) + fc_b2_ref[...], 0.0)        # (B, 64)
    rows = [s[b:b + 1, SALI_IN * r:SALI_IN * (r + 1)]
            for b in range(B) for r in range(SALI_IN)]
    x_img = jnp.concatenate(rows, axis=0)                                 # (B*8, 8)
    tmp = fdot(x_img, interp_wt_ref[...])                                 # (B*8, 224)
    a_h = interp_h_ref[...]                                               # (224, 8)
    for b in range(B):
        sal_vmem[b] = fdot(a_h, tmp[b * SALI_IN:(b + 1) * SALI_IN, :])    # (224, 224)
    sal_copy = pltpu.make_async_copy(sal_vmem, sal_hbm_ref, dma_sem.at[1])
    sal_copy.start()

    # -- 4. LSTM cells: per-gate fused [x|h] weights (PyTorch gate order i|f|g|o)
    def lstm_cell(x, h, c, w_ref, b_ref):
        xh = jnp.concatenate([x, h], axis=1).astype(bf16)                 # (B, in+hid)

        def gate(g):
            return jnp.dot(xh, w_ref[g], preferred_element_type=f32) + b_ref[g]

        i = jax.nn.sigmoid(gate(0))
        f = jax.nn.sigmoid(gate(1))
        g_ = jnp.tanh(gate(2))
        o = jax.nn.sigmoid(gate(3))
        c1 = f * c + i * g_                                               # f32 cell math
        return o * jnp.tanh(c1), c1

    # direct_lstm first (its weights are already VMEM-resident) -> more DMA overlap.
    dir_emb = bdot(direction_ref[...], demb_w_ref[...]) + demb_b_ref[...]  # (B, 32)
    h1, c1 = lstm_cell(dir_emb, h0_ref[...], c0_ref[...], dl_w_ref, dl_b_ref)
    h1_ref[...] = h1
    c1_ref[...] = c1

    # vision_lstm: LSTMCell(49, 576) -- weights arrive via the DMA started above.
    vl_copy.wait()
    hh1, cc1 = lstm_cell(input_lstm_0, hh0_ref[...], cc0_ref[...],
                         vl_w_vmem, vl_b_ref)
    hh1_ref[...] = hh1
    cc1_ref[...] = cc1

    # -- 5. decoder_2_action_full: 768 -> 256 -> 32 -> 4 (first weight split)
    y = jnp.maximum(bdot(h1, dec_w1h_ref[...]) + bdot(hh1, dec_w1hh_ref[...])
                    + dec_b1_ref[...], 0.0)
    y = jnp.maximum(bdot(y, dec_w2_ref[...]) + dec_b2_ref[...], 0.0)
    out_ref[...] = bdot(y, dec_w3_ref[...]) + dec_b3_ref[...]             # (B, 4)

    # -- 6. the saliency store must have landed before the kernel returns.
    sal_copy.wait()


# ---------------------------------------------------------------- glue helpers
def patchify(im, patch):
    b, c, h, w = im.shape
    gh, gw = h // patch, w // patch
    x = im.reshape(b, c, gh, patch, gw, patch)
    x = jnp.transpose(x, (0, 2, 4, 1, 3, 5))      # (B, gh, gw, C, p, p)
    return x.reshape(b, gh * gw, c * patch * patch)


def bilinear_matrix(in_size, out_size):
    # Matches torch.nn.functional.interpolate(mode="bilinear", align_corners=False)
    a = np.zeros((out_size, in_size), dtype=np.float32)
    scale = in_size / out_size
    for o in range(out_size):
        src = (o + 0.5) * scale - 0.5
        src = max(src, 0.0)
        i0 = min(int(np.floor(src)), in_size - 1)
        i1 = min(i0 + 1, in_size - 1)
        w1 = src - i0
        a[o, i0] += 1.0 - w1
        a[o, i1] += w1
    return jnp.asarray(a)


def init_linear(key, in_dim, out_dim):
    k1, k2 = jax.random.split(key)
    bound = 1.0 / math.sqrt(in_dim)
    w = jax.random.uniform(k1, (in_dim, out_dim), jnp.float32, -bound, bound)
    b = jax.random.uniform(k2, (1, out_dim), jnp.float32, -bound, bound)
    return w, b


def init_lstm(key, in_dim, hid):
    # Per-gate, K-fused [x|h] layout (gate order i|f|g|o):
    #   w[g] : (in_dim + hid, hid) == concat([W_ih[g*hid:(g+1)*hid].T,
    #                                         W_hh[g*hid:(g+1)*hid].T], axis=0)
    #   b[g] : (1, hid)            == (b_ih + b_hh)[g*hid:(g+1)*hid]
    # A PyTorch checkpoint port must transpose/slice weight_ih / weight_hh exactly
    # this way; random init matches U(-1/sqrt(hid), 1/sqrt(hid)).
    ks = jax.random.split(key, 3)
    bound = 1.0 / math.sqrt(hid)
    w = jax.random.uniform(ks[0], (4, in_dim + hid, hid), jnp.float32, -bound, bound)
    b = (jax.random.uniform(ks[1], (4, 1, hid), jnp.float32, -bound, bound)
         + jax.random.uniform(ks[2], (4, 1, hid), jnp.float32, -bound, bound))
    return w, b


def init_params(key):
    ks = jax.random.split(key, 16)
    p = {}
    # vision_model stand-in: patch-embedding projection (C_in*p*p -> C_IM)
    # TODO(synk): the real module wraps an external ViT; replaced by a
    # deterministic patch-embedding projection giving the same (B, 64, 49) view.
    p["vision_w"], p["vision_b"] = init_linear(ks[0], PATCH_DIM, C_IM)
    # h_fc: Linear(768, 49) + ReLU, split along the cat(h_0, hh_0) input axis
    hfc_w, p["hfc_b"] = init_linear(ks[1], HIDDEN, IM_FEAT)
    p["hfc_w_h"], p["hfc_w_hh"] = hfc_w[:H_DIR], hfc_w[H_DIR:]
    # attention_layer_vision: SoftDotAttention(49) (both linears bias-free);
    # linear_out weight is split along the cat(weighted, h) input axis.
    bound = 1.0 / math.sqrt(IM_FEAT)
    p["att_v_win"] = jax.random.uniform(ks[2], (IM_FEAT, IM_FEAT), jnp.float32, -bound, bound)
    bound2 = 1.0 / math.sqrt(2 * IM_FEAT)
    p["att_v_wout_a"] = jax.random.uniform(ks[3], (IM_FEAT, IM_FEAT), jnp.float32, -bound2, bound2)
    p["att_v_wout_b"] = jax.random.uniform(ks[4], (IM_FEAT, IM_FEAT), jnp.float32, -bound2, bound2)
    # vision_lstm: LSTMCell(49, 576);  direct_lstm: LSTMCell(32, 192)
    p["vlstm_w"], p["vlstm_b"] = init_lstm(ks[5], IM_FEAT, H_VIS)
    p["dir_emb_w"], p["dir_emb_b"] = init_linear(ks[6], 2, EMB)
    p["dlstm_w"], p["dlstm_b"] = init_lstm(ks[7], EMB, H_DIR)
    # decoder_2_action_full: 768 -> 256 -> 32 -> 4 (first weight split)
    dec_w1, p["dec_b1"] = init_linear(ks[8], HIDDEN, 256)
    p["dec_w1_h"], p["dec_w1_hh"] = dec_w1[:H_DIR], dec_w1[H_DIR:]
    p["dec_w2"], p["dec_b2"] = init_linear(ks[9], 256, 32)
    p["dec_w3"], p["dec_b3"] = init_linear(ks[10], 32, 4)
    # fc: 49 -> 128 -> 64
    p["fc_w1"], p["fc_b1"] = init_linear(ks[11], IM_FEAT, 128)
    p["fc_w2"], p["fc_b2"] = init_linear(ks[12], 128, 64)
    # pos_embedding / attention_layer_lang / attention_layer_vision_lang are
    # unused in forward(), so no parameters are created for them.
    # Bilinear interpolation matrices (constants, kept exact in f32).
    p["interp_h"] = bilinear_matrix(SALI_IN, SALI_OUT)          # (224, 8)
    p["interp_w_t"] = bilinear_matrix(SALI_IN, SALI_OUT).T      # (8, 224)
    # Stream all weight matrices as bf16 (halves HBM/VMEM weight bytes); biases
    # and the bilinear matrices stay f32; matmuls accumulate in f32 in-kernel.
    for k in ("vision_w", "hfc_w_h", "hfc_w_hh", "att_v_win", "att_v_wout_a",
              "att_v_wout_b", "vlstm_w", "dir_emb_w", "dlstm_w",
              "dec_w1_h", "dec_w1_hh", "dec_w2", "dec_w3", "fc_w1", "fc_w2"):
        p[k] = p[k].astype(jnp.bfloat16)
    return p


# ---------------------------------------------------------------- forward pass
def vit_lstm_vision_only_forward(params, current_direct, im_input, pos_input,
                                 h_0, c_0, hh_0, cc_0):
    bsz = im_input.shape[0]

    # Layout glue in plain JAX (cheap, fused by XLA; not worth kernel launches).
    patches = patchify(im_input, PATCH)                                   # (B, 49, 12)
    patches = jnp.pad(patches, ((0, 0), (0, PATCH_ROWS - N_PATCH), (0, 0)))
    patches_flat = patches.reshape(bsz * PATCH_ROWS, PATCH_DIM)           # (B*56, 12)
    rad = current_direct / 180.0 * 3.14159   # literal matches the PyTorch spec
    direction = jnp.concatenate([jnp.sin(rad), jnp.cos(rad)], axis=1)     # (B, 2)

    out_shapes = (
        jax.ShapeDtypeStruct((bsz, H_DIR), jnp.float32),      # h_1
        jax.ShapeDtypeStruct((bsz, H_DIR), jnp.float32),      # c_1
        jax.ShapeDtypeStruct((bsz, H_VIS), jnp.float32),      # hh_1
        jax.ShapeDtypeStruct((bsz, H_VIS), jnp.float32),      # cc_1
        jax.ShapeDtypeStruct((bsz, 4), jnp.float32),          # action logits
        jax.ShapeDtypeStruct((bsz, SALI_OUT, SALI_OUT), jnp.float32),  # saliency
    )
    args_specs = [
        (patches_flat, VMEM_SPEC), (direction, VMEM_SPEC),
        (h_0, VMEM_SPEC), (c_0, VMEM_SPEC), (hh_0, VMEM_SPEC), (cc_0, VMEM_SPEC),
        (params["vision_w"], VMEM_SPEC), (params["vision_b"], VMEM_SPEC),
        (params["hfc_w_h"], VMEM_SPEC), (params["hfc_w_hh"], VMEM_SPEC),
        (params["hfc_b"], VMEM_SPEC),
        (params["att_v_win"], VMEM_SPEC), (params["att_v_wout_a"], VMEM_SPEC),
        (params["att_v_wout_b"], VMEM_SPEC),
        (params["vlstm_w"], ANY_SPEC),       # biggest weight stays in HBM; manual DMA
        (params["vlstm_b"], VMEM_SPEC),
        (params["dir_emb_w"], VMEM_SPEC), (params["dir_emb_b"], VMEM_SPEC),
        (params["dlstm_w"], VMEM_SPEC), (params["dlstm_b"], VMEM_SPEC),
        (params["dec_w1_h"], VMEM_SPEC), (params["dec_w1_hh"], VMEM_SPEC),
        (params["dec_b1"], VMEM_SPEC),
        (params["dec_w2"], VMEM_SPEC), (params["dec_b2"], VMEM_SPEC),
        (params["dec_w3"], VMEM_SPEC), (params["dec_b3"], VMEM_SPEC),
        (params["fc_w1"], VMEM_SPEC), (params["fc_b1"], VMEM_SPEC),
        (params["fc_w2"], VMEM_SPEC), (params["fc_b2"], VMEM_SPEC),
        (params["interp_h"], VMEM_SPEC), (params["interp_w_t"], VMEM_SPEC),
    ]
    inputs = tuple(a for a, _ in args_specs)
    in_specs = [s for _, s in args_specs]

    h_1, c_1, hh_1, cc_1, output, sal = pl.pallas_call(
        _fused_forward_kernel,
        out_shape=out_shapes,
        in_specs=in_specs,
        out_specs=(VMEM_SPEC, VMEM_SPEC, VMEM_SPEC, VMEM_SPEC, VMEM_SPEC, ANY_SPEC),
        scratch_shapes=[
            pltpu.VMEM((4, IM_FEAT + H_VIS, H_VIS), jnp.bfloat16),  # vision-LSTM weights
            pltpu.VMEM((bsz, SALI_OUT, SALI_OUT), jnp.float32),     # saliency staging
            pltpu.SemaphoreType.DMA((2,)),
        ],
        compiler_params=pltpu.CompilerParams(
            vmem_limit_bytes=32 * 1024 * 1024),
    )(*inputs)

    pred_saliency = sal.reshape(bsz, 1, SALI_OUT, SALI_OUT)
    return h_1, c_1, hh_1, cc_1, output, pred_saliency


# ---------------------------------------------------------------- main
if __name__ == "__main__":
    key = jax.random.PRNGKey(0)
    k_params, k_in = jax.random.split(key)
    params = init_params(k_params)

    ki = jax.random.split(k_in, 7)
    current_direct = jax.random.uniform(ki[0], (B, 1), jnp.float32, 0.0, 360.0)
    im_input = jax.random.normal(ki[1], (B, C_IN, IM_HW, IM_HW), jnp.float32)
    pos_input = jax.random.normal(ki[2], (B, 2), jnp.float32)  # unused by forward()
    h_0 = jax.random.normal(ki[3], (B, H_DIR), jnp.float32)
    c_0 = jax.random.normal(ki[4], (B, H_DIR), jnp.float32)
    hh_0 = jax.random.normal(ki[5], (B, H_VIS), jnp.float32)
    cc_0 = jax.random.normal(ki[6], (B, H_VIS), jnp.float32)

    fwd = jax.jit(functools.partial(vit_lstm_vision_only_forward, params))
    h_1, c_1, hh_1, cc_1, output, pred_saliency = fwd(
        current_direct, im_input, pos_input, h_0, c_0, hh_0, cc_0)
    jax.block_until_ready((h_1, c_1, hh_1, cc_1, output, pred_saliency))

    assert h_1.shape == (B, H_DIR) and c_1.shape == (B, H_DIR)
    assert hh_1.shape == (B, H_VIS) and cc_1.shape == (B, H_VIS)
    assert output.shape == (B, 4)
    assert pred_saliency.shape == (B, 1, SALI_OUT, SALI_OUT)
    assert bool(jnp.all(jnp.isfinite(output))) and bool(jnp.all(jnp.isfinite(pred_saliency)))
    assert bool(jnp.all(jnp.isfinite(hh_1))) and bool(jnp.all(jnp.isfinite(cc_1)))
    print("KERNEL_OK")
</pallas_src>

<mosaic_0001>
module attributes {stable_mosaic.version = 11 : i64} {
  func.func @_fused_forward_kernel(%arg0: memref<112x12xf32, #tpu.memory_space<vmem>>, %arg1: memref<2x2xf32, #tpu.memory_space<vmem>>, %arg2: memref<2x192xf32, #tpu.memory_space<vmem>>, %arg3: memref<2x192xf32, #tpu.memory_space<vmem>>, %arg4: memref<2x576xf32, #tpu.memory_space<vmem>>, %arg5: memref<2x576xf32, #tpu.memory_space<vmem>>, %arg6: memref<12x64xbf16, #tpu.memory_space<vmem>>, %arg7: memref<1x64xf32, #tpu.memory_space<vmem>>, %arg8: memref<192x49xbf16, #tpu.memory_space<vmem>>, %arg9: memref<576x49xbf16, #tpu.memory_space<vmem>>, %arg10: memref<1x49xf32, #tpu.memory_space<vmem>>, %arg11: memref<49x49xbf16, #tpu.memory_space<vmem>>, %arg12: memref<49x49xbf16, #tpu.memory_space<vmem>>, %arg13: memref<49x49xbf16, #tpu.memory_space<vmem>>, %arg14: memref<4x625x576xbf16, #tpu.memory_space<any>>, %arg15: memref<4x1x576xf32, #tpu.memory_space<vmem>>, %arg16: memref<2x32xbf16, #tpu.memory_space<vmem>>, %arg17: memref<1x32xf32, #tpu.memory_space<vmem>>, %arg18: memref<4x224x192xbf16, #tpu.memory_space<vmem>>, %arg19: memref<4x1x192xf32, #tpu.memory_space<vmem>>, %arg20: memref<192x256xbf16, #tpu.memory_space<vmem>>, %arg21: memref<576x256xbf16, #tpu.memory_space<vmem>>, %arg22: memref<1x256xf32, #tpu.memory_space<vmem>>, %arg23: memref<256x32xbf16, #tpu.memory_space<vmem>>, %arg24: memref<1x32xf32, #tpu.memory_space<vmem>>, %arg25: memref<32x4xbf16, #tpu.memory_space<vmem>>, %arg26: memref<1x4xf32, #tpu.memory_space<vmem>>, %arg27: memref<49x128xbf16, #tpu.memory_space<vmem>>, %arg28: memref<1x128xf32, #tpu.memory_space<vmem>>, %arg29: memref<128x64xbf16, #tpu.memory_space<vmem>>, %arg30: memref<1x64xf32, #tpu.memory_space<vmem>>, %arg31: memref<224x8xf32, #tpu.memory_space<vmem>>, %arg32: memref<8x224xf32, #tpu.memory_space<vmem>>, %arg33: memref<2x192xf32, #tpu.memory_space<vmem>>, %arg34: memref<2x192xf32, #tpu.memory_space<vmem>>, %arg35: memref<2x576xf32, #tpu.memory_space<vmem>>, %arg36: memref<2x576xf32, #tpu.memory_space<vmem>>, %arg37: memref<2x4xf32, #tpu.memory_space<vmem>>, %arg38: memref<2x224x224xf32, #tpu.memory_space<any>>, %arg39: memref<4x625x576xbf16, #tpu.memory_space<vmem>>, %arg40: memref<2x224x224xf32, #tpu.memory_space<vmem>>, %arg41: memref<2x!tpu.dma_semaphore, #tpu.memory_space<semaphore_mem>>) attributes {dimension_semantics = [], scalar_prefetch = 0 : i64, scratch_operands = 3 : i64, tpu.core_type = #tpu.core_type<tc>} {
    %c0_i32 = arith.constant 0 : i32
    %0 = tpu.memref_slice %arg41[%c0_i32] : memref<2x!tpu.dma_semaphore, #tpu.memory_space<semaphore_mem>> -> memref<1x!tpu.dma_semaphore, #tpu.memory_space<semaphore_mem>>
    %1 = tpu.memref_squeeze %0 : memref<1x!tpu.dma_semaphore, #tpu.memory_space<semaphore_mem>> -> memref<!tpu.dma_semaphore, #tpu.memory_space<semaphore_mem>>
    tpu.enqueue_dma source(%arg14 : memref<4x625x576xbf16, #tpu.memory_space<any>>) target(%arg39 : memref<4x625x576xbf16, #tpu.memory_space<vmem>>) target_semaphore(%1 : memref<!tpu.dma_semaphore, #tpu.memory_space<semaphore_mem>>)
    %c0 = arith.constant 0 : index
    %c0_0 = arith.constant 0 : index
    %2 = vector.load %arg2[%c0, %c0_0] : memref<2x192xf32, #tpu.memory_space<vmem>>, vector<2x192xf32>
    %c0_1 = arith.constant 0 : index
    %c0_2 = arith.constant 0 : index
    %3 = vector.load %arg8[%c0_1, %c0_2] : memref<192x49xbf16, #tpu.memory_space<vmem>>, vector<192x49xbf16>
    %4 = arith.truncf %2 : vector<2x192xf32> to vector<2x192xbf16>
    %cst = arith.constant dense<0.000000e+00> : vector<2x49xf32>
    %5 = tpu.matmul %4, %3, %cst {dimension_numbers = #tpu.dot_dimension_numbers<[1], [0], [0], [1], [0, 0, 1, 1], [], []>} : vector<2x192xbf16>, vector<192x49xbf16>, vector<2x49xf32> -> vector<2x49xf32>
    %c0_3 = arith.constant 0 : index
    %c0_4 = arith.constant 0 : index
    %6 = vector.load %arg4[%c0_3, %c0_4] : memref<2x576xf32, #tpu.memory_space<vmem>>, vector<2x576xf32>
    %c0_5 = arith.constant 0 : index
    %c0_6 = arith.constant 0 : index
    %7 = vector.load %arg9[%c0_5, %c0_6] : memref<576x49xbf16, #tpu.memory_space<vmem>>, vector<576x49xbf16>
    %8 = arith.truncf %6 : vector<2x576xf32> to vector<2x576xbf16>
    %cst_7 = arith.constant dense<0.000000e+00> : vector<2x49xf32>
    %9 = tpu.matmul %8, %7, %cst_7 {dimension_numbers = #tpu.dot_dimension_numbers<[1], [0], [0], [1], [0, 0, 1, 1], [], []>} : vector<2x576xbf16>, vector<576x49xbf16>, vector<2x49xf32> -> vector<2x49xf32>
    %10 = arith.addf %5, %9 : vector<2x49xf32>
    %c0_8 = arith.constant 0 : index
    %c0_9 = arith.constant 0 : index
    %11 = vector.load %arg10[%c0_8, %c0_9] : memref<1x49xf32, #tpu.memory_space<vmem>>, vector<1x49xf32>
    %12 = vector.broadcast %11 : vector<1x49xf32> to vector<2x49xf32>
    %13 = arith.addf %10, %12 : vector<2x49xf32>
    %cst_10 = arith.constant 0.000000e+00 : f32
    %14 = vector.broadcast %cst_10 : f32 to vector<2x49xf32>
    %15 = arith.maximumf %13, %14 : vector<2x49xf32>
    %c0_11 = arith.constant 0 : index
    %c0_12 = arith.constant 0 : index
    %16 = vector.load %arg0[%c0_11, %c0_12] : memref<112x12xf32, #tpu.memory_space<vmem>>, vector<112x12xf32>
    %c0_13 = arith.constant 0 : index
    %c0_14 = arith.constant 0 : index
    %17 = vector.load %arg6[%c0_13, %c0_14] : memref<12x64xbf16, #tpu.memory_space<vmem>>, vector<12x64xbf16>
    %18 = arith.truncf %16 : vector<112x12xf32> to vector<112x12xbf16>
    %cst_15 = arith.constant dense<0.000000e+00> : vector<112x64xf32>
    %19 = tpu.matmul %18, %17, %cst_15 {dimension_numbers = #tpu.dot_dimension_numbers<[1], [0], [0], [1], [0, 0, 1, 1], [], []>} : vector<112x12xbf16>, vector<12x64xbf16>, vector<112x64xf32> -> vector<112x64xf32>
    %c0_16 = arith.constant 0 : index
    %c0_17 = arith.constant 0 : index
    %20 = vector.load %arg7[%c0_16, %c0_17] : memref<1x64xf32, #tpu.memory_space<vmem>>, vector<1x64xf32>
    %21 = vector.broadcast %20 : vector<1x64xf32> to vector<112x64xf32>
    %22 = arith.addf %19, %21 : vector<112x64xf32>
    %c0_18 = arith.constant 0 : index
    %c0_19 = arith.constant 0 : index
    %23 = vector.load %arg11[%c0_18, %c0_19] : memref<49x49xbf16, #tpu.memory_space<vmem>>, vector<49x49xbf16>
    %24 = arith.truncf %15 : vector<2x49xf32> to vector<2x49xbf16>
    %cst_20 = arith.constant dense<0.000000e+00> : vector<2x49xf32>
    %25 = tpu.matmul %24, %23, %cst_20 {dimension_numbers = #tpu.dot_dimension_numbers<[1], [0], [0], [1], [0, 0, 1, 1], [], []>} : vector<2x49xbf16>, vector<49x49xbf16>, vector<2x49xf32> -> vector<2x49xf32>
    %26 = vector.extract_strided_slice %22 {offsets = [0, 0], sizes = [49, 64], strides = [1, 1]} : vector<112x64xf32> to vector<49x64xf32>
    %27 = vector.extract_strided_slice %25 {offsets = [0, 0], sizes = [1, 49], strides = [1, 1]} : vector<2x49xf32> to vector<1x49xf32>
    %cst_21 = arith.constant dense<0.000000e+00> : vector<1x64xf32>
    %28 = tpu.matmul %27, %26, %cst_21 {dimension_numbers = #tpu.dot_dimension_numbers<[1], [0], [0], [1], [0, 0, 1, 1], [], []>} : vector<1x49xf32>, vector<49x64xf32>, vector<1x64xf32> -> vector<1x64xf32>
    %cst_22 = arith.constant dense<0xFF800000> : vector<1xf32>
    %29 = vector.multi_reduction <maximumf>, %28, %cst_22 [1] : vector<1x64xf32> to vector<1xf32>
    %30 = vector.shape_cast %29 : vector<1xf32> to vector<1x1xf32>
    %31 = vector.broadcast %30 : vector<1x1xf32> to vector<1x64xf32>
    %32 = arith.subf %28, %31 : vector<1x64xf32>
    %33 = math.exp %32 : vector<1x64xf32>
    %cst_23 = arith.constant dense<0.000000e+00> : vector<1xf32>
    %34 = vector.multi_reduction <add>, %33, %cst_23 [1] : vector<1x64xf32> to vector<1xf32>
    %35 = vector.shape_cast %34 : vector<1xf32> to vector<1x1xf32>
    %36 = tpu.reciprocal %35 {approx = true} : vector<1x1xf32> -> vector<1x1xf32>
    %37 = vector.broadcast %36 : vector<1x1xf32> to vector<1x64xf32>
    %38 = arith.mulf %33, %37 : vector<1x64xf32>
    %cst_24 = arith.constant dense<0.000000e+00> : vector<1x49xf32>
    %39 = tpu.matmul %38, %26, %cst_24 {dimension_numbers = #tpu.dot_dimension_numbers<[1], [1], [0], [0], [0, 0, 1, 0], [], []>} : vector<1x64xf32>, vector<49x64xf32>, vector<1x49xf32> -> vector<1x49xf32>
    %40 = vector.extract_strided_slice %22 {offsets = [56, 0], sizes = [49, 64], strides = [1, 1]} : vector<112x64xf32> to vector<49x64xf32>
    %41 = vector.extract_strided_slice %25 {offsets = [1, 0], sizes = [1, 49], strides = [1, 1]} : vector<2x49xf32> to vector<1x49xf32>
    %cst_25 = arith.constant dense<0.000000e+00> : vector<1x64xf32>
    %42 = tpu.matmul %41, %40, %cst_25 {dimension_numbers = #tpu.dot_dimension_numbers<[1], [0], [0], [1], [0, 0, 1, 1], [], []>} : vector<1x49xf32>, vector<49x64xf32>, vector<1x64xf32> -> vector<1x64xf32>
    %cst_26 = arith.constant dense<0xFF800000> : vector<1xf32>
    %43 = vector.multi_reduction <maximumf>, %42, %cst_26 [1] : vector<1x64xf32> to vector<1xf32>
    %44 = vector.shape_cast %43 : vector<1xf32> to vector<1x1xf32>
    %45 = vector.broadcast %44 : vector<1x1xf32> to vector<1x64xf32>
    %46 = arith.subf %42, %45 : vector<1x64xf32>
    %47 = math.exp %46 : vector<1x64xf32>
    %cst_27 = arith.constant dense<0.000000e+00> : vector<1xf32>
    %48 = vector.multi_reduction <add>, %47, %cst_27 [1] : vector<1x64xf32> to vector<1xf32>
    %49 = vector.shape_cast %48 : vector<1xf32> to vector<1x1xf32>
    %50 = tpu.reciprocal %49 {approx = true} : vector<1x1xf32> -> vector<1x1xf32>
    %51 = vector.broadcast %50 : vector<1x1xf32> to vector<1x64xf32>
    %52 = arith.mulf %47, %51 : vector<1x64xf32>
    %cst_28 = arith.constant dense<0.000000e+00> : vector<1x49xf32>
    %53 = tpu.matmul %52, %40, %cst_28 {dimension_numbers = #tpu.dot_dimension_numbers<[1], [1], [0], [0], [0, 0, 1, 0], [], []>} : vector<1x64xf32>, vector<49x64xf32>, vector<1x49xf32> -> vector<1x49xf32>
    %54 = tpu.concatenate %39, %53 in 0 : vector<1x49xf32>, vector<1x49xf32> -> vector<2x49xf32>
    %c0_29 = arith.constant 0 : index
    %c0_30 = arith.constant 0 : index
    %55 = vector.load %arg12[%c0_29, %c0_30] : memref<49x49xbf16, #tpu.memory_space<vmem>>, vector<49x49xbf16>
    %56 = arith.truncf %54 : vector<2x49xf32> to vector<2x49xbf16>
    %cst_31 = arith.constant dense<0.000000e+00> : vector<2x49xf32>
    %57 = tpu.matmul %56, %55, %cst_31 {dimension_numbers = #tpu.dot_dimension_numbers<[1], [0], [0], [1], [0, 0, 1, 1], [], []>} : vector<2x49xbf16>, vector<49x49xbf16>, vector<2x49xf32> -> vector<2x49xf32>
    %c0_32 = arith.constant 0 : index
    %c0_33 = arith.constant 0 : index
    %58 = vector.load %arg13[%c0_32, %c0_33] : memref<49x49xbf16, #tpu.memory_space<vmem>>, vector<49x49xbf16>
    %59 = arith.truncf %15 : vector<2x49xf32> to vector<2x49xbf16>
    %cst_34 = arith.constant dense<0.000000e+00> : vector<2x49xf32>
    %60 = tpu.matmul %59, %58, %cst_34 {dimension_numbers = #tpu.dot_dimension_numbers<[1], [0], [0], [1], [0, 0, 1, 1], [], []>} : vector<2x49xbf16>, vector<49x49xbf16>, vector<2x49xf32> -> vector<2x49xf32>
    %61 = arith.addf %57, %60 : vector<2x49xf32>
    %62 = math.tanh %61 : vector<2x49xf32>
    %c0_35 = arith.constant 0 : index
    %c0_36 = arith.constant 0 : index
    %63 = vector.load %arg27[%c0_35, %c0_36] : memref<49x128xbf16, #tpu.memory_space<vmem>>, vector<49x128xbf16>
    %64 = arith.truncf %62 : vector<2x49xf32> to vector<2x49xbf16>
    %cst_37 = arith.constant dense<0.000000e+00> : vector<2x128xf32>
    %65 = tpu.matmul %64, %63, %cst_37 {dimension_numbers = #tpu.dot_dimension_numbers<[1], [0], [0], [1], [0, 0, 1, 1], [], []>} : vector<2x49xbf16>, vector<49x128xbf16>, vector<2x128xf32> -> vector<2x128xf32>
    %c0_38 = arith.constant 0 : index
    %c0_39 = arith.constant 0 : index
    %66 = vector.load %arg28[%c0_38, %c0_39] : memref<1x128xf32, #tpu.memory_space<vmem>>, vector<1x128xf32>
    %67 = vector.broadcast %66 : vector<1x128xf32> to vector<2x128xf32>
    %68 = arith.addf %65, %67 : vector<2x128xf32>
    %cst_40 = arith.constant 0.000000e+00 : f32
    %69 = vector.broadcast %cst_40 : f32 to vector<2x128xf32>
    %70 = arith.maximumf %68, %69 : vector<2x128xf32>
    %c0_41 = arith.constant 0 : index
    %c0_42 = arith.constant 0 : index
    %71 = vector.load %arg29[%c0_41, %c0_42] : memref<128x64xbf16, #tpu.memory_space<vmem>>, vector<128x64xbf16>
    %72 = arith.truncf %70 : vector<2x128xf32> to vector<2x128xbf16>
    %cst_43 = arith.constant dense<0.000000e+00> : vector<2x64xf32>
    %73 = tpu.matmul %72, %71, %cst_43 {dimension_numbers = #tpu.dot_dimension_numbers<[1], [0], [0], [1], [0, 0, 1, 1], [], []>} : vector<2x128xbf16>, vector<128x64xbf16>, vector<2x64xf32> -> vector<2x64xf32>
    %c0_44 = arith.constant 0 : index
    %c0_45 = arith.constant 0 : index
    %74 = vector.load %arg30[%c0_44, %c0_45] : memref<1x64xf32, #tpu.memory_space<vmem>>, vector<1x64xf32>
    %75 = vector.broadcast %74 : vector<1x64xf32> to vector<2x64xf32>
    %76 = arith.addf %73, %75 : vector<2x64xf32>
    %cst_46 = arith.constant 0.000000e+00 : f32
    %77 = vector.broadcast %cst_46 : f32 to vector<2x64xf32>
    %78 = arith.maximumf %76, %77 : vector<2x64xf32>
    %79 = vector.extract_strided_slice %78 {offsets = [0, 0], sizes = [1, 8], strides = [1, 1]} : vector<2x64xf32> to vector<1x8xf32>
    %80 = vector.extract_strided_slice %78 {offsets = [0, 8], sizes = [1, 8], strides = [1, 1]} : vector<2x64xf32> to vector<1x8xf32>
    %81 = vector.extract_strided_slice %78 {offsets = [0, 16], sizes = [1, 8], strides = [1, 1]} : vector<2x64xf32> to vector<1x8xf32>
    %82 = vector.extract_strided_slice %78 {offsets = [0, 24], sizes = [1, 8], strides = [1, 1]} : vector<2x64xf32> to vector<1x8xf32>
    %83 = vector.extract_strided_slice %78 {offsets = [0, 32], sizes = [1, 8], strides = [1, 1]} : vector<2x64xf32> to vector<1x8xf32>
    %84 = vector.extract_strided_slice %78 {offsets = [0, 40], sizes = [1, 8], strides = [1, 1]} : vector<2x64xf32> to vector<1x8xf32>
    %85 = vector.extract_strided_slice %78 {offsets = [0, 48], sizes = [1, 8], strides = [1, 1]} : vector<2x64xf32> to vector<1x8xf32>
    %86 = vector.extract_strided_slice %78 {offsets = [0, 56], sizes = [1, 8], strides = [1, 1]} : vector<2x64xf32> to vector<1x8xf32>
    %87 = vector.extract_strided_slice %78 {offsets = [1, 0], sizes = [1, 8], strides = [1, 1]} : vector<2x64xf32> to vector<1x8xf32>
    %88 = vector.extract_strided_slice %78 {offsets = [1, 8], sizes = [1, 8], strides = [1, 1]} : vector<2x64xf32> to vector<1x8xf32>
    %89 = vector.extract_strided_slice %78 {offsets = [1, 16], sizes = [1, 8], strides = [1, 1]} : vector<2x64xf32> to vector<1x8xf32>
    %90 = vector.extract_strided_slice %78 {offsets = [1, 24], sizes = [1, 8], strides = [1, 1]} : vector<2x64xf32> to vector<1x8xf32>
    %91 = vector.extract_strided_slice %78 {offsets = [1, 32], sizes = [1, 8], strides = [1, 1]} : vector<2x64xf32> to vector<1x8xf32>
    %92 = vector.extract_strided_slice %78 {offsets = [1, 40], sizes = [1, 8], strides = [1, 1]} : vector<2x64xf32> to vector<1x8xf32>
    %93 = vector.extract_strided_slice %78 {offsets = [1, 48], sizes = [1, 8], strides = [1, 1]} : vector<2x64xf32> to vector<1x8xf32>
    %94 = vector.extract_strided_slice %78 {offsets = [1, 56], sizes = [1, 8], strides = [1, 1]} : vector<2x64xf32> to vector<1x8xf32>
    %95 = tpu.concatenate %79, %80, %81, %82, %83, %84, %85, %86, %87, %88, %89, %90, %91, %92, %93, %94 in 0 : vector<1x8xf32>, vector<1x8xf32>, vector<1x8xf32>, vector<1x8xf32>, vector<1x8xf32>, vector<1x8xf32>, vector<1x8xf32>, vector<1x8xf32>, vector<1x8xf32>, vector<1x8xf32>, vector<1x8xf32>, vector<1x8xf32>, vector<1x8xf32>, vector<1x8xf32>, vector<1x8xf32>, vector<1x8xf32> -> vector<16x8xf32>
    %c0_47 = arith.constant 0 : index
    %c0_48 = arith.constant 0 : index
    %96 = vector.load %arg32[%c0_47, %c0_48] : memref<8x224xf32, #tpu.memory_space<vmem>>, vector<8x224xf32>
    %cst_49 = arith.constant dense<0.000000e+00> : vector<16x224xf32>
    %97 = tpu.matmul %95, %96, %cst_49 {dimension_numbers = #tpu.dot_dimension_numbers<[1], [0], [0], [1], [0, 0, 1, 1], [], []>} : vector<16x8xf32>, vector<8x224xf32>, vector<16x224xf32> -> vector<16x224xf32>
    %c0_50 = arith.constant 0 : index
    %c0_51 = arith.constant 0 : index
    %98 = vector.load %arg31[%c0_50, %c0_51] : memref<224x8xf32, #tpu.memory_space<vmem>>, vector<224x8xf32>
    %99 = vector.extract_strided_slice %97 {offsets = [0, 0], sizes = [8, 224], strides = [1, 1]} : vector<16x224xf32> to vector<8x224xf32>
    %cst_52 = arith.constant dense<0.000000e+00> : vector<224x224xf32>
    %100 = tpu.matmul %98, %99, %cst_52 {dimension_numbers = #tpu.dot_dimension_numbers<[1], [0], [0], [1], [0, 0, 1, 1], [], []>} : vector<224x8xf32>, vector<8x224xf32>, vector<224x224xf32> -> vector<224x224xf32>
    %c0_53 = arith.constant 0 : index
    %c0_54 = arith.constant 0 : index
    %c0_55 = arith.constant 0 : index
    %101 = vector.load %arg40[%c0_53, %c0_54, %c0_55] : memref<2x224x224xf32, #tpu.memory_space<vmem>>, vector<1x224x224xf32>
    %102 = vector.shape_cast %101 : vector<1x224x224xf32> to vector<224x224xf32>
    %103 = vector.shape_cast %100 : vector<224x224xf32> to vector<1x224x224xf32>
    tpu.vector_store %arg40[%c0_53, %c0_54, %c0_55], %103 {strides = array<i32>} : memref<2x224x224xf32, #tpu.memory_space<vmem>>, vector<1x224x224xf32>,
    %104 = vector.extract_strided_slice %97 {offsets = [8, 0], sizes = [8, 224], strides = [1, 1]} : vector<16x224xf32> to vector<8x224xf32>
    %cst_56 = arith.constant dense<0.000000e+00> : vector<224x224xf32>
    %105 = tpu.matmul %98, %104, %cst_56 {dimension_numbers = #tpu.dot_dimension_numbers<[1], [0], [0], [1], [0, 0, 1, 1], [], []>} : vector<224x8xf32>, vector<8x224xf32>, vector<224x224xf32> -> vector<224x224xf32>
    %c1 = arith.constant 1 : index
    %c0_57 = arith.constant 0 : index
    %c0_58 = arith.constant 0 : index
    %106 = vector.load %arg40[%c1, %c0_57, %c0_58] : memref<2x224x224xf32, #tpu.memory_space<vmem>>, vector<1x224x224xf32>
    %107 = vector.shape_cast %106 : vector<1x224x224xf32> to vector<224x224xf32>
    %108 = vector.shape_cast %105 : vector<224x224xf32> to vector<1x224x224xf32>
    tpu.vector_store %arg40[%c1, %c0_57, %c0_58], %108 {strides = array<i32>} : memref<2x224x224xf32, #tpu.memory_space<vmem>>, vector<1x224x224xf32>,
    %c1_i32 = arith.constant 1 : i32
    %109 = tpu.memref_slice %arg41[%c1_i32] : memref<2x!tpu.dma_semaphore, #tpu.memory_space<semaphore_mem>> -> memref<1x!tpu.dma_semaphore, #tpu.memory_space<semaphore_mem>>
    %110 = tpu.memref_squeeze %109 : memref<1x!tpu.dma_semaphore, #tpu.memory_space<semaphore_mem>> -> memref<!tpu.dma_semaphore, #tpu.memory_space<semaphore_mem>>
    tpu.enqueue_dma source(%arg40 : memref<2x224x224xf32, #tpu.memory_space<vmem>>) target(%arg38 : memref<2x224x224xf32, #tpu.memory_space<any>>) target_semaphore(%110 : memref<!tpu.dma_semaphore, #tpu.memory_space<semaphore_mem>>)
    %c0_59 = arith.constant 0 : index
    %c0_60 = arith.constant 0 : index
    %111 = vector.load %arg1[%c0_59, %c0_60] : memref<2x2xf32, #tpu.memory_space<vmem>>, vector<2x2xf32>
    %c0_61 = arith.constant 0 : index
    %c0_62 = arith.constant 0 : index
    %112 = vector.load %arg16[%c0_61, %c0_62] : memref<2x32xbf16, #tpu.memory_space<vmem>>, vector<2x32xbf16>
    %113 = arith.truncf %111 : vector<2x2xf32> to vector<2x2xbf16>
    %cst_63 = arith.constant dense<0.000000e+00> : vector<2x32xf32>
    %114 = tpu.matmul %113, %112, %cst_63 {dimension_numbers = #tpu.dot_dimension_numbers<[1], [0], [0], [1], [0, 0, 1, 1], [], []>} : vector<2x2xbf16>, vector<2x32xbf16>, vector<2x32xf32> -> vector<2x32xf32>
    %c0_64 = arith.constant 0 : index
    %c0_65 = arith.constant 0 : index
    %115 = vector.load %arg17[%c0_64, %c0_65] : memref<1x32xf32, #tpu.memory_space<vmem>>, vector<1x32xf32>
    %116 = vector.broadcast %115 : vector<1x32xf32> to vector<2x32xf32>
    %117 = arith.addf %114, %116 : vector<2x32xf32>
    %c0_66 = arith.constant 0 : index
    %c0_67 = arith.constant 0 : index
    %118 = vector.load %arg2[%c0_66, %c0_67] : memref<2x192xf32, #tpu.memory_space<vmem>>, vector<2x192xf32>
    %c0_68 = arith.constant 0 : index
    %c0_69 = arith.constant 0 : index
    %119 = vector.load %arg3[%c0_68, %c0_69] : memref<2x192xf32, #tpu.memory_space<vmem>>, vector<2x192xf32>
    %120 = tpu.concatenate %117, %118 in 1 : vector<2x32xf32>, vector<2x192xf32> -> vector<2x224xf32>
    %121 = arith.truncf %120 : vector<2x224xf32> to vector<2x224xbf16>
    %c0_70 = arith.constant 0 : index
    %c0_71 = arith.constant 0 : index
    %c0_72 = arith.constant 0 : index
    %122 = vector.load %arg18[%c0_70, %c0_71, %c0_72] : memref<4x224x192xbf16, #tpu.memory_space<vmem>>, vector<1x224x192xbf16>
    %123 = vector.shape_cast %122 : vector<1x224x192xbf16> to vector<224x192xbf16>
    %cst_73 = arith.constant dense<0.000000e+00> : vector<2x192xf32>
    %124 = tpu.matmul %121, %123, %cst_73 {dimension_numbers = #tpu.dot_dimension_numbers<[1], [0], [0], [1], [0, 0, 1, 1], [], []>} : vector<2x224xbf16>, vector<224x192xbf16>, vector<2x192xf32> -> vector<2x192xf32>
    %c0_74 = arith.constant 0 : index
    %c0_75 = arith.constant 0 : index
    %c0_76 = arith.constant 0 : index
    %125 = vector.load %arg19[%c0_74, %c0_75, %c0_76] : memref<4x1x192xf32, #tpu.memory_space<vmem>>, vector<1x1x192xf32>
    %126 = vector.shape_cast %125 : vector<1x1x192xf32> to vector<1x192xf32>
    %127 = vector.broadcast %126 : vector<1x192xf32> to vector<2x192xf32>
    %128 = arith.addf %124, %127 : vector<2x192xf32>
    %129 = arith.negf %128 : vector<2x192xf32>
    %130 = math.exp %129 : vector<2x192xf32>
    %cst_77 = arith.constant 1.000000e+00 : f32
    %131 = vector.broadcast %cst_77 : f32 to vector<2x192xf32>
    %132 = arith.addf %131, %130 : vector<2x192xf32>
    %133 = arith.divf %131, %132 : vector<2x192xf32>
    %c1_78 = arith.constant 1 : index
    %c0_79 = arith.constant 0 : index
    %c0_80 = arith.constant 0 : index
    %134 = vector.load %arg18[%c1_78, %c0_79, %c0_80] : memref<4x224x192xbf16, #tpu.memory_space<vmem>>, vector<1x224x192xbf16>
    %135 = vector.shape_cast %134 : vector<1x224x192xbf16> to vector<224x192xbf16>
    %cst_81 = arith.constant dense<0.000000e+00> : vector<2x192xf32>
    %136 = tpu.matmul %121, %135, %cst_81 {dimension_numbers = #tpu.dot_dimension_numbers<[1], [0], [0], [1], [0, 0, 1, 1], [], []>} : vector<2x224xbf16>, vector<224x192xbf16>, vector<2x192xf32> -> vector<2x192xf32>
    %c1_82 = arith.constant 1 : index
    %c0_83 = arith.constant 0 : index
    %c0_84 = arith.constant 0 : index
    %137 = vector.load %arg19[%c1_82, %c0_83, %c0_84] : memref<4x1x192xf32, #tpu.memory_space<vmem>>, vector<1x1x192xf32>
    %138 = vector.shape_cast %137 : vector<1x1x192xf32> to vector<1x192xf32>
    %139 = vector.broadcast %138 : vector<1x192xf32> to vector<2x192xf32>
    %140 = arith.addf %136, %139 : vector<2x192xf32>
    %141 = arith.negf %140 : vector<2x192xf32>
    %142 = math.exp %141 : vector<2x192xf32>
    %cst_85 = arith.constant 1.000000e+00 : f32
    %143 = vector.broadcast %cst_85 : f32 to vector<2x192xf32>
    %144 = arith.addf %143, %142 : vector<2x192xf32>
    %145 = arith.divf %143, %144 : vector<2x192xf32>
    %c2 = arith.constant 2 : index
    %c0_86 = arith.constant 0 : index
    %c0_87 = arith.constant 0 : index
    %146 = vector.load %arg18[%c2, %c0_86, %c0_87] : memref<4x224x192xbf16, #tpu.memory_space<vmem>>, vector<1x224x192xbf16>
    %147 = vector.shape_cast %146 : vector<1x224x192xbf16> to vector<224x192xbf16>
    %cst_88 = arith.constant dense<0.000000e+00> : vector<2x192xf32>
    %148 = tpu.matmul %121, %147, %cst_88 {dimension_numbers = #tpu.dot_dimension_numbers<[1], [0], [0], [1], [0, 0, 1, 1], [], []>} : vector<2x224xbf16>, vector<224x192xbf16>, vector<2x192xf32> -> vector<2x192xf32>
    %c2_89 = arith.constant 2 : index
    %c0_90 = arith.constant 0 : index
    %c0_91 = arith.constant 0 : index
    %149 = vector.load %arg19[%c2_89, %c0_90, %c0_91] : memref<4x1x192xf32, #tpu.memory_space<vmem>>, vector<1x1x192xf32>
    %150 = vector.shape_cast %149 : vector<1x1x192xf32> to vector<1x192xf32>
    %151 = vector.broadcast %150 : vector<1x192xf32> to vector<2x192xf32>
    %152 = arith.addf %148, %151 : vector<2x192xf32>
    %153 = math.tanh %152 : vector<2x192xf32>
    %c3 = arith.constant 3 : index
    %c0_92 = arith.constant 0 : index
    %c0_93 = arith.constant 0 : index
    %154 = vector.load %arg18[%c3, %c0_92, %c0_93] : memref<4x224x192xbf16, #tpu.memory_space<vmem>>, vector<1x224x192xbf16>
    %155 = vector.shape_cast %154 : vector<1x224x192xbf16> to vector<224x192xbf16>
    %cst_94 = arith.constant dense<0.000000e+00> : vector<2x192xf32>
    %156 = tpu.matmul %121, %155, %cst_94 {dimension_numbers = #tpu.dot_dimension_numbers<[1], [0], [0], [1], [0, 0, 1, 1], [], []>} : vector<2x224xbf16>, vector<224x192xbf16>, vector<2x192xf32> -> vector<2x192xf32>
    %c3_95 = arith.constant 3 : index
    %c0_96 = arith.constant 0 : index
    %c0_97 = arith.constant 0 : index
    %157 = vector.load %arg19[%c3_95, %c0_96, %c0_97] : memref<4x1x192xf32, #tpu.memory_space<vmem>>, vector<1x1x192xf32>
    %158 = vector.shape_cast %157 : vector<1x1x192xf32> to vector<1x192xf32>
    %159 = vector.broadcast %158 : vector<1x192xf32> to vector<2x192xf32>
    %160 = arith.addf %156, %159 : vector<2x192xf32>
    %161 = arith.negf %160 : vector<2x192xf32>
    %162 = math.exp %161 : vector<2x192xf32>
    %cst_98 = arith.constant 1.000000e+00 : f32
    %163 = vector.broadcast %cst_98 : f32 to vector<2x192xf32>
    %164 = arith.addf %163, %162 : vector<2x192xf32>
    %165 = arith.divf %163, %164 : vector<2x192xf32>
    %166 = arith.mulf %145, %119 : vector<2x192xf32>
    %167 = arith.mulf %133, %153 : vector<2x192xf32>
    %168 = arith.addf %166, %167 : vector<2x192xf32>
    %169 = math.tanh %168 : vector<2x192xf32>
    %170 = arith.mulf %165, %169 : vector<2x192xf32>
    %c0_99 = arith.constant 0 : index
    %c0_100 = arith.constant 0 : index
    %171 = vector.load %arg33[%c0_99, %c0_100] : memref<2x192xf32, #tpu.memory_space<vmem>>, vector<2x192xf32>
    tpu.vector_store %arg33[%c0_99, %c0_100], %170 {strides = array<i32>} : memref<2x192xf32, #tpu.memory_space<vmem>>, vector<2x192xf32>,
    %c0_101 = arith.constant 0 : index
    %c0_102 = arith.constant 0 : index
    %172 = vector.load %arg34[%c0_101, %c0_102] : memref<2x192xf32, #tpu.memory_space<vmem>>, vector<2x192xf32>
    tpu.vector_store %arg34[%c0_101, %c0_102], %168 {strides = array<i32>} : memref<2x192xf32, #tpu.memory_space<vmem>>, vector<2x192xf32>,
    %c0_i32_103 = arith.constant 0 : i32
    %173 = tpu.memref_slice %arg41[%c0_i32_103] : memref<2x!tpu.dma_semaphore, #tpu.memory_space<semaphore_mem>> -> memref<1x!tpu.dma_semaphore, #tpu.memory_space<semaphore_mem>>
    %174 = tpu.memref_squeeze %173 : memref<1x!tpu.dma_semaphore, #tpu.memory_space<semaphore_mem>> -> memref<!tpu.dma_semaphore, #tpu.memory_space<semaphore_mem>>
    tpu.wait_dma2 semaphore(%174 : memref<!tpu.dma_semaphore, #tpu.memory_space<semaphore_mem>>) src(%arg14 : memref<4x625x576xbf16, #tpu.memory_space<any>>) dst(%arg39 : memref<4x625x576xbf16, #tpu.memory_space<vmem>>)
    %c0_104 = arith.constant 0 : index
    %c0_105 = arith.constant 0 : index
    %175 = vector.load %arg4[%c0_104, %c0_105] : memref<2x576xf32, #tpu.memory_space<vmem>>, vector<2x576xf32>
    %c0_106 = arith.constant 0 : index
    %c0_107 = arith.constant 0 : index
    %176 = vector.load %arg5[%c0_106, %c0_107] : memref<2x576xf32, #tpu.memory_space<vmem>>, vector<2x576xf32>
    %177 = tpu.concatenate %62, %175 in 1 : vector<2x49xf32>, vector<2x576xf32> -> vector<2x625xf32>
    %178 = arith.truncf %177 : vector<2x625xf32> to vector<2x625xbf16>
    %c0_108 = arith.constant 0 : index
    %c0_109 = arith.constant 0 : index
    %c0_110 = arith.constant 0 : index
    %179 = vector.load %arg39[%c0_108, %c0_109, %c0_110] : memref<4x625x576xbf16, #tpu.memory_space<vmem>>, vector<1x625x576xbf16>
    %180 = vector.shape_cast %179 : vector<1x625x576xbf16> to vector<625x576xbf16>
    %cst_111 = arith.constant dense<0.000000e+00> : vector<2x576xf32>
    %181 = tpu.matmul %178, %180, %cst_111 {dimension_numbers = #tpu.dot_dimension_numbers<[1], [0], [0], [1], [0, 0, 1, 1], [], []>} : vector<2x625xbf16>, vector<625x576xbf16>, vector<2x576xf32> -> vector<2x576xf32>
    %c0_112 = arith.constant 0 : index
    %c0_113 = arith.constant 0 : index
    %c0_114 = arith.constant 0 : index
    %182 = vector.load %arg15[%c0_112, %c0_113, %c0_114] : memref<4x1x576xf32, #tpu.memory_space<vmem>>, vector<1x1x576xf32>
    %183 = vector.shape_cast %182 : vector<1x1x576xf32> to vector<1x576xf32>
    %184 = vector.broadcast %183 : vector<1x576xf32> to vector<2x576xf32>
    %185 = arith.addf %181, %184 : vector<2x576xf32>
    %186 = arith.negf %185 : vector<2x576xf32>
    %187 = math.exp %186 : vector<2x576xf32>
    %cst_115 = arith.constant 1.000000e+00 : f32
    %188 = vector.broadcast %cst_115 : f32 to vector<2x576xf32>
    %189 = arith.addf %188, %187 : vector<2x576xf32>
    %190 = arith.divf %188, %189 : vector<2x576xf32>
    %c1_116 = arith.constant 1 : index
    %c0_117 = arith.constant 0 : index
    %c0_118 = arith.constant 0 : index
    %191 = vector.load %arg39[%c1_116, %c0_117, %c0_118] : memref<4x625x576xbf16, #tpu.memory_space<vmem>>, vector<1x625x576xbf16>
    %192 = vector.shape_cast %191 : vector<1x625x576xbf16> to vector<625x576xbf16>
    %cst_119 = arith.constant dense<0.000000e+00> : vector<2x576xf32>
    %193 = tpu.matmul %178, %192, %cst_119 {dimension_numbers = #tpu.dot_dimension_numbers<[1], [0], [0], [1], [0, 0, 1, 1], [], []>} : vector<2x625xbf16>, vector<625x576xbf16>, vector<2x576xf32> -> vector<2x576xf32>
    %c1_120 = arith.constant 1 : index
    %c0_121 = arith.constant 0 : index
    %c0_122 = arith.constant 0 : index
    %194 = vector.load %arg15[%c1_120, %c0_121, %c0_122] : memref<4x1x576xf32, #tpu.memory_space<vmem>>, vector<1x1x576xf32>
    %195 = vector.shape_cast %194 : vector<1x1x576xf32> to vector<1x576xf32>
    %196 = vector.broadcast %195 : vector<1x576xf32> to vector<2x576xf32>
    %197 = arith.addf %193, %196 : vector<2x576xf32>
    %198 = arith.negf %197 : vector<2x576xf32>
    %199 = math.exp %198 : vector<2x576xf32>
    %cst_123 = arith.constant 1.000000e+00 : f32
    %200 = vector.broadcast %cst_123 : f32 to vector<2x576xf32>
    %201 = arith.addf %200, %199 : vector<2x576xf32>
    %202 = arith.divf %200, %201 : vector<2x576xf32>
    %c2_124 = arith.constant 2 : index
    %c0_125 = arith.constant 0 : index
    %c0_126 = arith.constant 0 : index
    %203 = vector.load %arg39[%c2_124, %c0_125, %c0_126] : memref<4x625x576xbf16, #tpu.memory_space<vmem>>, vector<1x625x576xbf16>
    %204 = vector.shape_cast %203 : vector<1x625x576xbf16> to vector<625x576xbf16>
    %cst_127 = arith.constant dense<0.000000e+00> : vector<2x576xf32>
    %205 = tpu.matmul %178, %204, %cst_127 {dimension_numbers = #tpu.dot_dimension_numbers<[1], [0], [0], [1], [0, 0, 1, 1], [], []>} : vector<2x625xbf16>, vector<625x576xbf16>, vector<2x576xf32> -> vector<2x576xf32>
    %c2_128 = arith.constant 2 : index
    %c0_129 = arith.constant 0 : index
    %c0_130 = arith.constant 0 : index
    %206 = vector.load %arg15[%c2_128, %c0_129, %c0_130] : memref<4x1x576xf32, #tpu.memory_space<vmem>>, vector<1x1x576xf32>
    %207 = vector.shape_cast %206 : vector<1x1x576xf32> to vector<1x576xf32>
    %208 = vector.broadcast %207 : vector<1x576xf32> to vector<2x576xf32>
    %209 = arith.addf %205, %208 : vector<2x576xf32>
    %210 = math.tanh %209 : vector<2x576xf32>
    %c3_131 = arith.constant 3 : index
    %c0_132 = arith.constant 0 : index
    %c0_133 = arith.constant 0 : index
    %211 = vector.load %arg39[%c3_131, %c0_132, %c0_133] : memref<4x625x576xbf16, #tpu.memory_space<vmem>>, vector<1x625x576xbf16>
    %212 = vector.shape_cast %211 : vector<1x625x576xbf16> to vector<625x576xbf16>
    %cst_134 = arith.constant dense<0.000000e+00> : vector<2x576xf32>
    %213 = tpu.matmul %178, %212, %cst_134 {dimension_numbers = #tpu.dot_dimension_numbers<[1], [0], [0], [1], [0, 0, 1, 1], [], []>} : vector<2x625xbf16>, vector<625x576xbf16>, vector<2x576xf32> -> vector<2x576xf32>
    %c3_135 = arith.constant 3 : index
    %c0_136 = arith.constant 0 : index
    %c0_137 = arith.constant 0 : index
    %214 = vector.load %arg15[%c3_135, %c0_136, %c0_137] : memref<4x1x576xf32, #tpu.memory_space<vmem>>, vector<1x1x576xf32>
    %215 = vector.shape_cast %214 : vector<1x1x576xf32> to vector<1x576xf32>
    %216 = vector.broadcast %215 : vector<1x576xf32> to vector<2x576xf32>
    %217 = arith.addf %213, %216 : vector<2x576xf32>
    %218 = arith.negf %217 : vector<2x576xf32>
    %219 = math.exp %218 : vector<2x576xf32>
    %cst_138 = arith.constant 1.000000e+00 : f32
    %220 = vector.broadcast %cst_138 : f32 to vector<2x576xf32>
    %221 = arith.addf %220, %219 : vector<2x576xf32>
    %222 = arith.divf %220, %221 : vector<2x576xf32>
    %223 = arith.mulf %202, %176 : vector<2x576xf32>
    %224 = arith.mulf %190, %210 : vector<2x576xf32>
    %225 = arith.addf %223, %224 : vector<2x576xf32>
    %226 = math.tanh %225 : vector<2x576xf32>
    %227 = arith.mulf %222, %226 : vector<2x576xf32>
    %c0_139 = arith.constant 0 : index
    %c0_140 = arith.constant 0 : index
    %228 = vector.load %arg35[%c0_139, %c0_140] : memref<2x576xf32, #tpu.memory_space<vmem>>, vector<2x576xf32>
    tpu.vector_store %arg35[%c0_139, %c0_140], %227 {strides = array<i32>} : memref<2x576xf32, #tpu.memory_space<vmem>>, vector<2x576xf32>,
    %c0_141 = arith.constant 0 : index
    %c0_142 = arith.constant 0 : index
    %229 = vector.load %arg36[%c0_141, %c0_142] : memref<2x576xf32, #tpu.memory_space<vmem>>, vector<2x576xf32>
    tpu.vector_store %arg36[%c0_141, %c0_142], %225 {strides = array<i32>} : memref<2x576xf32, #tpu.memory_space<vmem>>, vector<2x576xf32>,
    %c0_143 = arith.constant 0 : index
    %c0_144 = arith.constant 0 : index
    %230 = vector.load %arg20[%c0_143, %c0_144] : memref<192x256xbf16, #tpu.memory_space<vmem>>, vector<192x256xbf16>
    %231 = arith.truncf %170 : vector<2x192xf32> to vector<2x192xbf16>
    %cst_145 = arith.constant dense<0.000000e+00> : vector<2x256xf32>
    %232 = tpu.matmul %231, %230, %cst_145 {dimension_numbers = #tpu.dot_dimension_numbers<[1], [0], [0], [1], [0, 0, 1, 1], [], []>} : vector<2x192xbf16>, vector<192x256xbf16>, vector<2x256xf32> -> vector<2x256xf32>
    %c0_146 = arith.constant 0 : index
    %c0_147 = arith.constant 0 : index
    %233 = vector.load %arg21[%c0_146, %c0_147] : memref<576x256xbf16, #tpu.memory_space<vmem>>, vector<576x256xbf16>
    %234 = arith.truncf %227 : vector<2x576xf32> to vector<2x576xbf16>
    %cst_148 = arith.constant dense<0.000000e+00> : vector<2x256xf32>
    %235 = tpu.matmul %234, %233, %cst_148 {dimension_numbers = #tpu.dot_dimension_numbers<[1], [0], [0], [1], [0, 0, 1, 1], [], []>} : vector<2x576xbf16>, vector<576x256xbf16>, vector<2x256xf32> -> vector<2x256xf32>
    %236 = arith.addf %232, %235 : vector<2x256xf32>
    %c0_149 = arith.constant 0 : index
    %c0_150 = arith.constant 0 : index
    %237 = vector.load %arg22[%c0_149, %c0_150] : memref<1x256xf32, #tpu.memory_space<vmem>>, vector<1x256xf32>
    %238 = vector.broadcast %237 : vector<1x256xf32> to vector<2x256xf32>
    %239 = arith.addf %236, %238 : vector<2x256xf32>
    %cst_151 = arith.constant 0.000000e+00 : f32
    %240 = vector.broadcast %cst_151 : f32 to vector<2x256xf32>
    %241 = arith.maximumf %239, %240 : vector<2x256xf32>
    %c0_152 = arith.constant 0 : index
    %c0_153 = arith.constant 0 : index
    %242 = vector.load %arg23[%c0_152, %c0_153] : memref<256x32xbf16, #tpu.memory_space<vmem>>, vector<256x32xbf16>
    %243 = arith.truncf %241 : vector<2x256xf32> to vector<2x256xbf16>
    %cst_154 = arith.constant dense<0.000000e+00> : vector<2x32xf32>
    %244 = tpu.matmul %243, %242, %cst_154 {dimension_numbers = #tpu.dot_dimension_numbers<[1], [0], [0], [1], [0, 0, 1, 1], [], []>} : vector<2x256xbf16>, vector<256x32xbf16>, vector<2x32xf32> -> vector<2x32xf32>
    %c0_155 = arith.constant 0 : index
    %c0_156 = arith.constant 0 : index
    %245 = vector.load %arg24[%c0_155, %c0_156] : memref<1x32xf32, #tpu.memory_space<vmem>>, vector<1x32xf32>
    %246 = vector.broadcast %245 : vector<1x32xf32> to vector<2x32xf32>
    %247 = arith.addf %244, %246 : vector<2x32xf32>
    %cst_157 = arith.constant 0.000000e+00 : f32
    %248 = vector.broadcast %cst_157 : f32 to vector<2x32xf32>
    %249 = arith.maximumf %247, %248 : vector<2x32xf32>
    %c0_158 = arith.constant 0 : index
    %c0_159 = arith.constant 0 : index
    %250 = vector.load %arg25[%c0_158, %c0_159] : memref<32x4xbf16, #tpu.memory_space<vmem>>, vector<32x4xbf16>
    %251 = arith.truncf %249 : vector<2x32xf32> to vector<2x32xbf16>
    %cst_160 = arith.constant dense<0.000000e+00> : vector<2x4xf32>
    %252 = tpu.matmul %251, %250, %cst_160 {dimension_numbers = #tpu.dot_dimension_numbers<[1], [0], [0], [1], [0, 0, 1, 1], [], []>} : vector<2x32xbf16>, vector<32x4xbf16>, vector<2x4xf32> -> vector<2x4xf32>
    %c0_161 = arith.constant 0 : index
    %c0_162 = arith.constant 0 : index
    %253 = vector.load %arg26[%c0_161, %c0_162] : memref<1x4xf32, #tpu.memory_space<vmem>>, vector<1x4xf32>
    %254 = vector.broadcast %253 : vector<1x4xf32> to vector<2x4xf32>
    %255 = arith.addf %252, %254 : vector<2x4xf32>
    %c0_163 = arith.constant 0 : index
    %c0_164 = arith.constant 0 : index
    %256 = vector.load %arg37[%c0_163, %c0_164] : memref<2x4xf32, #tpu.memory_space<vmem>>, vector<2x4xf32>
    tpu.vector_store %arg37[%c0_163, %c0_164], %255 {strides = array<i32>} : memref<2x4xf32, #tpu.memory_space<vmem>>, vector<2x4xf32>,
    %c1_i32_165 = arith.constant 1 : i32
    %257 = tpu.memref_slice %arg41[%c1_i32_165] : memref<2x!tpu.dma_semaphore, #tpu.memory_space<semaphore_mem>> -> memref<1x!tpu.dma_semaphore, #tpu.memory_space<semaphore_mem>>
    %258 = tpu.memref_squeeze %257 : memref<1x!tpu.dma_semaphore, #tpu.memory_space<semaphore_mem>> -> memref<!tpu.dma_semaphore, #tpu.memory_space<semaphore_mem>>
    tpu.wait_dma2 semaphore(%258 : memref<!tpu.dma_semaphore, #tpu.memory_space<semaphore_mem>>) src(%arg40 : memref<2x224x224xf32, #tpu.memory_space<vmem>>) dst(%arg38 : memref<2x224x224xf32, #tpu.memory_space<any>>)
    return
  }
}

</mosaic_0001>

<bundles_post_ra>
// kernel: vit_lstm_vision_only_forward.1
= control target key start
LH: loop header
LB: loop body
LE: loop exit
PB: predicated region body
PF: predicated region fallthrough
CT: control target
= control target key end

     0   :  { %s16547_s6 = smov 1   ;;  %s16548_s10 = smov 2   ;;  %s17805_s0 = inlined_call_operand.smem [shape: u32[39], index: -1, kind: input, shape index: {}] }
   0x1   :  { %s16649_s5 = sld [smem:[%s17805_s0]]   ;;  %s16549_s14 = smov 3  }
   0x2   :  { %s16654_s9 = sld [smem:[%s17805_s0 + %s16547_s6]]   ;;  %s16550_s18 = smov 4  }
   0x3   :  { %s16659_s13 = sld [smem:[%s17805_s0 + %s16548_s10]]   ;;  %s16551_s22 = smov 5  }
   0x4   :  { %s16664_s17 = sld [smem:[%s17805_s0 + %s16549_s14]]   ;;  %s16552_s26 = smov 6  }
   0x5   :  { %s16669_s21 = sld [smem:[%s17805_s0 + %s16550_s18]]   ;;  %s16553_s30 = smov 7  }
   0x6   :  { %s16674_s25 = sld [smem:[%s17805_s0 + %s16551_s22]]   ;;  %s16554_s4 = smov 8  }
   0x7   :  { %17807 = sst [smem:[#allocation86_spill]] %s16649_s5  ;;  %s16555_s10 = smov 9  }
   0x8   :  { %17808 = sst [smem:[#allocation87_spill]] %s16654_s9  ;;  %s16556_s15 = smov 10  }
   0x9   :  { %17809 = sst [smem:[#allocation88_spill]] %s16659_s13  ;;  %s16557_s20 = smov 11  }
   0xa   :  { %s16679_s29 = sld [smem:[%s17805_s0 + %s16552_s26]]   ;;  %s16558_s26 = smov 12  }
   0xb   :  { %17810 = sst [smem:[#allocation89_spill]] %s16669_s21  ;;  %s16559_s1 = smov 13  }
   0xc   :  { %s16684_s3 = sld [smem:[%s17805_s0 + %s16553_s30]]   ;;  %s16560_s7 = smov 14  }
   0xd   :  { %s16689_s8 = sld [smem:[%s17805_s0 + %s16554_s4]]   ;;  %s16562_s22 = smov 16  }
   0xe   :  { %s16694_s14 = sld [smem:[%s17805_s0 + %s16555_s10]]   ;;  %s16563_s28 = smov 17  }
   0xf   :  { %s16699_s19 = sld [smem:[%s17805_s0 + %s16556_s15]]   ;;  %s16561_s15 = smov 15  }
  0x10   :  { %17811 = sst [smem:[#allocation90_spill]] %s16679_s29 }
  0x11   :  { %s16704_s24 = sld [smem:[%s17805_s0 + %s16557_s20]]  }
  0x12   :  { %s16709_s30 = sld [smem:[%s17805_s0 + %s16558_s26]]  }
  0x13   :  { %17812 = sst [smem:[#allocation91_spill]] %s16689_s8 }
  0x14   :  { %s16714_s6 = sld [smem:[%s17805_s0 + %s16559_s1]]  }
  0x15   :  { %17813 = sst [smem:[#allocation92_spill]] %s16699_s19 }
  0x16   :  { %s16719_s12 = sld [smem:[%s17805_s0 + %s16560_s7]]   ;;  %s16564_s7 = smov 18  }
  0x17   :  { %s16724_s20 = sld [smem:[%s17805_s0 + %s16561_s15]]   ;;  %s16565_s15 = smov 19  }
  0x18   :  { %17814 = sst [smem:[#allocation93_spill]] %s16709_s30 }
  0x19   :  { %s16729_s27 = sld [smem:[%s17805_s0 + %s16562_s22]]   ;;  %s16566_s22 = smov 20  }
  0x1a   :  { %s16734_s4 = sld [smem:[%s17805_s0 + %s16563_s28]]   ;;  %s16567_s28 = smov 21  }
  0x1b   :  { %s16744_s9 = sld [smem:[%s17805_s0 + %s16565_s15]]   ;;  %s16569_s15 = smov 23  }
  0x1c   :  { %17815 = sst [smem:[#allocation94_spill]] %s16719_s12 }
  0x1d   :  { %17816 = sst [smem:[#allocation95_spill]] %s16724_s20 }
  0x1e   :  { %s16739_s12 = sld [smem:[%s17805_s0 + %s16564_s7]]   ;;  %s16568_s7 = smov 22  }
  0x1f   :  { %s16749_s5 = sld [smem:[%s17805_s0 + %s16566_s22]]   ;;  %s16570_s22 = smov 24  }
  0x20   :  { %17817 = sst [smem:[#allocation96_spill]] %s16734_s4 }
  0x21   :  { %17818 = sst [smem:[#allocation97_spill]] %s16744_s9 }
  0x22   :  { %s16754_s4 = sld [smem:[%s17805_s0 + %s16567_s28]]   ;;  %s16571_s28 = smov 25  }
  0x23   :  { %s16759_s20 = sld [smem:[%s17805_s0 + %s16568_s7]]   ;;  %s16572_s7 = smov 26  }
  0x24   :  { %s16764_s9 = sld [smem:[%s17805_s0 + %s16569_s15]]   ;;  %s16573_s15 = smov 27  }
  0x25   :  { %s16769_s30 = sld [smem:[%s17805_s0 + %s16570_s22]]   ;;  %s16574_s22 = smov 28  }
  0x26   :  { %s16779_s19 = sld [smem:[%s17805_s0 + %s16572_s7]]   ;;  %s16576_s7 = smov 30  }
  0x27   :  { %s16789_s8 = sld [smem:[%s17805_s0 + %s16574_s22]]   ;;  %s16578_s22 = smov 32  }
  0x28   :  { %17819 = sst [smem:[#allocation98_spill]] %s16754_s4 }
  0x29   :  { %s16774_s4 = sld [smem:[%s17805_s0 + %s16571_s28]]   ;;  %s16575_s28 = smov 29  }
  0x2a   :  { %17820 = sst [smem:[#allocation99_spill]] %s16764_s9 }
  0x2b   :  { %s16784_s9 = sld [smem:[%s17805_s0 + %s16573_s15]]   ;;  %s16577_s15 = smov 31  }
  0x2c   :  { %s16799_s29 = sld [smem:[%s17805_s0 + %s16576_s7]]   ;;  %s16580_s7 = smov 34  }
  0x2d   :  { %s16809_s21 = sld [smem:[%s17805_s0 + %s16578_s22]]   ;;  %s16582_s22 = smov 36  }
  0x2e   :  { %s16819_s13 = sld [smem:[%s17805_s0 + %s16580_s7]]   ;;  %s16584_s7 = smov 38  }
  0x2f   :  { %17821 = sst [smem:[#allocation100_spill]] %s16774_s4 }
  0x30   :  { %s16794_s4 = sld [smem:[%s17805_s0 + %s16575_s28]]   ;;  %s16579_s28 = smov 33  }
  0x31   :  { %17822 = sst [smem:[#allocation101_spill]] %s16784_s9 }
  0x32   :  { %s16804_s9 = sld [smem:[%s17805_s0 + %s16577_s15]]   ;;  %s16581_s15 = smov 35  }
  0x33   :  { %17825 = sst [smem:[#allocation104_spill]] %s16809_s21 }
  0x34   :  { %17827 = sst [smem:[#allocation106_spill]] %s16819_s13 }
  0x35   :  { %s16829_s21 = sld [smem:[%s17805_s0 + %s16582_s22]]  }
  0x36   :  { %17823 = sst [smem:[#allocation102_spill]] %s16794_s4 }
  0x37   :  { %s16814_s4 = sld [smem:[%s17805_s0 + %s16579_s28]]   ;;  %s16583_s28 = smov 37  }
  0x38   :  { %17824 = sst [smem:[#allocation103_spill]] %s16804_s9 }
  0x39   :  { %s16824_s9 = sld [smem:[%s17805_s0 + %s16581_s15]]  }
  0x3a   :  { %s16839_s13 = sld [smem:[%s17805_s0 + %s16584_s7]]  }
  0x3d   :  { %17826 = sst [smem:[#allocation105_spill]] %s16814_s4 }
  0x3e   :  { %s16834_s4 = sld [smem:[%s17805_s0 + %s16583_s28]]  }
  0x3f   :  { %83 = vsyncpa [#allocation6], 0 }
  0x40   :  { %84 = vsyncpa [#allocation9], 0 }
  0x41   :  { %85 = vsyncpa [#allocation12], 0 }
  0x42   :  { %86 = vsyncpa [#allocation15], 0 }
  0x43   :  { %87 = vsyncpa [#allocation18], 0 }
  0x44   :  { %88 = vsyncpa [#allocation21], 0 }
  0x45   :  { %89 = vsyncpa [#allocation24], 0 }
  0x46   :  { %90 = vsyncpa [#allocation27], 0 }
  0x47   :  { %91 = vsyncpa [#allocation30], 0 }
  0x48   :  { %92 = vsyncpa [#allocation33], 0 }
  0x49   :  { %93 = vsyncpa [#allocation36], 0 }
  0x4a   :  { %94 = vsyncpa [#allocation39], 0 }
  0x4b   :  { %95 = vsyncpa [#allocation42], 0 }
  0x4c   :  { %96 = vsyncpa [#allocation45], 0 }
  0x4d   :  { %97 = vsyncpa [#allocation48], 0 }
  0x4e   :  { %98 = vsyncpa [#allocation51], 0 }
  0x4f   :  { %99 = vsyncpa [#allocation7], 0 }
  0x50   :  { %100 = vsyncpa [#allocation54], 0 }
  0x51   :  { %101 = vsyncpa [#allocation57], 0  ;;  %s16585_s0 = smov [#allocation8]   ;;  %s16586_s16 = smov [#allocation11]  }
  0x52   :  { %s122_s15 = sshll.u32 %s16585_s0, 4  ;;  %s142_s18 = sshll.u32 %s16586_s16, 4  ;;  %s123_s15 = int_to_ptr.vmem [resolvable:$true] %s122_s15  ;;  %s143_s18 = int_to_ptr.vmem [resolvable:$true] %s142_s18 }
  0x53   :  { %s15773_s22 = scalar_lea.vmem %s123_s15, 64  ;;  %p15778_p1 = scmp.lt.s32.totalorder %s123_s15, %s123_s15 }
  0x54   :  { %p15774_p0 = scmp.ne.s32.totalorder %s123_s15, %s15773_s22  ;;  %p15779_p2 = scmp.lt.s32.totalorder %s15773_s22, %s15773_s22 }
  0x56   :  { %p15780_p3 = por %p15779_p2, %p15778_p1 }
  0x58   :  { %p15781_p4 = pnand %p15780_p3, %p15774_p0 }
  0x5a   :  { %15784 = shalt.err (!%p15781_p4)
}
  0x5b   :  { %125 = dma.hbm_to_vmem [thread:$0]  %s16664_s17, 64, %s123_s15, [#allocation9]  }
  0x5c   :  { %s15793_s23 = scalar_lea.vmem %s143_s18, 160  ;;  %p15798_p6 = scmp.lt.s32.totalorder %s143_s18, %s143_s18 }
  0x5d   :  { %p15794_p5 = scmp.ne.s32.totalorder %s143_s18, %s15793_s23  ;;  %p15799_p7 = scmp.lt.s32.totalorder %s15793_s23, %s15793_s23 }
  0x5f   :  { %p15800_p8 = por %p15799_p7, %p15798_p6 }
  0x61   :  { %p15801_p9 = pnand %p15800_p8, %p15794_p5 }
  0x63   :  { %15804 = shalt.err (!%p15801_p9)
}
  0x64   :  { %145 = dma.hbm_to_vmem [thread:$0]  %s16674_s25, 160, %s143_s18, [#allocation12]  }
  0x65   :  { %s16587_s26 = smov [#allocation14]  }
  0x66   :  { %s164_s28 = sshll.u32 %s16587_s26, 4  ;;  %s165_s28 = int_to_ptr.vmem [resolvable:$true] %s164_s28 }
  0x67   :  { %s15813_s1 = scalar_lea.vmem %s165_s28, 16  ;;  %s15817_s2 = scalar_lea.vmem %s165_s28, 32 }
  0x68   :  { %p15814_p10 = scmp.ne.s32.totalorder %s165_s28, %s15813_s1  ;;  %p15818_p11 = scmp.lt.s32.totalorder %s165_s28, %s165_s28 }
  0x69   :  { %p15819_p12 = scmp.lt.s32.totalorder %s15817_s2, %s15813_s1 }
  0x6b   :  { %p15820_p13 = por %p15819_p12, %p15818_p11 }
  0x6d   :  { %p15821_p0 = pnand %p15820_p13, %p15814_p10 }
  0x6f   :  { %15824 = shalt.err (!%p15821_p0)
}
  0x70   :  { %167 = dma.hbm_to_vmem [thread:$0]  %s16684_s3, 16, %s165_s28, [#allocation15]  }
  0x71   :  { %s16588_s17 = smov [#allocation17]   ;;  %s16589_s10 = smov [#allocation20]  }
  0x72   :  { %s185_s7 = sshll.u32 %s16588_s17, 4  ;;  %s207_s11 = sshll.u32 %s16589_s10, 4  ;;  %s186_s7 = int_to_ptr.vmem [resolvable:$true] %s185_s7  ;;  %s208_s11 = int_to_ptr.vmem [resolvable:$true] %s207_s11 }
  0x73   :  { %s15833_s0 = scalar_lea.vmem %s186_s7, 4608  ;;  %p15838_p2 = scmp.lt.s32.totalorder %s186_s7, %s186_s7 }
  0x74   :  { %p15834_p1 = scmp.ne.s32.totalorder %s186_s7, %s15833_s0  ;;  %p15839_p3 = scmp.lt.s32.totalorder %s15833_s0, %s15833_s0 }
  0x76   :  { %p15840_p4 = por %p15839_p3, %p15838_p2 }
  0x78   :  { %p15841_p5 = pnand %p15840_p4, %p15834_p1 }
  0x7a   :  { %15844 = shalt.err (!%p15841_p5)
}
  0x7b   :  { %s16590_s25 = smov 64   ;;  %s16591_s15 = smov 4  }
  0x7c   :  { %191 = dma.hbm_to_vmem [thread:$0]  %s16694_s14, 4608, %s186_s7, [#allocation18], %s16590_s25, %s16590_s25, %s16591_s15  }
  0x7d   :  { %s15853_s3 = scalar_lea.vmem %s208_s11, 448  ;;  %p15858_p7 = scmp.lt.s32.totalorder %s208_s11, %s208_s11 }
  0x7e   :  { %p15854_p6 = scmp.ne.s32.totalorder %s208_s11, %s15853_s3  ;;  %p15859_p8 = scmp.lt.s32.totalorder %s15853_s3, %s15853_s3 }
  0x80   :  { %p15860_p9 = por %p15859_p8, %p15858_p7 }
  0x82   :  { %p15861_p10 = pnand %p15860_p9, %p15854_p6 }
  0x84   :  { %15864 = shalt.err (!%p15861_p10)
}
  0x85   :  { %213 = dma.hbm_to_vmem [thread:$0]  %s16704_s24, 448, %s208_s11, [#allocation21], %s16590_s25, %s16590_s25, %s16591_s15  }
  0x86   :  { %s16592_s16 = smov [#allocation23]   ;;  %s16593_s22 = smov [#allocation26]  }
  0x87   :  { %s231_s18 = sshll.u32 %s16592_s16, 4  ;;  %s256_s23 = sshll.u32 %s16593_s22, 4  ;;  %s232_s18 = int_to_ptr.vmem [resolvable:$true] %s231_s18  ;;  %s257_s23 = int_to_ptr.vmem [resolvable:$true] %s256_s23 }
  0x88   :  { %s15873_s26 = scalar_lea.vmem %s232_s18, 448  ;;  %p15878_p12 = scmp.lt.s32.totalorder %s232_s18, %s232_s18 }
  0x89   :  { %p15874_p11 = scmp.ne.s32.totalorder %s232_s18, %s15873_s26  ;;  %p15879_p13 = scmp.lt.s32.totalorder %s15873_s26, %s15873_s26 }
  0x8b   :  { %p15880_p0 = por %p15879_p13, %p15878_p12 }
  0x8d   :  { %p15881_p1 = pnand %p15880_p0, %p15874_p11 }
  0x8f   :  { %15884 = shalt.err (!%p15881_p1)
}
  0x90   :  { %237 = dma.hbm_to_vmem [thread:$0]  %s16714_s6, 448, %s232_s18, [#allocation24], %s16590_s25, %s16590_s25, %s16591_s15  }
  0x91   :  { %s15893_s14 = scalar_lea.vmem %s257_s23, 16  ;;  %s15897_s24 = scalar_lea.vmem %s257_s23, 32 }
  0x92   :  { %p15894_p2 = scmp.ne.s32.totalorder %s257_s23, %s15893_s14  ;;  %p15898_p3 = scmp.lt.s32.totalorder %s257_s23, %s257_s23 }
  0x93   :  { %p15899_p4 = scmp.lt.s32.totalorder %s15897_s24, %s15893_s14 }
  0x95   :  { %p15900_p5 = por %p15899_p4, %p15898_p3 }
  0x97   :  { %p15901_p6 = pnand %p15900_p5, %p15894_p2 }
  0x99   :  { %15904 = shalt.err (!%p15901_p6)
}
  0x9a   :  { %259 = dma.hbm_to_vmem [thread:$0]  %s16729_s27, 16, %s257_s23, [#allocation27]  }
  0x9b   :  { %s16594_s28 = smov [#allocation29]  }
  0x9c   :  { %s275_s1 = sshll.u32 %s16594_s28, 4  ;;  %s276_s1 = int_to_ptr.vmem [resolvable:$true] %s275_s1 }
  0x9d   :  { %s15913_s2 = scalar_lea.vmem %s276_s1, 14336  ;;  %p15918_p8 = scmp.lt.s32.totalorder %s276_s1, %s276_s1 }
  0x9e   :  { %p15914_p7 = scmp.ne.s32.totalorder %s276_s1, %s15913_s2  ;;  %p15919_p9 = scmp.lt.s32.totalorder %s15913_s2, %s15913_s2 }
  0xa0   :  { %p15920_p10 = por %p15919_p9, %p15918_p8 }
  0xa2   :  { %p15921_p11 = pnand %p15920_p10, %p15914_p7 }
  0xa4   :  { %15924 = shalt.err (!%p15921_p11)
}
  0xa5   :  { %s16595_s6 = smov 128   ;;  %s16596_s17 = smov 8  }
  0xa6   :  { %281 = dma.hbm_to_vmem [thread:$0]  %s16739_s12, 14336, %s276_s1, [#allocation30], %s16595_s6, %s16595_s6, %s16596_s17  }
  0xa7   :  { %s16597_s7 = smov [#allocation32]   ;;  %s16598_s27 = smov [#allocation35]  }
  0xa8   :  { %s299_s10 = sshll.u32 %s16597_s7, 4  ;;  %s324_s11 = sshll.u32 %s16598_s27, 4  ;;  %s300_s10 = int_to_ptr.vmem [resolvable:$true] %s299_s10  ;;  %s325_s11 = int_to_ptr.vmem [resolvable:$true] %s324_s11 }
  0xa9   :  { %s15933_s0 = scalar_lea.vmem %s300_s10, 3072  ;;  %p15938_p13 = scmp.lt.s32.totalorder %s300_s10, %s300_s10 }
  0xaa   :  { %p15934_p12 = scmp.ne.s32.totalorder %s300_s10, %s15933_s0  ;;  %p15939_p0 = scmp.lt.s32.totalorder %s15933_s0, %s15933_s0 }
  0xac   :  { %p15940_p1 = por %p15939_p0, %p15938_p13 }
  0xae   :  { %p15941_p2 = pnand %p15940_p1, %p15934_p12 }
  0xb0   :  { %15944 = shalt.err (!%p15941_p2)
}
  0xb1   :  { %305 = dma.hbm_to_vmem [thread:$0]  %s16749_s5, 3072, %s300_s10, [#allocation33], %s16595_s6, %s16595_s6, %s16596_s17  }
  0xb2   :  { %s15953_s3 = scalar_lea.vmem %s325_s11, 32  ;;  %p15958_p4 = scmp.lt.s32.totalorder %s325_s11, %s325_s11 }
  0xb3   :  { %p15954_p3 = scmp.ne.s32.totalorder %s325_s11, %s15953_s3  ;;  %p15959_p5 = scmp.lt.s32.totalorder %s15953_s3, %s15953_s3 }
  0xb5   :  { %p15960_p6 = por %p15959_p5, %p15958_p4 }
  0xb7   :  { %p15961_p7 = pnand %p15960_p6, %p15954_p3 }
  0xb9   :  { %15964 = shalt.err (!%p15961_p7)
}
  0xba   :  { %327 = dma.hbm_to_vmem [thread:$0]  %s16759_s20, 32, %s325_s11, [#allocation36]  }
  0xbb   :  { %s16599_s12 = smov [#allocation38]   ;;  %s16600_s18 = smov [#allocation41]  }
  0xbc   :  { %s346_s16 = sshll.u32 %s16599_s12, 4  ;;  %s368_s22 = sshll.u32 %s16600_s18, 4  ;;  %s347_s16 = int_to_ptr.vmem [resolvable:$true] %s346_s16  ;;  %s369_s22 = int_to_ptr.vmem [resolvable:$true] %s368_s22 }
  0xbd   :  { %s15973_s23 = scalar_lea.vmem %s347_s16, 16  ;;  %s15977_s26 = scalar_lea.vmem %s347_s16, 32 }
  0xbe   :  { %p15974_p8 = scmp.ne.s32.totalorder %s347_s16, %s15973_s23  ;;  %p15978_p9 = scmp.lt.s32.totalorder %s347_s16, %s347_s16 }
  0xbf   :  { %p15979_p10 = scmp.lt.s32.totalorder %s15977_s26, %s15973_s23 }
  0xc1   :  { %p15980_p11 = por %p15979_p10, %p15978_p9 }
  0xc3   :  { %p15981_p12 = pnand %p15980_p11, %p15974_p8 }
  0xc5   :  { %15984 = shalt.err (!%p15981_p12)
}
  0xc6   :  { %349 = dma.hbm_to_vmem [thread:$0]  %s16769_s30, 16, %s347_s16, [#allocation39]  }
  0xc7   :  { %s15993_s5 = scalar_lea.vmem %s369_s22, 16  ;;  %s15997_s14 = scalar_lea.vmem %s369_s22, 32 }
  0xc8   :  { %p15994_p13 = scmp.ne.s32.totalorder %s369_s22, %s15993_s5  ;;  %p15998_p0 = scmp.lt.s32.totalorder %s369_s22, %s369_s22 }
  0xc9   :  { %p15999_p1 = scmp.lt.s32.totalorder %s15997_s14, %s15993_s5 }
  0xcb   :  { %p16000_p2 = por %p15999_p1, %p15998_p0 }
  0xcd   :  { %p16001_p3 = pnand %p16000_p2, %p15994_p13 }
  0xcf   :  { %16004 = shalt.err (!%p16001_p3)
}
  0xd0   :  { %371 = dma.hbm_to_vmem [thread:$0]  %s16779_s19, 16, %s369_s22, [#allocation42]  }
  0xd1   :  { %s16601_s20 = smov [#allocation44]   ;;  %s16602_s28 = smov [#allocation47]  }
  0xd2   :  { %s390_s24 = sshll.u32 %s16601_s20, 4  ;;  %s412_s1 = sshll.u32 %s16602_s28, 4  ;;  %s391_s24 = int_to_ptr.vmem [resolvable:$true] %s390_s24  ;;  %s413_s1 = int_to_ptr.vmem [resolvable:$true] %s412_s1 }
  0xd3   :  { %s16013_s2 = scalar_lea.vmem %s391_s24, 16  ;;  %s16017_s7 = scalar_lea.vmem %s391_s24, 32 }
  0xd4   :  { %p16014_p4 = scmp.ne.s32.totalorder %s391_s24, %s16013_s2  ;;  %p16018_p5 = scmp.lt.s32.totalorder %s391_s24, %s391_s24 }
  0xd5   :  { %p16019_p6 = scmp.lt.s32.totalorder %s16017_s7, %s16013_s2 }
  0xd7   :  { %p16020_p7 = por %p16019_p6, %p16018_p5 }
  0xd9   :  { %p16021_p8 = pnand %p16020_p7, %p16014_p4 }
  0xdb   :  { %16024 = shalt.err (!%p16021_p8)
}
  0xdc   :  { %393 = dma.hbm_to_vmem [thread:$0]  %s16789_s8, 16, %s391_s24, [#allocation45]  }
  0xdd   :  { %s16033_s30 = scalar_lea.vmem %s413_s1, 16  ;;  %s16037_s10 = scalar_lea.vmem %s413_s1, 32 }
  0xde   :  { %p16034_p9 = scmp.ne.s32.totalorder %s413_s1, %s16033_s30  ;;  %p16038_p10 = scmp.lt.s32.totalorder %s413_s1, %s413_s1 }
  0xdf   :  { %p16039_p11 = scmp.lt.s32.totalorder %s16037_s10, %s16033_s30 }
  0xe1   :  { %p16040_p12 = por %p16039_p11, %p16038_p10 }
  0xe3   :  { %p16041_p13 = pnand %p16040_p12, %p16034_p9 }
  0xe5   :  { %16044 = shalt.err (!%p16041_p13)
}
  0xe6   :  { %415 = dma.hbm_to_vmem [thread:$0]  %s16799_s29, 16, %s413_s1, [#allocation48]  }
  0xe7   :  { %s16603_s19 = smov [#allocation5]   ;;  %s16604_s11 = smov [#allocation10]  }
  0xe8   :  { %s112_s27 = sshll.u32 %s16603_s19, 4  ;;  %s132_s0 = sshll.u32 %s16604_s11, 4  ;;  %s113_s27 = int_to_ptr.vmem [resolvable:$true] %s112_s27  ;;  %s133_s0 = int_to_ptr.vmem [resolvable:$true] %s132_s0 }
  0xe9   :  { %s16053_s3 = scalar_lea.vmem %s113_s27, 64  ;;  %p16058_p1 = scmp.lt.s32.totalorder %s113_s27, %s113_s27 }
  0xea   :  { %p16054_p0 = scmp.ne.s32.totalorder %s113_s27, %s16053_s3  ;;  %p16059_p2 = scmp.lt.s32.totalorder %s16053_s3, %s16053_s3 }
  0xec   :  { %p16060_p3 = por %p16059_p2, %p16058_p1 }
  0xee   :  { %p16061_p4 = pnand %p16060_p3, %p16054_p0 }
  0xf0   :  { %16064 = shalt.err (!%p16061_p4)
}
  0xf1   :  { %s17828_s8 = sld [smem:[#allocation88_spill]]  ;;  %s16073_s12 = scalar_lea.vmem %s133_s0, 160 }
  0xf2   :  { %p16074_p5 = scmp.ne.s32.totalorder %s133_s0, %s16073_s12  ;;  %p16078_p6 = scmp.lt.s32.totalorder %s133_s0, %s133_s0 }
  0xf3   :  { %p16079_p7 = scmp.lt.s32.totalorder %s16073_s12, %s16073_s12 }
  0xf5   :  { %p16080_p8 = por %p16079_p7, %p16078_p6 }
  0xf7   :  { %115 = dma.hbm_to_vmem [thread:$0]  %s17828_s8, 64, %s113_s27, [#allocation6]  }
  0xf8   :  { %p16081_p9 = pnand %p16080_p8, %p16074_p5 }
  0xfa   :  { %16084 = shalt.err (!%p16081_p9)
}
  0xfb   :  { %s17829_s29 = sld [smem:[#allocation89_spill]]  ;;  %s16605_s16 = smov [#allocation13]  }
  0xfc   :  { %s151_s18 = sshll.u32 %s16605_s16, 4  ;;  %s16606_s22 = smov [#allocation16]   ;;  %s152_s18 = int_to_ptr.vmem [resolvable:$true] %s151_s18 }
  0xfd   :  { %s173_s23 = sshll.u32 %s16606_s22, 4  ;;  %s16093_s26 = scalar_lea.vmem %s152_s18, 128  ;;  %s174_s23 = int_to_ptr.vmem [resolvable:$true] %s173_s23 }
  0xfe   :  { %p16094_p10 = scmp.ne.s32.totalorder %s152_s18, %s16093_s26  ;;  %p16098_p11 = scmp.lt.s32.totalorder %s152_s18, %s152_s18 }
  0xff   :  { %p16099_p12 = scmp.lt.s32.totalorder %s16093_s26, %s16093_s26 }
 0x101   :  { %135 = dma.hbm_to_vmem [thread:$0]  %s17829_s29, 160, %s133_s0, [#allocation9]  }
 0x102   :  { %p16100_p13 = por %p16099_p12, %p16098_p11 }
 0x104   :  { %p16101_p0 = pnand %p16100_p13, %p16094_p10 }
 0x106   :  { %16104 = shalt.err (!%p16101_p0)
}
 0x107   :  { %s17830_s5 = sld [smem:[#allocation90_spill]]  ;;  %s16113_s14 = scalar_lea.vmem %s174_s23, 1536 }
 0x108   :  { %p16114_p1 = scmp.ne.s32.totalorder %s174_s23, %s16113_s14  ;;  %p16118_p2 = scmp.lt.s32.totalorder %s174_s23, %s174_s23 }
 0x109   :  { %p16119_p3 = scmp.lt.s32.totalorder %s16113_s14, %s16113_s14 }
 0x10b   :  { %p16120_p4 = por %p16119_p3, %p16118_p2 }
 0x10d   :  { %157 = dma.hbm_to_vmem [thread:$0]  %s17830_s5, 128, %s152_s18, [#allocation12], %s16590_s25, %s16590_s25, %s16591_s15  }
 0x10e   :  { %p16121_p5 = pnand %p16120_p4, %p16114_p1 }
 0x110   :  { %16124 = shalt.err (!%p16121_p5)
}
 0x111   :  { %s17831_s20 = sld [smem:[#allocation91_spill]]  ;;  %s16607_s24 = smov [#allocation19]  }
 0x112   :  { %s198_s28 = sshll.u32 %s16607_s24, 4  ;;  %s16608_s1 = smov [#allocation22]   ;;  %s199_s28 = int_to_ptr.vmem [resolvable:$true] %s198_s28 }
 0x113   :  { %s219_s2 = sshll.u32 %s16608_s1, 4  ;;  %s16133_s7 = scalar_lea.vmem %s199_s28, 16  ;;  %s220_s2 = int_to_ptr.vmem [resolvable:$true] %s219_s2 }
 0x114   :  { %p16134_p6 = scmp.ne.s32.totalorder %s199_s28, %s16133_s7  ;;  %s16137_s30 = scalar_lea.vmem %s199_s28, 32 }
 0x115   :  { %p16138_p7 = scmp.lt.s32.totalorder %s199_s28, %s199_s28  ;;  %p16139_p8 = scmp.lt.s32.totalorder %s16137_s30, %s16133_s7 }
 0x117   :  { %179 = dma.hbm_to_vmem [thread:$0]  %s17831_s20, 1536, %s174_s23, [#allocation15], %s16590_s25, %s16590_s25, %s16591_s15  }
 0x118   :  { %p16140_p9 = por %p16139_p8, %p16138_p7 }
 0x11a   :  { %p16141_p10 = pnand %p16140_p9, %p16134_p6 }
 0x11c   :  { %16144 = shalt.err (!%p16141_p10)
}
 0x11d   :  { %s17832_s10 = sld [smem:[#allocation92_spill]]  ;;  %s16153_s19 = scalar_lea.vmem %s220_s2, 448 }
 0x11e   :  { %p16154_p11 = scmp.ne.s32.totalorder %s220_s2, %s16153_s19  ;;  %p16158_p12 = scmp.lt.s32.totalorder %s220_s2, %s220_s2 }
 0x11f   :  { %p16159_p13 = scmp.lt.s32.totalorder %s16153_s19, %s16153_s19 }
 0x121   :  { %p16160_p0 = por %p16159_p13, %p16158_p12 }
 0x123   :  { %201 = dma.hbm_to_vmem [thread:$0]  %s17832_s10, 16, %s199_s28, [#allocation18]  }
 0x124   :  { %p16161_p1 = pnand %p16160_p0, %p16154_p11 }
 0x126   :  { %16164 = shalt.err (!%p16161_p1)
}
 0x127   :  { %s17833_s27 = sld [smem:[#allocation93_spill]]  ;;  %s16609_s11 = smov [#allocation25]  }
 0x128   :  { %s243_s0 = sshll.u32 %s16609_s11, 4  ;;  %s244_s0 = int_to_ptr.vmem [resolvable:$true] %s243_s0 }
 0x129   :  { %s16173_s3 = scalar_lea.vmem %s244_s0, 320  ;;  %p16178_p3 = scmp.lt.s32.totalorder %s244_s0, %s244_s0 }
 0x12a   :  { %p16174_p2 = scmp.ne.s32.totalorder %s244_s0, %s16173_s3  ;;  %p16179_p4 = scmp.lt.s32.totalorder %s16173_s3, %s16173_s3 }
 0x12c   :  { %p16180_p5 = por %p16179_p4, %p16178_p3 }
 0x12d   :  { %225 = dma.hbm_to_vmem [thread:$0]  %s17833_s27, 448, %s220_s2, [#allocation21], %s16590_s25, %s16590_s25, %s16591_s15  }
 0x12e   :  { %p16181_p6 = pnand %p16180_p5, %p16174_p2 }
 0x130   :  { %16184 = shalt.err (!%p16181_p6)
}
 0x131   :  { %s16610_s8 = smov 80   ;;  %s17834_s12 = sld [smem:[#allocation95_spill]] }
 0x132   :  { %s16611_s29 = smov 5   ;;  %s16612_s16 = smov [#allocation28]  }
 0x133   :  { %s266_s18 = sshll.u32 %s16612_s16, 4  ;;  %s16613_s22 = smov [#allocation31]   ;;  %s267_s18 = int_to_ptr.vmem [resolvable:$true] %s266_s18 }
 0x134   :  { %s287_s23 = sshll.u32 %s16613_s22, 4  ;;  %s16193_s26 = scalar_lea.vmem %s267_s18, 16  ;;  %s288_s23 = int_to_ptr.vmem [resolvable:$true] %s287_s23 }
 0x135   :  { %p16194_p7 = scmp.ne.s32.totalorder %s267_s18, %s16193_s26  ;;  %s16197_s5 = scalar_lea.vmem %s267_s18, 32 }
 0x136   :  { %p16198_p8 = scmp.lt.s32.totalorder %s267_s18, %s267_s18  ;;  %p16199_p9 = scmp.lt.s32.totalorder %s16197_s5, %s16193_s26 }
 0x137   :  { %249 = dma.hbm_to_vmem [thread:$0]  %s17834_s12, 320, %s244_s0, [#allocation24], %s16610_s8, %s16610_s8, %s16611_s29  }
 0x138   :  { %p16200_p10 = por %p16199_p9, %p16198_p8 }
 0x13a   :  { %p16201_p11 = pnand %p16200_p10, %p16194_p7 }
 0x13c   :  { %16204 = shalt.err (!%p16201_p11)
}
 0x13d   :  { %s17835_s14 = sld [smem:[#allocation96_spill]]  ;;  %s16213_s20 = scalar_lea.vmem %s288_s23, 128 }
 0x13e   :  { %p16214_p12 = scmp.ne.s32.totalorder %s288_s23, %s16213_s20  ;;  %p16218_p13 = scmp.lt.s32.totalorder %s288_s23, %s288_s23 }
 0x13f   :  { %p16219_p0 = scmp.lt.s32.totalorder %s16213_s20, %s16213_s20 }
 0x141   :  { %p16220_p1 = por %p16219_p0, %p16218_p13 }
 0x143   :  { %269 = dma.hbm_to_vmem [thread:$0]  %s17835_s14, 16, %s267_s18, [#allocation27]  }
 0x144   :  { %p16221_p2 = pnand %p16220_p1, %p16214_p12 }
 0x146   :  { %16224 = shalt.err (!%p16221_p2)
}
 0x147   :  { %s16614_s24 = smov 32   ;;  %s17836_s28 = sld [smem:[#allocation97_spill]] }
 0x148   :  { %s16615_s1 = smov 2   ;;  %s16616_s2 = smov [#allocation34]  }
 0x149   :  { %s311_s7 = sshll.u32 %s16616_s2, 4  ;;  %s16617_s30 = smov [#allocation37]   ;;  %s312_s7 = int_to_ptr.vmem [resolvable:$true] %s311_s7 }
 0x14a   :  { %s333_s10 = sshll.u32 %s16617_s30, 4  ;;  %s16233_s19 = scalar_lea.vmem %s312_s7, 9216  ;;  %s334_s10 = int_to_ptr.vmem [resolvable:$true] %s333_s10 }
 0x14b   :  { %p16234_p3 = scmp.ne.s32.totalorder %s312_s7, %s16233_s19  ;;  %p16238_p4 = scmp.lt.s32.totalorder %s312_s7, %s312_s7 }
 0x14c   :  { %p16239_p5 = scmp.lt.s32.totalorder %s16233_s19, %s16233_s19 }
 0x14d   :  { %293 = dma.hbm_to_vmem [thread:$0]  %s17836_s28, 128, %s288_s23, [#allocation30], %s16614_s24, %s16614_s24, %s16615_s1  }
 0x14e   :  { %p16240_p6 = por %p16239_p5, %p16238_p4 }
 0x150   :  { %p16241_p7 = pnand %p16240_p6, %p16234_p3 }
 0x152   :  { %16244 = shalt.err (!%p16241_p7)
}
 0x153   :  { %s17837_s27 = sld [smem:[#allocation98_spill]]  ;;  %s16253_s11 = scalar_lea.vmem %s334_s10, 2048 }
 0x154   :  { %p16254_p8 = scmp.ne.s32.totalorder %s334_s10, %s16253_s11  ;;  %p16258_p9 = scmp.lt.s32.totalorder %s334_s10, %s334_s10 }
 0x155   :  { %p16259_p10 = scmp.lt.s32.totalorder %s16253_s11, %s16253_s11 }
 0x157   :  { %p16260_p11 = por %p16259_p10, %p16258_p9 }
 0x159   :  { %317 = dma.hbm_to_vmem [thread:$0]  %s17837_s27, 9216, %s312_s7, [#allocation33], %s16595_s6, %s16595_s6, %s16596_s17  }
 0x15a   :  { %p16261_p12 = pnand %p16260_p11, %p16254_p8 }
 0x15c   :  { %16264 = shalt.err (!%p16261_p12)
}
 0x15d   :  { %s17838_s0 = sld [smem:[#allocation99_spill]]  ;;  %s16618_s3 = smov [#allocation40]  }
 0x15e   :  { %s355_s12 = sshll.u32 %s16618_s3, 4  ;;  %s16619_s29 = smov [#allocation43]   ;;  %s356_s12 = int_to_ptr.vmem [resolvable:$true] %s355_s12 }
 0x15f   :  { %s377_s16 = sshll.u32 %s16619_s29, 4  ;;  %s16273_s18 = scalar_lea.vmem %s356_s12, 256  ;;  %s378_s16 = int_to_ptr.vmem [resolvable:$true] %s377_s16 }
 0x160   :  { %p16274_p13 = scmp.ne.s32.totalorder %s356_s12, %s16273_s18  ;;  %p16278_p0 = scmp.lt.s32.totalorder %s356_s12, %s356_s12 }
 0x161   :  { %p16279_p1 = scmp.lt.s32.totalorder %s16273_s18, %s16273_s18 }
 0x163   :  { %339 = dma.hbm_to_vmem [thread:$0]  %s17838_s0, 2048, %s334_s10, [#allocation36], %s16590_s25, %s16590_s25, %s16591_s15  }
 0x164   :  { %p16280_p2 = por %p16279_p1, %p16278_p0 }
 0x166   :  { %p16281_p3 = pnand %p16280_p2, %p16274_p13 }
 0x168   :  { %16284 = shalt.err (!%p16281_p3)
}
 0x169   :  { %s17839_s22 = sld [smem:[#allocation100_spill]]  ;;  %s16293_s23 = scalar_lea.vmem %s378_s16, 448 }
 0x16a   :  { %p16294_p4 = scmp.ne.s32.totalorder %s378_s16, %s16293_s23  ;;  %p16298_p5 = scmp.lt.s32.totalorder %s378_s16, %s378_s16 }
 0x16b   :  { %p16299_p6 = scmp.lt.s32.totalorder %s16293_s23, %s16293_s23 }
 0x16d   :  { %p16300_p7 = por %p16299_p6, %p16298_p5 }
 0x16f   :  { %361 = dma.hbm_to_vmem [thread:$0]  %s17839_s22, 256, %s356_s12, [#allocation39], %s16590_s25, %s16590_s25, %s16591_s15  }
 0x170   :  { %p16301_p8 = pnand %p16300_p7, %p16294_p4 }
 0x172   :  { %16304 = shalt.err (!%p16301_p8)
}
 0x173   :  { %s17840_s26 = sld [smem:[#allocation101_spill]]  ;;  %s16620_s5 = smov [#allocation46]  }
 0x174   :  { %s399_s14 = sshll.u32 %s16620_s5, 4  ;;  %s16621_s20 = smov [#allocation49]   ;;  %s400_s14 = int_to_ptr.vmem [resolvable:$true] %s399_s14 }
 0x175   :  { %s421_s28 = sshll.u32 %s16621_s20, 4  ;;  %s16313_s1 = scalar_lea.vmem %s400_s14, 1024  ;;  %s422_s28 = int_to_ptr.vmem [resolvable:$true] %s421_s28 }
 0x176   :  { %p16314_p9 = scmp.ne.s32.totalorder %s400_s14, %s16313_s1  ;;  %p16318_p10 = scmp.lt.s32.totalorder %s400_s14, %s400_s14 }
 0x177   :  { %p16319_p11 = scmp.lt.s32.totalorder %s16313_s1, %s16313_s1 }
 0x179   :  { %383 = dma.hbm_to_vmem [thread:$0]  %s17840_s26, 448, %s378_s16, [#allocation42], %s16590_s25, %s16590_s25, %s16591_s15  }
 0x17a   :  { %p16320_p12 = por %p16319_p11, %p16318_p10 }
 0x17c   :  { %p16321_p13 = pnand %p16320_p12, %p16314_p9 }
 0x17e   :  { %16324 = shalt.err (!%p16321_p13)
}
 0x17f   :  { %s17841_s2 = sld [smem:[#allocation102_spill]]  ;;  %s16333_s7 = scalar_lea.vmem %s422_s28, 3584 }
 0x180   :  { %p16334_p0 = scmp.ne.s32.totalorder %s422_s28, %s16333_s7  ;;  %p16338_p1 = scmp.lt.s32.totalorder %s422_s28, %s422_s28 }
 0x181   :  { %p16339_p2 = scmp.lt.s32.totalorder %s16333_s7, %s16333_s7 }
 0x183   :  { %p16340_p3 = por %p16339_p2, %p16338_p1 }
 0x185   :  { %405 = dma.hbm_to_vmem [thread:$0]  %s17841_s2, 1024, %s400_s14, [#allocation45], %s16590_s25, %s16590_s25, %s16591_s15  }
 0x186   :  { %p16341_p4 = pnand %p16340_p3, %p16334_p0 }
 0x188   :  { %16344 = shalt.err (!%p16341_p4)
}
 0x189   :  { %s17842_s30 = sld [smem:[#allocation103_spill]]  ;;  %s16622_s10 = smov [#allocation50]  }
 0x18a   :  { %s434_s19 = sshll.u32 %s16622_s10, 4  ;;  %s435_s19 = int_to_ptr.vmem [resolvable:$true] %s434_s19 }
 0x18b   :  { %s16353_s27 = scalar_lea.vmem %s435_s19, 256  ;;  %p16358_p6 = scmp.lt.s32.totalorder %s435_s19, %s435_s19 }
 0x18c   :  { %p16354_p5 = scmp.ne.s32.totalorder %s435_s19, %s16353_s27  ;;  %p16359_p7 = scmp.lt.s32.totalorder %s16353_s27, %s16353_s27 }
 0x18e   :  { %p16360_p8 = por %p16359_p7, %p16358_p6 }
 0x18f   :  { %427 = dma.hbm_to_vmem [thread:$0]  %s17842_s30, 3584, %s422_s28, [#allocation48], %s16595_s6, %s16595_s6, %s16596_s17  }
 0x190   :  { %p16361_p9 = pnand %p16360_p8, %p16354_p5 }
 0x192   :  { %16364 = shalt.err (!%p16361_p9)
}
 0x193   :  { %s17843_s25 = sld [smem:[#allocation104_spill]] }
 0x199   :  { %437 = dma.hbm_to_vmem [thread:$0]  %s17843_s25, 256, %s435_s19, [#allocation51]  }
 0x19a   :  { %16505 = dma.done.wait [#allocation6], 64  }
 0x19b   :  { %16506 = vsyncadd [#allocation6], 4294967232 }
 0x19c   :  { %16507 = dma.done.wait [#allocation9], 224  }
 0x19d   :  { %16508 = vsyncadd [#allocation9], 4294967072 }
 0x19e   :  { %16509 = dma.done.wait [#allocation12], 288  }
 0x19f   :  { %16510 = vsyncadd [#allocation12], 4294967008 }
 0x1a0   :  { %16511 = dma.done.wait [#allocation15], 1552  }
 0x1a1   :  { %16512 = vsyncadd [#allocation15], 4294965744 }
 0x1a2   :  { %16513 = dma.done.wait [#allocation18], 4624  }
 0x1a3   :  { %16514 = vsyncadd [#allocation18], 4294962672 }
 0x1a4   :  { %16515 = dma.done.wait [#allocation21], 896  }
 0x1a5   :  { %16516 = vsyncadd [#allocation21], 4294966400 }
 0x1a6   :  { %16517 = dma.done.wait [#allocation24], 768  }
 0x1a7   :  { %16518 = vsyncadd [#allocation24], 4294966528 }
 0x1a8   :  { %16519 = dma.done.wait [#allocation27], 32  }
 0x1a9   :  { %16520 = vsyncadd [#allocation27], 4294967264 }
 0x1aa   :  { %16521 = dma.done.wait [#allocation30], 14464  }
 0x1ab   :  { %16522 = vsyncadd [#allocation30], 4294952832 }
 0x1ac   :  { %16523 = dma.done.wait [#allocation33], 12288  }
 0x1ad   :  { %16524 = vsyncadd [#allocation33], 4294955008 }
 0x1ae   :  { %16525 = dma.done.wait [#allocation36], 2080  }
 0x1af   :  { %16526 = vsyncadd [#allocation36], 4294965216 }
 0x1b0   :  { %16527 = dma.done.wait [#allocation39], 272  }
 0x1b1   :  { %16528 = vsyncadd [#allocation39], 4294967024 }
 0x1b2   :  { %16529 = dma.done.wait [#allocation42], 464  }
 0x1b3   :  { %16530 = vsyncadd [#allocation42], 4294966832 }
 0x1b4   :  { %16531 = dma.done.wait [#allocation45], 1040  }
 0x1b5   :  { %16532 = vsyncadd [#allocation45], 4294966256 }
 0x1b6   :  { %16533 = dma.done.wait [#allocation48], 3600  }
 0x1b7   :  { %16534 = vsyncadd [#allocation48], 4294963696 }
 0x1b8   :  { %16535 = dma.done.wait [#allocation51], 256  }
 0x1b9   :  { %16536 = vsyncadd [#allocation51], 4294967040  ;;  %v14114_v0 = vld [vmem:[#allocation17 + $0x78] sm:$0xff]   ;;  %v14118_v4 = vld [vmem:[#allocation17 + $0x70] sm:$0xff]   ;;  %v16623_v22 = vmov 1983009808   ;;  %v658_v24 = vlaneseq }
 0x1ba   :  { %v14115_v1 = vld [vmem:[#allocation17 + $0xf8] sm:$0xff]   ;;  %13384 = vmatprep.subr.bf16.mxu0 %v14114_v0  ;;  %v14119_v5 = vld [vmem:[#allocation17 + $0xf0] sm:$0xff]   ;;  %v14122_v8 = vld [vmem:[#allocation17 + $0x68] sm:$0xff]   ;;  %v656_v23 = vunpack.c.l.s4 %v16623_v22  ;;  %v16624_v41 = vmov 0.0   ;;  %v16625_v42 = vmov 0   ;;  %vm16626_vm0 = vmmov 0  }
 0x1bb   :  { %v14116_v2 = vld [vmem:[#allocation17 + $0x38] sm:$0xff]   ;;  %13406 = vmatprep.subr.bf16.mxu1 %v14115_v1  ;;  %v14120_v6 = vld [vmem:[#allocation17 + $0x30] sm:$0xff]   ;;  %v14123_v9 = vld [vmem:[#allocation17 + $0xe8] sm:$0xff]   ;;  %v16917_v30 = vshrl.u32 %v658_v24, 7  ;;  %vm1209_vm1 = vcmask 1045504   ;;  %s17844_s15 = sld [smem:[#allocation86_spill]] }
 0x1bc   :  { %v14117_v3 = vld [vmem:[#allocation17 + $0xb8] sm:$0xff]   ;;  %13385 = vmatpush3.bf16.msra.mxu0 %v14116_v2  ;;  %v14121_v7 = vld [vmem:[#allocation17 + $0xb0] sm:$0xff]   ;;  %v14124_v10 = vld [vmem:[#allocation17 + $0x28] sm:$0xff]   ;;  %v657_v29 = vunpack.c.0.s8 %v656_v23  ;;  %vm904_vm2 = vcmask 523264   ;;  %vm1187_vm3 = vcmask 97280   ;;  %vm1335_vm4 = vcmask 1040384  }
 0x1bd   :  { %13407 = vmatpush3.bf16.msra.mxu1 %v14117_v3  ;;  %13386 = vmatprep.subr.bf16.mxu0 %v14118_v4  ;;  %v14125_v11 = vld [vmem:[#allocation17 + $0xa8] sm:$0xff]   ;;  %v14126_v12 = vld [vmem:[#allocation17 + $0x60] sm:$0xff]   ;;  %v14130_v16 = vld [vmem:[#allocation17 + $0x58] sm:$0xff]   ;;  %vm1331_vm5 = vcmask 400384   ;;  %vm1457_vm6 = vcmask 516096   ;;  %s16627_s6 = smov 112  }
 0x1be   :  { %13408 = vmatprep.subr.bf16.mxu1 %v14119_v5  ;;  %v14127_v13 = vld [vmem:[#allocation17 + $0xe0] sm:$0xff]   ;;  %v14131_v17 = vld [vmem:[#allocation17 + $0xd8] sm:$0xff]   ;;  %v14134_v20 = vld [vmem:[#allocation17 + $0x50] sm:$0xff]   ;;  %v16920_v35 = vsub.s32 %v657_v29, %v16917_v30  ;;  %s16628_s17 = smov 120   ;;  %s16629_s11 = smov 104   ;;  %vm2141_vm7 = vcmask 1041408  }
 0x1bf   :  { %v14128_v14 = vld [vmem:[#allocation17 + $0x20] sm:$0xff]   ;;  %v14132_v18 = vld [vmem:[#allocation17 + $0x18] sm:$0xff]   ;;  %v14135_v21 = vld [vmem:[#allocation17 + $0xd0] sm:$0xff]   ;;  %s16630_s0 = smov 88   ;;  %s16631_s3 = smov 96   ;;  %vm2143_vm8 = vcmask 1042432  }
 0x1c0   :  { %13387 = vmatpush3.bf16.msra.mxu0 %v14120_v6  ;;  %v14129_v15 = vld [vmem:[#allocation17 + $0xa0] sm:$0xff]   ;;  %v14133_v19 = vld [vmem:[#allocation17 + $0x98] sm:$0xff]   ;;  %v14136_v25 = vld [vmem:[#allocation17 + $0x10] sm:$0xff]   ;;  %s16632_s12 = smov 72   ;;  %vm2145_vm9 = vcmask 1043456   ;;  %vm2147_vm10 = vcmask 1044480  }
 0x1c1   :  { %13409 = vmatpush3.bf16.msra.mxu1 %v14121_v7  ;;  %13388 = vmatprep.subr.bf16.mxu0 %v14122_v8  ;;  %v14137_v26 = vld [vmem:[#allocation17 + $0x90] sm:$0xff]   ;;  %v14138_v27 = vld [vmem:[#allocation17 + $0x48] sm:$0xff]   ;;  %v14142_v33 = vld [vmem:[#allocation17 + $0x40] sm:$0xff]   ;;  %vm2150_vm11 = vcmask 1046528   ;;  %vm2161_vm12 = vcmask 64512   ;;  %vm2959_vm13 = vcmask 15360  }
 0x1c2   :  { %13410 = vmatprep.subr.bf16.mxu1 %v14123_v9  ;;  %v14139_v28 = vld [vmem:[#allocation17 + $0xc8] sm:$0xff]   ;;  %v14143_v34 = vld [vmem:[#allocation17 + $0xc0] sm:$0xff]   ;;  %v14147_v48 = vld [vmem:[#allocation17 + $0x118] sm:$0xff]   ;;  %vm3021_vm14 = vcmask 261120   ;;  %vm2591_vm15 = vcmask 785408   ;;  %s16634_s16 = smov [#allocation3]  }
 0x1c3   :  { %v14140_v31 = vld [vmem:[#allocation17 + $0x8] sm:$0xff]   ;;  %v14144_v36 = vld [vmem:[#allocation17] sm:$0xff]   ;;  %v14148_v51 = vld [vmem:[#allocation16 + $0x38] sm:$0xff]   ;;  %s2945_s18 = sshll.u32 %s16634_s16, 4  ;;  %s2946_s18 = int_to_ptr.vmem [resolvable:$true] %s2945_s18 }
 0x1c4   :  { %13389 = vmatpush3.bf16.msra.mxu0 %v14124_v10  ;;  %v14141_v32 = vld [vmem:[#allocation17 + $0x88] sm:$0xff]   ;;  %v14145_v37 = vld [vmem:[#allocation17 + $0x80] sm:$0xff]   ;;  %v14149_v52 = vld [vmem:[#allocation17 + $0x110] sm:$0xff]  }
 0x1c5   :  { %13411 = vmatpush3.bf16.msra.mxu1 %v14125_v11  ;;  %13390 = vmatprep.subr.bf16.mxu0 %v14126_v12  ;;  %v578_v38 = vld [vmem:[#allocation10] sm:$0xff]  ;;  %v14150_v53 = vld [vmem:[#allocation16 + $0x30] sm:$0xff]   ;;  %v12139_v56 = vld.sshfl [vmem:[#allocation10 + $0x8] sm:$0x3 pattern:$0x76325410] }
 0x1c6   :  { %13412 = vmatprep.subr.bf16.mxu1 %v14127_v13  ;;  %v661_v39 = vrot.slane %v578_v38, %v16920_v35  ;;  %v654_v40 = vcombine.high %v578_v38, %v578_v38  ;;  %v14151_v54 = vld [vmem:[#allocation17 + $0x108] sm:$0xff]   ;;  %v14153_v57 = vld [vmem:[#allocation17 + $0x100] sm:$0xff]   ;;  %v16932_v58 = vld.sshfl [vmem:[#allocation5] sm:$0x33 pattern:$0x76325410]  ;;  %v687_v62 = vpack.c.bf16 %v12139_v56, %v12139_v56 }
 0x1c7   :  { %v14152_v55 = vld [vmem:[#allocation16 + $0x28] sm:$0xff]   ;;  %v573_v59 = vcombine.high %v16932_v58, %v16932_v58  ;;  %v14163_v60 = vld [vmem:[#allocation13] sm:$0x3f]   ;;  %v14154_v61 = vld [vmem:[#allocation16 + $0x20] sm:$0xff]  }
 0x1c8   :  { %13391 = vmatpush3.bf16.msra.mxu0 %v14128_v14  ;;  %v669_v43 = vcombine.high %v661_v39, %v661_v39  ;;  %v668_v44 = vrot.slane %v654_v40, %v16920_v35  ;;  %v683_v45 = vpack.c.bf16 %v661_v39, %v661_v39  ;;  %v1211_v0 = vsel %vm1209_vm1, %v14163_v60, 0  ;;  %v14155_v1 = vld [vmem:[#allocation16 + $0x18] sm:$0xff]   ;;  %v1152_v2 = vld [vmem:[%s17844_s15] sm:$0xff]  ;;  %v1155_v8 = vld [vmem:[%s17844_s15 + $0x18] sm:$0xff] }
 0x1c9   :  { %13413 = vmatpush3.bf16.msra.mxu1 %v14129_v15  ;;  %13392 = vmatprep.subr.bf16.mxu0 %v14130_v16  ;;  %v577_v63 = vpack.c.bf16 %v573_v59, %v573_v59  ;;  %v1153_v3 = vld [vmem:[%s17844_s15 + $0x8] sm:$0xff]  ;;  %v14157_v6 = vld [vmem:[#allocation16 + $0x8] sm:$0xff]   ;;  %v1154_v7 = vld [vmem:[%s17844_s15 + $0x10] sm:$0xff] }
 0x1ca   :  { %13414 = vmatprep.subr.bf16.mxu1 %v14131_v17  ;;  %v684_v46 = vpack.c.bf16 %v669_v43, %v669_v43  ;;  %v670_v47 = vcombine.high %v668_v44, %v668_v44  ;;  %v685_v49 = vpack.c.bf16 %v668_v44, %v668_v44  ;;  %v14156_v4 = vld [vmem:[#allocation16 + $0x10] sm:$0xff]   ;;  %v1168_v5 = vpack.c.bf16 %v1153_v3, %v1152_v2  ;;  %v14158_v9 = vld [vmem:[#allocation16] sm:$0xff]   ;;  %v14159_v11 = vld [vmem:[#allocation16 + $0x58] sm:$0xff]  }
 0x1cb   :  { %v1169_v10 = vpack.c.bf16 %v1155_v8, %v1154_v7  ;;  %v1156_v12 = vld [vmem:[%s17844_s15 + $0x20] sm:$0xff]  ;;  %v1157_v13 = vld [vmem:[%s17844_s15 + $0x28] sm:$0xff]  ;;  %v1158_v17 = vld [vmem:[%s17844_s15 + $0x30] sm:$0xff] }
 0x1cc   :  { %13393 = vmatpush3.bf16.msra.mxu0 %v14132_v18  ;;  %940 = vmatprep.mubr.bf16.mxu0 %v684_v46  ;;  %v686_v50 = vpack.c.bf16 %v670_v47, %v670_v47  ;;  %v14160_v14 = vld [vmem:[#allocation16 + $0x50] sm:$0xff]   ;;  %v1170_v15 = vpack.c.bf16 %v1157_v13, %v1156_v12  ;;  %v14161_v16 = vld [vmem:[#allocation16 + $0x48] sm:$0xff]   ;;  %v17002_v2 = vld [vmem:[#allocation14] ss:$0 sm:$0xff] }
 0x1cd   :  { %13415 = vmatpush3.bf16.msra.mxu1 %v14133_v19  ;;  %13394 = vmatprep.subr.bf16.mxu0 %v14134_v20  ;;  %v1159_v18 = vld [vmem:[%s17844_s15 + $0x38] sm:$0xff]  ;;  %v1160_v22 = vld [vmem:[%s17844_s15 + $0x40] sm:$0xff]  ;;  %v1161_v23 = vld [vmem:[%s17844_s15 + $0x48] sm:$0xff] }
 0x1ce   :  { %13416 = vmatprep.subr.bf16.mxu1 %v14135_v21  ;;  %980 = vmatprep.mubr.bf16.mxu1 %v686_v50  ;;  %v14162_v19 = vld [vmem:[#allocation16 + $0x40] sm:$0xff]   ;;  %v1171_v20 = vpack.c.bf16 %v1159_v18, %v1158_v17  ;;  %v576_v21 = vpack.c.bf16 %v16932_v58, %v16932_v58  ;;  %v1172_v24 = vpack.c.bf16 %v1161_v23, %v1160_v22 }
 0x1cf   :  { %v1163_v29 = vld [vmem:[%s17844_s15 + $0x58] sm:$0xff] }
 0x1d0   :  { %13395 = vmatpush3.bf16.msra.mxu0 %v14136_v25  ;;  %v14164_v25 = vld [vmem:[#allocation20 + $0x18] ss:$0 sps:$4 sm:$0x11]   ;;  %v14167_v38 = vld [vmem:[#allocation20] sm:$0xff]  }
 0x1d1   :  { %13417 = vmatpush3.bf16.msra.mxu1 %v14137_v26  ;;  %13396 = vmatprep.subr.bf16.mxu0 %v14138_v27  ;;  %v16982_v26 = vsel %vm1335_vm4, 65535, %v16625_v42 }
 0x1d2   :  { %13418 = vmatprep.subr.bf16.mxu1 %v14139_v28  ;;  %v1339_v27 = vand.u32 %v14164_v25, %v16982_v26  ;;  %v1162_v28 = vld [vmem:[%s17844_s15 + $0x50] sm:$0xff] }
 0x1d4   :  { %13397 = vmatpush3.bf16.msra.mxu0 %v14140_v31  ;;  %v14165_v31 = vld [vmem:[#allocation20 + $0x10] sm:$0xff]  }
 0x1d5   :  { %13419 = vmatpush3.bf16.msra.mxu1 %v14141_v32  ;;  %13398 = vmatprep.subr.bf16.mxu0 %v14142_v33  ;;  %v1173_v32 = vpack.c.bf16 %v1163_v29, %v1162_v28  ;;  %v14166_v33 = vld [vmem:[#allocation20 + $0x8] sm:$0xff]  }
 0x1d6   :  { %13420 = vmatprep.subr.bf16.mxu1 %v14143_v34  ;;  %v1164_v34 = vld [vmem:[%s17844_s15 + $0x60] sm:$0xff] }
 0x1d8   :  { %13399 = vmatpush3.bf16.msra.mxu0 %v14144_v36  ;;  %v1165_v36 = vld [vmem:[%s17844_s15 + $0x68] sm:$0xff] }
 0x1d9   :  { %13421 = vmatpush3.bf16.msra.mxu1 %v14145_v37  ;;  %13741 = vmatprep.subr.bf16.mxu0 %v16624_v41  ;;  %v1174_v37 = vpack.c.bf16 %v1165_v36, %v1164_v34 }
 0x1da   :  { %1103 = vmatprep.subr.bf16.mxu1 %v16625_v42 }
 0x1db   :  { %941 = vmatmul.mubr.bf16.vlgmr.msra.gmra.mxu0 %v683_v45 }
 0x1dc   :  { %13742 = vmatpush3.bf16.msra.mxu0 %v14147_v48  ;;  %981 = vmatmul.mubr.bf16.vlgmr.msra.gmra.mxu1 %v685_v49 }
 0x1dd   :  { %13743 = vmatprep.subr.bf16.mxu0 %v16624_v41  ;;  %1104 = vmatpush1.bf16.msra.mxu1 %v14148_v51 }
 0x1de   :  { %13749 = vmatprep.mubr.msk.bf16.mxu0 %vm16626_vm0, %v16624_v41  ;;  %1105 = vmatprep.subr.bf16.mxu1 %v16625_v42 }
 0x1df   :  { %12189 = vmatprep.mubr.msk.bf16.mxu1 %vm904_vm2, %v577_v63 }
 0x1e0   :  { %13744 = vmatpush3.bf16.msra.mxu0 %v14149_v52 }
 0x1e1   :  { %13745 = vmatprep.subr.bf16.mxu0 %v16624_v41  ;;  %1106 = vmatpush1.bf16.msra.mxu1 %v14150_v53 }
 0x1e2   :  { %1107 = vmatprep.subr.bf16.mxu1 %v16625_v42 }
 0x1e4   :  { %13746 = vmatpush3.bf16.msra.mxu0 %v14151_v54 }
 0x1e5   :  { %13747 = vmatprep.subr.bf16.mxu0 %v16624_v41  ;;  %1108 = vmatpush1.bf16.msra.mxu1 %v14152_v55 }
 0x1e6   :  { %1109 = vmatprep.subr.bf16.mxu1 %v16625_v42 }
 0x1e8   :  { %13748 = vmatpush3.bf16.msra.mxu0 %v14153_v57 }
 0x1e9   :  { %13753 = vmatprep.subr.bf16.mxu0 %v16624_v41  ;;  %1110 = vmatpush1.bf16.msra.mxu1 %v14154_v61 }
 0x1ea   :  { %1111 = vmatprep.subr.bf16.mxu1 %v16625_v42 }
 0x1eb   :  { %13750 = vmatmul.mubr.msk.bf16.vlgmr.msra.gmra.mxu0 %vm904_vm2, %v687_v62 }
 0x1ec   :  { %13754 = vmatpush3.bf16.msra.mxu0 %v1211_v0  ;;  %13755 = vmatprep.mubr.msk.bf16.mxu0 %vm16626_vm0, %v16624_v41 }
 0x1ed   :  { %13812 = vmatprep.subr.mxu0 %v16624_v41  ;;  %1112 = vmatpush1.bf16.msra.mxu1 %v14155_v1 }
 0x1ee   :  { %1113 = vmatprep.subr.bf16.mxu1 %v16625_v42 }
 0x1f1   :  { %1114 = vmatpush1.bf16.msra.mxu1 %v14156_v4 }
 0x1f2   :  { %1115 = vmatprep.subr.bf16.mxu1 %v16625_v42 }
 0x1f3   :  { %13756 = vmatmul.mubr.msk.bf16.vlgmr.msra.gmra.mxu0 %vm1187_vm3, %v1168_v5 }
 0x1f4   :  { %13759 = vmatprep.mubr.msk.bf16.mxu0 %vm16626_vm0, %v16624_v41 }
 0x1f5   :  { %1116 = vmatpush1.bf16.msra.mxu1 %v14157_v6 }
 0x1f6   :  { %1117 = vmatprep.subr.bf16.mxu1 %v16625_v42 }
 0x1f9   :  { %1118 = vmatpush1.bf16.msra.mxu1 %v14158_v9  ;;  %v12190_v9 = vld [vmem:[#allocation19] ss:$0 sm:$0xff] }
 0x1fa   :  { %1127 = vmatprep.subr.bf16.mxu1 %v16625_v42 }
 0x1fb   :  { %13760 = vmatmul.mubr.msk.bf16.gmra.mxu0 %vm1187_vm3, %v1169_v10 }
 0x1fc   :  { %13763 = vmatprep.mubr.msk.bf16.mxu0 %vm16626_vm0, %v16624_v41 }
 0x1fd   :  { %1128 = vmatpush2.bf16.msra.mxu1 %v14159_v11 }
 0x1fe   :  { %1129 = vmatprep.subr.bf16.mxu1 %v16625_v42 }
 0x201   :  { %1130 = vmatpush2.bf16.msra.mxu1 %v14160_v14 }
 0x202   :  { %1131 = vmatprep.subr.bf16.mxu1 %v16625_v42 }
 0x203   :  { %13764 = vmatmul.mubr.msk.bf16.gmra.mxu0 %vm1187_vm3, %v1170_v15 }
 0x204   :  { %13767 = vmatprep.mubr.msk.bf16.mxu0 %vm16626_vm0, %v16624_v41 }
 0x205   :  { %1132 = vmatpush2.bf16.msra.mxu1 %v14161_v16 }
 0x206   :  { %1133 = vmatprep.subr.bf16.mxu1 %v16625_v42 }
 0x209   :  { %1134 = vmatpush2.bf16.msra.mxu1 %v14162_v19 }
 0x20a   :  { %13783 = vmatprep.subr.bf16.mxu1 %v16624_v41 }
 0x20b   :  { %13768 = vmatmul.mubr.msk.bf16.gmra.mxu0 %vm1187_vm3, %v1171_v20 }
 0x20c   :  { %13771 = vmatprep.mubr.msk.bf16.mxu0 %vm16626_vm0, %v16624_v41  ;;  %1136 = vmatmul.mubr.bf16.vlgmr.msra.gmra.mxu1 %v576_v21 }
 0x20d   :  { %13791 = vmatprep.mubr.msk.bf16.mxu1 %vm16626_vm0, %v16624_v41  ;;  %13784 = vmatpush3.bf16.msra.mxu1 %v1339_v27 }
 0x20e   :  { %13785 = vmatprep.subr.bf16.mxu1 %v16624_v41 }
 0x211   :  { %13786 = vmatpush3.bf16.msra.mxu1 %v14165_v31 }
 0x212   :  { %13787 = vmatprep.subr.bf16.mxu1 %v16624_v41 }
 0x213   :  { %13772 = vmatmul.mubr.msk.bf16.gmra.mxu0 %vm1187_vm3, %v1172_v24 }
 0x214   :  { %13775 = vmatprep.mubr.msk.bf16.mxu0 %vm16626_vm0, %v16624_v41 }
 0x215   :  { %13788 = vmatpush3.bf16.msra.mxu1 %v14166_v33 }
 0x216   :  { %13789 = vmatprep.subr.bf16.mxu1 %v16624_v41 }
 0x219   :  { %13790 = vmatpush3.bf16.msra.mxu1 %v14167_v38 }
 0x21a   :  { %13795 = vmatprep.subr.mxu1 %v16624_v41 }
 0x21b   :  { %13776 = vmatmul.mubr.msk.bf16.gmra.mxu0 %vm1187_vm3, %v1173_v32 }
 0x21c   :  { %13779 = vmatprep.mubr.msk.bf16.mxu0 %vm16626_vm0, %v16624_v41 }
 0x223   :  { %13780 = vmatmul.mubr.msk.bf16.gmra.mxu0 %vm1187_vm3, %v1174_v37 }
 0x224   :  { %13826 = vmatprep.mubr.msk.f32.mxu0 %vm16626_vm0, %v16624_v41 }
 0x29b   :  { %v13400_v39 = vpop.f32.mrf.mxu0 }
 0x29c   :  { %v13422_v40 = vpop.f32.mrf.mxu1 }
 0x29d   :  { %v13401_v43 = vpop.f32.mrf.mxu0 }
 0x29e   :  { %v13423_v44 = vpop.f32.mrf.mxu1  ;;  %v13402_v63 = vadd.f32 %v13401_v43, %v13400_v39 }
 0x29f   :  { %v13403_v45 = vpop.f32.mrf.mxu0  ;;  %v13424_v0 = vadd.f32 %v13423_v44, %v13422_v40 }
 0x2a0   :  { %v13425_v46 = vpop.f32.mrf.mxu1 }
 0x2a1   :  { %v13404_v47 = vpop.f32.mrf.mxu0  ;;  %v983_v4 = vadd.f32 %v13424_v0, %v13402_v63 }
 0x2a2   :  { %v13426_v48 = vpop.f32.mrf.mxu1 }
 0x2ab   :  { %v1022_v49 = vpop.f32.mrf.mxu0 }
 0x2ac   :  { %v1023_v6 = vadd.f32 %v1022_v49, %v983_v4 }
 0x2ad   :  { %v13751_v50 = vpop.f32.mrf.mxu0 }
 0x2af   :  { %v1025_v51 = vpop.f32.mrf.mxu0 }
 0x2b1   :  { %v13752_v52 = vpop.f32.mrf.mxu0 }
 0x2b2   :  { %v14168_v52 = vld [vmem:[#allocation23 + $0x18] ss:$0 sps:$4 sm:$0x11]  }
 0x2b3   :  { %v1247_v53 = vpop.f32.mrf.mxu0 }
 0x2b4   :  { %v1248_v25 = vadd.f32 %v17002_v2, %v1247_v53 }
 0x2b5   :  { %v13757_v54 = vpop.f32.mrf.mxu0 }
 0x2b7   :  { %v1250_v55 = vpop.f32.mrf.mxu0 }
 0x2b8   :  { %v1251_v24 = vadd.f32 %v17002_v2, %v1250_v55  ;;  %v1783_v55 = vand.u32 %v14168_v52, %v16982_v26 }
 0x2b9   :  { %v13758_v56 = vpop.f32.mrf.mxu0 }
 0x2bb   :  { %v1255_v57 = vpop.f32.mrf.mxu0 }
 0x2bc   :  { %v1256_v23 = vadd.f32 %v17002_v2, %v1255_v57  ;;  %v14169_v57 = vld [vmem:[#allocation23 + $0x10] sm:$0xff]  }
 0x2bd   :  { %v13761_v58 = vpop.f32.mrf.mxu0 }
 0x2be   :  { %v14170_v58 = vld [vmem:[#allocation23 + $0x8] sm:$0xff]  }
 0x2bf   :  { %v1258_v59 = vpop.f32.mrf.mxu0 }
 0x2c0   :  { %v1259_v22 = vadd.f32 %v17002_v2, %v1258_v59  ;;  %v14171_v59 = vld [vmem:[#allocation23] sm:$0xff]  }
 0x2c1   :  { %v13762_v60 = vpop.f32.mrf.mxu0 }
 0x2c3   :  { %v1263_v61 = vpop.f32.mrf.mxu0 }
 0x2c4   :  { %v1264_v19 = vadd.f32 %v17002_v2, %v1263_v61 }
 0x2c5   :  { %v13765_v62 = vpop.f32.mrf.mxu0 }
 0x2c7   :  { %v1266_v1 = vpop.f32.mrf.mxu0 }
 0x2c8   :  { %v1267_v12 = vadd.f32 %v17002_v2, %v1266_v1 }
 0x2c9   :  { %v13766_v3 = vpop.f32.mrf.mxu0 }
 0x2cb   :  { %v1271_v5 = vpop.f32.mrf.mxu0 }
 0x2cc   :  { %v1272_v7 = vadd.f32 %v17002_v2, %v1271_v5  ;;  %v1137_v8 = vpop.f32.mrf.mxu1 }
 0x2cd   :  { %v13769_v10 = vpop.f32.mrf.mxu0  ;;  %v1138_v11 = vadd.f32 %v1137_v8, %v1023_v6 }
 0x2ce   :  { %13813 = vmatpush3.xpose.msk.msra.mxu0 %vm904_vm2, %v1272_v7  ;;  %v1139_v13 = vpop.f32.mrf.mxu1 }
 0x2cf   :  { %13814 = vmatprep.subr.mxu0 %v16624_v41  ;;  %v17008_v14 = vpop.f32.mrf.mxu0  ;;  %v1150_v15 = vadd.f32 %v12190_v9, %v1138_v11 }
 0x2d0   :  { %v1140_v16 = vpop.f32.mrf.mxu1  ;;  %v17075_v54 = vadd.f32 %v17002_v2, %v17008_v14 }
 0x2d1   :  { %v13770_v17 = vpop.f32.mrf.mxu0  ;;  %v1151_v18 = vmax.f32 %v1150_v15, 0.0 }
 0x2d2   :  { %13815 = vmatpush3.xpose.msk.msra.mxu0 %vm904_vm2, %v1267_v12  ;;  %v1141_v20 = vpop.f32.mrf.mxu1 }
 0x2d3   :  { %13816 = vmatprep.subr.mxu0 %v16624_v41  ;;  %v17013_v21 = vpack.c.bf16 %v1151_v18, %v1151_v18  ;;  %v1279_v27 = vpop.f32.mrf.mxu0 }
 0x2d4   :  { %v17069_v53 = vadd.f32 %v17002_v2, %v1279_v27  ;;  %v14175_v27 = vld [vmem:[#allocation22] sm:$0xff]  }
 0x2d5   :  { %13792 = vmatmul.mubr.msk.bf16.vlgmr.msra.gmra.mxu1 %vm1331_vm5, %v17013_v21  ;;  %v13773_v28 = vpop.f32.mrf.mxu0 }
 0x2d6   :  { %13817 = vmatpush3.xpose.msk.msra.mxu0 %vm904_vm2, %v1264_v19  ;;  %13796 = vmatpush3.msk.msra.mxu1 %vm1335_vm4, %v1272_v7 }
 0x2d7   :  { %13818 = vmatprep.subr.mxu0 %v16624_v41  ;;  %13797 = vmatprep.subr.mxu1 %v16624_v41  ;;  %v1282_v29 = vpop.f32.mrf.mxu0 }
 0x2d8   :  { %13809 = vmatprep.mubr.msk.f32.mxu1 %vm16626_vm0, %v16624_v41  ;;  %13798 = vmatpush3.msra.mxu1 %v1267_v12  ;;  %v17064_v51 = vadd.f32 %v17002_v2, %v1282_v29 }
 0x2d9   :  { %13799 = vmatprep.subr.mxu1 %v16624_v41  ;;  %v13774_v31 = vpop.f32.mrf.mxu0 }
 0x2da   :  { %13819 = vmatpush3.xpose.msk.msra.mxu0 %vm904_vm2, %v1259_v22  ;;  %13800 = vmatpush3.msra.mxu1 %v1264_v19 }
 0x2db   :  { %13820 = vmatprep.subr.mxu0 %v16624_v41  ;;  %13801 = vmatprep.subr.mxu1 %v16624_v41  ;;  %v1287_v32 = vpop.f32.mrf.mxu0 }
 0x2dc   :  { %13802 = vmatpush3.msra.mxu1 %v1259_v22  ;;  %v17059_v49 = vadd.f32 %v17002_v2, %v1287_v32  ;;  %v14172_v22 = vld [vmem:[#allocation22 + $0x18] ss:$0 sps:$4 sm:$0x11]  }
 0x2dd   :  { %13803 = vmatprep.subr.mxu1 %v16624_v41  ;;  %v13777_v33 = vpop.f32.mrf.mxu0 }
 0x2de   :  { %13821 = vmatpush3.xpose.msk.msra.mxu0 %vm904_vm2, %v1256_v23  ;;  %13804 = vmatpush3.msra.mxu1 %v1256_v23  ;;  %v1850_v23 = vand.u32 %v14172_v22, %v16982_v26 }
 0x2df   :  { %13822 = vmatprep.subr.mxu0 %v16624_v41  ;;  %13805 = vmatprep.subr.mxu1 %v16624_v41  ;;  %v1290_v34 = vpop.f32.mrf.mxu0 }
 0x2e0   :  { %13806 = vmatpush3.msra.mxu1 %v1251_v24  ;;  %v17054_v47 = vadd.f32 %v17002_v2, %v1290_v34 }
 0x2e1   :  { %13807 = vmatprep.subr.mxu1 %v16624_v41  ;;  %v13778_v36 = vpop.f32.mrf.mxu0 }
 0x2e2   :  { %13823 = vmatpush3.xpose.msk.msra.mxu0 %vm904_vm2, %v1251_v24  ;;  %13808 = vmatpush3.msra.mxu1 %v1248_v25  ;;  %v14173_v24 = vld [vmem:[#allocation22 + $0x10] sm:$0xff]  }
 0x2e3   :  { %13824 = vmatprep.subr.mxu0 %v16624_v41  ;;  %13829 = vmatprep.subr.mxu1 %v16624_v41  ;;  %v1295_v37 = vpop.f32.mrf.mxu0 }
 0x2e4   :  { %v17045_v44 = vadd.f32 %v17002_v2, %v1295_v37  ;;  %v14176_v37 = vld [vmem:[#allocation43 + $0x18] ss:$0 sps:$4 sm:$0x11]  }
 0x2e5   :  { %v13781_v38 = vpop.f32.mrf.mxu0 }
 0x2e6   :  { %13825 = vmatpush3.xpose.msk.msra.mxu0 %vm904_vm2, %v1248_v25  ;;  %v14174_v25 = vld [vmem:[#allocation22 + $0x8] sm:$0xff]   ;;  %v1933_v38 = vand.u32 %v14176_v37, %v16982_v26 }
 0x2e7   :  { %13846 = vmatprep.subr.mxu0 %v16624_v41  ;;  %v1298_v39 = vpop.f32.mrf.mxu0 }
 0x2e8   :  { %v17042_v43 = vadd.f32 %v17002_v2, %v1298_v39  ;;  %v14177_v39 = vld [vmem:[#allocation43 + $0x10] sm:$0xff]  }
 0x2e9   :  { %v13782_v40 = vpop.f32.mrf.mxu0 }
 0x2ea   :  { %v14178_v40 = vld [vmem:[#allocation43 + $0x8] sm:$0xff]  }
 0x395   :  { %v1375_v45 = vpop.f32.mrf.mxu1 }
 0x396   :  { %13810 = vmatmul.mubr.msk.f32.vlgmr.msra.gmra.mxu1 %vm1331_vm5, %v1375_v45  ;;  %v1562_v56 = vrot.slane %v1375_v45, 1  ;;  %v14181_v45 = vld [vmem:[#allocation46 + $0x30] sm:$0xff]  }
 0x397   :  { %13830 = vmatpush3.msk.msra.mxu1 %vm1335_vm4, %v17042_v43  ;;  %v13793_v46 = vpop.f32.mrf.mxu1  ;;  %13843 = vmatprep.mubr.msk.f32.mxu1 %vm16626_vm0, %v16624_v41 }
 0x398   :  { %13831 = vmatprep.subr.mxu1 %v16624_v41  ;;  %v14182_v46 = vld [vmem:[#allocation46 + $0x28] sm:$0xff]  }
 0x399   :  { %13832 = vmatpush3.msra.mxu1 %v17045_v44  ;;  %v1378_v48 = vpop.f32.mrf.mxu1 }
 0x39a   :  { %13833 = vmatprep.subr.mxu1 %v16624_v41  ;;  %v14184_v48 = vld [vmem:[#allocation46 + $0x18] sm:$0xff]  }
 0x39b   :  { %13834 = vmatpush3.msra.mxu1 %v17054_v47  ;;  %v13794_v50 = vpop.f32.mrf.mxu1 }
 0x39c   :  { %13835 = vmatprep.subr.mxu1 %v16624_v41 }
 0x39d   :  { %13836 = vmatpush3.msra.mxu1 %v17059_v49 }
 0x39e   :  { %13837 = vmatprep.subr.mxu1 %v16624_v41 }
 0x39f   :  { %13838 = vmatpush3.msra.mxu1 %v17064_v51 }
 0x3a0   :  { %13839 = vmatprep.subr.mxu1 %v16624_v41 }
 0x3a1   :  { %13840 = vmatpush3.msra.mxu1 %v17069_v53 }
 0x3a2   :  { %13841 = vmatprep.subr.mxu1 %v16624_v41 }
 0x3a3   :  { %13842 = vmatpush3.msra.mxu1 %v17075_v54 }
 0x3a4   :  { %13844 = vmatmul.mubr.msk.f32.vlgmr.msra.gmra.mxu1 %vm1331_vm5, %v1562_v56  ;;  %13863 = vmatprep.subr.bf16.mxu1 %v16624_v41 }
 0x3a5   :  { %13864 = vmatpush3.bf16.msra.mxu1 %v1783_v55  ;;  %13871 = vmatprep.mubr.msk.bf16.mxu1 %vm16626_vm0, %v16624_v41 }
 0x3a6   :  { %13865 = vmatprep.subr.bf16.mxu1 %v16624_v41 }
 0x3a9   :  { %13866 = vmatpush3.bf16.msra.mxu1 %v14169_v57  ;;  %v14186_v57 = vld [vmem:[#allocation46 + $0x8] sm:$0xff]  }
 0x3aa   :  { %13867 = vmatprep.subr.bf16.mxu1 %v16624_v41 }
 0x3ad   :  { %13868 = vmatpush3.bf16.msra.mxu1 %v14170_v58  ;;  %v14187_v58 = vld [vmem:[#allocation46] sm:$0xff]  }
 0x3ae   :  { %13869 = vmatprep.subr.bf16.mxu1 %v16624_v41 }
 0x3b1   :  { %13870 = vmatpush3.bf16.msra.mxu1 %v14171_v59  ;;  %v12235_v59 = vld [vmem:[#allocation44] ss:$0 sm:$0xff] }
 0x3b2   :  { %13887 = vmatprep.subr.bf16.mxu1 %v16624_v41 }
 0x3b4   :  { %13872 = vmatmul.mubr.msk.bf16.vlgmr.msra.gmra.mxu1 %vm1331_vm5, %v17013_v21 }
 0x3b5   :  { %13895 = vmatprep.mubr.msk.bf16.mxu1 %vm16626_vm0, %v16624_v41  ;;  %13888 = vmatpush3.bf16.msra.mxu1 %v1933_v38 }
 0x3b6   :  { %13889 = vmatprep.subr.bf16.mxu1 %v16624_v41 }
 0x3b9   :  { %13890 = vmatpush3.bf16.msra.mxu1 %v14177_v39 }
 0x3ba   :  { %13891 = vmatprep.subr.bf16.mxu1 %v16624_v41 }
 0x3bd   :  { %13892 = vmatpush3.bf16.msra.mxu1 %v14178_v40 }
 0x3be   :  { %13893 = vmatprep.subr.bf16.mxu1 %v16624_v41 }
 0x456   :  { %v1453_v60 = vpop.f32.mrf.mxu1 }
 0x457   :  { %v1458_v61 = vsel %vm1457_vm6, %v1453_v60, -inf }
 0x458   :  { %1459 = vmax.xlane.f32.xlu0 %v1458_v61  ;;  %v13811_v62 = vpop.f32.mrf.mxu1 }
 0x464   :  { %v1634_v63 = vpop.f32.mrf.mxu1 }
 0x465   :  { %v1638_v0 = vsel %vm1457_vm6, %v1634_v63, -inf }
 0x466   :  { %1639 = vmax.xlane.f32.xlu0 %v1638_v0  ;;  %v13845_v1 = vpop.f32.mrf.mxu1 }
 0x474   :  { %v17095_v2 = vpop.f32.mrf.mxu1 }
 0x476   :  { %v13873_v3 = vpop.f32.mrf.mxu1 }
 0x477   :  { %v12241_v3 = vld [vmem:[#allocation47] ss:$0 sm:$0xff] }
 0x478   :  { %v1822_v4 = vpop.f32.mrf.mxu1 }
 0x47a   :  { %v13874_v5 = vpop.f32.mrf.mxu1 }
 0x4e1   :  { %v1460_v6 = vpop.xlane.xlu0 %1459 }
 0x4e2   :  { %v1461_v7 = vsub.f32 %v1453_v60, %v1460_v6 }
 0x4e4   :  { %v1462_v8 = vmul.f32 1.442695, %v1461_v7 }
 0x4e6   :  { %14356 = vpow2.f32 %v1462_v8 }
 0x4ef   :  { %v1640_v9 = vpop.xlane.xlu0 %1639 }
 0x4f0   :  { %v1641_v10 = vsub.f32 %v1634_v63, %v1640_v9 }
 0x4f2   :  { %v1642_v11 = vmul.f32 1.442695, %v1641_v10 }
 0x4f3   :  { %v14357_v12 = vpop.eup %14356 }
 0x4f4   :  { %14358 = vpow2.f32 %v1642_v11  ;;  %v1464_v13 = vsel %vm1457_vm6, %v14357_v12, 0.0 }
 0x4f5   :  { %1465 = vadd.xlane.f32.xlu1 %v1464_v13  ;;  %v2159_v13 = vld [vmem:[#allocation50] sm:$0xff] }
 0x501   :  { %v14359_v14 = vpop.eup %14358 }
 0x502   :  { %v1644_v15 = vsel %vm1457_vm6, %v14359_v14, 0.0 }
 0x503   :  { %1645 = vadd.xlane.f32.xlu1 %v1644_v15 }
 0x57e   :  { %v1466_v16 = vpop.xlane.xlu1 %1465 }
 0x57f   :  { %14360 = vrcp.f32 %v1466_v16 }
 0x58c   :  { %v14361_v17 = vpop.eup %14360  ;;  %v1646_v19 = vpop.xlane.xlu1 %1645 }
 0x58d   :  { %v1468_v18 = vmul.f32 %v14361_v17, %v14357_v12  ;;  %14362 = vrcp.f32 %v1646_v19  ;;  %v2160_v12 = vld [vmem:[#allocation50 + $0x8] sm:$0xff] }
 0x58f   :  { %13827 = vmatmul.mubr.msk.f32.vlgmr.msra.gmra.mxu0 %vm904_vm2, %v1468_v18 }
 0x590   :  { %13847 = vmatpush3.xpose.msk.msra.mxu0 %vm904_vm2, %v17042_v43  ;;  %13860 = vmatprep.mubr.msk.f32.mxu0 %vm16626_vm0, %v16624_v41  ;;  %v14179_v43 = vld [vmem:[#allocation43] sm:$0xff]  }
 0x591   :  { %13848 = vmatprep.subr.mxu0 %v16624_v41  ;;  %13894 = vmatpush3.bf16.msra.mxu1 %v14179_v43 }
 0x592   :  { %2198 = vmatprep.subr.mxu1 %v2160_v12 }
 0x594   :  { %13849 = vmatpush3.xpose.msk.msra.mxu0 %vm904_vm2, %v17045_v44  ;;  %v14180_v44 = vld [vmem:[#allocation46 + $0x38] sm:$0xff]  }
 0x595   :  { %13850 = vmatprep.subr.mxu0 %v16624_v41 }
 0x598   :  { %13851 = vmatpush3.xpose.msk.msra.mxu0 %vm904_vm2, %v17054_v47  ;;  %v14183_v47 = vld [vmem:[#allocation46 + $0x20] sm:$0xff]  }
 0x599   :  { %13852 = vmatprep.subr.mxu0 %v16624_v41 }
 0x59a   :  { %v14363_v20 = vpop.eup %14362 }
 0x59b   :  { %v1648_v21 = vmul.f32 %v14363_v20, %v14359_v14 }
 0x59c   :  { %13853 = vmatpush3.xpose.msk.msra.mxu0 %vm904_vm2, %v17059_v49  ;;  %v14185_v49 = vld [vmem:[#allocation46 + $0x10] sm:$0xff]  }
 0x59d   :  { %13854 = vmatprep.subr.mxu0 %v16624_v41 }
 0x5a0   :  { %13855 = vmatpush3.xpose.msk.msra.mxu0 %vm904_vm2, %v17064_v51 }
 0x5a1   :  { %13856 = vmatprep.subr.mxu0 %v16624_v41 }
 0x5a4   :  { %13857 = vmatpush3.xpose.msk.msra.mxu0 %vm904_vm2, %v17069_v53 }
 0x5a5   :  { %13858 = vmatprep.subr.mxu0 %v16624_v41 }
 0x5a8   :  { %13859 = vmatpush3.xpose.msk.msra.mxu0 %vm904_vm2, %v17075_v54 }
 0x5a9   :  { %13875 = vmatprep.subr.bf16.mxu0 %v16624_v41 }
 0x5ab   :  { %13861 = vmatmul.mubr.msk.f32.vlgmr.msra.gmra.mxu0 %vm904_vm2, %v1648_v21 }
 0x5ac   :  { %13883 = vmatprep.mubr.msk.bf16.mxu0 %vm16626_vm0, %v16624_v41  ;;  %13876 = vmatpush3.bf16.msra.mxu0 %v1850_v23 }
 0x5ad   :  { %13877 = vmatprep.subr.bf16.mxu0 %v16624_v41 }
 0x5b0   :  { %13878 = vmatpush3.bf16.msra.mxu0 %v14173_v24 }
 0x5b1   :  { %13879 = vmatprep.subr.bf16.mxu0 %v16624_v41 }
 0x5b4   :  { %13880 = vmatpush3.bf16.msra.mxu0 %v14174_v25 }
 0x5b5   :  { %13881 = vmatprep.subr.bf16.mxu0 %v16624_v41 }
 0x5b8   :  { %13882 = vmatpush3.bf16.msra.mxu0 %v14175_v27 }
 0x5b9   :  { %13899 = vmatprep.subr.bf16.mxu0 %v16624_v41 }
 0x64f   :  { %v1558_v28 = vpop.f32.mrf.mxu0 }
 0x651   :  { %v13828_v29 = vpop.f32.mrf.mxu0 }
 0x66b   :  { %v1738_v31 = vpop.f32.mrf.mxu0 }
 0x66c   :  { %v1743_v32 = vrot.slane %v1738_v31, 7 }
 0x66d   :  { %v13862_v33 = vpop.f32.mrf.mxu0 }
 0x66e   :  { %v1745_v34 = vsel %vm1335_vm4, %v1558_v28, %v1743_v32 }
 0x66f   :  { %v1753_v36 = vpack.c.bf16 %v1745_v34, %v1745_v34 }
 0x671   :  { %13884 = vmatmul.mubr.msk.bf16.vlgmr.msra.gmra.mxu0 %vm1331_vm5, %v1753_v36 }
 0x672   :  { %13915 = vmatprep.mubr.msk.bf16.mxu0 %vm16626_vm0, %v16624_v41  ;;  %13900 = vmatpush3.bf16.msra.mxu0 %v14180_v44 }
 0x673   :  { %13901 = vmatprep.subr.bf16.mxu0 %v16624_v41 }
 0x676   :  { %13902 = vmatpush3.bf16.msra.mxu0 %v14181_v45 }
 0x677   :  { %13903 = vmatprep.subr.bf16.mxu0 %v16624_v41 }
 0x67a   :  { %13904 = vmatpush3.bf16.msra.mxu0 %v14182_v46 }
 0x67b   :  { %13905 = vmatprep.subr.bf16.mxu0 %v16624_v41 }
 0x67e   :  { %13906 = vmatpush3.bf16.msra.mxu0 %v14183_v47 }
 0x67f   :  { %13907 = vmatprep.subr.bf16.mxu0 %v16624_v41 }
 0x682   :  { %13908 = vmatpush3.bf16.msra.mxu0 %v14184_v48 }
 0x683   :  { %13909 = vmatprep.subr.bf16.mxu0 %v16624_v41 }
 0x686   :  { %13910 = vmatpush3.bf16.msra.mxu0 %v14185_v49 }
 0x687   :  { %13911 = vmatprep.subr.bf16.mxu0 %v16624_v41 }
 0x68a   :  { %13912 = vmatpush3.bf16.msra.mxu0 %v14186_v57  ;;  %v2247_v57 = vld [vmem:[#allocation49 + $0x10] sm:$0xff] }
 0x68b   :  { %13913 = vmatprep.subr.bf16.mxu0 %v16624_v41 }
 0x68e   :  { %13914 = vmatpush3.bf16.msra.mxu0 %v14187_v58  ;;  %v2248_v58 = vld [vmem:[#allocation49 + $0x18] sm:$0xff] }
 0x731   :  { %v1886_v50 = vpop.f32.mrf.mxu0 }
 0x732   :  { %v1887_v51 = vadd.f32 %v1886_v50, %v17095_v2 }
 0x733   :  { %v13885_v52 = vpop.f32.mrf.mxu0 }
 0x734   :  { %14364 = vtanh.f32 %v1887_v51 }
 0x735   :  { %v1889_v53 = vpop.f32.mrf.mxu0 }
 0x737   :  { %v13886_v54 = vpop.f32.mrf.mxu0 }
 0x738   :  { %v2245_v54 = vld [vmem:[#allocation49] sm:$0xff] }
 0x741   :  { %v17146_v55 = vpop.eup %14364 }
 0x742   :  { %v1900_v56 = vpack.c.bf16 %v17146_v55, %v17146_v55 }
 0x744   :  { %13896 = vmatmul.mubr.msk.bf16.vlgmr.msra.gmra.mxu1 %vm1331_vm5, %v1900_v56  ;;  %v2246_v56 = vld [vmem:[#allocation49 + $0x8] sm:$0xff] }
 0x745   :  { %2232 = vmatprep.mubr.f32.mxu1 %v16624_v41  ;;  %2199 = vmatpush1.msra.mxu1 %v2159_v13  ;;  %v2262_v13 = vld [vmem:[#allocation49 + $0x88] sm:$0xff] }
 0x804   :  { %v1969_v60 = vpop.f32.mrf.mxu1 }
 0x805   :  { %v1970_v61 = vadd.f32 %v12235_v59, %v1969_v60 }
 0x806   :  { %v13897_v62 = vpop.f32.mrf.mxu1 }
 0x807   :  { %v1975_v63 = vmax.f32 %v1970_v61, 0.0  ;;  %v2249_v61 = vld [vmem:[#allocation49 + $0x20] sm:$0xff]  ;;  %v2250_v62 = vld [vmem:[#allocation49 + $0x28] sm:$0xff] }
 0x808   :  { %v1972_v0 = vpop.f32.mrf.mxu1 }
 0x809   :  { %v1992_v1 = vpack.c.bf16 %v1975_v63, %v1975_v63  ;;  %v2251_v63 = vld [vmem:[#allocation49 + $0x30] sm:$0xff]  ;;  %v2252_v0 = vld [vmem:[#allocation49 + $0x38] sm:$0xff] }
 0x80a   :  { %v13898_v2 = vpop.f32.mrf.mxu1 }
 0x80b   :  { %13916 = vmatmul.mubr.bf16.vlgmr.msra.gmra.mxu0 %v1992_v1  ;;  %v2253_v1 = vld [vmem:[#allocation49 + $0x40] sm:$0xff]  ;;  %v2254_v2 = vld [vmem:[#allocation49 + $0x48] sm:$0xff] }
 0x80c   :  { %2711 = vmatprep.mubr.f32.mxu0 %v16624_v41 }
 0x8cb   :  { %v2082_v4 = vpop.f32.mrf.mxu0 }
 0x8cc   :  { %v2083_v5 = vadd.f32 %v12241_v3, %v2082_v4  ;;  %v2255_v3 = vld [vmem:[#allocation49 + $0x50] sm:$0xff]  ;;  %v2256_v4 = vld [vmem:[#allocation49 + $0x58] sm:$0xff] }
 0x8cd   :  { %v13917_v6 = vpop.f32.mrf.mxu0 }
 0x8ce   :  { %v2088_v7 = vmax.f32 %v2083_v5, 0.0  ;;  %v2257_v5 = vld [vmem:[#allocation49 + $0x60] sm:$0xff]  ;;  %v2258_v6 = vld [vmem:[#allocation49 + $0x68] sm:$0xff] }
 0x8cf   :  { %v2085_v8 = vpop.f32.mrf.mxu0 }
 0x8d0   :  { %v2094_v9 = vrot.slane %v2088_v7, 6  ;;  %v2090_v10 = vrot.slane %v2088_v7, 7  ;;  %v2098_v14 = vrot.slane %v2088_v7, 5  ;;  %v2106_v15 = vrot.slane %v2088_v7, 3  ;;  %v2260_v8 = vld [vmem:[#allocation49 + $0x78] sm:$0xff] }
 0x8d1   :  { %v13918_v11 = vpop.f32.mrf.mxu0  ;;  %v2102_v16 = vrot.slane %v2088_v7, 4  ;;  %v2114_v17 = vrot.slane %v2088_v7, 1  ;;  %v2110_v18 = vrot.slane %v2088_v7, 2 }
 0x8d2   :  { %2095 = vrot.lane.b32.xlu1 %v2094_v9, %s16627_s6  ;;  %2091 = vrot.lane.b32.xlu0 %v2090_v10, %s16628_s17 }
 0x8d6   :  { %2099 = vrot.lane.b32.xlu1 %v2098_v14, %s16629_s11  ;;  %2107 = vrot.lane.b32.xlu0 %v2106_v15, %s16630_s0 }
 0x8da   :  { %2103 = vrot.lane.b32.xlu1 %v2102_v16, %s16631_s3  ;;  %2115 = vrot.lane.b32.xlu0 %v2114_v17, %s16632_s12 }
 0x8de   :  { %2111 = vrot.lane.b32.xlu1 %v2110_v18, %s16610_s8  ;;  %2122 = vrot.lane.b32.xlu0 %v2090_v10, %s16627_s6  ;;  %v12310_v10 = vld.sshfl [vmem:[#allocation5] sm:$0x33 pattern:$0x76325410] }
 0x8df   :  { %v3016_v11 = vcombine.high %v12310_v10, %v12310_v10 }
 0x8e1   :  { %v14109_v12 = vpack.i.bf16 %v3016_v11, %v12310_v10  ;;  %v14250_v10 = vld [vmem:[#allocation29 + $0xb4] ss:$8 sps:$4 sm:$0xff]  }
 0x8e2   :  { %2119 = vrot.lane.b32.xlu1 %v2088_v7, %s16628_s17  ;;  %2128 = vrot.lane.b32.xlu0 %v2098_v14, %s16631_s3  ;;  %v2263_v14 = vld [vmem:[#allocation49 + $0x90] sm:$0xff] }
 0x8e3   :  { %v14253_v11 = vld [vmem:[#allocation29 + $0x194] ss:$8 sps:$4 sm:$0xff]  }
 0x8e6   :  { %2125 = vrot.lane.b32.xlu1 %v2094_v9, %s16629_s11  ;;  %2134 = vrot.lane.b32.xlu0 %v2106_v15, %s16610_s8  ;;  %v2261_v9 = vld [vmem:[#allocation49 + $0x80] sm:$0xff]  ;;  %v2264_v15 = vld [vmem:[#allocation49 + $0x98] sm:$0xff]  ;;  %s17845_s8 = sld [smem:[#allocation87_spill]] }
 0x8ea   :  { %2131 = vrot.lane.b32.xlu1 %v2102_v16, %s16630_s0  ;;  %14110 = vrot.lane.b32.xlu0 %v14109_v12, %s16614_s24  ;;  %v2265_v16 = vld [vmem:[#allocation49 + $0xa0] sm:$0xff]  ;;  %v14248_v12 = vld [vmem:[#allocation29 + $0xb0] ss:$8 sps:$4 sm:$0xff]   ;;  %s16633_s24 = smov [#allocation2]  }
 0x8eb   :  { %s536_s29 = sshll.u32 %s16633_s24, 4  ;;  %s537_s29 = int_to_ptr.vmem [resolvable:$true] %s536_s29 }
 0x8ec   :  { %s16373_s22 = scalar_lea.vmem %s537_s29, 101120  ;;  %p16378_p11 = scmp.lt.s32.totalorder %s537_s29, %s537_s29 }
 0x8ed   :  { %p16374_p10 = scmp.ne.s32.totalorder %s537_s29, %s16373_s22  ;;  %p16379_p12 = scmp.lt.s32.totalorder %s16373_s22, %s16373_s22 }
 0x8ee   :  { %2137 = vrot.lane.b32.xlu1 %v2110_v18, %s16632_s12  ;;  %v2267_v18 = vld [vmem:[#allocation49 + $0xb0] sm:$0xff] }
 0x8ef   :  { %p16380_p13 = por %p16379_p12, %p16378_p11 }
 0x8f1   :  { %p16381_p0 = pnand %p16380_p13, %p16374_p10 }
 0x944   :  { %v2096_v19 = vpop.permute.xlu1 %2095  ;;  %v2092_v20 = vpop.permute.xlu0 %2091 }
 0x945   :  { %v2140_v21 = vsel %vm1335_vm4, %v2088_v7, %v2092_v20  ;;  %v2259_v7 = vld [vmem:[#allocation49 + $0x70] sm:$0xff] }
 0x946   :  { %v2142_v24 = vsel %vm2141_vm7, %v2140_v21, %v2096_v19  ;;  %v2268_v19 = vld [vmem:[#allocation49 + $0xb8] sm:$0xff] }
 0x947   :  { %v14188_v20 = vld [vmem:[#allocation29 + $0x70] ss:$8 sps:$4 sm:$0xff]   ;;  %v14190_v21 = vld [vmem:[#allocation29 + $0x74] ss:$8 sps:$4 sm:$0xff]  }
 0x948   :  { %v2100_v22 = vpop.permute.xlu1 %2099  ;;  %v2108_v23 = vpop.permute.xlu0 %2107 }
 0x949   :  { %v2144_v25 = vsel %vm2143_vm8, %v2142_v24, %v2100_v22  ;;  %v2269_v22 = vld [vmem:[#allocation49 + $0xc0] sm:$0xff] }
 0x94a   :  { %v14191_v24 = vld [vmem:[#allocation29 + $0x60] ss:$8 sps:$4 sm:$0xff]  }
 0x94c   :  { %v2104_v27 = vpop.permute.xlu1 %2103  ;;  %v2116_v29 = vpop.permute.xlu0 %2115 }
 0x94d   :  { %v2146_v28 = vsel %vm2145_vm9, %v2144_v25, %v2104_v27  ;;  %v14193_v25 = vld [vmem:[#allocation29 + $0x64] ss:$8 sps:$4 sm:$0xff]  }
 0x94e   :  { %v2148_v32 = vsel %vm2147_vm10, %v2146_v28, %v2108_v23  ;;  %v2270_v23 = vld [vmem:[#allocation49 + $0xc8] sm:$0xff]  ;;  %v2271_v27 = vld [vmem:[#allocation49 + $0xd0] sm:$0xff]  ;;  %v2272_v28 = vld [vmem:[#allocation49 + $0xd8] sm:$0xff] }
 0x950   :  { %v2112_v31 = vpop.permute.xlu1 %2111  ;;  %v2123_v36 = vpop.permute.xlu0 %2122 }
 0x951   :  { %v2149_v33 = vsel %vm1209_vm1, %v2148_v32, %v2112_v31  ;;  %v14194_v31 = vld [vmem:[#allocation29 + $0x50] ss:$8 sps:$4 sm:$0xff]   ;;  %v14196_v32 = vld [vmem:[#allocation29 + $0x54] ss:$8 sps:$4 sm:$0xff]  }
 0x952   :  { %v2151_v34 = vsel %vm2150_vm11, %v2149_v33, %v2116_v29  ;;  %v2950_v29 = vld [vmem:[#allocation26] sm:$0x1] }
 0x953   :  { %12250 = vmatmul.mubr.msk.f32.vlgmr.msra.gmra.mxu1 %vm2161_vm12, %v2151_v34  ;;  %v2949_v33 = vld [vmem:[%s17845_s8] sm:$0x3]  ;;  %v2964_v34 = vsel %vm1335_vm4, %v2950_v29, 0  ;;  %v14269_v29 = vld [vmem:[#allocation29 + $0x160] ss:$8 sps:$4 sm:$0xff]  }
 0x954   :  { %v2120_v37 = vpop.permute.xlu1 %2119  ;;  %2238 = vmatprep.mubr.f32.mxu1 %v16624_v41  ;;  %v2129_v43 = vpop.permute.xlu0 %2128 }
 0x955   :  { %v2152_v38 = vsel %vm1335_vm4, %v2114_v17, %v2120_v37  ;;  %v2266_v17 = vld [vmem:[#allocation49 + $0xa8] sm:$0xff] }
 0x956   :  { %v2153_v40 = vsel %vm2141_vm7, %v2152_v38, %v2123_v36  ;;  %v2951_v36 = vpack.c.bf16 %v2949_v33, %v2949_v33  ;;  %v14197_v37 = vld [vmem:[#allocation29 + $0x40] ss:$8 sps:$4 sm:$0xff]   ;;  %v14199_v38 = vld [vmem:[#allocation29 + $0x44] ss:$8 sps:$4 sm:$0xff]   ;;  %v14274_v33 = vld [vmem:[#allocation29 + $0x234] ss:$8 sps:$4 sm:$0xff]  }
 0x958   :  { %v2126_v39 = vpop.permute.xlu1 %2125  ;;  %v2135_v48 = vpop.permute.xlu0 %2134 }
 0x959   :  { %v2154_v44 = vsel %vm2143_vm8, %v2153_v40, %v2126_v39  ;;  %v14200_v39 = vld [vmem:[#allocation29 + $0x30] ss:$8 sps:$4 sm:$0xff]   ;;  %v14202_v40 = vld [vmem:[#allocation29 + $0x34] ss:$8 sps:$4 sm:$0xff]  }
 0x95a   :  { %v2155_v46 = vsel %vm2145_vm9, %v2154_v44, %v2129_v43  ;;  %v14205_v43 = vld [vmem:[#allocation29 + $0x154] ss:$8 sps:$4 sm:$0xff]   ;;  %v14203_v44 = vld [vmem:[#allocation29 + $0x150] ss:$8 sps:$4 sm:$0xff]  }
 0x95c   :  { %v2132_v45 = vpop.permute.xlu1 %2131 }
 0x95d   :  { %v2156_v47 = vsel %vm2147_vm10, %v2155_v46, %v2132_v45  ;;  %v14206_v45 = vld [vmem:[#allocation29 + $0x20] ss:$8 sps:$4 sm:$0xff]   ;;  %v14208_v46 = vld [vmem:[#allocation29 + $0x24] ss:$8 sps:$4 sm:$0xff]  }
 0x95e   :  { %v2157_v50 = vsel %vm1209_vm1, %v2156_v47, %v2135_v48  ;;  %v14211_v47 = vld [vmem:[#allocation29 + $0x144] ss:$8 sps:$4 sm:$0xff]   ;;  %v14209_v48 = vld [vmem:[#allocation29 + $0x140] ss:$8 sps:$4 sm:$0xff]  }
 0x960   :  { %v2138_v49 = vpop.permute.xlu1 %2137 }
 0x961   :  { %v2158_v51 = vsel %vm2150_vm11, %v2157_v50, %v2138_v49  ;;  %v14214_v49 = vld [vmem:[#allocation29 + $0x134] ss:$8 sps:$4 sm:$0xff]   ;;  %v14212_v50 = vld [vmem:[#allocation29 + $0x130] ss:$8 sps:$4 sm:$0xff]  }
 0x962   :  { %12251 = vmatmul.mubr.msk.f32.gmra.mxu1 %vm2161_vm12, %v2158_v51  ;;  %v14215_v51 = vld [vmem:[#allocation29 + $0x10] ss:$8 sps:$4 sm:$0xff]  }
 0x963   :  { %2421 = vmatprep.mubr.f32.mxu1 %v16624_v41 }
 0xa13   :  { %v2234_v52 = vpop.f32.mrf.mxu1 }
 0xa15   :  { %v2236_v53 = vpop.f32.mrf.mxu1 }
 0xa16   :  { %2387 = vmatprep.subr.mxu1 %v2236_v53  ;;  %v14220_v53 = vld [vmem:[#allocation29 + $0x124] ss:$8 sps:$4 sm:$0xff]  }
 0xa17   :  { %2388 = vmatpush1.msra.mxu1 %v2234_v52  ;;  %v14217_v52 = vld [vmem:[#allocation29 + $0x14] ss:$8 sps:$4 sm:$0xff]  }
 0xa18   :  { %12252 = vmatmul.mubr.msk.f32.vlgmr.msra.gmra.mxu1 %vm2161_vm12, %v2245_v54 }
 0xa19   :  { %2427 = vmatprep.mubr.f32.mxu1 %v16624_v41 }
 0xa1c   :  { %12253 = vmatmul.mubr.msk.f32.gmra.mxu1 %vm2161_vm12, %v2246_v56 }
 0xa1d   :  { %2433 = vmatprep.mubr.f32.mxu1 %v16624_v41 }
 0xa20   :  { %12254 = vmatmul.mubr.msk.f32.gmra.mxu1 %vm2161_vm12, %v2247_v57 }
 0xa21   :  { %2439 = vmatprep.mubr.f32.mxu1 %v16624_v41 }
 0xa22   :  { %v2240_v59 = vpop.f32.mrf.mxu1 }
 0xa24   :  { %v2242_v60 = vpop.f32.mrf.mxu1  ;;  %12255 = vmatmul.mubr.msk.f32.gmra.mxu1 %vm2161_vm12, %v2248_v58 }
 0xa25   :  { %2677 = vmatprep.subr.mxu0 %v2242_v60  ;;  %14013 = vmatprep.subr.mxu1 %v2242_v60  ;;  %v14229_v60 = vld [vmem:[#allocation29 + $0x104] ss:$8 sps:$4 sm:$0xff]  }
 0xa26   :  { %2678 = vmatpush1.msra.mxu0 %v2240_v59  ;;  %14014 = vmatpush1.msra.mxu1 %v2240_v59  ;;  %v14224_v59 = vld [vmem:[#allocation29 + $0x110] ss:$8 sps:$4 sm:$0xff]  }
 0xa27   :  { %2445 = vmatprep.mubr.f32.mxu1 %v16624_v41  ;;  %13919 = vmatprep.subr.bf16.mxu1 %v16624_v41 }
 0xa28   :  { %12256 = vmatmul.mubr.msk.f32.gmra.mxu1 %vm2161_vm12, %v2249_v61  ;;  %12280 = vmatmul.mubr.msk.f32.vlgmr.msra.gmra.mxu0 %vm2161_vm12, %v2245_v54  ;;  %v14218_v54 = vld [vmem:[#allocation29 + $0x120] ss:$8 sps:$4 sm:$0xff]  }
 0xa29   :  { %2451 = vmatprep.mubr.f32.mxu1 %v16624_v41  ;;  %2717 = vmatprep.mubr.f32.mxu0 %v16624_v41 }
 0xa2a   :  { %3211 = vmatprep.subr.bf16.mxu0 %v14190_v21  ;;  %v14263_v21 = vld [vmem:[#allocation29 + $0x170] ss:$8 sps:$4 sm:$0xff]  }
 0xa2b   :  { %3212 = vmatpush1.bf16.msra.mxu0 %v14188_v20  ;;  %v14260_v20 = vld [vmem:[#allocation29 + $0x90] ss:$8 sps:$4 sm:$0xff]  }
 0xa2c   :  { %12257 = vmatmul.mubr.msk.f32.gmra.mxu1 %vm2161_vm12, %v2250_v62  ;;  %12281 = vmatmul.mubr.msk.f32.gmra.mxu0 %vm2161_vm12, %v2246_v56  ;;  %v14226_v56 = vld [vmem:[#allocation29 + $0x114] ss:$8 sps:$4 sm:$0xff]  }
 0xa2d   :  { %2457 = vmatprep.mubr.f32.mxu1 %v16624_v41  ;;  %2723 = vmatprep.mubr.f32.mxu0 %v16624_v41 }
 0xa2e   :  { %3213 = vmatprep.subr.bf16.mxu0 %v14193_v25 }
 0xa2f   :  { %3214 = vmatpush1.bf16.msra.mxu0 %v14191_v24  ;;  %v14271_v24 = vld [vmem:[#allocation29 + $0x164] ss:$8 sps:$4 sm:$0xff]  }
 0xa30   :  { %12258 = vmatmul.mubr.msk.f32.gmra.mxu1 %vm2161_vm12, %v2251_v63  ;;  %12282 = vmatmul.mubr.msk.f32.gmra.mxu0 %vm2161_vm12, %v2247_v57  ;;  %v14221_v57 = vld [vmem:[#allocation29] ss:$8 sps:$4 sm:$0xff]  }
 0xa31   :  { %2463 = vmatprep.mubr.f32.mxu1 %v16624_v41  ;;  %2729 = vmatprep.mubr.f32.mxu0 %v16624_v41 }
 0xa32   :  { %3215 = vmatprep.subr.bf16.mxu0 %v14196_v32 }
 0xa33   :  { %3216 = vmatpush1.bf16.msra.mxu0 %v14194_v31 }
 0xa34   :  { %12259 = vmatmul.mubr.msk.f32.gmra.mxu1 %vm2161_vm12, %v2252_v0  ;;  %12283 = vmatmul.mubr.msk.f32.gmra.mxu0 %vm2161_vm12, %v2248_v58  ;;  %v14223_v58 = vld [vmem:[#allocation29 + $0x4] ss:$8 sps:$4 sm:$0xff]  }
 0xa35   :  { %2469 = vmatprep.mubr.f32.mxu1 %v16624_v41  ;;  %2735 = vmatprep.mubr.f32.mxu0 %v16624_v41 }
 0xa36   :  { %3217 = vmatprep.subr.bf16.mxu0 %v14199_v38 }
 0xa37   :  { %3218 = vmatpush1.bf16.msra.mxu0 %v14197_v37 }
 0xa38   :  { %12260 = vmatmul.mubr.msk.f32.gmra.mxu1 %vm2161_vm12, %v2253_v1  ;;  %12284 = vmatmul.mubr.msk.f32.gmra.mxu0 %vm2161_vm12, %v2249_v61  ;;  %v14227_v61 = vld [vmem:[#allocation29 + $0x100] ss:$8 sps:$4 sm:$0xff]  }
 0xa39   :  { %2475 = vmatprep.mubr.f32.mxu1 %v16624_v41  ;;  %2741 = vmatprep.mubr.f32.mxu0 %v16624_v41 }
 0xa3a   :  { %3219 = vmatprep.subr.bf16.mxu0 %v14202_v40 }
 0xa3b   :  { %3220 = vmatpush1.bf16.msra.mxu0 %v14200_v39 }
 0xa3c   :  { %12261 = vmatmul.mubr.msk.f32.gmra.mxu1 %vm2161_vm12, %v2254_v2  ;;  %12285 = vmatmul.mubr.msk.f32.gmra.mxu0 %vm2161_vm12, %v2250_v62  ;;  %v14235_v62 = vld [vmem:[#allocation29 + $0xf4] ss:$8 sps:$4 sm:$0xff]  }
 0xa3d   :  { %2481 = vmatprep.mubr.f32.mxu1 %v16624_v41  ;;  %2747 = vmatprep.mubr.f32.mxu0 %v16624_v41 }
 0xa3e   :  { %3221 = vmatprep.subr.bf16.mxu0 %v14208_v46 }
 0xa3f   :  { %3222 = vmatpush1.bf16.msra.mxu0 %v14206_v45 }
 0xa40   :  { %12262 = vmatmul.mubr.msk.f32.gmra.mxu1 %vm2161_vm12, %v2255_v3  ;;  %12286 = vmatmul.mubr.msk.f32.gmra.mxu0 %vm2161_vm12, %v2251_v63  ;;  %v14230_v63 = vld [vmem:[#allocation29 + $0xd0] ss:$8 sps:$4 sm:$0xff]  }
 0xa41   :  { %2487 = vmatprep.mubr.f32.mxu1 %v16624_v41  ;;  %2753 = vmatprep.mubr.f32.mxu0 %v16624_v41 }
 0xa42   :  { %3223 = vmatprep.subr.bf16.mxu0 %v14217_v52 }
 0xa43   :  { %3224 = vmatpush1.bf16.msra.mxu0 %v14215_v51 }
 0xa44   :  { %12263 = vmatmul.mubr.msk.f32.gmra.mxu1 %vm2161_vm12, %v2256_v4  ;;  %12287 = vmatmul.mubr.msk.f32.gmra.mxu0 %vm2161_vm12, %v2252_v0  ;;  %v14232_v0 = vld [vmem:[#allocation29 + $0xd4] ss:$8 sps:$4 sm:$0xff]  }
 0xa45   :  { %2493 = vmatprep.mubr.f32.mxu1 %v16624_v41  ;;  %2759 = vmatprep.mubr.f32.mxu0 %v16624_v41 }
 0xa46   :  { %3225 = vmatprep.subr.bf16.mxu0 %v14223_v58 }
 0xa47   :  { %3226 = vmatpush1.bf16.msra.mxu0 %v14221_v57 }
 0xa48   :  { %12264 = vmatmul.mubr.msk.f32.gmra.mxu1 %vm2161_vm12, %v2257_v5  ;;  %12288 = vmatmul.mubr.msk.f32.gmra.mxu0 %vm2161_vm12, %v2253_v1  ;;  %v14233_v1 = vld [vmem:[#allocation29 + $0xf0] ss:$8 sps:$4 sm:$0xff]  }
 0xa49   :  { %2499 = vmatprep.mubr.f32.mxu1 %v16624_v41  ;;  %2765 = vmatprep.mubr.f32.mxu0 %v16624_v41 }
 0xa4a   :  { %3231 = vmatprep.subr.bf16.mxu0 %v14232_v0 }
 0xa4b   :  { %3232 = vmatpush2.bf16.msra.mxu0 %v14230_v63 }
 0xa4c   :  { %12265 = vmatmul.mubr.msk.f32.gmra.mxu1 %vm2161_vm12, %v2258_v6  ;;  %12289 = vmatmul.mubr.msk.f32.gmra.mxu0 %vm2161_vm12, %v2254_v2  ;;  %v14238_v2 = vld [vmem:[#allocation29 + $0xe4] ss:$8 sps:$4 sm:$0xff]  }
 0xa4d   :  { %2505 = vmatprep.mubr.f32.mxu1 %v16624_v41  ;;  %2771 = vmatprep.mubr.f32.mxu0 %v16624_v41 }
 0xa50   :  { %12266 = vmatmul.mubr.msk.f32.gmra.mxu1 %vm2161_vm12, %v2259_v7  ;;  %12290 = vmatmul.mubr.msk.f32.gmra.mxu0 %vm2161_vm12, %v2255_v3  ;;  %v14236_v3 = vld [vmem:[#allocation29 + $0xe0] ss:$8 sps:$4 sm:$0xff]  }
 0xa51   :  { %2511 = vmatprep.mubr.f32.mxu1 %v16624_v41  ;;  %2777 = vmatprep.mubr.f32.mxu0 %v16624_v41 }
 0xa54   :  { %12267 = vmatmul.mubr.msk.f32.gmra.mxu1 %vm2161_vm12, %v2260_v8  ;;  %12291 = vmatmul.mubr.msk.f32.gmra.mxu0 %vm2161_vm12, %v2256_v4  ;;  %v14244_v4 = vld [vmem:[#allocation29 + $0x1b4] ss:$8 sps:$4 sm:$0xff]  }
 0xa55   :  { %2517 = vmatprep.mubr.f32.mxu1 %v16624_v41  ;;  %2783 = vmatprep.mubr.f32.mxu0 %v16624_v41 }
 0xa58   :  { %12268 = vmatmul.mubr.msk.f32.gmra.mxu1 %vm2161_vm12, %v2261_v9  ;;  %12292 = vmatmul.mubr.msk.f32.gmra.mxu0 %vm2161_vm12, %v2257_v5  ;;  %v14239_v5 = vld [vmem:[#allocation29 + $0xc0] ss:$8 sps:$4 sm:$0xff]  }
 0xa59   :  { %2523 = vmatprep.mubr.f32.mxu1 %v16624_v41  ;;  %2789 = vmatprep.mubr.f32.mxu0 %v16624_v41 }
 0xa5c   :  { %12269 = vmatmul.mubr.msk.f32.gmra.mxu1 %vm2161_vm12, %v2262_v13  ;;  %12293 = vmatmul.mubr.msk.f32.gmra.mxu0 %vm2161_vm12, %v2258_v6  ;;  %v14241_v6 = vld [vmem:[#allocation29 + $0xc4] ss:$8 sps:$4 sm:$0xff]  }
 0xa5d   :  { %2529 = vmatprep.mubr.f32.mxu1 %v16624_v41  ;;  %2795 = vmatprep.mubr.f32.mxu0 %v16624_v41 }
 0xa5e   :  { %3233 = vmatprep.subr.bf16.mxu0 %v14241_v6 }
 0xa5f   :  { %3234 = vmatpush2.bf16.msra.mxu0 %v14239_v5 }
 0xa60   :  { %12270 = vmatmul.mubr.msk.f32.gmra.mxu1 %vm2161_vm12, %v2263_v14  ;;  %12294 = vmatmul.mubr.msk.f32.gmra.mxu0 %vm2161_vm12, %v2259_v7  ;;  %v14242_v7 = vld [vmem:[#allocation29 + $0x1b0] ss:$8 sps:$4 sm:$0xff]  }
 0xa61   :  { %2535 = vmatprep.mubr.f32.mxu1 %v16624_v41  ;;  %2801 = vmatprep.mubr.f32.mxu0 %v16624_v41 }
 0xa62   :  { %3235 = vmatprep.subr.bf16.mxu0 %v14250_v10 }
 0xa63   :  { %3236 = vmatpush2.bf16.msra.mxu0 %v14248_v12 }
 0xa64   :  { %12271 = vmatmul.mubr.msk.f32.gmra.mxu1 %vm2161_vm12, %v2264_v15  ;;  %12295 = vmatmul.mubr.msk.f32.gmra.mxu0 %vm2161_vm12, %v2260_v8  ;;  %v14247_v8 = vld [vmem:[#allocation29 + $0x1a4] ss:$8 sps:$4 sm:$0xff]  }
 0xa65   :  { %2541 = vmatprep.mubr.f32.mxu1 %v16624_v41  ;;  %2807 = vmatprep.mubr.f32.mxu0 %v16624_v41 }
 0xa68   :  { %12272 = vmatmul.mubr.msk.f32.gmra.mxu1 %vm2161_vm12, %v2265_v16  ;;  %12296 = vmatmul.mubr.msk.f32.gmra.mxu0 %vm2161_vm12, %v2261_v9  ;;  %v14245_v9 = vld [vmem:[#allocation29 + $0x1a0] ss:$8 sps:$4 sm:$0xff]  }
 0xa69   :  { %2547 = vmatprep.mubr.f32.mxu1 %v16624_v41  ;;  %2813 = vmatprep.mubr.f32.mxu0 %v16624_v41 }
 0xa6c   :  { %12273 = vmatmul.mubr.msk.f32.gmra.mxu1 %vm2161_vm12, %v2266_v17  ;;  %12297 = vmatmul.mubr.msk.f32.gmra.mxu0 %vm2161_vm12, %v2262_v13  ;;  %v14251_v13 = vld [vmem:[#allocation29 + $0x190] ss:$8 sps:$4 sm:$0xff]  }
 0xa6d   :  { %2553 = vmatprep.mubr.f32.mxu1 %v16624_v41  ;;  %2819 = vmatprep.mubr.f32.mxu0 %v16624_v41 }
 0xa70   :  { %12274 = vmatmul.mubr.msk.f32.gmra.mxu1 %vm2161_vm12, %v2267_v18  ;;  %12298 = vmatmul.mubr.msk.f32.gmra.mxu0 %vm2161_vm12, %v2263_v14  ;;  %v14256_v14 = vld [vmem:[#allocation29 + $0xa4] ss:$8 sps:$4 sm:$0xff]  }
 0xa71   :  { %2559 = vmatprep.mubr.f32.mxu1 %v16624_v41  ;;  %2825 = vmatprep.mubr.f32.mxu0 %v16624_v41 }
 0xa72   :  { %3237 = vmatprep.subr.bf16.mxu0 %v14256_v14 }
 0xa74   :  { %12275 = vmatmul.mubr.msk.f32.gmra.mxu1 %vm2161_vm12, %v2268_v19  ;;  %12299 = vmatmul.mubr.msk.f32.gmra.mxu0 %vm2161_vm12, %v2264_v15  ;;  %v14259_v15 = vld [vmem:[#allocation29 + $0x184] ss:$8 sps:$4 sm:$0xff]  }
 0xa75   :  { %2565 = vmatprep.mubr.f32.mxu1 %v16624_v41  ;;  %2831 = vmatprep.mubr.f32.mxu0 %v16624_v41 }
 0xa78   :  { %12276 = vmatmul.mubr.msk.f32.gmra.mxu1 %vm2161_vm12, %v2269_v22  ;;  %12300 = vmatmul.mubr.msk.f32.gmra.mxu0 %vm2161_vm12, %v2265_v16  ;;  %v14254_v16 = vld [vmem:[#allocation29 + $0xa0] ss:$8 sps:$4 sm:$0xff]  }
 0xa79   :  { %2571 = vmatprep.mubr.f32.mxu1 %v16624_v41  ;;  %2837 = vmatprep.mubr.f32.mxu0 %v16624_v41 }
 0xa7a   :  { %3238 = vmatpush2.bf16.msra.mxu0 %v14254_v16 }
 0xa7c   :  { %12277 = vmatmul.mubr.msk.f32.gmra.mxu1 %vm2161_vm12, %v2270_v23  ;;  %12301 = vmatmul.mubr.msk.f32.gmra.mxu0 %vm2161_vm12, %v2266_v17  ;;  %v14257_v17 = vld [vmem:[#allocation29 + $0x180] ss:$8 sps:$4 sm:$0xff]  }
 0xa7d   :  { %2577 = vmatprep.mubr.f32.mxu1 %v16624_v41  ;;  %2843 = vmatprep.mubr.f32.mxu0 %v16624_v41 }
 0xa80   :  { %12278 = vmatmul.mubr.msk.f32.gmra.mxu1 %vm2161_vm12, %v2271_v27  ;;  %12302 = vmatmul.mubr.msk.f32.gmra.mxu0 %vm2161_vm12, %v2267_v18  ;;  %v14262_v18 = vld [vmem:[#allocation29 + $0x94] ss:$8 sps:$4 sm:$0xff]  }
 0xa81   :  { %2583 = vmatprep.mubr.f32.mxu1 %v16624_v41  ;;  %2849 = vmatprep.mubr.f32.mxu0 %v16624_v41 }
 0xa82   :  { %3239 = vmatprep.subr.bf16.mxu0 %v14262_v18 }
 0xa83   :  { %3240 = vmatpush2.bf16.msra.mxu0 %v14260_v20 }
 0xa84   :  { %12279 = vmatmul.mubr.msk.f32.gmra.mxu1 %vm2161_vm12, %v2272_v28  ;;  %12303 = vmatmul.mubr.msk.f32.gmra.mxu0 %vm2161_vm12, %v2268_v19  ;;  %v14265_v19 = vld [vmem:[#allocation29 + $0x174] ss:$8 sps:$4 sm:$0xff]  }
 0xa85   :  { %2873 = vmatprep.mubr.f32.mxu1 %v16624_v41  ;;  %2855 = vmatprep.mubr.f32.mxu0 %v16624_v41 }
 0xa88   :  { %12307 = vmatmul.mubr.msk.f32.vlgmr.msra.gmra.mxu1 %vm2161_vm12, %v2272_v28  ;;  %12304 = vmatmul.mubr.msk.f32.gmra.mxu0 %vm2161_vm12, %v2269_v22  ;;  %v17290_v22 = vpop.permute.xlu0 %14110  ;;  %v14266_v28 = vld [vmem:[#allocation29 + $0x80] ss:$8 sps:$4 sm:$0xff]  }
 0xa89   :  { %13920 = vmatpush3.bf16.msra.mxu1 %v2964_v34  ;;  %13921 = vmatprep.mubr.msk.bf16.mxu1 %vm16626_vm0, %v16624_v41  ;;  %v14113_v25 = vunpack.i.h.bf16 %v17290_v22  ;;  %v14277_v34 = vld [vmem:[#allocation29 + $0x314] ss:$8 sps:$4 sm:$0xff]  }
 0xa8a   :  { %2861 = vmatprep.mubr.f32.mxu0 %v16624_v41  ;;  %3446 = vmatprep.subr.bf16.mxu1 %v14205_v43 }
 0xa8c   :  { %13922 = vmatmul.mubr.msk.bf16.vlgmr.msra.gmra.mxu1 %vm2959_vm13, %v2951_v36  ;;  %12305 = vmatmul.mubr.msk.f32.gmra.mxu0 %vm2161_vm12, %v2270_v23  ;;  %v14268_v23 = vld [vmem:[#allocation29 + $0x84] ss:$8 sps:$4 sm:$0xff]  }
 0xa8d   :  { %2867 = vmatprep.mubr.f32.mxu0 %v16624_v41  ;;  %3447 = vmatpush1.bf16.msra.mxu1 %v14203_v44 }
 0xa8e   :  { %3448 = vmatprep.subr.bf16.mxu1 %v14211_v47  ;;  %3241 = vmatprep.subr.bf16.mxu0 %v14268_v23 }
 0xa8f   :  { %3242 = vmatpush2.bf16.msra.mxu0 %v14266_v28 }
 0xa90   :  { %12306 = vmatmul.mubr.msk.f32.gmra.mxu0 %vm2161_vm12, %v2271_v27  ;;  %v14112_v27 = vunpack.i.l.bf16 %v17290_v22  ;;  %3681 = vmatprep.subr.bf16.mxu0 %v14274_v33  ;;  %v14278_v22 = vld [vmem:[#allocation29 + $0x220] ss:$8 sps:$4 sm:$0xff]  }
 0xa91   :  { %3449 = vmatpush1.bf16.msra.mxu1 %v14209_v48 }
 0xa92   :  { %3450 = vmatprep.subr.bf16.mxu1 %v14214_v49  ;;  %v3022_v31 = vsel %vm3021_vm14, %v14112_v27, %v14113_v25 }
 0xa93   :  { %v17297_v32 = vpack.c.bf16 %v3022_v31, %v3022_v31 }
 0xa95   :  { %3451 = vmatpush1.bf16.msra.mxu1 %v14212_v50  ;;  %12339 = vmatprep.mubr.msk.bf16.mxu0 %vm2591_vm15, %v17297_v32 }
 0xa96   :  { %3452 = vmatprep.subr.bf16.mxu1 %v14220_v53  ;;  %12370 = vmatprep.mubr.msk.bf16.mxu1 %vm2591_vm15, %v17297_v32 }
 0xa99   :  { %3453 = vmatpush1.bf16.msra.mxu1 %v14218_v54 }
 0xa9a   :  { %3454 = vmatprep.subr.bf16.mxu1 %v14226_v56 }
 0xa9d   :  { %3455 = vmatpush1.bf16.msra.mxu1 %v14224_v59 }
 0xa9e   :  { %3456 = vmatprep.subr.bf16.mxu1 %v14229_v60 }
 0xaa1   :  { %3457 = vmatpush1.bf16.msra.mxu1 %v14227_v61 }
 0xaa2   :  { %3458 = vmatprep.subr.bf16.mxu1 %v14235_v62 }
 0xaa5   :  { %3459 = vmatpush1.bf16.msra.mxu1 %v14233_v1 }
 0xaa6   :  { %3460 = vmatprep.subr.bf16.mxu1 %v14238_v2 }
 0xaa9   :  { %3461 = vmatpush1.bf16.msra.mxu1 %v14236_v3 }
 0xaaa   :  { %3466 = vmatprep.subr.bf16.mxu1 %v14244_v4 }
 0xaad   :  { %3467 = vmatpush2.bf16.msra.mxu1 %v14242_v7 }
 0xaae   :  { %3468 = vmatprep.subr.bf16.mxu1 %v14247_v8 }
 0xab1   :  { %3469 = vmatpush2.bf16.msra.mxu1 %v14245_v9 }
 0xab2   :  { %3470 = vmatprep.subr.bf16.mxu1 %v14253_v11 }
 0xab5   :  { %3471 = vmatpush2.bf16.msra.mxu1 %v14251_v13 }
 0xab6   :  { %3472 = vmatprep.subr.bf16.mxu1 %v14259_v15 }
 0xab9   :  { %3473 = vmatpush2.bf16.msra.mxu1 %v14257_v17 }
 0xaba   :  { %3474 = vmatprep.subr.bf16.mxu1 %v14265_v19 }
 0xabd   :  { %3475 = vmatpush2.bf16.msra.mxu1 %v14263_v21 }
 0xabe   :  { %3476 = vmatprep.subr.bf16.mxu1 %v14271_v24 }
 0xac1   :  { %3477 = vmatpush2.bf16.msra.mxu1 %v14269_v29 }
 0xac2   :  { %3906 = vmatprep.subr.bf16.mxu1 %v14277_v34 }
 0xad8   :  { %v2423_v36 = vpop.f32.mrf.mxu1 }
 0xad9   :  { %2590 = vst [vmem:[#allocation3] sm:$0xff] %v2423_v36 }
 0xada   :  { %v2425_v37 = vpop.f32.mrf.mxu1 }
 0xadb   :  { %2592 = vst.msk [vmem:[#allocation3 + $0x8] sm:$0xff] %vm2591_vm15, %v2425_v37 }
 0xadc   :  { %v2429_v38 = vpop.f32.mrf.mxu1 }
 0xadd   :  { %2593 = vst [vmem:[#allocation3 + $0x10] sm:$0xff] %v2429_v38 }
 0xade   :  { %v2431_v39 = vpop.f32.mrf.mxu1 }
 0xadf   :  { %2594 = vst.msk [vmem:[#allocation3 + $0x18] sm:$0xff] %vm2591_vm15, %v2431_v39 }
 0xae0   :  { %v2435_v40 = vpop.f32.mrf.mxu1 }
 0xae1   :  { %2595 = vst [vmem:[#allocation3 + $0x20] sm:$0xff] %v2435_v40 }
 0xae2   :  { %v2437_v43 = vpop.f32.mrf.mxu1 }
 0xae3   :  { %2596 = vst.msk [vmem:[#allocation3 + $0x28] sm:$0xff] %vm2591_vm15, %v2437_v43 }
 0xae4   :  { %v2441_v44 = vpop.f32.mrf.mxu1 }
 0xae5   :  { %2597 = vst [vmem:[#allocation3 + $0x30] sm:$0xff] %v2441_v44 }
 0xae6   :  { %v2443_v45 = vpop.f32.mrf.mxu1 }
 0xae7   :  { %2598 = vst.msk [vmem:[#allocation3 + $0x38] sm:$0xff] %vm2591_vm15, %v2443_v45 }
 0xae8   :  { %v2447_v46 = vpop.f32.mrf.mxu1  ;;  %v2713_v1 = vpop.f32.mrf.mxu0 }
 0xae9   :  { %2599 = vst [vmem:[#allocation3 + $0x40] sm:$0xff] %v2447_v46  ;;  %2881 = vst [vmem:[#allocation3 + $0x1c0] sm:$0xff] %v2713_v1 }
 0xaea   :  { %v2449_v47 = vpop.f32.mrf.mxu1  ;;  %v2715_v3 = vpop.f32.mrf.mxu0 }
 0xaeb   :  { %2600 = vst.msk [vmem:[#allocation3 + $0x48] sm:$0xff] %vm2591_vm15, %v2449_v47  ;;  %2882 = vst.msk [vmem:[#allocation3 + $0x1c8] sm:$0xff] %vm2591_vm15, %v2715_v3 }
 0xaec   :  { %v2453_v48 = vpop.f32.mrf.mxu1  ;;  %v2719_v5 = vpop.f32.mrf.mxu0 }
 0xaed   :  { %2601 = vst [vmem:[#allocation3 + $0x50] sm:$0xff] %v2453_v48  ;;  %2883 = vst [vmem:[#allocation3 + $0x1d0] sm:$0xff] %v2719_v5 }
 0xaee   :  { %v2455_v49 = vpop.f32.mrf.mxu1  ;;  %v2721_v7 = vpop.f32.mrf.mxu0 }
 0xaef   :  { %2602 = vst.msk [vmem:[#allocation3 + $0x58] sm:$0xff] %vm2591_vm15, %v2455_v49  ;;  %2884 = vst.msk [vmem:[#allocation3 + $0x1d8] sm:$0xff] %vm2591_vm15, %v2721_v7 }
 0xaf0   :  { %v2459_v50 = vpop.f32.mrf.mxu1  ;;  %v2725_v9 = vpop.f32.mrf.mxu0 }
 0xaf1   :  { %2603 = vst [vmem:[#allocation3 + $0x60] sm:$0xff] %v2459_v50  ;;  %2885 = vst [vmem:[#allocation3 + $0x1e0] sm:$0xff] %v2725_v9 }
 0xaf2   :  { %v2461_v51 = vpop.f32.mrf.mxu1  ;;  %v2727_v11 = vpop.f32.mrf.mxu0 }
 0xaf3   :  { %2604 = vst.msk [vmem:[#allocation3 + $0x68] sm:$0xff] %vm2591_vm15, %v2461_v51  ;;  %2886 = vst.msk [vmem:[#allocation3 + $0x1e8] sm:$0xff] %vm2591_vm15, %v2727_v11 }
 0xaf4   :  { %v2465_v52 = vpop.f32.mrf.mxu1  ;;  %v2731_v13 = vpop.f32.mrf.mxu0 }
 0xaf5   :  { %2605 = vst [vmem:[#allocation3 + $0x70] sm:$0xff] %v2465_v52  ;;  %2887 = vst [vmem:[#allocation3 + $0x1f0] sm:$0xff] %v2731_v13 }
 0xaf6   :  { %v2467_v53 = vpop.f32.mrf.mxu1  ;;  %v2733_v15 = vpop.f32.mrf.mxu0 }
 0xaf7   :  { %2606 = vst.msk [vmem:[#allocation3 + $0x78] sm:$0xff] %vm2591_vm15, %v2467_v53  ;;  %2888 = vst.msk [vmem:[#allocation3 + $0x1f8] sm:$0xff] %vm2591_vm15, %v2733_v15 }
 0xaf8   :  { %v2471_v54 = vpop.f32.mrf.mxu1  ;;  %v2737_v17 = vpop.f32.mrf.mxu0 }
 0xaf9   :  { %2607 = vst [vmem:[#allocation3 + $0x80] sm:$0xff] %v2471_v54  ;;  %2889 = vst [vmem:[#allocation3 + $0x200] sm:$0xff] %v2737_v17 }
 0xafa   :  { %v2473_v56 = vpop.f32.mrf.mxu1  ;;  %v2739_v19 = vpop.f32.mrf.mxu0 }
 0xafb   :  { %2608 = vst.msk [vmem:[#allocation3 + $0x88] sm:$0xff] %vm2591_vm15, %v2473_v56  ;;  %2890 = vst.msk [vmem:[#allocation3 + $0x208] sm:$0xff] %vm2591_vm15, %v2739_v19  ;;  %v14275_v19 = vld [vmem:[#allocation29 + $0x310] ss:$8 sps:$4 sm:$0xff]  }
 0xafc   :  { %v2477_v57 = vpop.f32.mrf.mxu1  ;;  %v2743_v21 = vpop.f32.mrf.mxu0 }
 0xafd   :  { %2609 = vst [vmem:[#allocation3 + $0x90] sm:$0xff] %v2477_v57  ;;  %2891 = vst [vmem:[#allocation3 + $0x210] sm:$0xff] %v2743_v21  ;;  %v14280_v21 = vld [vmem:[#allocation29 + $0x224] ss:$8 sps:$4 sm:$0xff]  }
 0xafe   :  { %v2479_v58 = vpop.f32.mrf.mxu1  ;;  %v2745_v24 = vpop.f32.mrf.mxu0 }
 0xaff   :  { %2610 = vst.msk [vmem:[#allocation3 + $0x98] sm:$0xff] %vm2591_vm15, %v2479_v58  ;;  %2892 = vst.msk [vmem:[#allocation3 + $0x218] sm:$0xff] %vm2591_vm15, %v2745_v24 }
 0xb00   :  { %v2483_v59 = vpop.f32.mrf.mxu1  ;;  %v2749_v28 = vpop.f32.mrf.mxu0 }
 0xb01   :  { %2611 = vst [vmem:[#allocation3 + $0xa0] sm:$0xff] %v2483_v59  ;;  %2893 = vst [vmem:[#allocation3 + $0x220] sm:$0xff] %v2749_v28 }
 0xb02   :  { %v2485_v60 = vpop.f32.mrf.mxu1  ;;  %v2751_v31 = vpop.f32.mrf.mxu0 }
 0xb03   :  { %2612 = vst.msk [vmem:[#allocation3 + $0xa8] sm:$0xff] %vm2591_vm15, %v2485_v60  ;;  %2894 = vst.msk [vmem:[#allocation3 + $0x228] sm:$0xff] %vm2591_vm15, %v2751_v31  ;;  %v14286_v31 = vld [vmem:[#allocation29 + $0x214] ss:$8 sps:$4 sm:$0xff]  }
 0xb04   :  { %v2489_v61 = vpop.f32.mrf.mxu1  ;;  %v2755_v34 = vpop.f32.mrf.mxu0 }
 0xb05   :  { %2613 = vst [vmem:[#allocation3 + $0xb0] sm:$0xff] %v2489_v61  ;;  %2895 = vst [vmem:[#allocation3 + $0x230] sm:$0xff] %v2755_v34 }
 0xb06   :  { %v2491_v62 = vpop.f32.mrf.mxu1  ;;  %v2757_v37 = vpop.f32.mrf.mxu0 }
 0xb07   :  { %2614 = vst.msk [vmem:[#allocation3 + $0xb8] sm:$0xff] %vm2591_vm15, %v2491_v62  ;;  %2896 = vst.msk [vmem:[#allocation3 + $0x238] sm:$0xff] %vm2591_vm15, %v2757_v37  ;;  %v14284_v37 = vld [vmem:[#allocation29 + $0x210] ss:$8 sps:$4 sm:$0xff]  }
 0xb08   :  { %v2495_v63 = vpop.f32.mrf.mxu1  ;;  %v2761_v39 = vpop.f32.mrf.mxu0 }
 0xb09   :  { %2615 = vst [vmem:[#allocation3 + $0xc0] sm:$0xff] %v2495_v63  ;;  %2897 = vst [vmem:[#allocation3 + $0x240] sm:$0xff] %v2761_v39  ;;  %v14292_v39 = vld [vmem:[#allocation29 + $0x204] ss:$8 sps:$4 sm:$0xff]  }
 0xb0a   :  { %v2497_v0 = vpop.f32.mrf.mxu1  ;;  %v2763_v43 = vpop.f32.mrf.mxu0 }
 0xb0b   :  { %2616 = vst.msk [vmem:[#allocation3 + $0xc8] sm:$0xff] %vm2591_vm15, %v2497_v0  ;;  %2898 = vst.msk [vmem:[#allocation3 + $0x248] sm:$0xff] %vm2591_vm15, %v2763_v43 }
 0xb0c   :  { %v2501_v2 = vpop.f32.mrf.mxu1  ;;  %v2767_v45 = vpop.f32.mrf.mxu0 }
 0xb0d   :  { %2617 = vst [vmem:[#allocation3 + $0xd0] sm:$0xff] %v2501_v2  ;;  %2899 = vst [vmem:[#allocation3 + $0x250] sm:$0xff] %v2767_v45  ;;  %v14290_v45 = vld [vmem:[#allocation29 + $0x200] ss:$8 sps:$4 sm:$0xff]  }
 0xb0e   :  { %v2503_v4 = vpop.f32.mrf.mxu1  ;;  %v2769_v47 = vpop.f32.mrf.mxu0 }
 0xb0f   :  { %2618 = vst.msk [vmem:[#allocation3 + $0xd8] sm:$0xff] %vm2591_vm15, %v2503_v4  ;;  %2900 = vst.msk [vmem:[#allocation3 + $0x258] sm:$0xff] %vm2591_vm15, %v2769_v47  ;;  %v14301_v47 = vld [vmem:[#allocation29 + $0x2d4] ss:$8 sps:$4 sm:$0xff]  }
 0xb10   :  { %v2507_v6 = vpop.f32.mrf.mxu1  ;;  %v2773_v49 = vpop.f32.mrf.mxu0 }
 0xb11   :  { %2619 = vst [vmem:[#allocation3 + $0xe0] sm:$0xff] %v2507_v6  ;;  %2901 = vst [vmem:[#allocation3 + $0x260] sm:$0xff] %v2773_v49 }
 0xb12   :  { %v2509_v8 = vpop.f32.mrf.mxu1  ;;  %v2775_v51 = vpop.f32.mrf.mxu0 }
 0xb13   :  { %2620 = vst.msk [vmem:[#allocation3 + $0xe8] sm:$0xff] %vm2591_vm15, %v2509_v8  ;;  %2902 = vst.msk [vmem:[#allocation3 + $0x268] sm:$0xff] %vm2591_vm15, %v2775_v51  ;;  %v14299_v51 = vld [vmem:[#allocation29 + $0x2d0] ss:$8 sps:$4 sm:$0xff]  }
 0xb14   :  { %v2513_v10 = vpop.f32.mrf.mxu1  ;;  %v2779_v53 = vpop.f32.mrf.mxu0 }
 0xb15   :  { %2621 = vst [vmem:[#allocation3 + $0xf0] sm:$0xff] %v2513_v10  ;;  %2903 = vst [vmem:[#allocation3 + $0x270] sm:$0xff] %v2779_v53  ;;  %v12308_v10 = vld [vmem:[#allocation28] ss:$0 sm:$0xff]  ;;  %v14307_v53 = vld [vmem:[#allocation29 + $0x2c4] ss:$8 sps:$4 sm:$0xff]  }
 0xb16   :  { %v2515_v12 = vpop.f32.mrf.mxu1  ;;  %v2781_v56 = vpop.f32.mrf.mxu0 }
 0xb17   :  { %2622 = vst.msk [vmem:[#allocation3 + $0xf8] sm:$0xff] %vm2591_vm15, %v2515_v12  ;;  %2904 = vst.msk [vmem:[#allocation3 + $0x278] sm:$0xff] %vm2591_vm15, %v2781_v56 }
 0xb18   :  { %v2519_v14 = vpop.f32.mrf.mxu1  ;;  %v2785_v58 = vpop.f32.mrf.mxu0 }
 0xb19   :  { %2623 = vst [vmem:[#allocation3 + $0x100] sm:$0xff] %v2519_v14  ;;  %2905 = vst [vmem:[#allocation3 + $0x280] sm:$0xff] %v2785_v58  ;;  %v14305_v58 = vld [vmem:[#allocation29 + $0x2c0] ss:$8 sps:$4 sm:$0xff]  }
 0xb1a   :  { %v2521_v16 = vpop.f32.mrf.mxu1  ;;  %v2787_v60 = vpop.f32.mrf.mxu0 }
 0xb1b   :  { %2624 = vst.msk [vmem:[#allocation3 + $0x108] sm:$0xff] %vm2591_vm15, %v2521_v16  ;;  %2906 = vst.msk [vmem:[#allocation3 + $0x288] sm:$0xff] %vm2591_vm15, %v2787_v60  ;;  %v14313_v60 = vld [vmem:[#allocation29 + $0x2b4] ss:$8 sps:$4 sm:$0xff]  }
 0xb1c   :  { %v2525_v18 = vpop.f32.mrf.mxu1  ;;  %v2791_v62 = vpop.f32.mrf.mxu0 }
 0xb1d   :  { %2625 = vst [vmem:[#allocation3 + $0x110] sm:$0xff] %v2525_v18  ;;  %2907 = vst [vmem:[#allocation3 + $0x290] sm:$0xff] %v2791_v62  ;;  %v14272_v18 = vld [vmem:[#allocation29 + $0x230] ss:$8 sps:$4 sm:$0xff]  }
 0xb1e   :  { %v2527_v20 = vpop.f32.mrf.mxu1  ;;  %v2793_v0 = vpop.f32.mrf.mxu0 }
 0xb1f   :  { %2626 = vst.msk [vmem:[#allocation3 + $0x118] sm:$0xff] %vm2591_vm15, %v2527_v20  ;;  %2908 = vst.msk [vmem:[#allocation3 + $0x298] sm:$0xff] %vm2591_vm15, %v2793_v0  ;;  %v14311_v0 = vld [vmem:[#allocation29 + $0x2b0] ss:$8 sps:$4 sm:$0xff]  }
 0xb20   :  { %v2531_v23 = vpop.f32.mrf.mxu1  ;;  %v2797_v2 = vpop.f32.mrf.mxu0 }
 0xb21   :  { %2627 = vst [vmem:[#allocation3 + $0x120] sm:$0xff] %v2531_v23  ;;  %2909 = vst [vmem:[#allocation3 + $0x2a0] sm:$0xff] %v2797_v2  ;;  %v14283_v23 = vld [vmem:[#allocation29 + $0x304] ss:$8 sps:$4 sm:$0xff]  }
 0xb22   :  { %v2533_v25 = vpop.f32.mrf.mxu1  ;;  %v2799_v4 = vpop.f32.mrf.mxu0  ;;  %v14319_v2 = vld [vmem:[#allocation29 + $0x2a4] ss:$8 sps:$4 sm:$0xff]  }
 0xb23   :  { %2628 = vst.msk [vmem:[#allocation3 + $0x128] sm:$0xff] %vm2591_vm15, %v2533_v25  ;;  %2910 = vst.msk [vmem:[#allocation3 + $0x2a8] sm:$0xff] %vm2591_vm15, %v2799_v4 }
 0xb24   :  { %v2537_v29 = vpop.f32.mrf.mxu1  ;;  %v2803_v6 = vpop.f32.mrf.mxu0 }
 0xb25   :  { %2629 = vst [vmem:[#allocation3 + $0x130] sm:$0xff] %v2537_v29  ;;  %2911 = vst [vmem:[#allocation3 + $0x2b0] sm:$0xff] %v2803_v6  ;;  %v14317_v6 = vld [vmem:[#allocation29 + $0x2a0] ss:$8 sps:$4 sm:$0xff]  }
 0xb26   :  { %v2539_v33 = vpop.f32.mrf.mxu1  ;;  %v2805_v8 = vpop.f32.mrf.mxu0 }
 0xb27   :  { %2630 = vst.msk [vmem:[#allocation3 + $0x138] sm:$0xff] %vm2591_vm15, %v2539_v33  ;;  %2912 = vst.msk [vmem:[#allocation3 + $0x2b8] sm:$0xff] %vm2591_vm15, %v2805_v8  ;;  %v14289_v33 = vld [vmem:[#allocation29 + $0x2f4] ss:$8 sps:$4 sm:$0xff]  }
 0xb28   :  { %v2543_v36 = vpop.f32.mrf.mxu1  ;;  %v2809_v11 = vpop.f32.mrf.mxu0  ;;  %v14325_v8 = vld [vmem:[#allocation29 + $0x374] ss:$8 sps:$4 sm:$0xff]  }
 0xb29   :  { %2631 = vst [vmem:[#allocation3 + $0x140] sm:$0xff] %v2543_v36  ;;  %2913 = vst [vmem:[#allocation3 + $0x2c0] sm:$0xff] %v2809_v11  ;;  %v14320_v11 = vld [vmem:[#allocation29 + $0x290] ss:$8 sps:$4 sm:$0xff]  }
 0xb2a   :  { %v2545_v38 = vpop.f32.mrf.mxu1  ;;  %v2811_v13 = vpop.f32.mrf.mxu0 }
 0xb2b   :  { %2632 = vst.msk [vmem:[#allocation3 + $0x148] sm:$0xff] %vm2591_vm15, %v2545_v38  ;;  %2914 = vst.msk [vmem:[#allocation3 + $0x2c8] sm:$0xff] %vm2591_vm15, %v2811_v13  ;;  %v14287_v38 = vld [vmem:[#allocation29 + $0x2f0] ss:$8 sps:$4 sm:$0xff]   ;;  %v14328_v13 = vld [vmem:[#allocation29 + $0x284] ss:$8 sps:$4 sm:$0xff]  }
 0xb2c   :  { %v2549_v40 = vpop.f32.mrf.mxu1  ;;  %v2815_v16 = vpop.f32.mrf.mxu0 }
 0xb2d   :  { %2633 = vst [vmem:[#allocation3 + $0x150] sm:$0xff] %v2549_v40  ;;  %2915 = vst [vmem:[#allocation3 + $0x2d0] sm:$0xff] %v2815_v16  ;;  %v14295_v40 = vld [vmem:[#allocation29 + $0x2e4] ss:$8 sps:$4 sm:$0xff]  }
 0xb2e   :  { %v2551_v44 = vpop.f32.mrf.mxu1  ;;  %v2817_v25 = vpop.f32.mrf.mxu0 }
 0xb2f   :  { %2634 = vst.msk [vmem:[#allocation3 + $0x158] sm:$0xff] %vm2591_vm15, %v2551_v44  ;;  %2916 = vst.msk [vmem:[#allocation3 + $0x2d8] sm:$0xff] %vm2591_vm15, %v2817_v25  ;;  %v14335_v25 = vld [vmem:[#allocation29 + $0x350] ss:$8 sps:$4 sm:$0xff]  }
 0xb30   :  { %v2555_v46 = vpop.f32.mrf.mxu1  ;;  %v2821_v29 = vpop.f32.mrf.mxu0 }
 0xb31   :  { %2635 = vst [vmem:[#allocation3 + $0x160] sm:$0xff] %v2555_v46  ;;  %2917 = vst [vmem:[#allocation3 + $0x2e0] sm:$0xff] %v2821_v29  ;;  %v14298_v46 = vld [vmem:[#allocation29 + $0x1f4] ss:$8 sps:$4 sm:$0xff]   ;;  %v14343_v29 = vld [vmem:[#allocation29 + $0x344] ss:$8 sps:$4 sm:$0xff]  }
 0xb32   :  { %v2557_v48 = vpop.f32.mrf.mxu1  ;;  %v2823_v34 = vpop.f32.mrf.mxu0 }
 0xb33   :  { %2636 = vst.msk [vmem:[#allocation3 + $0x168] sm:$0xff] %vm2591_vm15, %v2557_v48  ;;  %2918 = vst.msk [vmem:[#allocation3 + $0x2e8] sm:$0xff] %vm2591_vm15, %v2823_v34  ;;  %v14344_v34 = vld [vmem:[#allocation29 + $0x250] ss:$8 sps:$4 sm:$0xff]  }
 0xb34   :  { %v2561_v50 = vpop.f32.mrf.mxu1  ;;  %v2827_v36 = vpop.f32.mrf.mxu0 }
 0xb35   :  { %2637 = vst [vmem:[#allocation3 + $0x170] sm:$0xff] %v2561_v50  ;;  %2919 = vst [vmem:[#allocation3 + $0x2f0] sm:$0xff] %v2827_v36  ;;  %v14296_v50 = vld [vmem:[#allocation29 + $0x1f0] ss:$8 sps:$4 sm:$0xff]  }
 0xb36   :  { %v2563_v52 = vpop.f32.mrf.mxu1  ;;  %v2829_v43 = vpop.f32.mrf.mxu0  ;;  %v14347_v36 = vld [vmem:[#allocation29 + $0x330] ss:$8 sps:$4 sm:$0xff]  }
 0xb37   :  { %2638 = vst.msk [vmem:[#allocation3 + $0x178] sm:$0xff] %vm2591_vm15, %v2563_v52  ;;  %2920 = vst.msk [vmem:[#allocation3 + $0x2f8] sm:$0xff] %vm2591_vm15, %v2829_v43  ;;  %v14304_v52 = vld [vmem:[#allocation29 + $0x1e4] ss:$8 sps:$4 sm:$0xff]  }
 0xb38   :  { %v2567_v54 = vpop.f32.mrf.mxu1  ;;  %v2833_v44 = vpop.f32.mrf.mxu0 }
 0xb39   :  { %2639 = vst [vmem:[#allocation3 + $0x180] sm:$0xff] %v2567_v54  ;;  %2921 = vst [vmem:[#allocation3 + $0x300] sm:$0xff] %v2833_v44 }
 0xb3a   :  { %v2569_v57 = vpop.f32.mrf.mxu1  ;;  %v2835_v48 = vpop.f32.mrf.mxu0 }
 0xb3b   :  { %2640 = vst.msk [vmem:[#allocation3 + $0x188] sm:$0xff] %vm2591_vm15, %v2569_v57  ;;  %2922 = vst.msk [vmem:[#allocation3 + $0x308] sm:$0xff] %vm2591_vm15, %v2835_v48  ;;  %v14302_v57 = vld [vmem:[#allocation29 + $0x1e0] ss:$8 sps:$4 sm:$0xff]  }
 0xb3c   :  { %v2573_v59 = vpop.f32.mrf.mxu1  ;;  %v2839_v49 = vpop.f32.mrf.mxu0 }
 0xb3d   :  { %2641 = vst [vmem:[#allocation3 + $0x190] sm:$0xff] %v2573_v59  ;;  %2923 = vst [vmem:[#allocation3 + $0x310] sm:$0xff] %v2839_v49  ;;  %v14310_v59 = vld [vmem:[#allocation29 + $0x1d4] ss:$8 sps:$4 sm:$0xff]  }
 0xb3e   :  { %v2575_v61 = vpop.f32.mrf.mxu1  ;;  %v2841_v54 = vpop.f32.mrf.mxu0 }
 0xb3f   :  { %2642 = vst.msk [vmem:[#allocation3 + $0x198] sm:$0xff] %vm2591_vm15, %v2575_v61  ;;  %2924 = vst.msk [vmem:[#allocation3 + $0x318] sm:$0xff] %vm2591_vm15, %v2841_v54 }
 0xb40   :  { %v2579_v63 = vpop.f32.mrf.mxu1  ;;  %v2845_v56 = vpop.f32.mrf.mxu0 }
 0xb41   :  { %2643 = vst [vmem:[#allocation3 + $0x1a0] sm:$0xff] %v2579_v63  ;;  %2925 = vst [vmem:[#allocation3 + $0x320] sm:$0xff] %v2845_v56  ;;  %v14308_v63 = vld [vmem:[#allocation29 + $0x1d0] ss:$8 sps:$4 sm:$0xff]  }
 0xb42   :  { %v2581_v1 = vpop.f32.mrf.mxu1  ;;  %v2847_v61 = vpop.f32.mrf.mxu0 }
 0xb43   :  { %2644 = vst.msk [vmem:[#allocation3 + $0x1a8] sm:$0xff] %vm2591_vm15, %v2581_v1  ;;  %2926 = vst.msk [vmem:[#allocation3 + $0x328] sm:$0xff] %vm2591_vm15, %v2847_v61  ;;  %v14316_v1 = vld [vmem:[#allocation29 + $0x1c4] ss:$8 sps:$4 sm:$0xff]  }
 0xb44   :  { %v2585_v3 = vpop.f32.mrf.mxu1  ;;  %v2851_v62 = vpop.f32.mrf.mxu0 }
 0xb45   :  { %2645 = vst [vmem:[#allocation3 + $0x1b0] sm:$0xff] %v2585_v3  ;;  %2927 = vst [vmem:[#allocation3 + $0x330] sm:$0xff] %v2851_v62 }
 0xb46   :  { %v2587_v5 = vpop.f32.mrf.mxu1  ;;  %v2853_v3 = vpop.f32.mrf.mxu0 }
 0xb47   :  { %2646 = vst.msk [vmem:[#allocation3 + $0x1b8] sm:$0xff] %vm2591_vm15, %v2587_v5  ;;  %2928 = vst.msk [vmem:[#allocation3 + $0x338] sm:$0xff] %vm2591_vm15, %v2853_v3  ;;  %v14314_v5 = vld [vmem:[#allocation29 + $0x1c0] ss:$8 sps:$4 sm:$0xff]  }
 0xb48   :  { %v2875_v7 = vpop.f32.mrf.mxu1  ;;  %v2857_v4 = vpop.f32.mrf.mxu0 }
 0xb49   :  { %2935 = vst [vmem:[#allocation3 + $0x370] sm:$0xff] %v2875_v7  ;;  %2929 = vst [vmem:[#allocation3 + $0x340] sm:$0xff] %v2857_v4  ;;  %v14322_v7 = vld [vmem:[#allocation29 + $0x294] ss:$8 sps:$4 sm:$0xff]  }
 0xb4a   :  { %v2877_v9 = vpop.f32.mrf.mxu1 }
 0xb4b   :  { %2936 = vst.msk [vmem:[#allocation3 + $0x378] sm:$0xff] %vm2591_vm15, %v2877_v9  ;;  %v2859_v9 = vpop.f32.mrf.mxu0 }
 0xb4c   :  { %v3000_v12 = vpop.f32.mrf.mxu1  ;;  %2930 = vst.msk [vmem:[#allocation3 + $0x348] sm:$0xff] %vm2591_vm15, %v2859_v9 }
 0xb4d   :  { %v3001_v14 = vadd.f32 %v12308_v10, %v3000_v12  ;;  %v2863_v10 = vpop.f32.mrf.mxu0  ;;  %v14323_v12 = vld [vmem:[#allocation29 + $0x370] ss:$8 sps:$4 sm:$0xff]  }
 0xb4e   :  { %v13923_v15 = vpop.f32.mrf.mxu1  ;;  %2931 = vst [vmem:[#allocation3 + $0x350] sm:$0xff] %v2863_v10 }
 0xb4f   :  { %v3025_v17 = vsel %vm3021_vm14, %v3001_v14, %v14112_v27  ;;  %v14281_v27 = vld [vmem:[#allocation29 + $0x300] ss:$8 sps:$4 sm:$0xff]   ;;  %v14331_v14 = vld [vmem:[#allocation29 + $0x364] ss:$8 sps:$4 sm:$0xff]   ;;  %v2865_v15 = vpop.f32.mrf.mxu0 }
 0xb50   :  { %v17352_v20 = vpack.c.bf16 %v3025_v17, %v3025_v17  ;;  %v3003_v24 = vpop.f32.mrf.mxu1  ;;  %2932 = vst.msk [vmem:[#allocation3 + $0x358] sm:$0xff] %vm2591_vm15, %v2865_v15  ;;  %v14326_v17 = vld [vmem:[#allocation29 + $0x280] ss:$8 sps:$4 sm:$0xff]  }
 0xb51   :  { %v2869_v16 = vpop.f32.mrf.mxu0  ;;  %v14332_v24 = vld [vmem:[#allocation29 + $0x270] ss:$8 sps:$4 sm:$0xff]  }
 0xb52   :  { %3244 = vmatmul.mubr.bf16.vlgmr.msra.gmra.mxu0 %v17352_v20  ;;  %3479 = vmatmul.mubr.bf16.vlgmr.msra.gmra.mxu1 %v17352_v20  ;;  %v13924_v28 = vpop.f32.mrf.mxu1  ;;  %2933 = vst [vmem:[#allocation3 + $0x360] sm:$0xff] %v2869_v16 }
 0xb53   :  { %3682 = vmatpush1.bf16.msra.mxu0 %v14272_v18  ;;  %3907 = vmatpush1.bf16.msra.mxu1 %v14275_v19  ;;  %v14329_v18 = vld [vmem:[#allocation29 + $0x360] ss:$8 sps:$4 sm:$0xff]   ;;  %v14334_v19 = vld [vmem:[#allocation29 + $0x274] ss:$8 sps:$4 sm:$0xff]   ;;  %v14340_v28 = vld [vmem:[#allocation29 + $0x264] ss:$8 sps:$4 sm:$0xff]  }
 0xb54   :  { %3683 = vmatprep.subr.bf16.mxu0 %v14280_v21  ;;  %3908 = vmatprep.subr.bf16.mxu1 %v14283_v23  ;;  %v14337_v21 = vld [vmem:[#allocation29 + $0x354] ss:$8 sps:$4 sm:$0xff]   ;;  %v2871_v23 = vpop.f32.mrf.mxu0 }
 0xb55   :  { %12401 = vmatprep.mubr.msk.bf16.mxu0 %vm2591_vm15, %v17297_v32  ;;  %12430 = vmatprep.mubr.msk.bf16.mxu1 %vm2591_vm15, %v17297_v32  ;;  %v14293_v32 = vld [vmem:[#allocation29 + $0x2e0] ss:$8 sps:$4 sm:$0xff]   ;;  %2934 = vst.msk [vmem:[#allocation3 + $0x368] sm:$0xff] %vm2591_vm15, %v2871_v23 }
 0xb57   :  { %3684 = vmatpush1.bf16.msra.mxu0 %v14278_v22  ;;  %3909 = vmatpush1.bf16.msra.mxu1 %v14281_v27  ;;  %v14338_v22 = vld [vmem:[#allocation29 + $0x260] ss:$8 sps:$4 sm:$0xff]  }
 0xb58   :  { %3685 = vmatprep.subr.bf16.mxu0 %v14286_v31  ;;  %3910 = vmatprep.subr.bf16.mxu1 %v14289_v33  ;;  %v14341_v27 = vld [vmem:[#allocation29 + $0x340] ss:$8 sps:$4 sm:$0xff]   ;;  %v14346_v31 = vld [vmem:[#allocation29 + $0x254] ss:$8 sps:$4 sm:$0xff]  }
 0xb59   :  { %v14349_v33 = vld [vmem:[#allocation29 + $0x334] ss:$8 sps:$4 sm:$0xff]  }
 0xb5b   :  { %3686 = vmatpush1.bf16.msra.mxu0 %v14284_v37  ;;  %3911 = vmatpush1.bf16.msra.mxu1 %v14287_v38  ;;  %v14352_v37 = vld [vmem:[#allocation29 + $0x244] ss:$8 sps:$4 sm:$0xff]  }
 0xb5c   :  { %3687 = vmatprep.subr.bf16.mxu0 %v14292_v39  ;;  %3912 = vmatprep.subr.bf16.mxu1 %v14295_v40  ;;  %v14355_v38 = vld [vmem:[#allocation29 + $0x324] ss:$8 sps:$4 sm:$0xff]   ;;  %v14350_v39 = vld [vmem:[#allocation29 + $0x240] ss:$8 sps:$4 sm:$0xff]  }
 0xb5d   :  { %v14353_v40 = vld [vmem:[#allocation29 + $0x320] ss:$8 sps:$4 sm:$0xff]  }
 0xb5f   :  { %3688 = vmatpush1.bf16.msra.mxu0 %v14290_v45  ;;  %3913 = vmatpush1.bf16.msra.mxu1 %v14293_v32 }
 0xb60   :  { %3689 = vmatprep.subr.bf16.mxu0 %v14298_v46  ;;  %3914 = vmatprep.subr.bf16.mxu1 %v14301_v47 }
 0xb63   :  { %3690 = vmatpush1.bf16.msra.mxu0 %v14296_v50  ;;  %3915 = vmatpush1.bf16.msra.mxu1 %v14299_v51 }
 0xb64   :  { %3691 = vmatprep.subr.bf16.mxu0 %v14304_v52  ;;  %3916 = vmatprep.subr.bf16.mxu1 %v14307_v53 }
 0xb67   :  { %3692 = vmatpush1.bf16.msra.mxu0 %v14302_v57  ;;  %3917 = vmatpush1.bf16.msra.mxu1 %v14305_v58 }
 0xb68   :  { %3693 = vmatprep.subr.bf16.mxu0 %v14310_v59  ;;  %3918 = vmatprep.subr.bf16.mxu1 %v14313_v60 }
 0xb6b   :  { %3694 = vmatpush1.bf16.msra.mxu0 %v14308_v63  ;;  %3919 = vmatpush1.bf16.msra.mxu1 %v14311_v0 }
 0xb6c   :  { %3695 = vmatprep.subr.bf16.mxu0 %v14316_v1  ;;  %3920 = vmatprep.subr.bf16.mxu1 %v14319_v2 }
 0xb6f   :  { %3696 = vmatpush1.bf16.msra.mxu0 %v14314_v5  ;;  %3921 = vmatpush1.bf16.msra.mxu1 %v14317_v6 }
 0xb70   :  { %3701 = vmatprep.subr.bf16.mxu0 %v14322_v7  ;;  %3926 = vmatprep.subr.bf16.mxu1 %v14325_v8 }
 0xb73   :  { %3702 = vmatpush2.bf16.msra.mxu0 %v14320_v11  ;;  %3927 = vmatpush2.bf16.msra.mxu1 %v14323_v12 }
 0xb74   :  { %3703 = vmatprep.subr.bf16.mxu0 %v14328_v13  ;;  %3928 = vmatprep.subr.bf16.mxu1 %v14331_v14 }
 0xb77   :  { %3704 = vmatpush2.bf16.msra.mxu0 %v14326_v17  ;;  %3929 = vmatpush2.bf16.msra.mxu1 %v14329_v18 }
 0xb78   :  { %3705 = vmatprep.subr.bf16.mxu0 %v14334_v19  ;;  %3930 = vmatprep.subr.bf16.mxu1 %v14337_v21 }
 0xb7b   :  { %3706 = vmatpush2.bf16.msra.mxu0 %v14332_v24  ;;  %3931 = vmatpush2.bf16.msra.mxu1 %v14335_v25 }
 0xb7c   :  { %3707 = vmatprep.subr.bf16.mxu0 %v14340_v28  ;;  %3932 = vmatprep.subr.bf16.mxu1 %v14343_v29 }
 0xb7f   :  { %3708 = vmatpush2.bf16.msra.mxu0 %v14338_v22  ;;  %3933 = vmatpush2.bf16.msra.mxu1 %v14341_v27 }
 0xb80   :  { %3709 = vmatprep.subr.bf16.mxu0 %v14346_v31  ;;  %3934 = vmatprep.subr.bf16.mxu1 %v14349_v33 }
 0xb83   :  { %3710 = vmatpush2.bf16.msra.mxu0 %v14344_v34  ;;  %3935 = vmatpush2.bf16.msra.mxu1 %v14347_v36 }
 0xb84   :  { %3711 = vmatprep.subr.bf16.mxu0 %v14352_v37  ;;  %3936 = vmatprep.subr.bf16.mxu1 %v14355_v38 }
 0xb87   :  { %3712 = vmatpush2.bf16.msra.mxu0 %v14350_v39  ;;  %3937 = vmatpush2.bf16.msra.mxu1 %v14353_v40 }
 0xb8a   :  { %3714 = vmatmul.mubr.bf16.vlgmr.msra.gmra.mxu0 %v17352_v20  ;;  %3939 = vmatmul.mubr.bf16.vlgmr.msra.gmra.mxu1 %v17352_v20 }
 0xb8b   :  { %16384 = shalt.err (!%p16381_p0)  }
 0xb8c   :  { %s17846_s23 = sld [smem:[#allocation94_spill]]  ;;  %s16385_s26 = scalar_lea.vmem %s2946_s18, 14336 }
 0xb8d   :  { %p16386_p1 = scmp.ne.s32.totalorder %s2946_s18, %s16385_s26  ;;  %p16390_p2 = scmp.lt.s32.totalorder %s2946_s18, %s2946_s18 }
 0xb8e   :  { %p16391_p3 = scmp.lt.s32.totalorder %s16385_s26, %s16385_s26 }
 0xb90   :  { %p16392_p4 = por %p16391_p3, %p16390_p2 }
 0xb92   :  { %539 = dma.hbm_to_vmem [thread:$0]  %s17846_s23, 101120, %s537_s29, [#allocation4] }
 0xb93   :  { %p16393_p5 = pnand %p16392_p4, %p16386_p1 }
 0xb95   :  { %16396 = shalt.err (!%p16393_p5)  }
 0xb96   :  { %2948 = dma.vmem_to_hbm [thread:$0]  %s2946_s18, 14336, %s16839_s13, [#allocation4 + $0x1]  ;;  %v17375_v49 = vsub.s32 0, %v16917_v30  ;;  %v3056_v50 = vld [vmem:[#allocation31] sm:$0x3]  ;;  %v17378_v52 = vsub.s32 1, %v16917_v30 }
 0xb97   :  { %v3294_v51 = vld [vmem:[#allocation31 + $0x2] sm:$0x3]  ;;  %v3529_v4 = vld [vmem:[#allocation31 + $0x4] sm:$0x3]  ;;  %v3754_v5 = vld [vmem:[#allocation31 + $0x6] sm:$0x3] }
 0xb98   :  { %v3061_v53 = vrot.slane %v3056_v50, %v17375_v49  ;;  %v3299_v54 = vrot.slane %v3294_v51, %v17375_v49  ;;  %v3065_v56 = vrot.slane %v3056_v50, %v17378_v52  ;;  %v3303_v58 = vrot.slane %v3294_v51, %v17378_v52  ;;  %v12433_v36 = vld.sshfl [vmem:[#allocation8] sm:$0x33 pattern:$0x76325410] }
 0xb99   :  { %v3534_v10 = vrot.slane %v3529_v4, %v17375_v49  ;;  %v3759_v11 = vrot.slane %v3754_v5, %v17375_v49  ;;  %v3538_v13 = vrot.slane %v3529_v4, %v17378_v52  ;;  %v3763_v14 = vrot.slane %v3754_v5, %v17378_v52 }
 0xb9a   :  { %v3967_v40 = vcombine.high %v12433_v36, %v12433_v36  ;;  %vm3991_vm1 = vcmask 519170  }
 0xb9b   :  { %vm3992_vm3 = vmor %vm3991_vm1, %vm2141_vm7 }
 0xc12   :  { %v3245_v20 = vpop.f32.mrf.mxu0  ;;  %v3480_v43 = vpop.f32.mrf.mxu1 }
 0xc13   :  { %v3246_v57 = vadd.f32 %v3245_v20, %v3061_v53  ;;  %v3481_v59 = vadd.f32 %v3480_v43, %v3299_v54 }
 0xc14   :  { %v3247_v44 = vpop.f32.mrf.mxu0  ;;  %v3482_v45 = vpop.f32.mrf.mxu1 }
 0xc15   :  { %v3248_v60 = vadd.f32 %v3247_v44, %v3065_v56  ;;  %v12340_v61 = vmul.f32 -1.442695, %v3246_v57  ;;  %v3483_v62 = vadd.f32 %v3482_v45, %v3303_v58  ;;  %v12371_v63 = vmul.f32 -1.442695, %v3481_v59 }
 0xc16   :  { %v3249_v32 = vpop.f32.mrf.mxu0  ;;  %v3484_v46 = vpop.f32.mrf.mxu1 }
 0xc17   :  { %v12341_v0 = vmul.f32 -1.442695, %v3248_v60  ;;  %14366 = vpow2.f32 %v12340_v61  ;;  %v12372_v1 = vmul.f32 -1.442695, %v3483_v62 }
 0xc18   :  { %v3250_v47 = vpop.f32.mrf.mxu0  ;;  %v3485_v48 = vpop.f32.mrf.mxu1  ;;  %14368 = vpow2.f32 %v12371_v63 }
 0xc19   :  { %14370 = vpow2.f32 %v12341_v0 }
 0xc1a   :  { %14372 = vpow2.f32 %v12372_v1 }
 0xc24   :  { %v14367_v2 = vpop.eup %14366 }
 0xc25   :  { %v14369_v3 = vpop.eup %14368  ;;  %v3258_v7 = vadd.f32 1.0, %v14367_v2 }
 0xc26   :  { %v14371_v6 = vpop.eup %14370  ;;  %v3493_v9 = vadd.f32 1.0, %v14369_v3 }
 0xc27   :  { %v14373_v8 = vpop.eup %14372  ;;  %v3259_v12 = vadd.f32 1.0, %v14371_v6  ;;  %14374 = vrcp.f32 %v3258_v7 }
 0xc28   :  { %v3494_v15 = vadd.f32 1.0, %v14373_v8  ;;  %14376 = vrcp.f32 %v3493_v9 }
 0xc29   :  { %14378 = vrcp.f32 %v3259_v12 }
 0xc34   :  { %v14375_v34 = vpop.eup %14374 }
 0xc35   :  { %v14377_v37 = vpop.eup %14376 }
 0xc36   :  { %v14379_v38 = vpop.eup %14378  ;;  %v3970_v43 = vmul.f32 %v14377_v37, %v12433_v36 }
 0xc4a   :  { %v3715_v16 = vpop.f32.mrf.mxu0  ;;  %v3940_v17 = vpop.f32.mrf.mxu1 }
 0xc4b   :  { %v3716_v18 = vadd.f32 %v3715_v16, %v3534_v10  ;;  %v3941_v19 = vadd.f32 %v3940_v17, %v3759_v11 }
 0xc4c   :  { %v3717_v21 = vpop.f32.mrf.mxu0  ;;  %v3942_v23 = vpop.f32.mrf.mxu1 }
 0xc4d   :  { %14380 = vtanh.f32 %v3716_v18  ;;  %v12431_v24 = vmul.f32 -1.442695, %v3941_v19  ;;  %v3718_v25 = vadd.f32 %v3717_v21, %v3538_v13  ;;  %v3943_v28 = vadd.f32 %v3942_v23, %v3763_v14 }
 0xc4e   :  { %14382 = vrcp.f32 %v3494_v15  ;;  %v3719_v29 = vpop.f32.mrf.mxu0  ;;  %v3944_v22 = vpop.f32.mrf.mxu1 }
 0xc4f   :  { %14384 = vpow2.f32 %v12431_v24  ;;  %v12432_v27 = vmul.f32 -1.442695, %v3943_v28 }
 0xc50   :  { %14386 = vtanh.f32 %v3718_v25  ;;  %v3720_v31 = vpop.f32.mrf.mxu0  ;;  %v3945_v33 = vpop.f32.mrf.mxu1 }
 0xc51   :  { %14388 = vpow2.f32 %v12432_v27 }
 0xc5a   :  { %v14381_v39 = vpop.eup %14380 }
 0xc5b   :  { %v14383_v20 = vpop.eup %14382  ;;  %v3972_v44 = vmul.f32 %v14381_v39, %v14375_v34 }
 0xc5c   :  { %v14385_v45 = vpop.eup %14384  ;;  %v3971_v50 = vmul.f32 %v14383_v20, %v3967_v40 }
 0xc5d   :  { %v14387_v32 = vpop.eup %14386  ;;  %v3974_v46 = vadd.f32 %v3972_v44, %v3970_v43  ;;  %v3953_v47 = vadd.f32 1.0, %v14385_v45 }
 0xc5e   :  { %v14389_v48 = vpop.eup %14388  ;;  %v3973_v51 = vmul.f32 %v14387_v32, %v14379_v38 }
 0xc5f   :  { %14390 = vtanh.f32 %v3974_v46  ;;  %v3954_v53 = vadd.f32 1.0, %v14389_v48 }
 0xc60   :  { %14392 = vrcp.f32 %v3953_v47  ;;  %v3975_v54 = vadd.f32 %v3973_v51, %v3971_v50 }
 0xc61   :  { %14394 = vrcp.f32 %v3954_v53 }
 0xc62   :  { %14396 = vtanh.f32 %v3975_v54  ;;  %v3996_v56 = vcombine.low %v3974_v46, %v3975_v54 }
 0xc64   :  { %v4003_v57 = vrot.slane %v3996_v56, %v16920_v35 }
 0xc66   :  { %4005 = vst.msk [vmem:[#allocation53] sm:$0xf] %vm3992_vm3, %v4003_v57 }
 0xc6c   :  { %v14391_v58 = vpop.eup %14390 }
 0xc6d   :  { %v14393_v59 = vpop.eup %14392 }
 0xc6e   :  { %v14395_v60 = vpop.eup %14394  ;;  %v17390_v62 = vmul.f32 %v14393_v59, %v14391_v58 }
 0xc6f   :  { %v14397_v61 = vpop.eup %14396 }
 0xc70   :  { %v17392_v63 = vmul.f32 %v14397_v61, %v14395_v60 }
 0xc72   :  { %v3982_v0 = vcombine.low %v17390_v62, %v17392_v63 }
 0xc74   :  { %v3989_v1 = vrot.slane %v3982_v0, %v16920_v35 }
 0xc76   :  { %3993 = vst.msk [vmem:[#allocation52] sm:$0xf] %vm3992_vm3, %v3989_v1 }
 0xc77   :  { %16537 = dma.done.wait [#allocation4], 101120 }
 0xc78   :  { %16538 = vsyncadd [#allocation4], 4294866176  ;;  %v4011_v2 = vld [vmem:[#allocation10] sm:$0xff]  ;;  %v14412_v8 = vld [vmem:[#allocation2 + $0xf4] ss:$20 sps:$4 sm:$0xff]   ;;  %s16635_s13 = smov 49  }
 0xc79   :  { %v4024_v3 = vrot.slane %v4011_v2, %v16920_v35  ;;  %v4017_v4 = vcombine.high %v4011_v2, %v4011_v2  ;;  %v14409_v5 = vld [vmem:[#allocation2 + $0x11c] ss:$20 sps:$4 sm:$0xff]   ;;  %v14411_v6 = vld [vmem:[#allocation2 + $0x118] ss:$20 sps:$4 sm:$0xff]   ;;  %v14420_v17 = vld [vmem:[#allocation2 + $0x374] ss:$20 sps:$4 sm:$0xff]  }
 0xc7a   :  { %v12434_v7 = vld.sshfl [vmem:[#allocation10 + $0x8] sm:$0x3 pattern:$0x76325410]  ;;  %5376 = vmatprep.subr.bf16.mxu0 %v14409_v5  ;;  %v14414_v11 = vld [vmem:[#allocation2 + $0x39c] ss:$20 sps:$4 sm:$0xff]  }
 0xc7b   :  { %v4032_v9 = vcombine.high %v4024_v3, %v4024_v3  ;;  %v4031_v10 = vrot.slane %v4017_v4, %v16920_v35  ;;  %5377 = vmatpush1.bf16.msra.mxu0 %v14411_v6  ;;  %v14416_v12 = vld [vmem:[#allocation2 + $0xf0] ss:$20 sps:$4 sm:$0xff]   ;;  %v14417_v13 = vld [vmem:[#allocation2 + $0x398] ss:$20 sps:$4 sm:$0xff]   ;;  %5417 = vmatprep.subr.bf16.mxu1 %v14414_v11  ;;  %v14422_v21 = vld [vmem:[#allocation2 + $0xc8] ss:$20 sps:$4 sm:$0xff]  }
 0xc7c   :  { %5378 = vmatprep.subr.bf16.mxu0 %v14412_v8  ;;  %v14418_v16 = vld [vmem:[#allocation2 + $0xcc] ss:$20 sps:$4 sm:$0xff]   ;;  %5418 = vmatpush1.bf16.msra.mxu1 %v14417_v13  ;;  %v14423_v19 = vld [vmem:[#allocation2 + $0x370] ss:$20 sps:$4 sm:$0xff]   ;;  %v14429_v25 = vld [vmem:[#allocation2 + $0x348] ss:$20 sps:$4 sm:$0xff]  }
 0xc7d   :  { %v14398_v14 = vpack.i.bf16 %v4032_v9, %v4024_v3  ;;  %4045 = vrot.lane.b32.xlu1 %v4031_v10, %s16635_s13  ;;  %v4033_v15 = vcombine.high %v4031_v10, %v4031_v10  ;;  %5419 = vmatprep.subr.bf16.mxu1 %v14420_v17  ;;  %v14424_v23 = vld [vmem:[#allocation2 + $0xa4] ss:$20 sps:$4 sm:$0xff]   ;;  %v14426_v24 = vld [vmem:[#allocation2 + $0x34c] ss:$20 sps:$4 sm:$0xff]   ;;  %v14430_v22 = vld [vmem:[#allocation2 + $0x7c] ss:$20 sps:$4 sm:$0xff]  }
 0xc7e   :  { %v14428_v28 = vld [vmem:[#allocation2 + $0xa0] ss:$20 sps:$4 sm:$0xff]   ;;  %v14432_v29 = vld [vmem:[#allocation2 + $0x324] ss:$20 sps:$4 sm:$0xff]   ;;  %v14438_v33 = vld [vmem:[#allocation2 + $0x2fc] ss:$20 sps:$4 sm:$0xff]  }
 0xc7f   :  { %14399 = vrot.lane.b32.xlu0 %v14398_v14, %s16635_s13  ;;  %v14403_v18 = vpack.i.bf16 %v12434_v7, %v4033_v15  ;;  %5379 = vmatpush1.bf16.msra.mxu0 %v14416_v12  ;;  %v14434_v27 = vld [vmem:[#allocation2 + $0x78] ss:$20 sps:$4 sm:$0xff]   ;;  %v14435_v31 = vld [vmem:[#allocation2 + $0x320] ss:$20 sps:$4 sm:$0xff]   ;;  %v14440_v37 = vld [vmem:[#allocation2 + $0x50] ss:$20 sps:$4 sm:$0xff]  }
 0xc80   :  { %5380 = vmatprep.subr.bf16.mxu0 %v14418_v16  ;;  %5420 = vmatpush1.bf16.msra.mxu1 %v14423_v19  ;;  %v14436_v34 = vld [vmem:[#allocation2 + $0x54] ss:$20 sps:$4 sm:$0xff]   ;;  %v14441_v36 = vld [vmem:[#allocation2 + $0x2f8] ss:$20 sps:$4 sm:$0xff]   ;;  %v14447_v20 = vld [vmem:[#allocation2 + $0x2d0] ss:$20 sps:$4 sm:$0xff]  }
 0xc81   :  { %5421 = vmatprep.subr.bf16.mxu1 %v14426_v24  ;;  %v14444_v38 = vld [vmem:[#allocation2 + $0x2d4] ss:$20 sps:$4 sm:$0xff]   ;;  %v14442_v39 = vld [vmem:[#allocation2 + $0x2c] ss:$20 sps:$4 sm:$0xff]   ;;  %v14448_v44 = vld [vmem:[#allocation2 + $0x4] ss:$20 sps:$4 sm:$0xff]  }
 0xc82   :  { %v14446_v40 = vld [vmem:[#allocation2 + $0x28] ss:$20 sps:$4 sm:$0xff]   ;;  %v14450_v43 = vld [vmem:[#allocation2 + $0x2ac] ss:$20 sps:$4 sm:$0xff]   ;;  %v14456_v46 = vld [vmem:[#allocation2 + $0x284] ss:$20 sps:$4 sm:$0xff]  }
 0xc83   :  { %14404 = vrot.lane.b32.xlu0 %v14403_v18, %s16635_s13  ;;  %5381 = vmatpush1.bf16.msra.mxu0 %v14422_v21  ;;  %v14453_v45 = vld [vmem:[#allocation2 + $0x2a8] ss:$20 sps:$4 sm:$0xff]   ;;  %v14452_v32 = vld [vmem:[#allocation2] ss:$20 sps:$4 sm:$0xff]   ;;  %v14458_v48 = vld [vmem:[#allocation2 + $0x258] ss:$20 sps:$4 sm:$0xff]  }
 0xc84   :  { %5382 = vmatprep.subr.bf16.mxu0 %v14424_v23  ;;  %5422 = vmatpush1.bf16.msra.mxu1 %v14429_v25  ;;  %v14454_v47 = vld [vmem:[#allocation2 + $0x25c] ss:$20 sps:$4 sm:$0xff]   ;;  %v14459_v50 = vld [vmem:[#allocation2 + $0x280] ss:$20 sps:$4 sm:$0xff]   ;;  %v14465_v54 = vld [vmem:[#allocation2 + $0x4d8] ss:$20 sps:$4 sm:$0xff]  }
 0xc85   :  { %5423 = vmatprep.subr.bf16.mxu1 %v14432_v29  ;;  %v14462_v51 = vld [vmem:[#allocation2 + $0x4dc] ss:$20 sps:$4 sm:$0xff]   ;;  %v14460_v53 = vld [vmem:[#allocation2 + $0x234] ss:$20 sps:$4 sm:$0xff]   ;;  %v14466_v58 = vld [vmem:[#allocation2 + $0x20c] ss:$20 sps:$4 sm:$0xff]  }
 0xc86   :  { %v14464_v56 = vld [vmem:[#allocation2 + $0x230] ss:$20 sps:$4 sm:$0xff]   ;;  %v14468_v57 = vld [vmem:[#allocation2 + $0x4b4] ss:$20 sps:$4 sm:$0xff]   ;;  %v14474_v61 = vld [vmem:[#allocation2 + $0x48c] ss:$20 sps:$4 sm:$0xff]  }
 0xc87   :  { %5383 = vmatpush1.bf16.msra.mxu0 %v14428_v28  ;;  %v14470_v59 = vld [vmem:[#allocation2 + $0x208] ss:$20 sps:$4 sm:$0xff]   ;;  %v14471_v60 = vld [vmem:[#allocation2 + $0x4b0] ss:$20 sps:$4 sm:$0xff]   ;;  %v14476_v2 = vld [vmem:[#allocation2 + $0x1e0] ss:$20 sps:$4 sm:$0xff]  }
 0xc88   :  { %5384 = vmatprep.subr.bf16.mxu0 %v14430_v22  ;;  %5424 = vmatpush1.bf16.msra.mxu1 %v14435_v31  ;;  %v14472_v0 = vld [vmem:[#allocation2 + $0x1e4] ss:$20 sps:$4 sm:$0xff]   ;;  %v14477_v1 = vld [vmem:[#allocation2 + $0x488] ss:$20 sps:$4 sm:$0xff]   ;;  %v14483_v5 = vld [vmem:[#allocation2 + $0x460] ss:$20 sps:$4 sm:$0xff]  }
 0xc89   :  { %5425 = vmatprep.subr.bf16.mxu1 %v14438_v33  ;;  %v14480_v3 = vld [vmem:[#allocation2 + $0x464] ss:$20 sps:$4 sm:$0xff]   ;;  %v14478_v4 = vld [vmem:[#allocation2 + $0x1bc] ss:$20 sps:$4 sm:$0xff]   ;;  %v14484_v8 = vld [vmem:[#allocation2 + $0x194] ss:$20 sps:$4 sm:$0xff]  }
 0xc8a   :  { %v14482_v6 = vld [vmem:[#allocation2 + $0x1b8] ss:$20 sps:$4 sm:$0xff]   ;;  %v14486_v7 = vld [vmem:[#allocation2 + $0x43c] ss:$20 sps:$4 sm:$0xff]   ;;  %v14492_v11 = vld [vmem:[#allocation2 + $0x414] ss:$20 sps:$4 sm:$0xff]  }
 0xc8b   :  { %5385 = vmatpush1.bf16.msra.mxu0 %v14434_v27  ;;  %v14489_v9 = vld [vmem:[#allocation2 + $0x438] ss:$20 sps:$4 sm:$0xff]   ;;  %v14488_v10 = vld [vmem:[#allocation2 + $0x190] ss:$20 sps:$4 sm:$0xff]   ;;  %v14494_v15 = vld [vmem:[#allocation2 + $0x168] ss:$20 sps:$4 sm:$0xff]  }
 0xc8c   :  { %5386 = vmatprep.subr.bf16.mxu0 %v14436_v34  ;;  %5426 = vmatpush1.bf16.msra.mxu1 %v14441_v36  ;;  %v14490_v12 = vld [vmem:[#allocation2 + $0x16c] ss:$20 sps:$4 sm:$0xff]   ;;  %v4300_v13 = vld [vmem:[#allocation2 + $0x618] sm:$0x11]  ;;  %v14495_v14 = vld [vmem:[#allocation2 + $0x410] ss:$20 sps:$4 sm:$0xff]  }
 0xc8d   :  { %5427 = vmatprep.subr.bf16.mxu1 %v14444_v38  ;;  %v14498_v16 = vld [vmem:[#allocation2 + $0x3ec] ss:$20 sps:$4 sm:$0xff]   ;;  %v14496_v17 = vld [vmem:[#allocation2 + $0x144] ss:$20 sps:$4 sm:$0xff]   ;;  %v12631_v18 = vcombine.high %v4300_v13, %v4300_v13  ;;  %v14501_v19 = vld [vmem:[#allocation2 + $0x3e8] ss:$20 sps:$4 sm:$0xff]   ;;  %v12630_v22 = vcombine.low %v4300_v13, %v4300_v13 }
 0xc8e   :  { %v14500_v21 = vld [vmem:[#allocation2 + $0x140] ss:$20 sps:$4 sm:$0xff]   ;;  %v14502_v23 = vld [vmem:[#allocation2 + $0x3c4] ss:$20 sps:$4 sm:$0xff]   ;;  %vm5357_vm4 = vcmask 924672  }
 0xc8f   :  { %5387 = vmatpush1.bf16.msra.mxu0 %v14440_v37  ;;  %v5365_v24 = vand.u32 %v12631_v18, %v16982_v26  ;;  %v14506_v25 = vld [vmem:[#allocation2 + $0x3c0] ss:$20 sps:$4 sm:$0xff]   ;;  %v14512_v28 = vld [vmem:[#allocation2 + $0x3a4] ss:$20 sps:$4 sm:$0xff]  }
 0xc90   :  { %5388 = vmatprep.subr.bf16.mxu0 %v14442_v39  ;;  %5428 = vmatpush1.bf16.msra.mxu1 %v14447_v20  ;;  %v14546_v13 = vld [vmem:[#allocation2 + $0x2b0] ss:$20 sps:$4 sm:$0xff]  }
 0xc91   :  { %5429 = vmatprep.subr.bf16.mxu1 %v14450_v43  ;;  %v14509_v43 = vld [vmem:[#allocation2 + $0x5f4] ss:$20 sps:$4 sm:$0xff]  }
 0xc93   :  { %5389 = vmatpush1.bf16.msra.mxu0 %v14446_v40  ;;  %v5362_v40 = vand.u32 %v12630_v22, %v16982_v26  ;;  %v14566_v22 = vld [vmem:[#allocation2 + $0x4bc] ss:$20 sps:$4 sm:$0xff]  }
 0xc94   :  { %5390 = vmatprep.subr.bf16.mxu0 %v14448_v44  ;;  %5430 = vmatpush1.bf16.msra.mxu1 %v14453_v45  ;;  %v14507_v45 = vld [vmem:[#allocation2 + $0x5f0] ss:$20 sps:$4 sm:$0xff]  }
 0xc95   :  { %5431 = vmatprep.subr.bf16.mxu1 %v14456_v46 }
 0xc97   :  { %5391 = vmatpush1.bf16.msra.mxu0 %v14452_v32 }
 0xc98   :  { %5392 = vmatprep.subr.bf16.mxu0 %v14454_v47  ;;  %5432 = vmatpush1.bf16.msra.mxu1 %v14459_v50  ;;  %v14515_v47 = vld [vmem:[#allocation2 + $0x5cc] ss:$20 sps:$4 sm:$0xff]   ;;  %v14518_v50 = vld [vmem:[#allocation2 + $0x37c] ss:$20 sps:$4 sm:$0xff]  }
 0xc99   :  { %5433 = vmatprep.subr.bf16.mxu1 %v14462_v51  ;;  %v14513_v51 = vld [vmem:[#allocation2 + $0x5c8] ss:$20 sps:$4 sm:$0xff]  }
 0xc9b   :  { %5393 = vmatpush2.bf16.msra.mxu0 %v14458_v48 }
 0xc9c   :  { %5394 = vmatprep.subr.bf16.mxu0 %v14460_v53  ;;  %5434 = vmatpush2.bf16.msra.mxu1 %v14465_v54  ;;  %v14516_v53 = vld [vmem:[#allocation2 + $0x378] ss:$20 sps:$4 sm:$0xff]  }
 0xc9d   :  { %5435 = vmatprep.subr.bf16.mxu1 %v14468_v57  ;;  %v14521_v54 = vld [vmem:[#allocation2 + $0x5a4] ss:$20 sps:$4 sm:$0xff]   ;;  %v14519_v57 = vld [vmem:[#allocation2 + $0x5a0] ss:$20 sps:$4 sm:$0xff]  }
 0xc9f   :  { %5395 = vmatpush2.bf16.msra.mxu0 %v14464_v56  ;;  %v14524_v56 = vld [vmem:[#allocation2 + $0x354] ss:$20 sps:$4 sm:$0xff]  }
 0xca0   :  { %5396 = vmatprep.subr.bf16.mxu0 %v14466_v58  ;;  %5436 = vmatpush2.bf16.msra.mxu1 %v14471_v60  ;;  %v14522_v58 = vld [vmem:[#allocation2 + $0x350] ss:$20 sps:$4 sm:$0xff]   ;;  %v14530_v60 = vld [vmem:[#allocation2 + $0x32c] ss:$20 sps:$4 sm:$0xff]  }
 0xca1   :  { %5437 = vmatprep.subr.bf16.mxu1 %v14474_v61  ;;  %v14525_v61 = vld [vmem:[#allocation2 + $0x578] ss:$20 sps:$4 sm:$0xff]  }
 0xca3   :  { %5397 = vmatpush2.bf16.msra.mxu0 %v14470_v59  ;;  %v14527_v59 = vld [vmem:[#allocation2 + $0x57c] ss:$20 sps:$4 sm:$0xff]  }
 0xca4   :  { %5398 = vmatprep.subr.bf16.mxu0 %v14472_v0  ;;  %5438 = vmatpush2.bf16.msra.mxu1 %v14477_v1  ;;  %v14528_v0 = vld [vmem:[#allocation2 + $0x328] ss:$20 sps:$4 sm:$0xff]  }
 0xca5   :  { %5439 = vmatprep.subr.bf16.mxu1 %v14480_v3  ;;  %v14533_v1 = vld [vmem:[#allocation2 + $0x554] ss:$20 sps:$4 sm:$0xff]   ;;  %v14531_v3 = vld [vmem:[#allocation2 + $0x550] ss:$20 sps:$4 sm:$0xff]  }
 0xca7   :  { %5399 = vmatpush2.bf16.msra.mxu0 %v14476_v2  ;;  %v14536_v2 = vld [vmem:[#allocation2 + $0x304] ss:$20 sps:$4 sm:$0xff]  }
 0xca8   :  { %5400 = vmatprep.subr.bf16.mxu0 %v14478_v4  ;;  %5440 = vmatpush2.bf16.msra.mxu1 %v14483_v5  ;;  %v14534_v4 = vld [vmem:[#allocation2 + $0x300] ss:$20 sps:$4 sm:$0xff]  }
 0xca9   :  { %5441 = vmatprep.subr.bf16.mxu1 %v14486_v7  ;;  %v14539_v5 = vld [vmem:[#allocation2 + $0x52c] ss:$20 sps:$4 sm:$0xff]   ;;  %v14537_v7 = vld [vmem:[#allocation2 + $0x528] ss:$20 sps:$4 sm:$0xff]  }
 0xcab   :  { %5401 = vmatpush2.bf16.msra.mxu0 %v14482_v6  ;;  %v14542_v6 = vld [vmem:[#allocation2 + $0x2dc] ss:$20 sps:$4 sm:$0xff]  }
 0xcac   :  { %5402 = vmatprep.subr.bf16.mxu0 %v14484_v8  ;;  %5442 = vmatpush2.bf16.msra.mxu1 %v14489_v9  ;;  %v14540_v8 = vld [vmem:[#allocation2 + $0x2d8] ss:$20 sps:$4 sm:$0xff]  }
 0xcad   :  { %5443 = vmatprep.subr.bf16.mxu1 %v14492_v11  ;;  %v14548_v11 = vld [vmem:[#allocation2 + $0x2b4] ss:$20 sps:$4 sm:$0xff]  }
 0xcaf   :  { %5403 = vmatpush2.bf16.msra.mxu0 %v14488_v10  ;;  %v14545_v10 = vld [vmem:[#allocation2 + $0x504] ss:$20 sps:$4 sm:$0xff]  }
 0xcb0   :  { %5404 = vmatprep.subr.bf16.mxu0 %v14490_v12  ;;  %5444 = vmatpush2.bf16.msra.mxu1 %v14495_v14  ;;  %v14543_v12 = vld [vmem:[#allocation2 + $0x500] ss:$20 sps:$4 sm:$0xff]  }
 0xcb1   :  { %5445 = vmatprep.subr.bf16.mxu1 %v14498_v16  ;;  %v14554_v16 = vld [vmem:[#allocation2 + $0x28c] ss:$20 sps:$4 sm:$0xff]  }
 0xcb3   :  { %5405 = vmatpush2.bf16.msra.mxu0 %v14494_v15  ;;  %v14551_v15 = vld [vmem:[#allocation2 + $0x124] ss:$20 sps:$4 sm:$0xff]  }
 0xcb4   :  { %5406 = vmatprep.subr.bf16.mxu0 %v14496_v17  ;;  %5446 = vmatpush2.bf16.msra.mxu1 %v14501_v19  ;;  %v14549_v17 = vld [vmem:[#allocation2 + $0x120] ss:$20 sps:$4 sm:$0xff]   ;;  %v14552_v19 = vld [vmem:[#allocation2 + $0x288] ss:$20 sps:$4 sm:$0xff]  }
 0xcb5   :  { %5447 = vmatprep.subr.bf16.mxu1 %v14502_v23  ;;  %v14560_v23 = vld [vmem:[#allocation2 + $0x4e4] ss:$20 sps:$4 sm:$0xff]  }
 0xcb7   :  { %5407 = vmatpush2.bf16.msra.mxu0 %v14500_v21  ;;  %v14557_v21 = vld [vmem:[#allocation2 + $0xfc] ss:$20 sps:$4 sm:$0xff]  }
 0xcb8   :  { %5458 = vmatprep.subr.bf16.mxu0 %v5365_v24  ;;  %5448 = vmatpush2.bf16.msra.mxu1 %v14506_v25  ;;  %v14555_v24 = vld [vmem:[#allocation2 + $0xf8] ss:$20 sps:$4 sm:$0xff]   ;;  %v14558_v25 = vld [vmem:[#allocation2 + $0x4e0] ss:$20 sps:$4 sm:$0xff]  }
 0xcb9   :  { %5540 = vmatprep.subr.bf16.mxu1 %v14512_v28  ;;  %v14563_v28 = vld [vmem:[#allocation2 + $0xd4] ss:$20 sps:$4 sm:$0xff]  }
 0xcef   :  { %v4046_v36 = vpop.permute.xlu1 %4045 }
 0xcf1   :  { %v14400_v29 = vpop.permute.xlu0 %14399 }
 0xcf2   :  { %v14402_v27 = vunpack.i.h.bf16 %v14400_v29  ;;  %v14401_v31 = vunpack.i.l.bf16 %v14400_v29  ;;  %v14561_v29 = vld [vmem:[#allocation2 + $0xd0] ss:$20 sps:$4 sm:$0xff]  }
 0xcf4   :  { %v4051_v33 = vsel %vm1331_vm5, %v14401_v31, %v14402_v27  ;;  %v4060_v34 = vsel %vm1331_vm5, %v17146_v55, %v14401_v31  ;;  %v4052_v44 = vsel %vm1331_vm5, %v14402_v27, %v4046_v36  ;;  %v14510_v55 = vld [vmem:[#allocation2 + $0x3a0] ss:$20 sps:$4 sm:$0xff]   ;;  %v14564_v27 = vld [vmem:[#allocation2 + $0x4b8] ss:$20 sps:$4 sm:$0xff]  }
 0xcf5   :  { %v17403_v37 = vpack.c.bf16 %v4060_v34, %v4060_v34  ;;  %v17405_v38 = vpack.c.bf16 %v4051_v33, %v4051_v33  ;;  %v17407_v39 = vpop.permute.xlu0 %14404  ;;  %v17418_v48 = vpack.c.bf16 %v4052_v44, %v4052_v44  ;;  %v14569_v31 = vld [vmem:[#allocation2 + $0xac] ss:$20 sps:$4 sm:$0xff]   ;;  %v14567_v33 = vld [vmem:[#allocation2 + $0xa8] ss:$20 sps:$4 sm:$0xff]  }
 0xcf6   :  { %v14406_v20 = vunpack.i.l.bf16 %v17407_v39  ;;  %v14407_v9 = vunpack.i.h.bf16 %v17407_v39  ;;  %v14572_v34 = vld [vmem:[#allocation2 + $0x494] ss:$20 sps:$4 sm:$0xff]   ;;  %v14575_v39 = vld [vmem:[#allocation2 + $0x84] ss:$20 sps:$4 sm:$0xff]   ;;  %v14581_v44 = vld [vmem:[#allocation2 + $0x5c] ss:$20 sps:$4 sm:$0xff]  }
 0xcf7   :  { %5408 = vmatprep.mubr.bf16.mxu0 %v17405_v38 }
 0xcf8   :  { %v4053_v32 = vsel %vm1331_vm5, %v4046_v36, %v14406_v20  ;;  %5409 = vmatmul.mubr.bf16.vlgmr.msra.gmra.mxu0 %v17403_v37  ;;  %v4054_v14 = vsel %vm1331_vm5, %v14406_v20, %v14407_v9  ;;  %v14570_v36 = vld [vmem:[#allocation2 + $0x490] ss:$20 sps:$4 sm:$0xff]   ;;  %v14578_v20 = vld [vmem:[#allocation2 + $0x46c] ss:$20 sps:$4 sm:$0xff]   ;;  %vm10947_vm5 = vcmask 517120  }
 0xcf9   :  { %v17415_v46 = vpack.c.bf16 %v4053_v32, %v4053_v32  ;;  %5459 = vmatpush1.bf16.msra.mxu0 %v5362_v40  ;;  %5490 = vmatprep.mubr.bf16.mxu0 %v16625_v42  ;;  %v17425_v18 = vpack.c.bf16 %v4054_v14, %v4054_v14  ;;  %v14573_v40 = vld [vmem:[#allocation2 + $0x80] ss:$20 sps:$4 sm:$0xff]   ;;  %v14584_v32 = vld [vmem:[#allocation2 + $0x444] ss:$20 sps:$4 sm:$0xff]  }
 0xcfa   :  { %5460 = vmatprep.subr.bf16.mxu0 %v14509_v43  ;;  %v14576_v43 = vld [vmem:[#allocation2 + $0x468] ss:$20 sps:$4 sm:$0xff]   ;;  %v14615_v9 = vld [vmem:[#allocation2 + $0x1ec] ss:$20 sps:$4 sm:$0xff]  }
 0xcfb   :  { %5449 = vmatprep.mubr.bf16.mxu1 %v17415_v46  ;;  %v14618_v14 = vld [vmem:[#allocation2 + $0x1c0] ss:$20 sps:$4 sm:$0xff]  }
 0xcfc   :  { %5450 = vmatmul.mubr.bf16.vlgmr.msra.gmra.mxu1 %v17418_v48 }
 0xcfd   :  { %5461 = vmatpush1.bf16.msra.mxu0 %v14507_v45  ;;  %5541 = vmatpush1.bf16.msra.mxu1 %v14510_v55  ;;  %v14579_v45 = vld [vmem:[#allocation2 + $0x58] ss:$20 sps:$4 sm:$0xff]   ;;  %v14582_v55 = vld [vmem:[#allocation2 + $0x440] ss:$20 sps:$4 sm:$0xff]  }
 0xcfe   :  { %5462 = vmatprep.subr.bf16.mxu0 %v14515_v47  ;;  %5542 = vmatprep.subr.bf16.mxu1 %v14518_v50  ;;  %v14587_v47 = vld [vmem:[#allocation2 + $0x34] ss:$20 sps:$4 sm:$0xff]   ;;  %v14585_v50 = vld [vmem:[#allocation2 + $0x30] ss:$20 sps:$4 sm:$0xff]  }
 0xcff   :  { %5572 = vmatprep.mubr.bf16.mxu1 %v17415_v46 }
 0xd01   :  { %5463 = vmatpush1.bf16.msra.mxu0 %v14513_v51  ;;  %5543 = vmatpush1.bf16.msra.mxu1 %v14516_v53  ;;  %v14590_v51 = vld [vmem:[#allocation2 + $0x41c] ss:$20 sps:$4 sm:$0xff]   ;;  %v14588_v53 = vld [vmem:[#allocation2 + $0x418] ss:$20 sps:$4 sm:$0xff]  }
 0xd02   :  { %5464 = vmatprep.subr.bf16.mxu0 %v14521_v54  ;;  %5544 = vmatprep.subr.bf16.mxu1 %v14524_v56  ;;  %v14593_v54 = vld [vmem:[#allocation2 + $0xc] ss:$20 sps:$4 sm:$0xff]   ;;  %v14591_v56 = vld [vmem:[#allocation2 + $0x8] ss:$20 sps:$4 sm:$0xff]  }
 0xd05   :  { %5465 = vmatpush1.bf16.msra.mxu0 %v14519_v57  ;;  %5545 = vmatpush1.bf16.msra.mxu1 %v14522_v58  ;;  %v14596_v57 = vld [vmem:[#allocation2 + $0x3f4] ss:$20 sps:$4 sm:$0xff]   ;;  %v14594_v58 = vld [vmem:[#allocation2 + $0x3f0] ss:$20 sps:$4 sm:$0xff]  }
 0xd06   :  { %5466 = vmatprep.subr.bf16.mxu0 %v14527_v59  ;;  %5546 = vmatprep.subr.bf16.mxu1 %v14530_v60  ;;  %v14599_v59 = vld [vmem:[#allocation2 + $0x264] ss:$20 sps:$4 sm:$0xff]   ;;  %v14597_v60 = vld [vmem:[#allocation2 + $0x260] ss:$20 sps:$4 sm:$0xff]  }
 0xd09   :  { %5467 = vmatpush1.bf16.msra.mxu0 %v14525_v61  ;;  %5547 = vmatpush1.bf16.msra.mxu1 %v14528_v0  ;;  %v14602_v61 = vld [vmem:[#allocation2 + $0x3cc] ss:$20 sps:$4 sm:$0xff]   ;;  %v14600_v0 = vld [vmem:[#allocation2 + $0x3c8] ss:$20 sps:$4 sm:$0xff]  }
 0xd0a   :  { %5468 = vmatprep.subr.bf16.mxu0 %v14533_v1  ;;  %5548 = vmatprep.subr.bf16.mxu1 %v14536_v2  ;;  %v14605_v1 = vld [vmem:[#allocation2 + $0x23c] ss:$20 sps:$4 sm:$0xff]   ;;  %v14603_v2 = vld [vmem:[#allocation2 + $0x238] ss:$20 sps:$4 sm:$0xff]  }
 0xd0d   :  { %5469 = vmatpush1.bf16.msra.mxu0 %v14531_v3  ;;  %5549 = vmatpush1.bf16.msra.mxu1 %v14534_v4  ;;  %v14606_v3 = vld [vmem:[#allocation2 + $0x268] ss:$20 sps:$4 sm:$0xff]  }
 0xd0e   :  { %5470 = vmatprep.subr.bf16.mxu0 %v14539_v5  ;;  %5550 = vmatprep.subr.bf16.mxu1 %v14542_v6  ;;  %v14607_v4 = vld [vmem:[#allocation2 + $0x128] ss:$20 sps:$4 sm:$0xff]   ;;  %v14608_v5 = vld [vmem:[#allocation2 + $0x210] ss:$20 sps:$4 sm:$0xff]  }
 0xd0f   :  { %v14610_v6 = vld [vmem:[#allocation2 + $0x214] ss:$20 sps:$4 sm:$0xff]  }
 0xd11   :  { %5471 = vmatpush1.bf16.msra.mxu0 %v14537_v7  ;;  %5551 = vmatpush1.bf16.msra.mxu1 %v14540_v8  ;;  %v14611_v7 = vld [vmem:[#allocation2 + $0x240] ss:$20 sps:$4 sm:$0xff]  }
 0xd12   :  { %5472 = vmatprep.subr.bf16.mxu0 %v14545_v10  ;;  %5552 = vmatprep.subr.bf16.mxu1 %v14548_v11  ;;  %v14612_v8 = vld [vmem:[#allocation2 + $0x100] ss:$20 sps:$4 sm:$0xff]   ;;  %v14616_v10 = vld [vmem:[#allocation2 + $0x218] ss:$20 sps:$4 sm:$0xff]   ;;  %v14613_v11 = vld [vmem:[#allocation2 + $0x1e8] ss:$20 sps:$4 sm:$0xff]  }
 0xd15   :  { %5473 = vmatpush1.bf16.msra.mxu0 %v14543_v12  ;;  %5553 = vmatpush1.bf16.msra.mxu1 %v14546_v13  ;;  %v14617_v12 = vld [vmem:[#allocation2 + $0xd8] ss:$20 sps:$4 sm:$0xff]  }
 0xd16   :  { %5499 = vmatprep.subr.bf16.mxu0 %v14551_v15  ;;  %5554 = vmatprep.subr.bf16.mxu1 %v14554_v16  ;;  %v14620_v13 = vld [vmem:[#allocation2 + $0x1c4] ss:$20 sps:$4 sm:$0xff]  }
 0xd17   :  { %v14621_v15 = vld [vmem:[#allocation2 + $0x1f0] ss:$20 sps:$4 sm:$0xff]  }
 0xd18   :  { %12635 = vmatmul.mubr.msk.bf16.vlgmr.msra.gmra.mxu0 %vm5357_vm4, %v17425_v18  ;;  %v14622_v16 = vld [vmem:[#allocation2 + $0xb0] ss:$20 sps:$4 sm:$0xff]  }
 0xd19   :  { %5500 = vmatpush1.bf16.msra.mxu0 %v14549_v17  ;;  %5531 = vmatprep.mubr.bf16.mxu0 %v17405_v38  ;;  %v14625_v17 = vld [vmem:[#allocation2 + $0x19c] ss:$20 sps:$4 sm:$0xff]  }
 0xd1a   :  { %5555 = vmatpush1.bf16.msra.mxu1 %v14552_v19  ;;  %5501 = vmatprep.subr.bf16.mxu0 %v14557_v21  ;;  %v14623_v19 = vld [vmem:[#allocation2 + $0x198] ss:$20 sps:$4 sm:$0xff]   ;;  %v14626_v21 = vld [vmem:[#allocation2 + $0x1c8] ss:$20 sps:$4 sm:$0xff]  }
 0xd1b   :  { %5556 = vmatprep.subr.bf16.mxu1 %v14560_v23  ;;  %v14627_v23 = vld [vmem:[#allocation2 + $0x88] ss:$20 sps:$4 sm:$0xff]  }
 0xd1d   :  { %5502 = vmatpush1.bf16.msra.mxu0 %v14555_v24  ;;  %v14630_v24 = vld [vmem:[#allocation2 + $0x174] ss:$20 sps:$4 sm:$0xff]  }
 0xd1e   :  { %5557 = vmatpush2.bf16.msra.mxu1 %v14558_v25  ;;  %5503 = vmatprep.subr.bf16.mxu0 %v14563_v28  ;;  %v14631_v25 = vld [vmem:[#allocation2 + $0x1a0] ss:$20 sps:$4 sm:$0xff]   ;;  %v14628_v28 = vld [vmem:[#allocation2 + $0x170] ss:$20 sps:$4 sm:$0xff]  }
 0xd1f   :  { %5558 = vmatprep.subr.bf16.mxu1 %v14566_v22  ;;  %v14632_v22 = vld [vmem:[#allocation2 + $0x60] ss:$20 sps:$4 sm:$0xff]  }
 0xd21   :  { %5504 = vmatpush1.bf16.msra.mxu0 %v14561_v29  ;;  %v4301_v29 = vld [vmem:[#allocation2 + $0x620] sm:$0x11] }
 0xd22   :  { %5559 = vmatpush2.bf16.msra.mxu1 %v14564_v27  ;;  %5505 = vmatprep.subr.bf16.mxu0 %v14569_v31  ;;  %v14635_v27 = vld [vmem:[#allocation2 + $0x14c] ss:$20 sps:$4 sm:$0xff]   ;;  %v12633_v31 = vcombine.high %v4301_v29, %v4301_v29 }
 0xd23   :  { %5560 = vmatprep.subr.bf16.mxu1 %v14572_v34  ;;  %v14636_v34 = vld [vmem:[#allocation2 + $0x178] ss:$20 sps:$4 sm:$0xff]  }
 0xd25   :  { %5506 = vmatpush1.bf16.msra.mxu0 %v14567_v33  ;;  %v14633_v33 = vld [vmem:[#allocation2 + $0x148] ss:$20 sps:$4 sm:$0xff]  }
 0xd26   :  { %5561 = vmatpush2.bf16.msra.mxu1 %v14570_v36  ;;  %5507 = vmatprep.subr.bf16.mxu0 %v14575_v39  ;;  %v12632_v36 = vcombine.low %v4301_v29, %v4301_v29  ;;  %v14637_v39 = vld [vmem:[#allocation2 + $0x38] ss:$20 sps:$4 sm:$0xff]   ;;  %v14691_v29 = vld [vmem:[#allocation2 + $0x950] ss:$20 sps:$4 sm:$0xff]  }
 0xd27   :  { %5562 = vmatprep.subr.bf16.mxu1 %v14578_v20  ;;  %v14640_v20 = vld [vmem:[#allocation2 + $0x150] ss:$20 sps:$4 sm:$0xff]  }
 0xd29   :  { %5508 = vmatpush1.bf16.msra.mxu0 %v14573_v40  ;;  %v5371_v40 = vand.u32 %v12633_v31, %v16982_v26  ;;  %v14693_v31 = vld [vmem:[#allocation2 + $0x420] ss:$20 sps:$4 sm:$0xff]  }
 0xd2a   :  { %5563 = vmatpush2.bf16.msra.mxu1 %v14576_v43  ;;  %5509 = vmatprep.subr.bf16.mxu0 %v14581_v44  ;;  %v14641_v43 = vld [vmem:[#allocation2 + $0x10] ss:$20 sps:$4 sm:$0xff]  }
 0xd2b   :  { %5564 = vmatprep.subr.bf16.mxu1 %v14584_v32  ;;  %v14644_v44 = vld [vmem:[#allocation2 + $0x5fc] ss:$20 sps:$4 sm:$0xff]   ;;  %v5368_v32 = vand.u32 %v12632_v36, %v16982_v26  ;;  %v14694_v36 = vld [vmem:[#allocation2 + $0x924] ss:$20 sps:$4 sm:$0xff]  }
 0xd2d   :  { %5510 = vmatpush1.bf16.msra.mxu0 %v14579_v45  ;;  %v14645_v45 = vld [vmem:[#allocation2 + $0x628] ss:$0 sps:$4 sm:$0x11]  }
 0xd2e   :  { %5565 = vmatpush2.bf16.msra.mxu1 %v14582_v55  ;;  %5511 = vmatprep.subr.bf16.mxu0 %v14587_v47  ;;  %v14642_v55 = vld [vmem:[#allocation2 + $0x5f8] ss:$20 sps:$4 sm:$0xff]   ;;  %v14648_v47 = vld [vmem:[#allocation2 + $0x5d4] ss:$20 sps:$4 sm:$0xff]  }
 0xd2f   :  { %5566 = vmatprep.subr.bf16.mxu1 %v14590_v51  ;;  %v14646_v51 = vld [vmem:[#allocation2 + $0x5d0] ss:$20 sps:$4 sm:$0xff]  }
 0xd31   :  { %5512 = vmatpush1.bf16.msra.mxu0 %v14585_v50  ;;  %v5374_v50 = vand.u32 %v14645_v45, %v16982_v26  ;;  %v14706_v45 = vld [vmem:[#allocation2 + $0x8d8] ss:$20 sps:$4 sm:$0xff]  }
 0xd32   :  { %5567 = vmatpush2.bf16.msra.mxu1 %v14588_v53  ;;  %5513 = vmatprep.subr.bf16.mxu0 %v14593_v54  ;;  %v14649_v53 = vld [vmem:[#allocation2 + $0x600] ss:$20 sps:$4 sm:$0xff]  }
 0xd33   :  { %5568 = vmatprep.subr.bf16.mxu1 %v14596_v57  ;;  %v14652_v54 = vld [vmem:[#allocation2 + $0x5ac] ss:$20 sps:$4 sm:$0xff]  }
 0xd34   :  { %v14653_v57 = vld [vmem:[#allocation2 + $0x5d8] ss:$20 sps:$4 sm:$0xff]  }
 0xd35   :  { %5514 = vmatpush1.bf16.msra.mxu0 %v14591_v56  ;;  %v14650_v56 = vld [vmem:[#allocation2 + $0x5a8] ss:$20 sps:$4 sm:$0xff]  }
 0xd36   :  { %5569 = vmatpush2.bf16.msra.mxu1 %v14594_v58  ;;  %5515 = vmatprep.subr.bf16.mxu0 %v14599_v59  ;;  %v14656_v58 = vld [vmem:[#allocation2 + $0x584] ss:$20 sps:$4 sm:$0xff]   ;;  %v14654_v59 = vld [vmem:[#allocation2 + $0x580] ss:$20 sps:$4 sm:$0xff]  }
 0xd37   :  { %5570 = vmatprep.subr.bf16.mxu1 %v14602_v61  ;;  %v14660_v61 = vld [vmem:[#allocation2 + $0x55c] ss:$20 sps:$4 sm:$0xff]  }
 0xd39   :  { %5516 = vmatpush2.bf16.msra.mxu0 %v14597_v60  ;;  %v14657_v60 = vld [vmem:[#allocation2 + $0x5b0] ss:$20 sps:$4 sm:$0xff]  }
 0xd3a   :  { %5571 = vmatpush2.bf16.msra.mxu1 %v14600_v0  ;;  %5517 = vmatprep.subr.bf16.mxu0 %v14605_v1  ;;  %v14658_v0 = vld [vmem:[#allocation2 + $0x558] ss:$20 sps:$4 sm:$0xff]   ;;  %v14661_v1 = vld [vmem:[#allocation2 + $0x588] ss:$20 sps:$4 sm:$0xff]  }
 0xd3b   :  { %13504 = vmatprep.subr.bf16.mxu1 %v14606_v3  ;;  %v14662_v3 = vld [vmem:[#allocation2 + $0x530] ss:$20 sps:$4 sm:$0xff]  }
 0xd3d   :  { %5573 = vmatmul.mubr.bf16.vlgmr.msra.gmra.mxu1 %v17418_v48  ;;  %5518 = vmatpush2.bf16.msra.mxu0 %v14603_v2  ;;  %v14664_v2 = vld [vmem:[#allocation2 + $0x534] ss:$20 sps:$4 sm:$0xff]  }
 0xd3e   :  { %13505 = vmatpush3.bf16.msra.mxu1 %v14607_v4  ;;  %5654 = vmatprep.mubr.bf16.mxu1 %v17405_v38  ;;  %v14665_v4 = vld [vmem:[#allocation2 + $0x560] ss:$20 sps:$4 sm:$0xff]  }
 0xd3f   :  { %5519 = vmatprep.subr.bf16.mxu0 %v14610_v6  ;;  %13506 = vmatprep.subr.bf16.mxu1 %v14611_v7  ;;  %v14666_v6 = vld [vmem:[#allocation2 + $0x508] ss:$20 sps:$4 sm:$0xff]   ;;  %v14669_v7 = vld [vmem:[#allocation2 + $0x538] ss:$20 sps:$4 sm:$0xff]  }
 0xd41   :  { %5520 = vmatpush2.bf16.msra.mxu0 %v14608_v5  ;;  %v14668_v5 = vld [vmem:[#allocation2 + $0x50c] ss:$20 sps:$4 sm:$0xff]  }
 0xd42   :  { %13507 = vmatpush3.bf16.msra.mxu1 %v14612_v8  ;;  %5521 = vmatprep.subr.bf16.mxu0 %v14615_v9  ;;  %v14670_v8 = vld [vmem:[#allocation2 + $0x4e8] ss:$20 sps:$4 sm:$0xff]  }
 0xd43   :  { %13508 = vmatprep.subr.bf16.mxu1 %v14616_v10  ;;  %v14671_v9 = vld [vmem:[#allocation2 + $0x3a8] ss:$20 sps:$4 sm:$0xff]   ;;  %v14672_v10 = vld [vmem:[#allocation2 + $0x510] ss:$20 sps:$4 sm:$0xff]  }
 0xd45   :  { %5522 = vmatpush2.bf16.msra.mxu0 %v14613_v11  ;;  %v14673_v11 = vld [vmem:[#allocation2 + $0x4c0] ss:$20 sps:$4 sm:$0xff]  }
 0xd46   :  { %13509 = vmatpush3.bf16.msra.mxu1 %v14617_v12  ;;  %5523 = vmatprep.subr.bf16.mxu0 %v14620_v13  ;;  %v14676_v12 = vld [vmem:[#allocation2 + $0x9c8] ss:$20 sps:$4 sm:$0xff]   ;;  %v14674_v13 = vld [vmem:[#allocation2 + $0x9c4] ss:$20 sps:$4 sm:$0xff]  }
 0xd47   :  { %13510 = vmatprep.subr.bf16.mxu1 %v14621_v15  ;;  %v14678_v15 = vld [vmem:[#allocation2 + $0x498] ss:$20 sps:$4 sm:$0xff]  }
 0xd49   :  { %5524 = vmatpush2.bf16.msra.mxu0 %v14618_v14  ;;  %v14677_v14 = vld [vmem:[#allocation2 + $0x380] ss:$20 sps:$4 sm:$0xff]  }
 0xd4a   :  { %13511 = vmatpush3.bf16.msra.mxu1 %v14622_v16  ;;  %5525 = vmatprep.subr.bf16.mxu0 %v14625_v17  ;;  %v14681_v16 = vld [vmem:[#allocation2 + $0x9a0] ss:$20 sps:$4 sm:$0xff]   ;;  %v14682_v17 = vld [vmem:[#allocation2 + $0x358] ss:$20 sps:$4 sm:$0xff]  }
 0xd4b   :  { %13512 = vmatprep.subr.bf16.mxu1 %v14626_v21  ;;  %v14683_v21 = vld [vmem:[#allocation2 + $0x470] ss:$20 sps:$4 sm:$0xff]  }
 0xd4d   :  { %5526 = vmatpush2.bf16.msra.mxu0 %v14623_v19  ;;  %v14679_v19 = vld [vmem:[#allocation2 + $0x99c] ss:$20 sps:$4 sm:$0xff]  }
 0xd4e   :  { %13513 = vmatpush3.bf16.msra.mxu1 %v14627_v23  ;;  %5527 = vmatprep.subr.bf16.mxu0 %v14630_v24  ;;  %v14686_v23 = vld [vmem:[#allocation2 + $0x978] ss:$20 sps:$4 sm:$0xff]   ;;  %v14684_v24 = vld [vmem:[#allocation2 + $0x974] ss:$20 sps:$4 sm:$0xff]  }
 0xd4f   :  { %13514 = vmatprep.subr.bf16.mxu1 %v14631_v25  ;;  %v14687_v25 = vld [vmem:[#allocation2 + $0x330] ss:$20 sps:$4 sm:$0xff]  }
 0xd51   :  { %5528 = vmatpush2.bf16.msra.mxu0 %v14628_v28  ;;  %v14688_v28 = vld [vmem:[#allocation2 + $0x448] ss:$20 sps:$4 sm:$0xff]  }
 0xd52   :  { %13515 = vmatpush3.bf16.msra.mxu1 %v14632_v22  ;;  %5529 = vmatprep.subr.bf16.mxu0 %v14635_v27  ;;  %v14692_v22 = vld [vmem:[#allocation2 + $0x308] ss:$20 sps:$4 sm:$0xff]   ;;  %v14689_v27 = vld [vmem:[#allocation2 + $0x94c] ss:$20 sps:$4 sm:$0xff]  }
 0xd53   :  { %13516 = vmatprep.subr.bf16.mxu1 %v14636_v34  ;;  %v14697_v34 = vld [vmem:[#allocation2 + $0x2e0] ss:$20 sps:$4 sm:$0xff]  }
 0xd55   :  { %5530 = vmatpush2.bf16.msra.mxu0 %v14633_v33  ;;  %v14696_v33 = vld [vmem:[#allocation2 + $0x928] ss:$20 sps:$4 sm:$0xff]  }
 0xd56   :  { %13517 = vmatpush3.bf16.msra.mxu1 %v14637_v39  ;;  %5581 = vmatprep.subr.bf16.mxu0 %v5371_v40  ;;  %v14698_v39 = vld [vmem:[#allocation2 + $0x3f8] ss:$20 sps:$4 sm:$0xff]   ;;  %v14701_v40 = vld [vmem:[#allocation2 + $0x900] ss:$20 sps:$4 sm:$0xff]  }
 0xd57   :  { %13518 = vmatprep.subr.bf16.mxu1 %v14640_v20  ;;  %v14702_v20 = vld [vmem:[#allocation2 + $0x2b8] ss:$20 sps:$4 sm:$0xff]  }
 0xd58   :  { %5532 = vmatmul.mubr.bf16.vlgmr.msra.gmra.mxu0 %v17403_v37 }
 0xd59   :  { %5582 = vmatpush1.bf16.msra.mxu0 %v5368_v32  ;;  %5613 = vmatprep.mubr.bf16.mxu0 %v16625_v42  ;;  %v14707_v32 = vld [vmem:[#allocation2 + $0x290] ss:$20 sps:$4 sm:$0xff]  }
 0xd5a   :  { %13519 = vmatpush3.bf16.msra.mxu1 %v14641_v43  ;;  %5583 = vmatprep.subr.bf16.mxu0 %v14644_v44  ;;  %v14699_v43 = vld [vmem:[#allocation2 + $0x8fc] ss:$20 sps:$4 sm:$0xff]  }
 0xd5b   :  { %13925 = vmatprep.subr.bf16.mxu1 %v16624_v41  ;;  %v14703_v44 = vld [vmem:[#allocation2 + $0x3d0] ss:$20 sps:$4 sm:$0xff]  }
 0xd5d   :  { %5655 = vmatmul.mubr.bf16.vlgmr.msra.gmra.mxu1 %v17403_v37  ;;  %5584 = vmatpush1.bf16.msra.mxu0 %v14642_v55  ;;  %v14704_v55 = vld [vmem:[#allocation2 + $0x8d4] ss:$20 sps:$4 sm:$0xff]  }
 0xd5e   :  { %13926 = vmatpush3.bf16.msra.mxu1 %v5374_v50  ;;  %5585 = vmatprep.subr.bf16.mxu0 %v14648_v47  ;;  %v14710_v47 = vld [vmem:[#allocation2 + $0x748] ss:$20 sps:$4 sm:$0xff]   ;;  %v14713_v50 = vld [vmem:[#allocation2 + $0x8b0] ss:$20 sps:$4 sm:$0xff]  }
 0xd5f   :  { %13927 = vmatprep.subr.bf16.mxu1 %v16624_v41  ;;  %13941 = vmatprep.mubr.msk.bf16.mxu1 %vm16626_vm0, %v16624_v41 }
 0xd61   :  { %5586 = vmatpush1.bf16.msra.mxu0 %v14646_v51  ;;  %v14708_v51 = vld [vmem:[#allocation2 + $0x744] ss:$20 sps:$4 sm:$0xff]  }
 0xd62   :  { %13928 = vmatpush3.bf16.msra.mxu1 %v14649_v53  ;;  %5587 = vmatprep.subr.bf16.mxu0 %v14652_v54  ;;  %v14711_v53 = vld [vmem:[#allocation2 + $0x8ac] ss:$20 sps:$4 sm:$0xff]  }
 0xd63   :  { %13929 = vmatprep.subr.bf16.mxu1 %v16624_v41  ;;  %v14716_v54 = vld [vmem:[#allocation2 + $0x720] ss:$20 sps:$4 sm:$0xff]  }
 0xd65   :  { %5588 = vmatpush1.bf16.msra.mxu0 %v14650_v56  ;;  %v14714_v56 = vld [vmem:[#allocation2 + $0x71c] ss:$20 sps:$4 sm:$0xff]  }
 0xd66   :  { %13930 = vmatpush3.bf16.msra.mxu1 %v14653_v57  ;;  %5589 = vmatprep.subr.bf16.mxu0 %v14656_v58  ;;  %v14719_v57 = vld [vmem:[#allocation2 + $0xb08] ss:$20 sps:$4 sm:$0xff]   ;;  %v14717_v58 = vld [vmem:[#allocation2 + $0xb04] ss:$20 sps:$4 sm:$0xff]  }
 0xd67   :  { %13931 = vmatprep.subr.bf16.mxu1 %v16624_v41 }
 0xd69   :  { %5590 = vmatpush1.bf16.msra.mxu0 %v14654_v59  ;;  %v14722_v59 = vld [vmem:[#allocation2 + $0x6f8] ss:$20 sps:$4 sm:$0xff]  }
 0xd6a   :  { %13932 = vmatpush3.bf16.msra.mxu1 %v14657_v60  ;;  %5591 = vmatprep.subr.bf16.mxu0 %v14660_v61  ;;  %v14720_v60 = vld [vmem:[#allocation2 + $0x6f4] ss:$20 sps:$4 sm:$0xff]  }
 0xd6b   :  { %13933 = vmatprep.subr.bf16.mxu1 %v16624_v41  ;;  %v14725_v61 = vld [vmem:[#allocation2 + $0xae0] ss:$20 sps:$4 sm:$0xff]  }
 0xd6d   :  { %5592 = vmatpush1.bf16.msra.mxu0 %v14658_v0  ;;  %v14723_v0 = vld [vmem:[#allocation2 + $0xadc] ss:$20 sps:$4 sm:$0xff]  }
 0xd6e   :  { %13934 = vmatpush3.bf16.msra.mxu1 %v14661_v1  ;;  %5593 = vmatprep.subr.bf16.mxu0 %v14664_v2  ;;  %v14728_v1 = vld [vmem:[#allocation2 + $0x6d0] ss:$20 sps:$4 sm:$0xff]   ;;  %v14726_v2 = vld [vmem:[#allocation2 + $0x6cc] ss:$20 sps:$4 sm:$0xff]  }
 0xd6f   :  { %13935 = vmatprep.subr.bf16.mxu1 %v16624_v41 }
 0xd71   :  { %5594 = vmatpush1.bf16.msra.mxu0 %v14662_v3  ;;  %v14731_v3 = vld [vmem:[#allocation2 + $0xab8] ss:$20 sps:$4 sm:$0xff]  }
 0xd72   :  { %13936 = vmatpush3.bf16.msra.mxu1 %v14665_v4  ;;  %5595 = vmatprep.subr.bf16.mxu0 %v14668_v5  ;;  %v14729_v4 = vld [vmem:[#allocation2 + $0xab4] ss:$20 sps:$4 sm:$0xff]  }
 0xd73   :  { %13937 = vmatprep.subr.bf16.mxu1 %v16624_v41  ;;  %v14734_v5 = vld [vmem:[#allocation2 + $0x6a8] ss:$20 sps:$4 sm:$0xff]  }
 0xd75   :  { %5596 = vmatpush1.bf16.msra.mxu0 %v14666_v6  ;;  %v14737_v6 = vld [vmem:[#allocation2 + $0xa90] ss:$20 sps:$4 sm:$0xff]  }
 0xd76   :  { %13938 = vmatpush3.bf16.msra.mxu1 %v14669_v7  ;;  %13526 = vmatprep.subr.bf16.mxu0 %v14670_v8  ;;  %v14732_v7 = vld [vmem:[#allocation2 + $0x6a4] ss:$20 sps:$4 sm:$0xff]   ;;  %v14735_v8 = vld [vmem:[#allocation2 + $0xa8c] ss:$20 sps:$4 sm:$0xff]  }
 0xd77   :  { %13939 = vmatprep.subr.bf16.mxu1 %v16624_v41 }
 0xd78   :  { %12636 = vmatmul.mubr.msk.bf16.vlgmr.msra.gmra.mxu0 %vm5357_vm4, %v17425_v18 }
 0xd79   :  { %13527 = vmatpush3.bf16.msra.mxu0 %v14671_v9  ;;  %5694 = vmatprep.mubr.bf16.mxu0 %v17415_v46  ;;  %v14740_v9 = vld [vmem:[#allocation2 + $0x680] ss:$20 sps:$4 sm:$0xff]  }
 0xd7a   :  { %13940 = vmatpush3.bf16.msra.mxu1 %v14672_v10  ;;  %13528 = vmatprep.subr.bf16.mxu0 %v14673_v11  ;;  %v14743_v10 = vld [vmem:[#allocation2 + $0xa68] ss:$20 sps:$4 sm:$0xff]  }
 0xd7b   :  { %7121 = vmatprep.subr.bf16.mxu1 %v14676_v12  ;;  %v14738_v11 = vld [vmem:[#allocation2 + $0x67c] ss:$20 sps:$4 sm:$0xff]   ;;  %v14741_v12 = vld [vmem:[#allocation2 + $0xa64] ss:$20 sps:$4 sm:$0xff]  }
 0xd7d   :  { %13942 = vmatmul.mubr.msk.bf16.vlgmr.msra.gmra.mxu1 %vm5357_vm4, %v17425_v18  ;;  %13529 = vmatpush3.bf16.msra.mxu0 %v14677_v14  ;;  %v14749_v14 = vld [vmem:[#allocation2 + $0xa40] ss:$20 sps:$4 sm:$0xff]  }
 0xd7e   :  { %7122 = vmatpush1.bf16.msra.mxu1 %v14674_v13  ;;  %7153 = vmatprep.mubr.bf16.mxu1 %v17415_v46  ;;  %v14746_v13 = vld [vmem:[#allocation2 + $0x658] ss:$20 sps:$4 sm:$0xff]  }
 0xd7f   :  { %13530 = vmatprep.subr.bf16.mxu0 %v14678_v15  ;;  %7123 = vmatprep.subr.bf16.mxu1 %v14681_v16  ;;  %v14744_v15 = vld [vmem:[#allocation2 + $0x654] ss:$20 sps:$4 sm:$0xff]   ;;  %v14747_v16 = vld [vmem:[#allocation2 + $0xa3c] ss:$20 sps:$4 sm:$0xff]  }
 0xd81   :  { %13531 = vmatpush3.bf16.msra.mxu0 %v14682_v17  ;;  %v14752_v17 = vld [vmem:[#allocation2 + $0x630] ss:$20 sps:$4 sm:$0xff]  }
 0xd82   :  { %7124 = vmatpush1.bf16.msra.mxu1 %v14679_v19  ;;  %13532 = vmatprep.subr.bf16.mxu0 %v14683_v21  ;;  %v14755_v19 = vld [vmem:[#allocation2 + $0xa18] ss:$20 sps:$4 sm:$0xff]  }
 0xd83   :  { %7125 = vmatprep.subr.bf16.mxu1 %v14686_v23  ;;  %v14750_v21 = vld [vmem:[#allocation2 + $0x62c] ss:$20 sps:$4 sm:$0xff]   ;;  %v14753_v23 = vld [vmem:[#allocation2 + $0xa14] ss:$20 sps:$4 sm:$0xff]  }
 0xd85   :  { %13533 = vmatpush3.bf16.msra.mxu0 %v14687_v25  ;;  %v14761_v25 = vld [vmem:[#allocation2 + $0x9f0] ss:$20 sps:$4 sm:$0xff]  }
 0xd86   :  { %7126 = vmatpush1.bf16.msra.mxu1 %v14684_v24  ;;  %13534 = vmatprep.subr.bf16.mxu0 %v14688_v28  ;;  %v14758_v24 = vld [vmem:[#allocation2 + $0x888] ss:$20 sps:$4 sm:$0xff]   ;;  %v17456_v28 = vld [vmem:[#allocation25] sm:$0x1f] }
 0xd87   :  { %7127 = vmatprep.subr.bf16.mxu1 %v14691_v29  ;;  %v14756_v29 = vld [vmem:[#allocation2 + $0x884] ss:$20 sps:$4 sm:$0xff]  }
 0xd89   :  { %13535 = vmatpush3.bf16.msra.mxu0 %v14692_v22  ;;  %v14759_v22 = vld [vmem:[#allocation2 + $0x9ec] ss:$20 sps:$4 sm:$0xff]  }
 0xd8a   :  { %7128 = vmatpush1.bf16.msra.mxu1 %v14689_v27  ;;  %13536 = vmatprep.subr.bf16.mxu0 %v14693_v31  ;;  %v14764_v27 = vld [vmem:[#allocation2 + $0x860] ss:$20 sps:$4 sm:$0xff]   ;;  %v4308_v31 = vrot.slane %v17456_v28, %v17375_v49 }
 0xd8b   :  { %7129 = vmatprep.subr.bf16.mxu1 %v14696_v33  ;;  %v14767_v33 = vld [vmem:[#allocation2 + $0x750] ss:$20 sps:$4 sm:$0xff]  }
 0xd8d   :  { %13537 = vmatpush3.bf16.msra.mxu0 %v14697_v34 }
 0xd8e   :  { %7130 = vmatpush1.bf16.msra.mxu1 %v14694_v36  ;;  %13538 = vmatprep.subr.bf16.mxu0 %v14698_v39  ;;  %v14762_v36 = vld [vmem:[#allocation2 + $0x85c] ss:$20 sps:$4 sm:$0xff]   ;;  %v14765_v39 = vld [vmem:[#allocation2 + $0x74c] ss:$20 sps:$4 sm:$0xff]  }
 0xd8f   :  { %7131 = vmatprep.subr.bf16.mxu1 %v14701_v40  ;;  %v4312_v40 = vrot.slane %v17456_v28, %v17378_v52 }
 0xd91   :  { %13539 = vmatpush3.bf16.msra.mxu0 %v14702_v20 }
 0xd92   :  { %7132 = vmatpush1.bf16.msra.mxu1 %v14699_v43  ;;  %13540 = vmatprep.subr.bf16.mxu0 %v14703_v44  ;;  %v14768_v44 = vld [vmem:[#allocation2 + $0x834] ss:$20 sps:$4 sm:$0xff]  }
 0xd93   :  { %7133 = vmatprep.subr.bf16.mxu1 %v14706_v45  ;;  %v14770_v45 = vld [vmem:[#allocation2 + $0x838] ss:$20 sps:$4 sm:$0xff]  }
 0xd95   :  { %13541 = vmatpush3.bf16.msra.mxu0 %v14707_v32  ;;  %v14773_v32 = vld [vmem:[#allocation2 + $0x728] ss:$20 sps:$4 sm:$0xff]  }
 0xd96   :  { %7134 = vmatpush1.bf16.msra.mxu1 %v14704_v55  ;;  %7080 = vmatprep.subr.bf16.mxu0 %v14710_v47 }
 0xd97   :  { %7135 = vmatprep.subr.bf16.mxu1 %v14713_v50  ;;  %v14771_v50 = vld [vmem:[#allocation2 + $0x724] ss:$20 sps:$4 sm:$0xff]  }
 0xd98   :  { %5695 = vmatmul.mubr.bf16.vlgmr.msra.gmra.mxu0 %v17418_v48 }
 0xd99   :  { %7081 = vmatpush1.bf16.msra.mxu0 %v14708_v51  ;;  %7112 = vmatprep.mubr.bf16.mxu0 %v17405_v38  ;;  %v14776_v51 = vld [vmem:[#allocation2 + $0x810] ss:$20 sps:$4 sm:$0xff]  }
 0xd9a   :  { %7136 = vmatpush1.bf16.msra.mxu1 %v14711_v53  ;;  %7082 = vmatprep.subr.bf16.mxu0 %v14716_v54 }
 0xd9b   :  { %7137 = vmatprep.subr.bf16.mxu1 %v14719_v57 }
 0xd9d   :  { %7083 = vmatpush1.bf16.msra.mxu0 %v14714_v56 }
 0xd9e   :  { %7138 = vmatpush2.bf16.msra.mxu1 %v14717_v58  ;;  %7084 = vmatprep.subr.bf16.mxu0 %v14722_v59  ;;  %v14774_v59 = vld [vmem:[#allocation2 + $0x80c] ss:$20 sps:$4 sm:$0xff]  }
 0xd9f   :  { %7139 = vmatprep.subr.bf16.mxu1 %v14725_v61 }
 0xda1   :  { %7085 = vmatpush1.bf16.msra.mxu0 %v14720_v60  ;;  %v14779_v60 = vld [vmem:[#allocation2 + $0x700] ss:$20 sps:$4 sm:$0xff]  }
 0xda2   :  { %7140 = vmatpush2.bf16.msra.mxu1 %v14723_v0  ;;  %7086 = vmatprep.subr.bf16.mxu0 %v14728_v1  ;;  %v14777_v0 = vld [vmem:[#allocation2 + $0x6fc] ss:$20 sps:$4 sm:$0xff]  }
 0xda3   :  { %7141 = vmatprep.subr.bf16.mxu1 %v14731_v3  ;;  %v14782_v1 = vld [vmem:[#allocation2 + $0x7e8] ss:$20 sps:$4 sm:$0xff]   ;;  %v14780_v3 = vld [vmem:[#allocation2 + $0x7e4] ss:$20 sps:$4 sm:$0xff]  }
 0xda5   :  { %7087 = vmatpush1.bf16.msra.mxu0 %v14726_v2 }
 0xda6   :  { %7142 = vmatpush2.bf16.msra.mxu1 %v14729_v4  ;;  %7088 = vmatprep.subr.bf16.mxu0 %v14734_v5  ;;  %v14785_v4 = vld [vmem:[#allocation2 + $0x6d8] ss:$20 sps:$4 sm:$0xff]   ;;  %v14783_v5 = vld [vmem:[#allocation2 + $0x6d4] ss:$20 sps:$4 sm:$0xff]  }
 0xda7   :  { %7143 = vmatprep.subr.bf16.mxu1 %v14737_v6  ;;  %v14788_v6 = vld [vmem:[#allocation2 + $0x7c0] ss:$20 sps:$4 sm:$0xff]  }
 0xda9   :  { %7089 = vmatpush1.bf16.msra.mxu0 %v14732_v7  ;;  %v14786_v7 = vld [vmem:[#allocation2 + $0x7bc] ss:$20 sps:$4 sm:$0xff]  }
 0xdaa   :  { %7144 = vmatpush2.bf16.msra.mxu1 %v14735_v8  ;;  %7090 = vmatprep.subr.bf16.mxu0 %v14740_v9  ;;  %v14791_v8 = vld [vmem:[#allocation2 + $0x6b0] ss:$20 sps:$4 sm:$0xff]   ;;  %v14789_v9 = vld [vmem:[#allocation2 + $0x6ac] ss:$20 sps:$4 sm:$0xff]  }
 0xdab   :  { %7145 = vmatprep.subr.bf16.mxu1 %v14743_v10  ;;  %v14794_v10 = vld [vmem:[#allocation2 + $0x798] ss:$20 sps:$4 sm:$0xff]  }
 0xdad   :  { %7091 = vmatpush1.bf16.msra.mxu0 %v14738_v11  ;;  %v14792_v11 = vld [vmem:[#allocation2 + $0x794] ss:$20 sps:$4 sm:$0xff]  }
 0xdae   :  { %7146 = vmatpush2.bf16.msra.mxu1 %v14741_v12  ;;  %7092 = vmatprep.subr.bf16.mxu0 %v14746_v13  ;;  %v14797_v12 = vld [vmem:[#allocation2 + $0x688] ss:$20 sps:$4 sm:$0xff]  }
 0xdaf   :  { %7147 = vmatprep.subr.bf16.mxu1 %v14749_v14  ;;  %v6007_v13 = vld [vmem:[#allocation2 + $0xc44] sm:$0x11] }
 0xdb0   :  { %v14795_v14 = vld [vmem:[#allocation2 + $0x684] ss:$20 sps:$4 sm:$0xff]  }
 0xdb1   :  { %7093 = vmatpush1.bf16.msra.mxu0 %v14744_v15  ;;  %v14800_v15 = vld [vmem:[#allocation2 + $0x770] ss:$20 sps:$4 sm:$0xff]  }
 0xdb2   :  { %7148 = vmatpush2.bf16.msra.mxu1 %v14747_v16  ;;  %7094 = vmatprep.subr.bf16.mxu0 %v14752_v17  ;;  %v12839_v16 = vcombine.high %v6007_v13, %v6007_v13  ;;  %v14803_v17 = vld [vmem:[#allocation2 + $0x660] ss:$20 sps:$4 sm:$0xff]  }
 0xdb3   :  { %7149 = vmatprep.subr.bf16.mxu1 %v14755_v19  ;;  %v14798_v19 = vld [vmem:[#allocation2 + $0x76c] ss:$20 sps:$4 sm:$0xff]  }
 0xdb5   :  { %7095 = vmatpush1.bf16.msra.mxu0 %v14750_v21  ;;  %v12838_v21 = vcombine.low %v6007_v13, %v6007_v13  ;;  %v14854_v13 = vld [vmem:[#allocation2 + $0x9cc] ss:$20 sps:$4 sm:$0xff]  }
 0xdb6   :  { %7150 = vmatpush2.bf16.msra.mxu1 %v14753_v23  ;;  %7096 = vmatprep.subr.bf16.mxu0 %v14758_v24  ;;  %v14801_v23 = vld [vmem:[#allocation2 + $0x65c] ss:$20 sps:$4 sm:$0xff]   ;;  %v7069_v24 = vand.u32 %v12839_v16, %v16982_v26 }
 0xdb7   :  { %7151 = vmatprep.subr.bf16.mxu1 %v14761_v25  ;;  %v14808_v25 = vld [vmem:[#allocation2 + $0x638] ss:$20 sps:$4 sm:$0xff]   ;;  %v14859_v16 = vld [vmem:[#allocation2 + $0x9a8] ss:$20 sps:$4 sm:$0xff]  }
 0xdb8   :  { %v5410_v34 = vpop.f32.mrf.mxu0 }
 0xdb9   :  { %7097 = vmatpush2.bf16.msra.mxu0 %v14756_v29  ;;  %v5411_v43 = vadd.f32 %v5410_v34, %v4308_v31  ;;  %v14806_v29 = vld [vmem:[#allocation2 + $0x634] ss:$20 sps:$4 sm:$0xff]   ;;  %v14814_v31 = vld [vmem:[#allocation2 + $0x890] ss:$20 sps:$4 sm:$0xff]  }
 0xdba   :  { %7152 = vmatpush2.bf16.msra.mxu1 %v14759_v22  ;;  %v5412_v20 = vpop.f32.mrf.mxu0  ;;  %7098 = vmatprep.subr.bf16.mxu0 %v14764_v27  ;;  %v14811_v22 = vld [vmem:[#allocation2 + $0xc20] ss:$20 sps:$4 sm:$0xff]   ;;  %v7066_v27 = vand.u32 %v12838_v21, %v16982_v26  ;;  %v14857_v21 = vld [vmem:[#allocation2 + $0x9a4] ss:$20 sps:$4 sm:$0xff]  }
 0xdbb   :  { %7203 = vmatprep.subr.bf16.mxu1 %v14767_v33  ;;  %v5413_v53 = vadd.f32 %v5412_v20, %v4312_v40  ;;  %v14809_v33 = vld [vmem:[#allocation2 + $0xc1c] ss:$20 sps:$4 sm:$0xff]  }
 0xdbc   :  { %v5414_v55 = vpop.f32.mrf.mxu0  ;;  %v5451_v47 = vpop.f32.mrf.mxu1 }
 0xdbd   :  { %7154 = vmatmul.mubr.bf16.vlgmr.msra.gmra.mxu1 %v17418_v48  ;;  %v17463_v54 = vadd.f32 %v5451_v47, %v5411_v43  ;;  %7099 = vmatpush2.bf16.msra.mxu0 %v14762_v36  ;;  %v14812_v36 = vld [vmem:[#allocation2 + $0x88c] ss:$20 sps:$4 sm:$0xff]   ;;  %v14818_v55 = vld [vmem:[#allocation2 + $0x864] ss:$20 sps:$4 sm:$0xff]  }
 0xdbe   :  { %7204 = vmatpush1.bf16.msra.mxu1 %v14765_v39  ;;  %7235 = vmatprep.mubr.bf16.mxu1 %v17405_v38  ;;  %v5415_v56 = vpop.f32.mrf.mxu0  ;;  %v5453_v57 = vpop.f32.mrf.mxu1  ;;  %v14817_v39 = vld [vmem:[#allocation2 + $0xbf8] ss:$20 sps:$4 sm:$0xff]   ;;  %v14823_v47 = vld [vmem:[#allocation2 + $0xbd0] ss:$20 sps:$4 sm:$0xff]  }
 0xdbf   :  { %v17466_v58 = vadd.f32 %v5453_v57, %v5413_v53  ;;  %7100 = vmatprep.subr.bf16.mxu0 %v14770_v45  ;;  %7205 = vmatprep.subr.bf16.mxu1 %v14773_v32  ;;  %v14820_v45 = vld [vmem:[#allocation2 + $0x868] ss:$20 sps:$4 sm:$0xff]   ;;  %v14821_v53 = vld [vmem:[#allocation2 + $0xbcc] ss:$20 sps:$4 sm:$0xff]  }
 0xdc0   :  { %v5455_v61 = vpop.f32.mrf.mxu1  ;;  %v14829_v56 = vld [vmem:[#allocation2 + $0xba8] ss:$20 sps:$4 sm:$0xff]   ;;  %v14832_v57 = vld [vmem:[#allocation2 + $0x818] ss:$20 sps:$4 sm:$0xff]  }
 0xdc1   :  { %7101 = vmatpush2.bf16.msra.mxu0 %v14768_v44  ;;  %v14815_v44 = vld [vmem:[#allocation2 + $0xbf4] ss:$20 sps:$4 sm:$0xff]   ;;  %v14838_v61 = vld [vmem:[#allocation2 + $0x7f0] ss:$20 sps:$4 sm:$0xff]  }
 0xdc2   :  { %7206 = vmatpush1.bf16.msra.mxu1 %v14771_v50  ;;  %v5456_v2 = vpop.f32.mrf.mxu1  ;;  %7102 = vmatprep.subr.bf16.mxu0 %v14776_v51  ;;  %v14826_v50 = vld [vmem:[#allocation2 + $0x840] ss:$20 sps:$4 sm:$0xff]  }
 0xdc3   :  { %7207 = vmatprep.subr.bf16.mxu1 %v14779_v60  ;;  %v14835_v60 = vld [vmem:[#allocation2 + $0xb80] ss:$20 sps:$4 sm:$0xff]   ;;  %v14841_v2 = vld [vmem:[#allocation2 + $0xb58] ss:$20 sps:$4 sm:$0xff]  }
 0xdc5   :  { %7103 = vmatpush2.bf16.msra.mxu0 %v14774_v59  ;;  %v14830_v59 = vld [vmem:[#allocation2 + $0x814] ss:$20 sps:$4 sm:$0xff]  }
 0xdc6   :  { %7208 = vmatpush1.bf16.msra.mxu1 %v14777_v0  ;;  %7104 = vmatprep.subr.bf16.mxu0 %v14782_v1  ;;  %v14833_v0 = vld [vmem:[#allocation2 + $0xb7c] ss:$20 sps:$4 sm:$0xff]   ;;  %v14836_v1 = vld [vmem:[#allocation2 + $0x7ec] ss:$20 sps:$4 sm:$0xff]  }
 0xdc7   :  { %7209 = vmatprep.subr.bf16.mxu1 %v14785_v4  ;;  %v14844_v4 = vld [vmem:[#allocation2 + $0x7c8] ss:$20 sps:$4 sm:$0xff]  }
 0xdc9   :  { %7105 = vmatpush2.bf16.msra.mxu0 %v14780_v3  ;;  %v14839_v3 = vld [vmem:[#allocation2 + $0xb54] ss:$20 sps:$4 sm:$0xff]  }
 0xdca   :  { %7210 = vmatpush1.bf16.msra.mxu1 %v14783_v5  ;;  %7106 = vmatprep.subr.bf16.mxu0 %v14788_v6  ;;  %v14842_v5 = vld [vmem:[#allocation2 + $0x7c4] ss:$20 sps:$4 sm:$0xff]  }
 0xdcb   :  { %7211 = vmatprep.subr.bf16.mxu1 %v14791_v8  ;;  %v14847_v6 = vld [vmem:[#allocation2 + $0xb30] ss:$20 sps:$4 sm:$0xff]   ;;  %v14850_v8 = vld [vmem:[#allocation2 + $0x7a0] ss:$20 sps:$4 sm:$0xff]  }
 0xdcd   :  { %7107 = vmatpush2.bf16.msra.mxu0 %v14786_v7  ;;  %v14845_v7 = vld [vmem:[#allocation2 + $0xb2c] ss:$20 sps:$4 sm:$0xff]  }
 0xdce   :  { %7212 = vmatpush1.bf16.msra.mxu1 %v14789_v9  ;;  %7108 = vmatprep.subr.bf16.mxu0 %v14794_v10  ;;  %v14848_v9 = vld [vmem:[#allocation2 + $0x79c] ss:$20 sps:$4 sm:$0xff]  }
 0xdcf   :  { %7213 = vmatprep.subr.bf16.mxu1 %v14797_v12  ;;  %v14856_v10 = vld [vmem:[#allocation2 + $0x9d0] ss:$20 sps:$4 sm:$0xff]   ;;  %v14853_v12 = vld [vmem:[#allocation2 + $0x778] ss:$20 sps:$4 sm:$0xff]  }
 0xdd1   :  { %7109 = vmatpush2.bf16.msra.mxu0 %v14792_v11  ;;  %v6008_v11 = vld [vmem:[#allocation2 + $0xc4c] sm:$0x11] }
 0xdd2   :  { %7214 = vmatpush1.bf16.msra.mxu1 %v14795_v14  ;;  %7110 = vmatprep.subr.bf16.mxu0 %v14800_v15  ;;  %v12841_v14 = vcombine.high %v6008_v11, %v6008_v11  ;;  %v14851_v15 = vld [vmem:[#allocation2 + $0x774] ss:$20 sps:$4 sm:$0xff]  }
 0xdd3   :  { %7215 = vmatprep.subr.bf16.mxu1 %v14803_v17  ;;  %v12840_v17 = vcombine.low %v6008_v11, %v6008_v11  ;;  %v14907_v11 = vld [vmem:[#allocation2 + $0xb14] ss:$20 sps:$4 sm:$0xff]  }
 0xdd5   :  { %7111 = vmatpush2.bf16.msra.mxu0 %v14798_v19  ;;  %v7075_v19 = vand.u32 %v12841_v14, %v16982_v26  ;;  %v14908_v14 = vld [vmem:[#allocation2 + $0x9d4] ss:$20 sps:$4 sm:$0xff]  }
 0xdd6   :  { %7216 = vmatpush1.bf16.msra.mxu1 %v14801_v23  ;;  %7162 = vmatprep.subr.bf16.mxu0 %v7069_v24  ;;  %v14864_v23 = vld [vmem:[#allocation2 + $0x980] ss:$20 sps:$4 sm:$0xff]   ;;  %v14867_v24 = vld [vmem:[#allocation2 + $0xc28] ss:$20 sps:$4 sm:$0xff]  }
 0xdd7   :  { %7217 = vmatprep.subr.bf16.mxu1 %v14808_v25  ;;  %v7072_v25 = vand.u32 %v12840_v17, %v16982_v26 }
 0xdd8   :  { %v5492_v34 = vpop.f32.mrf.mxu0  ;;  %7113 = vmatmul.mubr.bf16.vlgmr.msra.gmra.mxu0 %v17403_v37 }
 0xdd9   :  { %v17472_v40 = vadd.f32 %v5492_v34, %v17463_v54  ;;  %7163 = vmatpush1.bf16.msra.mxu0 %v7066_v27  ;;  %7194 = vmatprep.mubr.bf16.mxu0 %v16625_v42  ;;  %v14824_v54 = vld [vmem:[#allocation2 + $0x83c] ss:$20 sps:$4 sm:$0xff]   ;;  %v14870_v27 = vld [vmem:[#allocation2 + $0x958] ss:$20 sps:$4 sm:$0xff]   ;;  %v14868_v34 = vld [vmem:[#allocation2 + $0x954] ss:$20 sps:$4 sm:$0xff]  }
 0xdda   :  { %7218 = vmatpush1.bf16.msra.mxu1 %v14806_v29  ;;  %v5494_v20 = vpop.f32.mrf.mxu0  ;;  %7164 = vmatprep.subr.bf16.mxu0 %v14811_v22  ;;  %v14862_v29 = vld [vmem:[#allocation2 + $0x97c] ss:$20 sps:$4 sm:$0xff]   ;;  %v14865_v22 = vld [vmem:[#allocation2 + $0xc24] ss:$20 sps:$4 sm:$0xff]  }
 0xddb   :  { %v17476_v43 = vadd.f32 %v5494_v20, %v17466_v58  ;;  %7219 = vmatprep.subr.bf16.mxu1 %v14814_v31  ;;  %v14827_v58 = vld [vmem:[#allocation2 + $0xba4] ss:$20 sps:$4 sm:$0xff]  }
 0xddc   :  { %v5496_v32 = vpop.f32.mrf.mxu0  ;;  %v14876_v20 = vld [vmem:[#allocation2 + $0x930] ss:$20 sps:$4 sm:$0xff]  }
 0xddd   :  { %7165 = vmatpush1.bf16.msra.mxu0 %v14809_v33  ;;  %v14879_v32 = vld [vmem:[#allocation2 + $0xbd8] ss:$20 sps:$4 sm:$0xff]  }
 0xdde   :  { %7220 = vmatpush2.bf16.msra.mxu1 %v14812_v36  ;;  %v5497_v51 = vpop.f32.mrf.mxu0  ;;  %7166 = vmatprep.subr.bf16.mxu0 %v14817_v39  ;;  %v14873_v36 = vld [vmem:[#allocation2 + $0xc00] ss:$20 sps:$4 sm:$0xff]   ;;  %v14871_v39 = vld [vmem:[#allocation2 + $0xbfc] ss:$20 sps:$4 sm:$0xff]  }
 0xddf   :  { %7221 = vmatprep.subr.bf16.mxu1 %v14820_v45  ;;  %v14880_v51 = vld [vmem:[#allocation2 + $0x904] ss:$20 sps:$4 sm:$0xff]  }
 0xde1   :  { %7167 = vmatpush1.bf16.msra.mxu0 %v14815_v44 }
 0xde2   :  { %7222 = vmatpush2.bf16.msra.mxu1 %v14818_v55  ;;  %7168 = vmatprep.subr.bf16.mxu0 %v14823_v47  ;;  %v14874_v55 = vld [vmem:[#allocation2 + $0x92c] ss:$20 sps:$4 sm:$0xff]   ;;  %v14877_v47 = vld [vmem:[#allocation2 + $0xbd4] ss:$20 sps:$4 sm:$0xff]  }
 0xde3   :  { %7223 = vmatprep.subr.bf16.mxu1 %v14826_v50  ;;  %v14882_v50 = vld [vmem:[#allocation2 + $0x908] ss:$20 sps:$4 sm:$0xff]  }
 0xde5   :  { %7169 = vmatpush1.bf16.msra.mxu0 %v14821_v53  ;;  %v14885_v53 = vld [vmem:[#allocation2 + $0xbb0] ss:$20 sps:$4 sm:$0xff]  }
 0xde6   :  { %7224 = vmatpush2.bf16.msra.mxu1 %v14824_v54  ;;  %7170 = vmatprep.subr.bf16.mxu0 %v14829_v56  ;;  %v14883_v54 = vld [vmem:[#allocation2 + $0xbac] ss:$20 sps:$4 sm:$0xff]  }
 0xde7   :  { %7225 = vmatprep.subr.bf16.mxu1 %v14832_v57  ;;  %v14888_v56 = vld [vmem:[#allocation2 + $0x8e0] ss:$20 sps:$4 sm:$0xff]   ;;  %v14886_v57 = vld [vmem:[#allocation2 + $0x8dc] ss:$20 sps:$4 sm:$0xff]  }
 0xde9   :  { %7171 = vmatpush1.bf16.msra.mxu0 %v14827_v58  ;;  %v14891_v58 = vld [vmem:[#allocation2 + $0xb88] ss:$20 sps:$4 sm:$0xff]  }
 0xdea   :  { %7226 = vmatpush2.bf16.msra.mxu1 %v14830_v59  ;;  %7172 = vmatprep.subr.bf16.mxu0 %v14835_v60  ;;  %v14889_v59 = vld [vmem:[#allocation2 + $0xb84] ss:$20 sps:$4 sm:$0xff]  }
 0xdeb   :  { %7227 = vmatprep.subr.bf16.mxu1 %v14838_v61  ;;  %v14894_v60 = vld [vmem:[#allocation2 + $0x8b8] ss:$20 sps:$4 sm:$0xff]   ;;  %v14892_v61 = vld [vmem:[#allocation2 + $0x8b4] ss:$20 sps:$4 sm:$0xff]  }
 0xded   :  { %7173 = vmatpush1.bf16.msra.mxu0 %v14833_v0  ;;  %v14897_v0 = vld [vmem:[#allocation2 + $0xb60] ss:$20 sps:$4 sm:$0xff]  }
 0xdee   :  { %7228 = vmatpush2.bf16.msra.mxu1 %v14836_v1  ;;  %7174 = vmatprep.subr.bf16.mxu0 %v14841_v2  ;;  %v17490_v1 = vsub.s32 2, %v16917_v30  ;;  %v14895_v2 = vld [vmem:[#allocation2 + $0xb5c] ss:$20 sps:$4 sm:$0xff]  }
 0xdef   :  { %7229 = vmatprep.subr.bf16.mxu1 %v14844_v4  ;;  %v14903_v4 = vld [vmem:[#allocation2 + $0xb38] ss:$20 sps:$4 sm:$0xff]  }
 0xdf1   :  { %7175 = vmatpush1.bf16.msra.mxu0 %v14839_v3  ;;  %v14900_v3 = vld [vmem:[#allocation2 + $0xb10] ss:$20 sps:$4 sm:$0xff]  }
 0xdf2   :  { %7230 = vmatpush2.bf16.msra.mxu1 %v14842_v5  ;;  %7176 = vmatprep.subr.bf16.mxu0 %v14847_v6  ;;  %v14898_v5 = vld [vmem:[#allocation2 + $0xb0c] ss:$20 sps:$4 sm:$0xff]   ;;  %v17493_v6 = vsub.s32 3, %v16917_v30 }
 0xdf3   :  { %7231 = vmatprep.subr.bf16.mxu1 %v14850_v8  ;;  %v4316_v8 = vrot.slane %v17456_v28, %v17490_v1 }
 0xdf5   :  { %7177 = vmatpush1.bf16.msra.mxu0 %v14845_v7  ;;  %v14901_v7 = vld [vmem:[#allocation2 + $0xb34] ss:$20 sps:$4 sm:$0xff]  }
 0xdf6   :  { %7232 = vmatpush2.bf16.msra.mxu1 %v14848_v9  ;;  %7244 = vmatprep.subr.bf16.mxu0 %v14856_v10  ;;  %v14906_v9 = vld [vmem:[#allocation2 + $0xae8] ss:$20 sps:$4 sm:$0xff]   ;;  %v4320_v10 = vrot.slane %v17456_v28, %v17493_v6 }
 0xdf7   :  { %7233 = vmatprep.subr.bf16.mxu1 %v14853_v12 }
 0xdf8   :  { %12843 = vmatmul.mubr.msk.bf16.vlgmr.msra.gmra.mxu0 %vm5357_vm4, %v17425_v18 }
 0xdf9   :  { %7245 = vmatpush1.bf16.msra.mxu0 %v14854_v13  ;;  %7276 = vmatprep.mubr.bf16.mxu0 %v17415_v46  ;;  %v14904_v13 = vld [vmem:[#allocation2 + $0xae4] ss:$20 sps:$4 sm:$0xff]  }
 0xdfa   :  { %7234 = vmatpush2.bf16.msra.mxu1 %v14851_v15  ;;  %7246 = vmatprep.subr.bf16.mxu0 %v14859_v16 }
 0xdfb   :  { %7285 = vmatprep.subr.bf16.mxu1 %v7075_v19  ;;  %v14911_v19 = vld [vmem:[#allocation2 + $0xac0] ss:$20 sps:$4 sm:$0xff]  }
 0xdfd   :  { %v17483_v31 = vpop.f32.mrf.mxu1  ;;  %7236 = vmatmul.mubr.bf16.vlgmr.msra.gmra.mxu1 %v17403_v37  ;;  %7247 = vmatpush1.bf16.msra.mxu0 %v14857_v21  ;;  %v14912_v21 = vld [vmem:[#allocation2 + $0xaec] ss:$20 sps:$4 sm:$0xff]  }
 0xdfe   :  { %7286 = vmatpush1.bf16.msra.mxu1 %v7072_v25  ;;  %7248 = vmatprep.subr.bf16.mxu0 %v14864_v23  ;;  %v14909_v25 = vld [vmem:[#allocation2 + $0xabc] ss:$20 sps:$4 sm:$0xff]  }
 0xdff   :  { %v17486_v33 = vpop.f32.mrf.mxu1  ;;  %7287 = vmatprep.subr.bf16.mxu1 %v14867_v24  ;;  %7317 = vmatprep.mubr.bf16.mxu1 %v16625_v42 }
 0xe01   :  { %v5578_v44 = vpop.f32.mrf.mxu1  ;;  %7249 = vmatpush1.bf16.msra.mxu0 %v14862_v29 }
 0xe02   :  { %7288 = vmatpush1.bf16.msra.mxu1 %v14865_v22  ;;  %7250 = vmatprep.subr.bf16.mxu0 %v14870_v27  ;;  %v14913_v27 = vld [vmem:[#allocation2 + $0x9ac] ss:$20 sps:$4 sm:$0xff]  }
 0xe03   :  { %v5579_v45 = vpop.f32.mrf.mxu1  ;;  %7289 = vmatprep.subr.bf16.mxu1 %v14873_v36 }
 0xe04   :  { %v14918_v45 = vld [vmem:[#allocation2 + $0x984] ss:$20 sps:$4 sm:$0xff]  }
 0xe05   :  { %7251 = vmatpush1.bf16.msra.mxu0 %v14868_v34  ;;  %v14916_v34 = vld [vmem:[#allocation2 + $0xa98] ss:$20 sps:$4 sm:$0xff]  }
 0xe06   :  { %7290 = vmatpush1.bf16.msra.mxu1 %v14871_v39  ;;  %7252 = vmatprep.subr.bf16.mxu0 %v14876_v20  ;;  %v14917_v39 = vld [vmem:[#allocation2 + $0xac4] ss:$20 sps:$4 sm:$0xff]  }
 0xe07   :  { %7291 = vmatprep.subr.bf16.mxu1 %v14879_v32 }
 0xe09   :  { %7253 = vmatpush1.bf16.msra.mxu0 %v14874_v55  ;;  %v14919_v55 = vld [vmem:[#allocation2 + $0xa6c] ss:$20 sps:$4 sm:$0xff]  }
 0xe0a   :  { %7292 = vmatpush1.bf16.msra.mxu1 %v14877_v47  ;;  %7254 = vmatprep.subr.bf16.mxu0 %v14882_v50  ;;  %v14922_v47 = vld [vmem:[#allocation2 + $0xa9c] ss:$20 sps:$4 sm:$0xff]  }
 0xe0b   :  { %7293 = vmatprep.subr.bf16.mxu1 %v14885_v53  ;;  %v14923_v50 = vld [vmem:[#allocation2 + $0x95c] ss:$20 sps:$4 sm:$0xff]   ;;  %v14924_v53 = vld [vmem:[#allocation2 + $0xa44] ss:$20 sps:$4 sm:$0xff]  }
 0xe0d   :  { %7255 = vmatpush1.bf16.msra.mxu0 %v14880_v51  ;;  %v14926_v51 = vld [vmem:[#allocation2 + $0xa48] ss:$20 sps:$4 sm:$0xff]  }
 0xe0e   :  { %7294 = vmatpush1.bf16.msra.mxu1 %v14883_v54  ;;  %7256 = vmatprep.subr.bf16.mxu0 %v14888_v56  ;;  %v14927_v54 = vld [vmem:[#allocation2 + $0xa74] ss:$20 sps:$4 sm:$0xff]  }
 0xe0f   :  { %7295 = vmatprep.subr.bf16.mxu1 %v14891_v58  ;;  %v14928_v56 = vld [vmem:[#allocation2 + $0x934] ss:$20 sps:$4 sm:$0xff]   ;;  %v14929_v58 = vld [vmem:[#allocation2 + $0xa1c] ss:$20 sps:$4 sm:$0xff]  }
 0xe11   :  { %7257 = vmatpush1.bf16.msra.mxu0 %v14886_v57  ;;  %v14931_v57 = vld [vmem:[#allocation2 + $0xa20] ss:$20 sps:$4 sm:$0xff]  }
 0xe12   :  { %7296 = vmatpush1.bf16.msra.mxu1 %v14889_v59  ;;  %7258 = vmatprep.subr.bf16.mxu0 %v14894_v60  ;;  %v14932_v59 = vld [vmem:[#allocation2 + $0xa4c] ss:$20 sps:$4 sm:$0xff]  }
 0xe13   :  { %7297 = vmatprep.subr.bf16.mxu1 %v14897_v0  ;;  %v14933_v60 = vld [vmem:[#allocation2 + $0x90c] ss:$20 sps:$4 sm:$0xff]   ;;  %v14934_v0 = vld [vmem:[#allocation2 + $0x9f4] ss:$20 sps:$4 sm:$0xff]  }
 0xe15   :  { %7259 = vmatpush1.bf16.msra.mxu0 %v14892_v61  ;;  %v14936_v61 = vld [vmem:[#allocation2 + $0x9f8] ss:$20 sps:$4 sm:$0xff]  }
 0xe16   :  { %7298 = vmatpush1.bf16.msra.mxu1 %v14895_v2  ;;  %7260 = vmatprep.subr.bf16.mxu0 %v14900_v3  ;;  %v14937_v2 = vld [vmem:[#allocation2 + $0xa24] ss:$20 sps:$4 sm:$0xff]  }
 0xe17   :  { %7299 = vmatprep.subr.bf16.mxu1 %v14903_v4  ;;  %v14938_v3 = vld [vmem:[#allocation2 + $0x8e4] ss:$20 sps:$4 sm:$0xff]   ;;  %v14939_v4 = vld [vmem:[#allocation2 + $0x894] ss:$20 sps:$4 sm:$0xff]  }
 0xe18   :  { %v5533_v12 = vpop.f32.mrf.mxu0 }
 0xe19   :  { %v5534_v15 = vadd.f32 %v5533_v12, %v4316_v8  ;;  %7261 = vmatpush2.bf16.msra.mxu0 %v14898_v5  ;;  %v14940_v5 = vld [vmem:[#allocation2 + $0x9fc] ss:$20 sps:$4 sm:$0xff]  }
 0xe1a   :  { %7300 = vmatpush1.bf16.msra.mxu1 %v14901_v7  ;;  %v5535_v16 = vpop.f32.mrf.mxu0  ;;  %7262 = vmatprep.subr.bf16.mxu0 %v14906_v9  ;;  %v14941_v7 = vld [vmem:[#allocation2 + $0x754] ss:$20 sps:$4 sm:$0xff]   ;;  %v14942_v8 = vld [vmem:[#allocation2 + $0x8bc] ss:$20 sps:$4 sm:$0xff]   ;;  %v14943_v9 = vld [vmem:[#allocation2 + $0x86c] ss:$20 sps:$4 sm:$0xff]  }
 0xe1b   :  { %v5536_v17 = vadd.f32 %v5535_v16, %v4320_v10  ;;  %13579 = vmatprep.subr.bf16.mxu1 %v14907_v11  ;;  %v17500_v23 = vadd.f32 %v17483_v31, %v5534_v15  ;;  %v14914_v31 = vld [vmem:[#allocation2 + $0xa94] ss:$20 sps:$4 sm:$0xff]   ;;  %v14944_v12 = vld [vmem:[#allocation2 + $0xd70] ss:$20 sps:$4 sm:$0xff]  }
 0xe1c   :  { %v5537_v24 = vpop.f32.mrf.mxu0  ;;  %v14946_v10 = vld [vmem:[#allocation2 + $0xd74] ss:$20 sps:$4 sm:$0xff]  }
 0xe1d   :  { %v13520_v29 = vpop.f32.mrf.mxu1  ;;  %12844 = vmatmul.mubr.msk.bf16.vlgmr.msra.gmra.mxu1 %vm5357_vm4, %v17425_v18  ;;  %7263 = vmatpush2.bf16.msra.mxu0 %v14904_v13  ;;  %v17505_v28 = vadd.f32 %v17486_v33, %v5536_v17  ;;  %v14921_v33 = vld [vmem:[#allocation2 + $0xa70] ss:$20 sps:$4 sm:$0xff]   ;;  %v14947_v13 = vld [vmem:[#allocation2 + $0x72c] ss:$20 sps:$4 sm:$0xff]   ;;  %v14949_v24 = vld [vmem:[#allocation2 + $0xd48] ss:$20 sps:$4 sm:$0xff]  }
 0xe1e   :  { %13580 = vmatpush3.bf16.msra.mxu1 %v14908_v14  ;;  %7398 = vmatprep.mubr.bf16.mxu1 %v17415_v46  ;;  %v5538_v22 = vpop.f32.mrf.mxu0  ;;  %v14948_v17 = vld [vmem:[#allocation2 + $0x844] ss:$20 sps:$4 sm:$0xff]  }
 0xe1f   :  { %v13521_v36 = vpop.f32.mrf.mxu1  ;;  %7264 = vmatprep.subr.bf16.mxu0 %v14911_v19  ;;  %13581 = vmatprep.subr.bf16.mxu1 %v14912_v21  ;;  %v14951_v19 = vld [vmem:[#allocation2 + $0xd4c] ss:$20 sps:$4 sm:$0xff]  }
 0xe20   :  { %v17508_v20 = vadd.f32 %v13521_v36, %v13520_v29  ;;  %v14957_v36 = vld [vmem:[#allocation2 + $0x6dc] ss:$20 sps:$4 sm:$0xff]  }
 0xe21   :  { %v13523_v44 = vpop.f32.mrf.mxu1  ;;  %7265 = vmatpush2.bf16.msra.mxu0 %v14909_v25  ;;  %v14952_v25 = vld [vmem:[#allocation2 + $0x704] ss:$20 sps:$4 sm:$0xff]  }
 0xe22   :  { %13582 = vmatpush3.bf16.msra.mxu1 %v14913_v27  ;;  %7266 = vmatprep.subr.bf16.mxu0 %v14916_v34  ;;  %v14954_v34 = vld [vmem:[#allocation2 + $0xd20] ss:$20 sps:$4 sm:$0xff]  }
 0xe23   :  { %v13524_v32 = vpop.f32.mrf.mxu1  ;;  %13583 = vmatprep.subr.bf16.mxu1 %v14917_v39 }
 0xe24   :  { %v14962_v32 = vld [vmem:[#allocation2 + $0x6b4] ss:$20 sps:$4 sm:$0xff]  }
 0xe25   :  { %7267 = vmatpush2.bf16.msra.mxu0 %v14914_v31  ;;  %v14958_v31 = vld [vmem:[#allocation2 + $0x7f4] ss:$20 sps:$4 sm:$0xff]  }
 0xe26   :  { %13584 = vmatpush3.bf16.msra.mxu1 %v14918_v45  ;;  %7268 = vmatprep.subr.bf16.mxu0 %v14921_v33  ;;  %v14961_v45 = vld [vmem:[#allocation2 + $0xcfc] ss:$20 sps:$4 sm:$0xff]   ;;  %v14959_v33 = vld [vmem:[#allocation2 + $0xcf8] ss:$20 sps:$4 sm:$0xff]  }
 0xe27   :  { %13585 = vmatprep.subr.bf16.mxu1 %v14922_v47  ;;  %v14966_v47 = vld [vmem:[#allocation2 + $0xcd4] ss:$20 sps:$4 sm:$0xff]  }
 0xe29   :  { %7269 = vmatpush2.bf16.msra.mxu0 %v14919_v55  ;;  %v14963_v55 = vld [vmem:[#allocation2 + $0x7cc] ss:$20 sps:$4 sm:$0xff]  }
 0xe2a   :  { %13586 = vmatpush3.bf16.msra.mxu1 %v14923_v50  ;;  %7270 = vmatprep.subr.bf16.mxu0 %v14926_v51  ;;  %v14964_v50 = vld [vmem:[#allocation2 + $0xcd0] ss:$20 sps:$4 sm:$0xff]   ;;  %v14967_v51 = vld [vmem:[#allocation2 + $0x68c] ss:$20 sps:$4 sm:$0xff]  }
 0xe2b   :  { %13587 = vmatprep.subr.bf16.mxu1 %v14927_v54  ;;  %v14971_v54 = vld [vmem:[#allocation2 + $0xcac] ss:$20 sps:$4 sm:$0xff]  }
 0xe2d   :  { %7271 = vmatpush2.bf16.msra.mxu0 %v14924_v53  ;;  %v14968_v53 = vld [vmem:[#allocation2 + $0x7a4] ss:$20 sps:$4 sm:$0xff]  }
 0xe2e   :  { %13588 = vmatpush3.bf16.msra.mxu1 %v14928_v56  ;;  %7272 = vmatprep.subr.bf16.mxu0 %v14931_v57  ;;  %v14969_v56 = vld [vmem:[#allocation2 + $0xca8] ss:$20 sps:$4 sm:$0xff]   ;;  %v14972_v57 = vld [vmem:[#allocation2 + $0x664] ss:$20 sps:$4 sm:$0xff]  }
 0xe2f   :  { %13589 = vmatprep.subr.bf16.mxu1 %v14932_v59  ;;  %v14976_v59 = vld [vmem:[#allocation2 + $0xc84] ss:$20 sps:$4 sm:$0xff]  }
 0xe31   :  { %7273 = vmatpush2.bf16.msra.mxu0 %v14929_v58  ;;  %v14973_v58 = vld [vmem:[#allocation2 + $0x77c] ss:$20 sps:$4 sm:$0xff]  }
 0xe32   :  { %13590 = vmatpush3.bf16.msra.mxu1 %v14933_v60  ;;  %7274 = vmatprep.subr.bf16.mxu0 %v14936_v61  ;;  %v14977_v60 = vld [vmem:[#allocation2 + $0x63c] ss:$20 sps:$4 sm:$0xff]   ;;  %v14974_v61 = vld [vmem:[#allocation2 + $0xc80] ss:$20 sps:$4 sm:$0xff]  }
 0xe33   :  { %13591 = vmatprep.subr.bf16.mxu1 %v14937_v2  ;;  %v17523_v2 = vsub.s32 4, %v16917_v30  ;;  %v14985_v30 = vld [vmem:[#allocation2 + $0xc2c] ss:$20 sps:$4 sm:$0xff]  }
 0xe35   :  { %7275 = vmatpush2.bf16.msra.mxu0 %v14934_v0  ;;  %v14981_v0 = vld [vmem:[#allocation2 + $0xc54] ss:$0 sps:$4 sm:$0x11]  }
 0xe36   :  { %13592 = vmatpush3.bf16.msra.mxu1 %v14938_v3  ;;  %13557 = vmatprep.subr.bf16.mxu0 %v14939_v4  ;;  %v14980_v3 = vld [vmem:[#allocation2 + $0xc5c] ss:$20 sps:$4 sm:$0xff]   ;;  %v14978_v4 = vld [vmem:[#allocation2 + $0xc58] ss:$20 sps:$4 sm:$0xff]  }
 0xe37   :  { %13593 = vmatprep.subr.bf16.mxu1 %v14940_v5  ;;  %v7078_v5 = vand.u32 %v14981_v0, %v16982_v26 }
 0xe38   :  { %v5615_v11 = vpop.f32.mrf.mxu0  ;;  %7277 = vmatmul.mubr.bf16.vlgmr.msra.gmra.mxu0 %v17418_v48 }
 0xe39   :  { %v17512_v14 = vadd.f32 %v5615_v11, %v17500_v23  ;;  %13558 = vmatpush3.bf16.msra.mxu0 %v14941_v7  ;;  %7358 = vmatprep.mubr.bf16.mxu0 %v17405_v38  ;;  %v14953_v23 = vld [vmem:[#allocation2 + $0x81c] ss:$20 sps:$4 sm:$0xff]  }
 0xe3a   :  { %13594 = vmatpush3.bf16.msra.mxu1 %v14942_v8  ;;  %v5617_v15 = vpop.f32.mrf.mxu0  ;;  %13559 = vmatprep.subr.bf16.mxu0 %v14943_v9  ;;  %v15764_v7 = vld [vmem:[#allocation25] sm:$0x1f]  ;;  %v14984_v9 = vld [vmem:[#allocation2 + $0xeb4] ss:$20 sps:$4 sm:$0xff]  }
 0xe3b   :  { %v17516_v16 = vadd.f32 %v5617_v15, %v17505_v28  ;;  %8784 = vmatprep.subr.bf16.mxu1 %v14946_v10  ;;  %v14956_v28 = vld [vmem:[#allocation2 + $0xd24] ss:$20 sps:$4 sm:$0xff]   ;;  %v4324_v8 = vrot.slane %v15764_v7, %v17523_v2  ;;  %v15021_v7 = vld [vmem:[#allocation2 + $0xfa0] ss:$20 sps:$4 sm:$0xff]  }
 0xe3c   :  { %v5619_v21 = vpop.f32.mrf.mxu0  ;;  %v14982_v11 = vld [vmem:[#allocation2 + $0xeb0] ss:$20 sps:$4 sm:$0xff]  }
 0xe3d   :  { %v17518_v29 = vpop.f32.mrf.mxu1  ;;  %7399 = vmatmul.mubr.bf16.vlgmr.msra.gmra.mxu1 %v17418_v48  ;;  %13560 = vmatpush3.bf16.msra.mxu0 %v14947_v13  ;;  %v5657_v13 = vadd.f32 %v17508_v20, %v4324_v8  ;;  %v14986_v21 = vld [vmem:[#allocation2 + $0xe88] ss:$20 sps:$4 sm:$0xff]  }
 0xe3e   :  { %8785 = vmatpush1.bf16.msra.mxu1 %v14944_v12  ;;  %8816 = vmatprep.mubr.bf16.mxu1 %v17405_v38  ;;  %v5620_v22 = vpop.f32.mrf.mxu0  ;;  %v14993_v20 = vld [vmem:[#allocation2 + $0xbdc] ss:$20 sps:$4 sm:$0xff]  }
 0xe3f   :  { %v13943_v27 = vpop.f32.mrf.mxu1  ;;  %13561 = vmatprep.subr.bf16.mxu0 %v14948_v17  ;;  %8786 = vmatprep.subr.bf16.mxu1 %v14951_v19  ;;  %v14988_v17 = vld [vmem:[#allocation2 + $0xe8c] ss:$20 sps:$4 sm:$0xff]   ;;  %v15024_v8 = vld [vmem:[#allocation2 + $0x1248] ss:$20 sps:$4 sm:$0xff]  }
 0xe40   :  { %v14992_v27 = vld [vmem:[#allocation2 + $0xe64] ss:$20 sps:$4 sm:$0xff]  }
 0xe41   :  { %v5739_v39 = vpop.f32.mrf.mxu1  ;;  %13562 = vmatpush3.bf16.msra.mxu0 %v14952_v25 }
 0xe42   :  { %8787 = vmatpush1.bf16.msra.mxu1 %v14949_v24  ;;  %13563 = vmatprep.subr.bf16.mxu0 %v14953_v23  ;;  %v14989_v24 = vld [vmem:[#allocation2 + $0xc04] ss:$20 sps:$4 sm:$0xff]   ;;  %v15000_v39 = vld [vmem:[#allocation2 + $0xe14] ss:$20 sps:$4 sm:$0xff]  }
 0xe43   :  { %v13944_v44 = vpop.f32.mrf.mxu1  ;;  %8788 = vmatprep.subr.bf16.mxu1 %v14956_v28  ;;  %v14990_v28 = vld [vmem:[#allocation2 + $0xe60] ss:$20 sps:$4 sm:$0xff]  }
 0xe44   :  { %v14998_v44 = vld [vmem:[#allocation2 + $0xe10] ss:$20 sps:$4 sm:$0xff]  }
 0xe45   :  { %13564 = vmatpush3.bf16.msra.mxu0 %v14957_v36  ;;  %v14997_v36 = vld [vmem:[#allocation2 + $0xbb4] ss:$20 sps:$4 sm:$0xff]  }
 0xe46   :  { %8789 = vmatpush1.bf16.msra.mxu1 %v14954_v34  ;;  %13565 = vmatprep.subr.bf16.mxu0 %v14958_v31  ;;  %v14996_v34 = vld [vmem:[#allocation2 + $0xe3c] ss:$20 sps:$4 sm:$0xff]   ;;  %v14994_v31 = vld [vmem:[#allocation2 + $0xe38] ss:$20 sps:$4 sm:$0xff]  }
 0xe47   :  { %8790 = vmatprep.subr.bf16.mxu1 %v14961_v45  ;;  %v15004_v45 = vld [vmem:[#allocation2 + $0xdec] ss:$20 sps:$4 sm:$0xff]  }
 0xe49   :  { %13566 = vmatpush3.bf16.msra.mxu0 %v14962_v32  ;;  %v15002_v32 = vld [vmem:[#allocation2 + $0xde8] ss:$20 sps:$4 sm:$0xff]  }
 0xe4a   :  { %8791 = vmatpush1.bf16.msra.mxu1 %v14959_v33  ;;  %13567 = vmatprep.subr.bf16.mxu0 %v14963_v55  ;;  %v15005_v33 = vld [vmem:[#allocation2 + $0xb64] ss:$20 sps:$4 sm:$0xff]  }
 0xe4b   :  { %8792 = vmatprep.subr.bf16.mxu1 %v14966_v47  ;;  %v15008_v55 = vld [vmem:[#allocation2 + $0xdc4] ss:$20 sps:$4 sm:$0xff]   ;;  %v15009_v47 = vld [vmem:[#allocation2 + $0xb3c] ss:$20 sps:$4 sm:$0xff]  }
 0xe4d   :  { %13568 = vmatpush3.bf16.msra.mxu0 %v14967_v51  ;;  %v15006_v51 = vld [vmem:[#allocation2 + $0xdc0] ss:$20 sps:$4 sm:$0xff]  }
 0xe4e   :  { %8793 = vmatpush1.bf16.msra.mxu1 %v14964_v50  ;;  %13569 = vmatprep.subr.bf16.mxu0 %v14968_v53  ;;  %v7711_v50 = vld [vmem:[#allocation2 + $0x1270] sm:$0x11] }
 0xe4f   :  { %8794 = vmatprep.subr.bf16.mxu1 %v14971_v54  ;;  %v15012_v53 = vld [vmem:[#allocation2 + $0xd9c] ss:$20 sps:$4 sm:$0xff]   ;;  %v15015_v54 = vld [vmem:[#allocation2 + $0xff4] ss:$20 sps:$4 sm:$0xff]  }
 0xe51   :  { %13570 = vmatpush3.bf16.msra.mxu0 %v14972_v57  ;;  %v15010_v57 = vld [vmem:[#allocation2 + $0xd98] ss:$20 sps:$4 sm:$0xff]  }
 0xe52   :  { %8795 = vmatpush1.bf16.msra.mxu1 %v14969_v56  ;;  %13571 = vmatprep.subr.bf16.mxu0 %v14973_v58  ;;  %v13047_v56 = vcombine.high %v7711_v50, %v7711_v50  ;;  %v15013_v58 = vld [vmem:[#allocation2 + $0xff0] ss:$20 sps:$4 sm:$0xff]  }
 0xe53   :  { %8796 = vmatprep.subr.bf16.mxu1 %v14976_v59  ;;  %v15018_v59 = vld [vmem:[#allocation2 + $0xfcc] ss:$20 sps:$4 sm:$0xff]  }
 0xe54   :  { %v8773_v0 = vand.u32 %v13047_v56, %v16982_v26 }
 0xe55   :  { %13572 = vmatpush3.bf16.msra.mxu0 %v14977_v60  ;;  %v13046_v60 = vcombine.low %v7711_v50, %v7711_v50  ;;  %v15057_v50 = vld [vmem:[#allocation2 + $0x1130] ss:$20 sps:$4 sm:$0xff]  }
 0xe56   :  { %8797 = vmatpush1.bf16.msra.mxu1 %v14974_v61  ;;  %13945 = vmatprep.subr.bf16.mxu0 %v16624_v41  ;;  %v15016_v61 = vld [vmem:[#allocation2 + $0xfc8] ss:$20 sps:$4 sm:$0xff]  }
 0xe57   :  { %8798 = vmatprep.subr.bf16.mxu1 %v14980_v3  ;;  %v15023_v3 = vld [vmem:[#allocation2 + $0xfa4] ss:$20 sps:$4 sm:$0xff]  }
 0xe58   :  { %v13542_v10 = vpop.f32.mrf.mxu0  ;;  %7359 = vmatmul.mubr.bf16.vlgmr.msra.gmra.mxu0 %v17403_v37 }
 0xe59   :  { %13946 = vmatpush3.bf16.msra.mxu0 %v7078_v5  ;;  %13961 = vmatprep.mubr.msk.bf16.mxu0 %vm16626_vm0, %v16624_v41  ;;  %v15026_v5 = vld [vmem:[#allocation2 + $0x124c] ss:$20 sps:$4 sm:$0xff]  }
 0xe5a   :  { %8799 = vmatpush1.bf16.msra.mxu1 %v14978_v4  ;;  %v13543_v12 = vpop.f32.mrf.mxu0  ;;  %13947 = vmatprep.subr.bf16.mxu0 %v16624_v41  ;;  %v8770_v4 = vand.u32 %v13046_v60, %v16982_v26  ;;  %v15066_v60 = vld [vmem:[#allocation2 + $0xff8] ss:$20 sps:$4 sm:$0xff]  }
 0xe5b   :  { %v13544_v15 = vadd.f32 %v13543_v12, %v13542_v10  ;;  %8800 = vmatprep.subr.bf16.mxu1 %v14984_v9  ;;  %v15029_v9 = vld [vmem:[#allocation2 + $0xf7c] ss:$20 sps:$4 sm:$0xff]   ;;  %v15032_v12 = vld [vmem:[#allocation2 + $0x1224] ss:$20 sps:$4 sm:$0xff]  }
 0xe5c   :  { %v13545_v19 = vpop.f32.mrf.mxu0 }
 0xe5d   :  { %v5697_v25 = vadd.f32 %v13544_v15, %v5657_v13  ;;  %13948 = vmatpush3.bf16.msra.mxu0 %v14985_v30  ;;  %v15027_v30 = vld [vmem:[#allocation2 + $0xf78] ss:$20 sps:$4 sm:$0xff]   ;;  %v15030_v13 = vld [vmem:[#allocation2 + $0x1220] ss:$20 sps:$4 sm:$0xff]  }
 0xe5e   :  { %8801 = vmatpush2.bf16.msra.mxu1 %v14982_v11  ;;  %v13546_v23 = vpop.f32.mrf.mxu0  ;;  %13949 = vmatprep.subr.bf16.mxu0 %v16624_v41  ;;  %v15035_v15 = vld [vmem:[#allocation2 + $0xf54] ss:$20 sps:$4 sm:$0xff]  }
 0xe5f   :  { %v17535_v22 = vadd.f32 %v17518_v29, %v5697_v25  ;;  %8802 = vmatprep.subr.bf16.mxu1 %v14988_v17  ;;  %v15001_v29 = vld [vmem:[#allocation2 + $0xb8c] ss:$20 sps:$4 sm:$0xff]  }
 0xe60   :  { %v15036_v25 = vld [vmem:[#allocation2 + $0x11f8] ss:$20 sps:$4 sm:$0xff]  }
 0xe61   :  { %13950 = vmatpush3.bf16.msra.mxu0 %v14989_v24  ;;  %v15038_v24 = vld [vmem:[#allocation2 + $0x11fc] ss:$20 sps:$4 sm:$0xff]   ;;  %v15041_v23 = vld [vmem:[#allocation2 + $0xf2c] ss:$20 sps:$4 sm:$0xff]  }
 0xe62   :  { %8803 = vmatpush2.bf16.msra.mxu1 %v14986_v21  ;;  %13951 = vmatprep.subr.bf16.mxu0 %v16624_v41  ;;  %v15033_v21 = vld [vmem:[#allocation2 + $0xf50] ss:$20 sps:$4 sm:$0xff]  }
 0xe63   :  { %8804 = vmatprep.subr.bf16.mxu1 %v14992_v27  ;;  %v15039_v27 = vld [vmem:[#allocation2 + $0xf28] ss:$20 sps:$4 sm:$0xff]  }
 0xe65   :  { %13952 = vmatpush3.bf16.msra.mxu0 %v14993_v20  ;;  %v15042_v20 = vld [vmem:[#allocation2 + $0x11d0] ss:$20 sps:$4 sm:$0xff]  }
 0xe66   :  { %8805 = vmatpush2.bf16.msra.mxu1 %v14990_v28  ;;  %13953 = vmatprep.subr.bf16.mxu0 %v16624_v41  ;;  %v15044_v28 = vld [vmem:[#allocation2 + $0x11d4] ss:$20 sps:$4 sm:$0xff]  }
 0xe67   :  { %8806 = vmatprep.subr.bf16.mxu1 %v14996_v34  ;;  %v15047_v34 = vld [vmem:[#allocation2 + $0xf04] ss:$20 sps:$4 sm:$0xff]  }
 0xe69   :  { %13954 = vmatpush3.bf16.msra.mxu0 %v14997_v36  ;;  %v15045_v36 = vld [vmem:[#allocation2 + $0xf00] ss:$20 sps:$4 sm:$0xff]  }
 0xe6a   :  { %8807 = vmatpush2.bf16.msra.mxu1 %v14994_v31  ;;  %13955 = vmatprep.subr.bf16.mxu0 %v16624_v41  ;;  %v15050_v31 = vld [vmem:[#allocation2 + $0x11ac] ss:$20 sps:$4 sm:$0xff]  }
 0xe6b   :  { %8808 = vmatprep.subr.bf16.mxu1 %v15000_v39  ;;  %v15048_v39 = vld [vmem:[#allocation2 + $0x11a8] ss:$20 sps:$4 sm:$0xff]  }
 0xe6d   :  { %13956 = vmatpush3.bf16.msra.mxu0 %v15001_v29  ;;  %v15053_v29 = vld [vmem:[#allocation2 + $0xedc] ss:$20 sps:$4 sm:$0xff]  }
 0xe6e   :  { %8809 = vmatpush2.bf16.msra.mxu1 %v14998_v44  ;;  %13957 = vmatprep.subr.bf16.mxu0 %v16624_v41  ;;  %v15051_v44 = vld [vmem:[#allocation2 + $0xed8] ss:$20 sps:$4 sm:$0xff]  }
 0xe6f   :  { %8810 = vmatprep.subr.bf16.mxu1 %v15004_v45  ;;  %v15056_v45 = vld [vmem:[#allocation2 + $0x1184] ss:$20 sps:$4 sm:$0xff]  }
 0xe71   :  { %13958 = vmatpush3.bf16.msra.mxu0 %v15005_v33  ;;  %v15054_v33 = vld [vmem:[#allocation2 + $0x1180] ss:$20 sps:$4 sm:$0xff]  }
 0xe72   :  { %8811 = vmatpush2.bf16.msra.mxu1 %v15002_v32  ;;  %13959 = vmatprep.subr.bf16.mxu0 %v16624_v41  ;;  %v17553_v32 = vld [vmem:[#allocation25 + $0x5] sm:$0x1f] }
 0xe73   :  { %8812 = vmatprep.subr.bf16.mxu1 %v15008_v55  ;;  %v15059_v55 = vld [vmem:[#allocation2 + $0x1134] ss:$20 sps:$4 sm:$0xff]   ;;  %v6020_v56 = vrot.slane %v17553_v32, %v17378_v52 }
 0xe75   :  { %13960 = vmatpush3.bf16.msra.mxu0 %v15009_v47  ;;  %v15062_v47 = vld [vmem:[#allocation2 + $0x115c] ss:$20 sps:$4 sm:$0xff]  }
 0xe76   :  { %8813 = vmatpush2.bf16.msra.mxu1 %v15006_v51  ;;  %8825 = vmatprep.subr.bf16.mxu0 %v15015_v54  ;;  %v15060_v51 = vld [vmem:[#allocation2 + $0x1158] ss:$20 sps:$4 sm:$0xff]   ;;  %v6016_v54 = vrot.slane %v17553_v32, %v17375_v49 }
 0xe77   :  { %8814 = vmatprep.subr.bf16.mxu1 %v15012_v53  ;;  %v15065_v53 = vld [vmem:[#allocation2 + $0x110c] ss:$20 sps:$4 sm:$0xff]  }
 0xe78   :  { %13962 = vmatmul.mubr.msk.bf16.vlgmr.msra.gmra.mxu0 %vm5357_vm4, %v17425_v18 }
 0xe79   :  { %8826 = vmatpush1.bf16.msra.mxu0 %v15013_v58  ;;  %8857 = vmatprep.mubr.bf16.mxu0 %v17415_v46 }
 0xe7a   :  { %8815 = vmatpush2.bf16.msra.mxu1 %v15010_v57  ;;  %8827 = vmatprep.subr.bf16.mxu0 %v15018_v59  ;;  %v15068_v57 = vld [vmem:[#allocation2 + $0xffc] ss:$20 sps:$4 sm:$0xff]  }
 0xe7b   :  { %8866 = vmatprep.subr.bf16.mxu1 %v8773_v0  ;;  %v15063_v59 = vld [vmem:[#allocation2 + $0x1108] ss:$20 sps:$4 sm:$0xff]  }
 0xe7d   :  { %v17547_v10 = vpop.f32.mrf.mxu1  ;;  %8817 = vmatmul.mubr.bf16.vlgmr.msra.gmra.mxu1 %v17403_v37  ;;  %8828 = vmatpush1.bf16.msra.mxu0 %v15016_v61 }
 0xe7e   :  { %8867 = vmatpush1.bf16.msra.mxu1 %v8770_v4  ;;  %8829 = vmatprep.subr.bf16.mxu0 %v15023_v3  ;;  %v15071_v4 = vld [vmem:[#allocation2 + $0x10e4] ss:$20 sps:$4 sm:$0xff]  }
 0xe7f   :  { %v17550_v11 = vpop.f32.mrf.mxu1  ;;  %8868 = vmatprep.subr.bf16.mxu1 %v15026_v5  ;;  %8898 = vmatprep.mubr.bf16.mxu1 %v16625_v42  ;;  %v15074_v5 = vld [vmem:[#allocation2 + $0xfd4] ss:$20 sps:$4 sm:$0xff]  }
 0xe81   :  { %v7159_v17 = vpop.f32.mrf.mxu1  ;;  %8830 = vmatpush1.bf16.msra.mxu0 %v15021_v7 }
 0xe82   :  { %8869 = vmatpush1.bf16.msra.mxu1 %v15024_v8  ;;  %8831 = vmatprep.subr.bf16.mxu0 %v15029_v9  ;;  %v15069_v9 = vld [vmem:[#allocation2 + $0x10e0] ss:$20 sps:$4 sm:$0xff]   ;;  %v15075_v17 = vld [vmem:[#allocation2 + $0x10b8] ss:$20 sps:$4 sm:$0xff]  }
 0xe83   :  { %v7160_v19 = vpop.f32.mrf.mxu1  ;;  %8870 = vmatprep.subr.bf16.mxu1 %v15032_v12 }
 0xe84   :  { %v15078_v19 = vld [vmem:[#allocation2 + $0xfa8] ss:$20 sps:$4 sm:$0xff]  }
 0xe85   :  { %8832 = vmatpush1.bf16.msra.mxu0 %v15027_v30  ;;  %v15072_v30 = vld [vmem:[#allocation2 + $0xfd0] ss:$20 sps:$4 sm:$0xff]  }
 0xe86   :  { %8871 = vmatpush1.bf16.msra.mxu1 %v15030_v13  ;;  %8833 = vmatprep.subr.bf16.mxu0 %v15035_v15  ;;  %v15077_v15 = vld [vmem:[#allocation2 + $0x10bc] ss:$20 sps:$4 sm:$0xff]  }
 0xe87   :  { %8872 = vmatprep.subr.bf16.mxu1 %v15038_v24  ;;  %v15086_v24 = vld [vmem:[#allocation2 + $0xf84] ss:$20 sps:$4 sm:$0xff]  }
 0xe89   :  { %8834 = vmatpush1.bf16.msra.mxu0 %v15033_v21  ;;  %v15083_v21 = vld [vmem:[#allocation2 + $0x1094] ss:$20 sps:$4 sm:$0xff]  }
 0xe8a   :  { %8873 = vmatpush1.bf16.msra.mxu1 %v15036_v25  ;;  %8835 = vmatprep.subr.bf16.mxu0 %v15041_v23  ;;  %v15081_v25 = vld [vmem:[#allocation2 + $0x1090] ss:$20 sps:$4 sm:$0xff]   ;;  %v15089_v23 = vld [vmem:[#allocation2 + $0x106c] ss:$20 sps:$4 sm:$0xff]  }
 0xe8b   :  { %8874 = vmatprep.subr.bf16.mxu1 %v15044_v28  ;;  %v15087_v28 = vld [vmem:[#allocation2 + $0x1068] ss:$20 sps:$4 sm:$0xff]  }
 0xe8d   :  { %8836 = vmatpush1.bf16.msra.mxu0 %v15039_v27  ;;  %v15092_v27 = vld [vmem:[#allocation2 + $0xf5c] ss:$20 sps:$4 sm:$0xff]  }
 0xe8e   :  { %8875 = vmatpush1.bf16.msra.mxu1 %v15042_v20  ;;  %8837 = vmatprep.subr.bf16.mxu0 %v15047_v34  ;;  %v15090_v20 = vld [vmem:[#allocation2 + $0xf58] ss:$20 sps:$4 sm:$0xff]  }
 0xe8f   :  { %8876 = vmatprep.subr.bf16.mxu1 %v15050_v31  ;;  %v15095_v34 = vld [vmem:[#allocation2 + $0x1044] ss:$20 sps:$4 sm:$0xff]   ;;  %v15093_v31 = vld [vmem:[#allocation2 + $0x1040] ss:$20 sps:$4 sm:$0xff]  }
 0xe91   :  { %8838 = vmatpush1.bf16.msra.mxu0 %v15045_v36  ;;  %v15098_v36 = vld [vmem:[#allocation2 + $0xf34] ss:$20 sps:$4 sm:$0xff]  }
 0xe92   :  { %8877 = vmatpush1.bf16.msra.mxu1 %v15048_v39  ;;  %8839 = vmatprep.subr.bf16.mxu0 %v15053_v29  ;;  %v15096_v39 = vld [vmem:[#allocation2 + $0xf30] ss:$20 sps:$4 sm:$0xff]  }
 0xe93   :  { %8878 = vmatprep.subr.bf16.mxu1 %v15056_v45  ;;  %v15101_v29 = vld [vmem:[#allocation2 + $0x101c] ss:$20 sps:$4 sm:$0xff]   ;;  %v15099_v45 = vld [vmem:[#allocation2 + $0x1018] ss:$20 sps:$4 sm:$0xff]  }
 0xe95   :  { %8840 = vmatpush1.bf16.msra.mxu0 %v15051_v44  ;;  %v15104_v44 = vld [vmem:[#allocation2 + $0xf0c] ss:$20 sps:$4 sm:$0xff]  }
 0xe96   :  { %8879 = vmatpush1.bf16.msra.mxu1 %v15054_v33  ;;  %8841 = vmatprep.subr.bf16.mxu0 %v15059_v55  ;;  %v15102_v33 = vld [vmem:[#allocation2 + $0xf08] ss:$20 sps:$4 sm:$0xff]  }
 0xe97   :  { %8880 = vmatprep.subr.bf16.mxu1 %v15062_v47  ;;  %v15107_v55 = vld [vmem:[#allocation2 + $0xd7c] ss:$20 sps:$4 sm:$0xff]   ;;  %v15110_v47 = vld [vmem:[#allocation2 + $0xee4] ss:$20 sps:$4 sm:$0xff]  }
 0xe98   :  { %v7114_v58 = vpop.f32.mrf.mxu0 }
 0xe99   :  { %v7115_v61 = vadd.f32 %v7114_v58, %v6016_v54  ;;  %8842 = vmatpush2.bf16.msra.mxu0 %v15057_v50  ;;  %v15105_v50 = vld [vmem:[#allocation2 + $0xd78] ss:$20 sps:$4 sm:$0xff]   ;;  %v15116_v54 = vld [vmem:[#allocation2 + $0x113c] ss:$20 sps:$4 sm:$0xff]  }
 0xe9a   :  { %8881 = vmatpush1.bf16.msra.mxu1 %v15060_v51  ;;  %v7116_v0 = vpop.f32.mrf.mxu0  ;;  %8843 = vmatprep.subr.bf16.mxu0 %v15065_v53  ;;  %v15108_v51 = vld [vmem:[#allocation2 + $0xee0] ss:$20 sps:$4 sm:$0xff]   ;;  %v15111_v58 = vld [vmem:[#allocation2 + $0xd50] ss:$20 sps:$4 sm:$0xff]  }
 0xe9b   :  { %v7117_v3 = vadd.f32 %v7116_v0, %v6020_v56  ;;  %8948 = vmatprep.subr.bf16.mxu1 %v15068_v57  ;;  %v17560_v7 = vadd.f32 %v17547_v10, %v7115_v61  ;;  %v15080_v10 = vld [vmem:[#allocation2 + $0xfac] ss:$20 sps:$4 sm:$0xff]   ;;  %v15113_v53 = vld [vmem:[#allocation2 + $0xd54] ss:$20 sps:$4 sm:$0xff]  }
 0xe9c   :  { %v7118_v8 = vpop.f32.mrf.mxu0  ;;  %v15119_v61 = vld [vmem:[#allocation2 + $0xd2c] ss:$20 sps:$4 sm:$0xff]  }
 0xe9d   :  { %13051 = vmatmul.mubr.msk.bf16.vlgmr.msra.gmra.mxu1 %vm5357_vm4, %v17425_v18  ;;  %8844 = vmatpush2.bf16.msra.mxu0 %v15063_v59  ;;  %v17565_v12 = vadd.f32 %v17550_v11, %v7117_v3  ;;  %v15084_v11 = vld [vmem:[#allocation2 + $0xf80] ss:$20 sps:$4 sm:$0xff]  }
 0xe9e   :  { %8949 = vmatpush1.bf16.msra.mxu1 %v15066_v60  ;;  %8980 = vmatprep.mubr.bf16.mxu1 %v17415_v46  ;;  %v7119_v13 = vpop.f32.mrf.mxu0  ;;  %v15114_v60 = vld [vmem:[#allocation2 + $0x1138] ss:$20 sps:$4 sm:$0xff]   ;;  %v15122_v3 = vld [vmem:[#allocation2 + $0x1114] ss:$20 sps:$4 sm:$0xff]  }
 0xe9f   :  { %8845 = vmatprep.subr.bf16.mxu0 %v15071_v4  ;;  %8950 = vmatprep.subr.bf16.mxu1 %v15074_v5 }
 0xea1   :  { %8846 = vmatpush2.bf16.msra.mxu0 %v15069_v9  ;;  %v15120_v9 = vld [vmem:[#allocation2 + $0x1110] ss:$20 sps:$4 sm:$0xff]  }
 0xea2   :  { %8951 = vmatpush1.bf16.msra.mxu1 %v15072_v30  ;;  %8847 = vmatprep.subr.bf16.mxu0 %v15077_v15  ;;  %v15125_v30 = vld [vmem:[#allocation2 + $0xd04] ss:$20 sps:$4 sm:$0xff]   ;;  %v15128_v15 = vld [vmem:[#allocation2 + $0x10ec] ss:$20 sps:$4 sm:$0xff]  }
 0xea3   :  { %8952 = vmatprep.subr.bf16.mxu1 %v15080_v10  ;;  %v15126_v10 = vld [vmem:[#allocation2 + $0x10e8] ss:$20 sps:$4 sm:$0xff]  }
 0xea5   :  { %8848 = vmatpush2.bf16.msra.mxu0 %v15075_v17 }
 0xea6   :  { %8953 = vmatpush1.bf16.msra.mxu1 %v15078_v19  ;;  %8849 = vmatprep.subr.bf16.mxu0 %v15083_v21  ;;  %v15131_v19 = vld [vmem:[#allocation2 + $0xcdc] ss:$20 sps:$4 sm:$0xff]  }
 0xea7   :  { %8954 = vmatprep.subr.bf16.mxu1 %v15086_v24  ;;  %v15134_v24 = vld [vmem:[#allocation2 + $0x10c4] ss:$20 sps:$4 sm:$0xff]  }
 0xea9   :  { %8850 = vmatpush2.bf16.msra.mxu0 %v15081_v25  ;;  %v15129_v25 = vld [vmem:[#allocation2 + $0xcd8] ss:$20 sps:$4 sm:$0xff]  }
 0xeaa   :  { %8955 = vmatpush1.bf16.msra.mxu1 %v15084_v11  ;;  %8851 = vmatprep.subr.bf16.mxu0 %v15089_v23  ;;  %v15132_v11 = vld [vmem:[#allocation2 + $0x10c0] ss:$20 sps:$4 sm:$0xff]  }
 0xeab   :  { %8956 = vmatprep.subr.bf16.mxu1 %v15092_v27  ;;  %v15137_v23 = vld [vmem:[#allocation2 + $0xcb4] ss:$20 sps:$4 sm:$0xff]   ;;  %v15140_v27 = vld [vmem:[#allocation2 + $0x109c] ss:$20 sps:$4 sm:$0xff]  }
 0xead   :  { %8852 = vmatpush2.bf16.msra.mxu0 %v15087_v28  ;;  %v15135_v28 = vld [vmem:[#allocation2 + $0xcb0] ss:$20 sps:$4 sm:$0xff]  }
 0xeae   :  { %8957 = vmatpush1.bf16.msra.mxu1 %v15090_v20  ;;  %8853 = vmatprep.subr.bf16.mxu0 %v15095_v34  ;;  %v15138_v20 = vld [vmem:[#allocation2 + $0x1098] ss:$20 sps:$4 sm:$0xff]  }
 0xeaf   :  { %8958 = vmatprep.subr.bf16.mxu1 %v15098_v36  ;;  %v15143_v34 = vld [vmem:[#allocation2 + $0xc8c] ss:$20 sps:$4 sm:$0xff]   ;;  %v15146_v36 = vld [vmem:[#allocation2 + $0x1074] ss:$20 sps:$4 sm:$0xff]  }
 0xeb1   :  { %8854 = vmatpush2.bf16.msra.mxu0 %v15093_v31  ;;  %v15141_v31 = vld [vmem:[#allocation2 + $0xc88] ss:$20 sps:$4 sm:$0xff]  }
 0xeb2   :  { %8959 = vmatpush1.bf16.msra.mxu1 %v15096_v39  ;;  %8855 = vmatprep.subr.bf16.mxu0 %v15101_v29  ;;  %v15144_v39 = vld [vmem:[#allocation2 + $0x1070] ss:$20 sps:$4 sm:$0xff]  }
 0xeb3   :  { %8960 = vmatprep.subr.bf16.mxu1 %v15104_v44  ;;  %v15149_v29 = vld [vmem:[#allocation2 + $0xc64] ss:$20 sps:$4 sm:$0xff]   ;;  %v15152_v44 = vld [vmem:[#allocation2 + $0x104c] ss:$20 sps:$4 sm:$0xff]  }
 0xeb5   :  { %8856 = vmatpush2.bf16.msra.mxu0 %v15099_v45  ;;  %v15147_v45 = vld [vmem:[#allocation2 + $0xc60] ss:$20 sps:$4 sm:$0xff]  }
 0xeb6   :  { %8961 = vmatpush1.bf16.msra.mxu1 %v15102_v33  ;;  %8907 = vmatprep.subr.bf16.mxu0 %v15107_v55  ;;  %v15150_v33 = vld [vmem:[#allocation2 + $0x1048] ss:$20 sps:$4 sm:$0xff]  }
 0xeb7   :  { %8962 = vmatprep.subr.bf16.mxu1 %v15110_v47  ;;  %v15155_v55 = vld [vmem:[#allocation2 + $0xebc] ss:$20 sps:$4 sm:$0xff]   ;;  %v15158_v47 = vld [vmem:[#allocation2 + $0x1024] ss:$20 sps:$4 sm:$0xff]  }
 0xeb8   :  { %v7196_v56 = vpop.f32.mrf.mxu0  ;;  %8858 = vmatmul.mubr.bf16.vlgmr.msra.gmra.mxu0 %v17418_v48 }
 0xeb9   :  { %v17570_v57 = vadd.f32 %v7196_v56, %v17560_v7  ;;  %8908 = vmatpush1.bf16.msra.mxu0 %v15105_v50  ;;  %8939 = vmatprep.mubr.bf16.mxu0 %v17405_v38  ;;  %v15117_v7 = vld [vmem:[#allocation2 + $0xd28] ss:$20 sps:$4 sm:$0xff]   ;;  %v15153_v50 = vld [vmem:[#allocation2 + $0xeb8] ss:$20 sps:$4 sm:$0xff]   ;;  %v15159_v56 = vld [vmem:[#allocation2 + $0xe90] ss:$20 sps:$4 sm:$0xff]  }
 0xeba   :  { %8963 = vmatpush1.bf16.msra.mxu1 %v15108_v51  ;;  %v7198_v59 = vpop.f32.mrf.mxu0  ;;  %8909 = vmatprep.subr.bf16.mxu0 %v15113_v53  ;;  %v15156_v51 = vld [vmem:[#allocation2 + $0x1020] ss:$20 sps:$4 sm:$0xff]  }
 0xebb   :  { %v17574_v0 = vadd.f32 %v7198_v59, %v17565_v12  ;;  %8964 = vmatprep.subr.bf16.mxu1 %v15116_v54  ;;  %v15123_v12 = vld [vmem:[#allocation2 + $0xd00] ss:$20 sps:$4 sm:$0xff]  }
 0xebc   :  { %v7200_v4 = vpop.f32.mrf.mxu0  ;;  %v15161_v53 = vld [vmem:[#allocation2 + $0xe94] ss:$20 sps:$4 sm:$0xff]   ;;  %v15166_v59 = vld [vmem:[#allocation2 + $0xe6c] ss:$20 sps:$4 sm:$0xff]  }
 0xebd   :  { %v17576_v5 = vpop.f32.mrf.mxu1  ;;  %8910 = vmatpush1.bf16.msra.mxu0 %v15111_v58  ;;  %v15162_v54 = vld [vmem:[#allocation2 + $0xec0] ss:$20 sps:$4 sm:$0xff]   ;;  %v15168_v4 = vld [vmem:[#allocation2 + $0xd58] ss:$20 sps:$4 sm:$0xff]  }
 0xebe   :  { %8965 = vmatpush2.bf16.msra.mxu1 %v15114_v60  ;;  %v7201_v8 = vpop.f32.mrf.mxu0  ;;  %8911 = vmatprep.subr.bf16.mxu0 %v15119_v61  ;;  %v15163_v58 = vld [vmem:[#allocation2 + $0xd80] ss:$20 sps:$4 sm:$0xff]   ;;  %v15167_v60 = vld [vmem:[#allocation2 + $0xe98] ss:$20 sps:$4 sm:$0xff]  }
 0xebf   :  { %v17578_v13 = vpop.f32.mrf.mxu1  ;;  %8966 = vmatprep.subr.bf16.mxu1 %v15122_v3  ;;  %v15164_v3 = vld [vmem:[#allocation2 + $0xe68] ss:$20 sps:$4 sm:$0xff]  }
 0xec1   :  { %v7241_v17 = vpop.f32.mrf.mxu1  ;;  %8912 = vmatpush1.bf16.msra.mxu0 %v15117_v7  ;;  %v15171_v7 = vld [vmem:[#allocation2 + $0xe44] ss:$20 sps:$4 sm:$0xff]  }
 0xec2   :  { %8967 = vmatpush2.bf16.msra.mxu1 %v15120_v9  ;;  %8913 = vmatprep.subr.bf16.mxu0 %v15125_v30  ;;  %v15172_v9 = vld [vmem:[#allocation2 + $0xe70] ss:$20 sps:$4 sm:$0xff]  }
 0xec3   :  { %v7242_v21 = vpop.f32.mrf.mxu1  ;;  %8968 = vmatprep.subr.bf16.mxu1 %v15128_v15  ;;  %v15169_v15 = vld [vmem:[#allocation2 + $0xe40] ss:$20 sps:$4 sm:$0xff]   ;;  %v15173_v17 = vld [vmem:[#allocation2 + $0xd30] ss:$20 sps:$4 sm:$0xff]  }
 0xec4   :  { %v15174_v21 = vld [vmem:[#allocation2 + $0xe18] ss:$20 sps:$4 sm:$0xff]  }
 0xec5   :  { %8914 = vmatpush1.bf16.msra.mxu0 %v15123_v12  ;;  %v15176_v12 = vld [vmem:[#allocation2 + $0xe1c] ss:$20 sps:$4 sm:$0xff]  }
 0xec6   :  { %8969 = vmatpush2.bf16.msra.mxu1 %v15126_v10  ;;  %8915 = vmatprep.subr.bf16.mxu0 %v15131_v19  ;;  %v15177_v19 = vld [vmem:[#allocation2 + $0xe48] ss:$20 sps:$4 sm:$0xff]  }
 0xec7   :  { %8970 = vmatprep.subr.bf16.mxu1 %v15134_v24  ;;  %v15178_v24 = vld [vmem:[#allocation2 + $0xd08] ss:$20 sps:$4 sm:$0xff]  }
 0xec9   :  { %8916 = vmatpush1.bf16.msra.mxu0 %v15129_v25  ;;  %v15181_v25 = vld [vmem:[#allocation2 + $0xdf4] ss:$20 sps:$4 sm:$0xff]  }
 0xeca   :  { %8971 = vmatpush2.bf16.msra.mxu1 %v15132_v11  ;;  %8917 = vmatprep.subr.bf16.mxu0 %v15137_v23  ;;  %v15182_v11 = vld [vmem:[#allocation2 + $0xe20] ss:$20 sps:$4 sm:$0xff]   ;;  %v15179_v23 = vld [vmem:[#allocation2 + $0xdf0] ss:$20 sps:$4 sm:$0xff]  }
 0xecb   :  { %8972 = vmatprep.subr.bf16.mxu1 %v15140_v27  ;;  %v15183_v27 = vld [vmem:[#allocation2 + $0xce0] ss:$20 sps:$4 sm:$0xff]  }
 0xecd   :  { %8918 = vmatpush1.bf16.msra.mxu0 %v15135_v28  ;;  %v15186_v28 = vld [vmem:[#allocation2 + $0xdcc] ss:$20 sps:$4 sm:$0xff]  }
 0xece   :  { %8973 = vmatpush2.bf16.msra.mxu1 %v15138_v20  ;;  %8919 = vmatprep.subr.bf16.mxu0 %v15143_v34  ;;  %v15187_v20 = vld [vmem:[#allocation2 + $0xdf8] ss:$20 sps:$4 sm:$0xff]  }
 0xecf   :  { %8974 = vmatprep.subr.bf16.mxu1 %v15146_v36  ;;  %v7712_v34 = vld [vmem:[#allocation2 + $0x1278] sm:$0x11] }
 0xed0   :  { %v15184_v36 = vld [vmem:[#allocation2 + $0xdc8] ss:$20 sps:$4 sm:$0xff]  }
 0xed1   :  { %8920 = vmatpush1.bf16.msra.mxu0 %v15141_v31  ;;  %v15188_v31 = vld [vmem:[#allocation2 + $0xcb8] ss:$20 sps:$4 sm:$0xff]  }
 0xed2   :  { %8975 = vmatpush2.bf16.msra.mxu1 %v15144_v39  ;;  %8921 = vmatprep.subr.bf16.mxu0 %v15149_v29  ;;  %v15191_v39 = vld [vmem:[#allocation2 + $0xda4] ss:$20 sps:$4 sm:$0xff]   ;;  %v13049_v29 = vcombine.high %v7712_v34, %v7712_v34 }
 0xed3   :  { %8976 = vmatprep.subr.bf16.mxu1 %v15152_v44  ;;  %v15192_v44 = vld [vmem:[#allocation2 + $0xdd0] ss:$20 sps:$4 sm:$0xff]  }
 0xed5   :  { %8922 = vmatpush1.bf16.msra.mxu0 %v15147_v45  ;;  %v15189_v45 = vld [vmem:[#allocation2 + $0xda0] ss:$20 sps:$4 sm:$0xff]  }
 0xed6   :  { %8977 = vmatpush2.bf16.msra.mxu1 %v15150_v33  ;;  %8923 = vmatprep.subr.bf16.mxu0 %v15155_v55  ;;  %v13048_v33 = vcombine.low %v7712_v34, %v7712_v34  ;;  %v15193_v55 = vld [vmem:[#allocation2 + $0xc90] ss:$20 sps:$4 sm:$0xff]  }
 0xed7   :  { %8978 = vmatprep.subr.bf16.mxu1 %v15158_v47  ;;  %v8779_v47 = vand.u32 %v13049_v29, %v16982_v26  ;;  %v15214_v29 = vld [vmem:[#allocation2 + $0x11b0] ss:$20 sps:$4 sm:$0xff]  }
 0xed9   :  { %8924 = vmatpush2.bf16.msra.mxu0 %v15153_v50  ;;  %v6024_v50 = vrot.slane %v17553_v32, %v17490_v1 }
 0xeda   :  { %8979 = vmatpush2.bf16.msra.mxu1 %v15156_v51  ;;  %8925 = vmatprep.subr.bf16.mxu0 %v15161_v53  ;;  %v15196_v51 = vld [vmem:[#allocation2 + $0xda8] ss:$20 sps:$4 sm:$0xff]   ;;  %v6028_v53 = vrot.slane %v17553_v32, %v17493_v6 }
 0xedb   :  { %13610 = vmatprep.subr.bf16.mxu1 %v15162_v54  ;;  %v8776_v54 = vand.u32 %v13048_v33, %v16982_v26  ;;  %v15218_v33 = vld [vmem:[#allocation2 + $0x1188] ss:$20 sps:$4 sm:$0xff]  }
 0xedd   :  { %v17580_v61 = vpop.f32.mrf.mxu1  ;;  %8981 = vmatmul.mubr.bf16.vlgmr.msra.gmra.mxu1 %v17418_v48  ;;  %8926 = vmatpush2.bf16.msra.mxu0 %v15159_v56  ;;  %v15197_v56 = vld [vmem:[#allocation2 + $0xc68] ss:$20 sps:$4 sm:$0xff]  }
 0xede   :  { %13611 = vmatpush3.bf16.msra.mxu1 %v15163_v58  ;;  %9062 = vmatprep.mubr.bf16.mxu1 %v17405_v38  ;;  %v15200_v58 = vld [vmem:[#allocation2 + $0x1254] ss:$20 sps:$4 sm:$0xff]  }
 0xedf   :  { %v17584_v8 = vpop.f32.mrf.mxu1  ;;  %8927 = vmatprep.subr.bf16.mxu0 %v15166_v59  ;;  %13612 = vmatprep.subr.bf16.mxu1 %v15167_v60  ;;  %v15201_v59 = vld [vmem:[#allocation2 + $0x1280] ss:$0 sps:$4 sm:$0x11]   ;;  %v7238_v60 = vadd.f32 %v17576_v5, %v6024_v50 }
 0xee0   :  { %v15222_v50 = vld [vmem:[#allocation2 + $0x1160] ss:$20 sps:$4 sm:$0xff]  }
 0xee1   :  { %v7323_v30 = vpop.f32.mrf.mxu1  ;;  %8928 = vmatpush2.bf16.msra.mxu0 %v15164_v3 }
 0xee2   :  { %13613 = vmatpush3.bf16.msra.mxu1 %v15168_v4  ;;  %8929 = vmatprep.subr.bf16.mxu0 %v15171_v7  ;;  %v7240_v4 = vadd.f32 %v17578_v13, %v6028_v53  ;;  %v15226_v53 = vld [vmem:[#allocation2 + $0x1140] ss:$20 sps:$4 sm:$0xff]  }
 0xee3   :  { %v7324_v10 = vpop.f32.mrf.mxu1  ;;  %13614 = vmatprep.subr.bf16.mxu1 %v15172_v9  ;;  %v15198_v9 = vld [vmem:[#allocation2 + $0x1250] ss:$20 sps:$4 sm:$0xff]  }
 0xee5   :  { %8930 = vmatpush2.bf16.msra.mxu0 %v15169_v15  ;;  %v8782_v15 = vand.u32 %v15201_v59, %v16982_v26  ;;  %v15232_v59 = vld [vmem:[#allocation2 + $0x1620] ss:$20 sps:$4 sm:$0xff]  }
 0xee6   :  { %13615 = vmatpush3.bf16.msra.mxu1 %v15173_v17  ;;  %8931 = vmatprep.subr.bf16.mxu0 %v15176_v12  ;;  %v15204_v17 = vld [vmem:[#allocation2 + $0x122c] ss:$20 sps:$4 sm:$0xff]  }
 0xee7   :  { %13616 = vmatprep.subr.bf16.mxu1 %v15177_v19 }
 0xee9   :  { %8932 = vmatpush2.bf16.msra.mxu0 %v15174_v21  ;;  %v15202_v21 = vld [vmem:[#allocation2 + $0x1228] ss:$20 sps:$4 sm:$0xff]  }
 0xeea   :  { %13617 = vmatpush3.bf16.msra.mxu1 %v15178_v24  ;;  %8933 = vmatprep.subr.bf16.mxu0 %v15181_v25  ;;  %v15205_v25 = vld [vmem:[#allocation2 + $0x1258] ss:$20 sps:$4 sm:$0xff]  }
 0xeeb   :  { %13618 = vmatprep.subr.bf16.mxu1 %v15182_v11  ;;  %v15208_v11 = vld [vmem:[#allocation2 + $0x1204] ss:$20 sps:$4 sm:$0xff]  }
 0xeed   :  { %8934 = vmatpush2.bf16.msra.mxu0 %v15179_v23 }
 0xeee   :  { %13619 = vmatpush3.bf16.msra.mxu1 %v15183_v27  ;;  %8935 = vmatprep.subr.bf16.mxu0 %v15186_v28  ;;  %v15206_v27 = vld [vmem:[#allocation2 + $0x1200] ss:$20 sps:$4 sm:$0xff]   ;;  %v15209_v28 = vld [vmem:[#allocation2 + $0x1230] ss:$20 sps:$4 sm:$0xff]  }
 0xeef   :  { %13620 = vmatprep.subr.bf16.mxu1 %v15187_v20  ;;  %v15212_v20 = vld [vmem:[#allocation2 + $0x11dc] ss:$20 sps:$4 sm:$0xff]  }
 0xef1   :  { %8936 = vmatpush2.bf16.msra.mxu0 %v15184_v36  ;;  %v15210_v36 = vld [vmem:[#allocation2 + $0x11d8] ss:$20 sps:$4 sm:$0xff]  }
 0xef2   :  { %13621 = vmatpush3.bf16.msra.mxu1 %v15188_v31  ;;  %8937 = vmatprep.subr.bf16.mxu0 %v15191_v39  ;;  %v15213_v31 = vld [vmem:[#allocation2 + $0x1208] ss:$20 sps:$4 sm:$0xff]  }
 0xef3   :  { %13622 = vmatprep.subr.bf16.mxu1 %v15192_v44  ;;  %v15216_v39 = vld [vmem:[#allocation2 + $0x11b4] ss:$20 sps:$4 sm:$0xff]  }
 0xef4   :  { %v15217_v44 = vld [vmem:[#allocation2 + $0x11e0] ss:$20 sps:$4 sm:$0xff]  }
 0xef5   :  { %8938 = vmatpush2.bf16.msra.mxu0 %v15189_v45  ;;  %v15220_v45 = vld [vmem:[#allocation2 + $0x118c] ss:$20 sps:$4 sm:$0xff]  }
 0xef6   :  { %13623 = vmatpush3.bf16.msra.mxu1 %v15193_v55  ;;  %8989 = vmatprep.subr.bf16.mxu0 %v8779_v47  ;;  %v15221_v55 = vld [vmem:[#allocation2 + $0x11b8] ss:$20 sps:$4 sm:$0xff]  }
 0xef7   :  { %13624 = vmatprep.subr.bf16.mxu1 %v15196_v51  ;;  %v15224_v47 = vld [vmem:[#allocation2 + $0x1164] ss:$20 sps:$4 sm:$0xff]  }
 0xef8   :  { %v7278_v3 = vpop.f32.mrf.mxu0  ;;  %8940 = vmatmul.mubr.bf16.vlgmr.msra.gmra.mxu0 %v17403_v37  ;;  %v15225_v51 = vld [vmem:[#allocation2 + $0x1190] ss:$20 sps:$4 sm:$0xff]  }
 0xef9   :  { %v7279_v7 = vadd.f32 %v7278_v3, %v7238_v60  ;;  %8990 = vmatpush1.bf16.msra.mxu0 %v8776_v54  ;;  %9021 = vmatprep.mubr.bf16.mxu0 %v16625_v42  ;;  %v15227_v54 = vld [vmem:[#allocation2 + $0x1000] ss:$20 sps:$4 sm:$0xff]   ;;  %v6032_v3 = vrot.slane %v17553_v32, %v17523_v2 }
 0xefa   :  { %13625 = vmatpush3.bf16.msra.mxu1 %v15197_v56  ;;  %v7280_v30 = vpop.f32.mrf.mxu0  ;;  %8991 = vmatprep.subr.bf16.mxu0 %v15200_v58  ;;  %v15228_v56 = vld [vmem:[#allocation2 + $0x1168] ss:$20 sps:$4 sm:$0xff]   ;;  %v15229_v58 = vld [vmem:[#allocation2 + $0x1118] ss:$20 sps:$4 sm:$0xff]  }
 0xefb   :  { %v17598_v12 = vadd.f32 %v17580_v61, %v7279_v7  ;;  %v7281_v5 = vadd.f32 %v7280_v30, %v7240_v4  ;;  %13965 = vmatprep.subr.bf16.mxu1 %v16624_v41  ;;  %v15233_v4 = vld [vmem:[#allocation2 + $0xfd8] ss:$20 sps:$4 sm:$0xff]  }
 0xefc   :  { %v7282_v10 = vpop.f32.mrf.mxu0 }
 0xefd   :  { %v17602_v13 = vadd.f32 %v17584_v8, %v7281_v5  ;;  %v13595_v19 = vpop.f32.mrf.mxu1  ;;  %9063 = vmatmul.mubr.bf16.vlgmr.msra.gmra.mxu1 %v17403_v37  ;;  %8992 = vmatpush1.bf16.msra.mxu0 %v15198_v9  ;;  %v15230_v9 = vld [vmem:[#allocation2 + $0x161c] ss:$20 sps:$4 sm:$0xff]  }
 0xefe   :  { %13966 = vmatpush3.bf16.msra.mxu1 %v8782_v15  ;;  %v7283_v24 = vpop.f32.mrf.mxu0  ;;  %8993 = vmatprep.subr.bf16.mxu0 %v15204_v17  ;;  %v15234_v15 = vld [vmem:[#allocation2 + $0x10f0] ss:$20 sps:$4 sm:$0xff]   ;;  %v15237_v17 = vld [vmem:[#allocation2 + $0x15f8] ss:$20 sps:$4 sm:$0xff]  }
 0xeff   :  { %v13596_v23 = vpop.f32.mrf.mxu1  ;;  %13967 = vmatprep.subr.bf16.mxu1 %v16624_v41  ;;  %13981 = vmatprep.mubr.msk.bf16.mxu1 %vm16626_vm0, %v16624_v41  ;;  %v15239_v24 = vld [vmem:[#allocation2 + $0x10c8] ss:$20 sps:$4 sm:$0xff]  }
 0xf00   :  { %v17608_v61 = vadd.f32 %v13596_v23, %v13595_v19  ;;  %v15238_v19 = vld [vmem:[#allocation2 + $0xfb0] ss:$20 sps:$4 sm:$0xff]   ;;  %v15243_v23 = vld [vmem:[#allocation2 + $0xf88] ss:$20 sps:$4 sm:$0xff]  }
 0xf01   :  { %v13598_v8 = vpop.f32.mrf.mxu1  ;;  %8994 = vmatpush1.bf16.msra.mxu0 %v15202_v21  ;;  %v15235_v21 = vld [vmem:[#allocation2 + $0x15f4] ss:$20 sps:$4 sm:$0xff]  }
 0xf02   :  { %13968 = vmatpush3.bf16.msra.mxu1 %v15205_v25  ;;  %8995 = vmatprep.subr.bf16.mxu0 %v15208_v11  ;;  %v15242_v25 = vld [vmem:[#allocation2 + $0x15d0] ss:$20 sps:$4 sm:$0xff]   ;;  %v15240_v8 = vld [vmem:[#allocation2 + $0x15cc] ss:$20 sps:$4 sm:$0xff]  }
 0xf03   :  { %v13599_v34 = vpop.f32.mrf.mxu1  ;;  %13969 = vmatprep.subr.bf16.mxu1 %v16624_v41 }
 0xf04   :  { %v15245_v34 = vld [vmem:[#allocation2 + $0x15a4] ss:$20 sps:$4 sm:$0xff]  }
 0xf05   :  { %8996 = vmatpush1.bf16.msra.mxu0 %v15206_v27  ;;  %v15244_v27 = vld [vmem:[#allocation2 + $0x10a0] ss:$20 sps:$4 sm:$0xff]  }
 0xf06   :  { %13970 = vmatpush3.bf16.msra.mxu1 %v15209_v28  ;;  %8997 = vmatprep.subr.bf16.mxu0 %v15212_v20  ;;  %v15247_v28 = vld [vmem:[#allocation2 + $0x15a8] ss:$20 sps:$4 sm:$0xff]   ;;  %v15248_v20 = vld [vmem:[#allocation2 + $0xf60] ss:$20 sps:$4 sm:$0xff]  }
 0xf07   :  { %13971 = vmatprep.subr.bf16.mxu1 %v16624_v41 }
 0xf09   :  { %8998 = vmatpush1.bf16.msra.mxu0 %v15210_v36  ;;  %v15249_v36 = vld [vmem:[#allocation2 + $0x1078] ss:$20 sps:$4 sm:$0xff]  }
 0xf0a   :  { %13972 = vmatpush3.bf16.msra.mxu1 %v15213_v31  ;;  %8999 = vmatprep.subr.bf16.mxu0 %v15216_v39  ;;  %v15252_v31 = vld [vmem:[#allocation2 + $0x1580] ss:$20 sps:$4 sm:$0xff]   ;;  %v15253_v39 = vld [vmem:[#allocation2 + $0xf38] ss:$20 sps:$4 sm:$0xff]  }
 0xf0b   :  { %13973 = vmatprep.subr.bf16.mxu1 %v16624_v41 }
 0xf0d   :  { %9000 = vmatpush1.bf16.msra.mxu0 %v15214_v29  ;;  %v15254_v29 = vld [vmem:[#allocation2 + $0x1050] ss:$20 sps:$4 sm:$0xff]  }
 0xf0e   :  { %13974 = vmatpush3.bf16.msra.mxu1 %v15217_v44  ;;  %9001 = vmatprep.subr.bf16.mxu0 %v15220_v45  ;;  %v15257_v44 = vld [vmem:[#allocation2 + $0x1558] ss:$20 sps:$4 sm:$0xff]   ;;  %v15258_v45 = vld [vmem:[#allocation2 + $0xf10] ss:$20 sps:$4 sm:$0xff]  }
 0xf0f   :  { %13975 = vmatprep.subr.bf16.mxu1 %v16624_v41 }
 0xf11   :  { %9002 = vmatpush1.bf16.msra.mxu0 %v15218_v33  ;;  %v15255_v33 = vld [vmem:[#allocation2 + $0x1554] ss:$20 sps:$4 sm:$0xff]  }
 0xf12   :  { %13976 = vmatpush3.bf16.msra.mxu1 %v15221_v55  ;;  %9003 = vmatprep.subr.bf16.mxu0 %v15224_v47  ;;  %v15259_v55 = vld [vmem:[#allocation2 + $0x1028] ss:$20 sps:$4 sm:$0xff]   ;;  %v15262_v47 = vld [vmem:[#allocation2 + $0x1530] ss:$20 sps:$4 sm:$0xff]  }
 0xf13   :  { %13977 = vmatprep.subr.bf16.mxu1 %v16624_v41 }
 0xf15   :  { %9004 = vmatpush1.bf16.msra.mxu0 %v15222_v50  ;;  %v15263_v50 = vld [vmem:[#allocation2 + $0xee8] ss:$20 sps:$4 sm:$0xff]  }
 0xf16   :  { %13978 = vmatpush3.bf16.msra.mxu1 %v15225_v51  ;;  %13632 = vmatprep.subr.bf16.mxu0 %v15226_v53  ;;  %v15260_v51 = vld [vmem:[#allocation2 + $0x152c] ss:$20 sps:$4 sm:$0xff]  }
 0xf17   :  { %13979 = vmatprep.subr.bf16.mxu1 %v16624_v41  ;;  %v15266_v53 = vld [vmem:[#allocation2 + $0x13a0] ss:$20 sps:$4 sm:$0xff]  }
 0xf18   :  { %v13573_v60 = vpop.f32.mrf.mxu0  ;;  %13052 = vmatmul.mubr.msk.bf16.vlgmr.msra.gmra.mxu0 %vm5357_vm4, %v17425_v18 }
 0xf19   :  { %13633 = vmatpush3.bf16.msra.mxu0 %v15227_v54  ;;  %9102 = vmatprep.mubr.bf16.mxu0 %v17415_v46  ;;  %v15269_v54 = vld [vmem:[#allocation2 + $0x1508] ss:$20 sps:$4 sm:$0xff]  }
 0xf1a   :  { %13980 = vmatpush3.bf16.msra.mxu1 %v15228_v56  ;;  %v13574_v7 = vpop.f32.mrf.mxu0  ;;  %13634 = vmatprep.subr.bf16.mxu0 %v15229_v58  ;;  %v15264_v56 = vld [vmem:[#allocation2 + $0x139c] ss:$20 sps:$4 sm:$0xff]   ;;  %v15267_v58 = vld [vmem:[#allocation2 + $0x1504] ss:$20 sps:$4 sm:$0xff]  }
 0xf1b   :  { %v13575_v30 = vadd.f32 %v13574_v7, %v13573_v60  ;;  %10504 = vmatprep.subr.bf16.mxu1 %v15232_v59  ;;  %v15272_v59 = vld [vmem:[#allocation2 + $0x1378] ss:$20 sps:$4 sm:$0xff]   ;;  %v15275_v60 = vld [vmem:[#allocation2 + $0x1760] ss:$20 sps:$4 sm:$0xff]  }
 0xf1c   :  { %v13576_v5 = vpop.f32.mrf.mxu0  ;;  %v15270_v7 = vld [vmem:[#allocation2 + $0x1374] ss:$20 sps:$4 sm:$0xff]  }
 0xf1d   :  { %v7361_v10 = vadd.f32 %v13575_v30, %v6032_v3  ;;  %13982 = vmatmul.mubr.msk.bf16.vlgmr.msra.gmra.mxu1 %vm5357_vm4, %v17425_v18  ;;  %13635 = vmatpush3.bf16.msra.mxu0 %v15233_v4  ;;  %v15273_v30 = vld [vmem:[#allocation2 + $0x175c] ss:$20 sps:$4 sm:$0xff]  }
 0xf1e   :  { %10505 = vmatpush1.bf16.msra.mxu1 %v15230_v9  ;;  %10536 = vmatprep.mubr.bf16.mxu1 %v17415_v46  ;;  %v13577_v32 = vpop.f32.mrf.mxu0 }
 0xf1f   :  { %13636 = vmatprep.subr.bf16.mxu0 %v15234_v15  ;;  %10506 = vmatprep.subr.bf16.mxu1 %v15237_v17  ;;  %v7401_v11 = vadd.f32 %v17608_v61, %v7361_v10  ;;  %v15250_v61 = vld [vmem:[#allocation2 + $0x157c] ss:$20 sps:$4 sm:$0xff]   ;;  %v15281_v17 = vld [vmem:[#allocation2 + $0x1738] ss:$20 sps:$4 sm:$0xff]  }
 0xf20   :  { %v15278_v15 = vld [vmem:[#allocation2 + $0x1350] ss:$20 sps:$4 sm:$0xff]  }
 0xf21   :  { %13637 = vmatpush3.bf16.msra.mxu0 %v15238_v19  ;;  %v15276_v19 = vld [vmem:[#allocation2 + $0x134c] ss:$20 sps:$4 sm:$0xff]  }
 0xf22   :  { %10507 = vmatpush1.bf16.msra.mxu1 %v15235_v21  ;;  %13638 = vmatprep.subr.bf16.mxu0 %v15239_v24  ;;  %v15279_v21 = vld [vmem:[#allocation2 + $0x1734] ss:$20 sps:$4 sm:$0xff]  }
 0xf23   :  { %10508 = vmatprep.subr.bf16.mxu1 %v15242_v25  ;;  %v15284_v24 = vld [vmem:[#allocation2 + $0x1328] ss:$20 sps:$4 sm:$0xff]  }
 0xf25   :  { %13639 = vmatpush3.bf16.msra.mxu0 %v15243_v23 }
 0xf26   :  { %10509 = vmatpush1.bf16.msra.mxu1 %v15240_v8  ;;  %13640 = vmatprep.subr.bf16.mxu0 %v15244_v27  ;;  %v15282_v8 = vld [vmem:[#allocation2 + $0x1324] ss:$20 sps:$4 sm:$0xff]   ;;  %v15285_v27 = vld [vmem:[#allocation2 + $0x170c] ss:$20 sps:$4 sm:$0xff]  }
 0xf27   :  { %10510 = vmatprep.subr.bf16.mxu1 %v15247_v28  ;;  %v15290_v28 = vld [vmem:[#allocation2 + $0x1300] ss:$20 sps:$4 sm:$0xff]  }
 0xf29   :  { %13641 = vmatpush3.bf16.msra.mxu0 %v15248_v20 }
 0xf2a   :  { %10511 = vmatpush1.bf16.msra.mxu1 %v15245_v34  ;;  %13642 = vmatprep.subr.bf16.mxu0 %v15249_v36  ;;  %v15293_v34 = vld [vmem:[#allocation2 + $0x16e8] ss:$20 sps:$4 sm:$0xff]  }
 0xf2b   :  { %10512 = vmatprep.subr.bf16.mxu1 %v15252_v31  ;;  %v15288_v36 = vld [vmem:[#allocation2 + $0x12fc] ss:$20 sps:$4 sm:$0xff]   ;;  %v15291_v31 = vld [vmem:[#allocation2 + $0x16e4] ss:$20 sps:$4 sm:$0xff]  }
 0xf2d   :  { %13643 = vmatpush3.bf16.msra.mxu0 %v15253_v39  ;;  %v15296_v39 = vld [vmem:[#allocation2 + $0x12d8] ss:$20 sps:$4 sm:$0xff]  }
 0xf2e   :  { %10513 = vmatpush1.bf16.msra.mxu1 %v15250_v61  ;;  %13644 = vmatprep.subr.bf16.mxu0 %v15254_v29  ;;  %v15299_v61 = vld [vmem:[#allocation2 + $0x16c0] ss:$20 sps:$4 sm:$0xff]  }
 0xf2f   :  { %10514 = vmatprep.subr.bf16.mxu1 %v15257_v44  ;;  %v15294_v29 = vld [vmem:[#allocation2 + $0x12d4] ss:$20 sps:$4 sm:$0xff]   ;;  %v15297_v44 = vld [vmem:[#allocation2 + $0x16bc] ss:$20 sps:$4 sm:$0xff]  }
 0xf31   :  { %13645 = vmatpush3.bf16.msra.mxu0 %v15258_v45  ;;  %v15302_v45 = vld [vmem:[#allocation2 + $0x12b0] ss:$20 sps:$4 sm:$0xff]  }
 0xf32   :  { %10515 = vmatpush1.bf16.msra.mxu1 %v15255_v33  ;;  %13646 = vmatprep.subr.bf16.mxu0 %v15259_v55  ;;  %v15305_v33 = vld [vmem:[#allocation2 + $0x1698] ss:$20 sps:$4 sm:$0xff]  }
 0xf33   :  { %10516 = vmatprep.subr.bf16.mxu1 %v15262_v47  ;;  %v15300_v55 = vld [vmem:[#allocation2 + $0x12ac] ss:$20 sps:$4 sm:$0xff]   ;;  %v15303_v47 = vld [vmem:[#allocation2 + $0x1694] ss:$20 sps:$4 sm:$0xff]  }
 0xf35   :  { %13647 = vmatpush3.bf16.msra.mxu0 %v15263_v50  ;;  %v15308_v50 = vld [vmem:[#allocation2 + $0x1288] ss:$20 sps:$4 sm:$0xff]  }
 0xf36   :  { %10517 = vmatpush1.bf16.msra.mxu1 %v15260_v51  ;;  %10463 = vmatprep.subr.bf16.mxu0 %v15266_v53  ;;  %v15311_v51 = vld [vmem:[#allocation2 + $0x1670] ss:$20 sps:$4 sm:$0xff]  }
 0xf37   :  { %10518 = vmatprep.subr.bf16.mxu1 %v15269_v54  ;;  %v15306_v53 = vld [vmem:[#allocation2 + $0x1284] ss:$20 sps:$4 sm:$0xff]   ;;  %v15309_v54 = vld [vmem:[#allocation2 + $0x166c] ss:$20 sps:$4 sm:$0xff]  }
 0xf38   :  { %v7440_v3 = vpop.f32.mrf.mxu0  ;;  %9103 = vmatmul.mubr.bf16.vlgmr.msra.gmra.mxu0 %v17418_v48 }
 0xf39   :  { %v17626_v4 = vadd.f32 %v7440_v3, %v7401_v11  ;;  %10464 = vmatpush1.bf16.msra.mxu0 %v15264_v56  ;;  %10495 = vmatprep.mubr.bf16.mxu0 %v17405_v38  ;;  %v15287_v11 = vld [vmem:[#allocation2 + $0x1710] ss:$20 sps:$4 sm:$0xff]   ;;  %v15314_v56 = vld [vmem:[#allocation2 + $0x14e0] ss:$20 sps:$4 sm:$0xff]   ;;  %v15320_v3 = vld [vmem:[#allocation2 + $0x14b8] ss:$20 sps:$4 sm:$0xff]  }
 0xf3a   :  { %10519 = vmatpush1.bf16.msra.mxu1 %v15267_v58  ;;  %v13963_v9 = vpop.f32.mrf.mxu0  ;;  %10465 = vmatprep.subr.bf16.mxu0 %v15272_v59  ;;  %v15317_v58 = vld [vmem:[#allocation2 + $0x1648] ss:$20 sps:$4 sm:$0xff]  }
 0xf3b   :  { %10520 = vmatprep.subr.bf16.mxu1 %v15275_v60  ;;  %v15312_v59 = vld [vmem:[#allocation2 + $0x14dc] ss:$20 sps:$4 sm:$0xff]   ;;  %v15315_v60 = vld [vmem:[#allocation2 + $0x1644] ss:$20 sps:$4 sm:$0xff]   ;;  %v15318_v9 = vld [vmem:[#allocation2 + $0x14b4] ss:$20 sps:$4 sm:$0xff]  }
 0xf3c   :  { %v7443_v5 = vpop.f32.mrf.mxu0 }
 0xf3d   :  { %v17629_v10 = vpop.f32.mrf.mxu1  ;;  %10466 = vmatpush1.bf16.msra.mxu0 %v15270_v7  ;;  %v15323_v7 = vld [vmem:[#allocation2 + $0x13a8] ss:$20 sps:$4 sm:$0xff]  }
 0xf3e   :  { %10521 = vmatpush2.bf16.msra.mxu1 %v15273_v30  ;;  %v13964_v32 = vpop.f32.mrf.mxu0  ;;  %10467 = vmatprep.subr.bf16.mxu0 %v15278_v15  ;;  %v15321_v30 = vld [vmem:[#allocation2 + $0x13a4] ss:$20 sps:$4 sm:$0xff]  }
 0xf3f   :  { %v17631_v25 = vpop.f32.mrf.mxu1  ;;  %10522 = vmatprep.subr.bf16.mxu1 %v15281_v17  ;;  %v15326_v15 = vld [vmem:[#allocation2 + $0x1490] ss:$20 sps:$4 sm:$0xff]   ;;  %v15329_v17 = vld [vmem:[#allocation2 + $0x1380] ss:$20 sps:$4 sm:$0xff]  }
 0xf40   :  { %v15327_v32 = vld [vmem:[#allocation2 + $0x137c] ss:$20 sps:$4 sm:$0xff]  }
 0xf41   :  { %v8822_v23 = vpop.f32.mrf.mxu1  ;;  %10468 = vmatpush1.bf16.msra.mxu0 %v15276_v19  ;;  %v15324_v19 = vld [vmem:[#allocation2 + $0x148c] ss:$20 sps:$4 sm:$0xff]  }
 0xf42   :  { %10523 = vmatpush2.bf16.msra.mxu1 %v15279_v21  ;;  %10469 = vmatprep.subr.bf16.mxu0 %v15284_v24  ;;  %v15332_v21 = vld [vmem:[#allocation2 + $0x1468] ss:$20 sps:$4 sm:$0xff]  }
 0xf43   :  { %v8823_v20 = vpop.f32.mrf.mxu1  ;;  %10524 = vmatprep.subr.bf16.mxu1 %v15287_v11  ;;  %v15335_v11 = vld [vmem:[#allocation2 + $0x1358] ss:$20 sps:$4 sm:$0xff]  }
 0xf44   :  { %v15338_v20 = vld [vmem:[#allocation2 + $0x1440] ss:$20 sps:$4 sm:$0xff]  }
 0xf45   :  { %10470 = vmatpush1.bf16.msra.mxu0 %v15282_v8  ;;  %v15330_v8 = vld [vmem:[#allocation2 + $0x1464] ss:$20 sps:$4 sm:$0xff]  }
 0xf46   :  { %10525 = vmatpush2.bf16.msra.mxu1 %v15285_v27  ;;  %10471 = vmatprep.subr.bf16.mxu0 %v15290_v28  ;;  %v12638_v27 = vmul.f32 -1.442695, %v17472_v40  ;;  %v15333_v28 = vld [vmem:[#allocation2 + $0x1354] ss:$20 sps:$4 sm:$0xff]   ;;  %v15344_v40 = vld [vmem:[#allocation2 + $0x1418] ss:$20 sps:$4 sm:$0xff]  }
 0xf47   :  { %10526 = vmatprep.subr.bf16.mxu1 %v15293_v34  ;;  %v12846_v34 = vmul.f32 -1.442695, %v17570_v57  ;;  %v15342_v57 = vld [vmem:[#allocation2 + $0x1414] ss:$20 sps:$4 sm:$0xff]  }
 0xf48   :  { %15684 = vpow2.f32 %v12638_v27 }
 0xf49   :  { %10472 = vmatpush1.bf16.msra.mxu0 %v15288_v36  ;;  %15686 = vpow2.f32 %v12846_v34 }
 0xf4a   :  { %10527 = vmatpush2.bf16.msra.mxu1 %v15291_v31  ;;  %10473 = vmatprep.subr.bf16.mxu0 %v15296_v39  ;;  %v15341_v31 = vld [vmem:[#allocation2 + $0x1330] ss:$20 sps:$4 sm:$0xff]   ;;  %v12847_v39 = vmul.f32 -1.442695, %v17574_v0 }
 0xf4b   :  { %10528 = vmatprep.subr.bf16.mxu1 %v15299_v61  ;;  %v15336_v61 = vld [vmem:[#allocation2 + $0x143c] ss:$20 sps:$4 sm:$0xff]  }
 0xf4c   :  { %15688 = vpow2.f32 %v12847_v39  ;;  %v15350_v0 = vld [vmem:[#allocation2 + $0x13f0] ss:$20 sps:$4 sm:$0xff]  }
 0xf4d   :  { %10474 = vmatpush1.bf16.msra.mxu0 %v15294_v29  ;;  %v12639_v29 = vmul.f32 -1.442695, %v17476_v43  ;;  %v15348_v43 = vld [vmem:[#allocation2 + $0x13ec] ss:$20 sps:$4 sm:$0xff]  }
 0xf4e   :  { %10529 = vmatpush2.bf16.msra.mxu1 %v15297_v44  ;;  %10475 = vmatprep.subr.bf16.mxu0 %v15302_v45  ;;  %v15339_v44 = vld [vmem:[#allocation2 + $0x132c] ss:$20 sps:$4 sm:$0xff]   ;;  %v15347_v45 = vld [vmem:[#allocation2 + $0x1308] ss:$20 sps:$4 sm:$0xff]  }
 0xf4f   :  { %10530 = vmatprep.subr.bf16.mxu1 %v15305_v33  ;;  %15690 = vpow2.f32 %v12639_v29  ;;  %v15345_v33 = vld [vmem:[#allocation2 + $0x1304] ss:$20 sps:$4 sm:$0xff]  }
 0xf51   :  { %10476 = vmatpush1.bf16.msra.mxu0 %v15300_v55  ;;  %v15353_v55 = vld [vmem:[#allocation2 + $0x12e0] ss:$20 sps:$4 sm:$0xff]  }
 0xf52   :  { %10531 = vmatpush2.bf16.msra.mxu1 %v15303_v47  ;;  %10477 = vmatprep.subr.bf16.mxu0 %v15308_v50  ;;  %v9390_v47 = vld [vmem:[#allocation2 + $0x189c] sm:$0x11] }
 0xf53   :  { %10532 = vmatprep.subr.bf16.mxu1 %v15311_v51  ;;  %v15351_v50 = vld [vmem:[#allocation2 + $0x12dc] ss:$20 sps:$4 sm:$0xff]  }
 0xf54   :  { %v15356_v51 = vld [vmem:[#allocation2 + $0x13c8] ss:$20 sps:$4 sm:$0xff]  }
 0xf55   :  { %10478 = vmatpush1.bf16.msra.mxu0 %v15306_v53  ;;  %v13250_v53 = vcombine.high %v9390_v47, %v9390_v47 }
 0xf56   :  { %10533 = vmatpush2.bf16.msra.mxu1 %v15309_v54  ;;  %10479 = vmatprep.subr.bf16.mxu0 %v15314_v56  ;;  %v15359_v54 = vld [vmem:[#allocation2 + $0x12b8] ss:$20 sps:$4 sm:$0xff]  }
 0xf57   :  { %10534 = vmatprep.subr.bf16.mxu1 %v15317_v58  ;;  %v17643_v56 = vld [vmem:[#allocation25 + $0xa] sm:$0x1f] }
 0xf58   :  { %v15354_v58 = vld [vmem:[#allocation2 + $0x13c4] ss:$20 sps:$4 sm:$0xff]  }
 0xf59   :  { %10480 = vmatpush2.bf16.msra.mxu0 %v15312_v59  ;;  %v13249_v59 = vcombine.low %v9390_v47, %v9390_v47 }
 0xf5a   :  { %10535 = vmatpush2.bf16.msra.mxu1 %v15315_v60  ;;  %10481 = vmatprep.subr.bf16.mxu0 %v15320_v3  ;;  %v15357_v60 = vld [vmem:[#allocation2 + $0x12b4] ss:$20 sps:$4 sm:$0xff]   ;;  %v10452_v3 = vand.u32 %v13250_v53, %v16982_v26 }
 0xf5b   :  { %10586 = vmatprep.subr.bf16.mxu1 %v15323_v7  ;;  %v15685_v7 = vpop.eup %15684  ;;  %v17657_v53 = vld [vmem:[#allocation11] sm:$0xff] }
 0xf5d   :  { %v17633_v5 = vpop.f32.mrf.mxu1  ;;  %10537 = vmatmul.mubr.bf16.vlgmr.msra.gmra.mxu1 %v17418_v48  ;;  %10482 = vmatpush2.bf16.msra.mxu0 %v15318_v9  ;;  %v7720_v9 = vrot.slane %v17643_v56, %v17375_v49 }
 0xf5e   :  { %10587 = vmatpush1.bf16.msra.mxu1 %v15321_v30  ;;  %10618 = vmatprep.mubr.bf16.mxu1 %v17405_v38  ;;  %v15364_v30 = vld [vmem:[#allocation2 + $0x1290] ss:$20 sps:$4 sm:$0xff]  }
 0xf5f   :  { %v17637_v24 = vpop.f32.mrf.mxu1  ;;  %10483 = vmatprep.subr.bf16.mxu0 %v15326_v15  ;;  %10588 = vmatprep.subr.bf16.mxu1 %v15329_v17  ;;  %v15687_v15 = vpop.eup %15686 }
 0xf60   :  { %v15689_v17 = vpop.eup %15688  ;;  %v7461_v27 = vadd.f32 1.0, %v15687_v15 }
 0xf61   :  { %v8904_v23 = vpop.f32.mrf.mxu1  ;;  %10484 = vmatpush2.bf16.msra.mxu0 %v15324_v19  ;;  %v7724_v19 = vrot.slane %v17643_v56, %v17378_v52  ;;  %v7462_v34 = vadd.f32 1.0, %v15689_v17 }
 0xf62   :  { %10589 = vmatpush1.bf16.msra.mxu1 %v15327_v32  ;;  %10485 = vmatprep.subr.bf16.mxu0 %v15332_v21  ;;  %v10449_v32 = vand.u32 %v13249_v59, %v16982_v26  ;;  %v5757_v21 = vadd.f32 1.0, %v15685_v7  ;;  %v15367_v23 = vld [vmem:[#allocation2 + $0x1878] ss:$20 sps:$4 sm:$0xff]   ;;  %v10868_v59 = vrot.slane %v17657_v53, %v16920_v35 }
 0xf63   :  { %v8905_v36 = vpop.f32.mrf.mxu1  ;;  %10590 = vmatprep.subr.bf16.mxu1 %v15335_v11  ;;  %v15362_v11 = vld [vmem:[#allocation2 + $0x128c] ss:$20 sps:$4 sm:$0xff]  }
 0xf64   :  { %15692 = vrcp.f32 %v5757_v21  ;;  %v15391_v7 = vld [vmem:[#allocation2 + $0x17d8] ss:$20 sps:$4 sm:$0xff]  }
 0xf65   :  { %10486 = vmatpush2.bf16.msra.mxu0 %v15330_v8  ;;  %v15691_v8 = vpop.eup %15690  ;;  %15694 = vrcp.f32 %v7461_v27 }
 0xf66   :  { %10591 = vmatpush1.bf16.msra.mxu1 %v15333_v28  ;;  %10487 = vmatprep.subr.bf16.mxu0 %v15338_v20  ;;  %v8819_v28 = vadd.f32 %v17629_v10, %v7720_v9  ;;  %v15370_v20 = vld [vmem:[#allocation2 + $0x14e8] ss:$20 sps:$4 sm:$0xff]   ;;  %v5758_v29 = vadd.f32 1.0, %v15691_v8  ;;  %v15373_v10 = vld [vmem:[#allocation2 + $0x1850] ss:$20 sps:$4 sm:$0xff]   ;;  %15696 = vrcp.f32 %v7462_v34 }
 0xf67   :  { %10592 = vmatprep.subr.bf16.mxu1 %v15341_v31  ;;  %v8821_v31 = vadd.f32 %v17631_v25, %v7724_v19  ;;  %v10876_v19 = vcombine.high %v10868_v59, %v10868_v59 }
 0xf69   :  { %10488 = vmatpush2.bf16.msra.mxu0 %v15336_v61  ;;  %v15365_v61 = vld [vmem:[#allocation2 + $0x1874] ss:$20 sps:$4 sm:$0xff]  }
 0xf6a   :  { %10593 = vmatpush1.bf16.msra.mxu1 %v15339_v44  ;;  %10489 = vmatprep.subr.bf16.mxu0 %v15344_v40  ;;  %v15368_v40 = vld [vmem:[#allocation2 + $0x14e4] ss:$20 sps:$4 sm:$0xff]  }
 0xf6b   :  { %10594 = vmatprep.subr.bf16.mxu1 %v15347_v45 }
 0xf6d   :  { %10490 = vmatpush2.bf16.msra.mxu0 %v15342_v57 }
 0xf6e   :  { %10595 = vmatpush1.bf16.msra.mxu1 %v15345_v33  ;;  %10491 = vmatprep.subr.bf16.mxu0 %v15350_v0  ;;  %v15376_v33 = vld [vmem:[#allocation2 + $0x14c0] ss:$20 sps:$4 sm:$0xff]  }
 0xf6f   :  { %10596 = vmatprep.subr.bf16.mxu1 %v15353_v55  ;;  %v15371_v55 = vld [vmem:[#allocation2 + $0x184c] ss:$20 sps:$4 sm:$0xff]  }
 0xf71   :  { %10492 = vmatpush2.bf16.msra.mxu0 %v15348_v43  ;;  %v15374_v43 = vld [vmem:[#allocation2 + $0x14bc] ss:$20 sps:$4 sm:$0xff]   ;;  %v15693_v9 = vpop.eup %15692 }
 0xf72   :  { %10597 = vmatpush1.bf16.msra.mxu1 %v15351_v50  ;;  %10493 = vmatprep.subr.bf16.mxu0 %v15356_v51  ;;  %v15379_v50 = vld [vmem:[#allocation2 + $0x1828] ss:$20 sps:$4 sm:$0xff]   ;;  %v15382_v51 = vld [vmem:[#allocation2 + $0x1498] ss:$20 sps:$4 sm:$0xff]   ;;  %v15695_v15 = vpop.eup %15694 }
 0xf73   :  { %10598 = vmatprep.subr.bf16.mxu1 %v15359_v54  ;;  %v15380_v54 = vld [vmem:[#allocation2 + $0x1494] ss:$20 sps:$4 sm:$0xff]   ;;  %v15697_v17 = vpop.eup %15696  ;;  %v10890_v27 = vmul.f32 %v15695_v15, %v10868_v59  ;;  %v15420_v59 = vld [vmem:[#allocation2 + $0x15d8] ss:$20 sps:$4 sm:$0xff]  }
 0xf75   :  { %10494 = vmatpush2.bf16.msra.mxu0 %v15354_v58  ;;  %v15385_v58 = vld [vmem:[#allocation2 + $0x1800] ss:$20 sps:$4 sm:$0xff]  }
 0xf76   :  { %10599 = vmatpush1.bf16.msra.mxu1 %v15357_v60  ;;  %10545 = vmatprep.subr.bf16.mxu0 %v10452_v3  ;;  %v15383_v60 = vld [vmem:[#allocation2 + $0x17fc] ss:$20 sps:$4 sm:$0xff]   ;;  %v15386_v3 = vld [vmem:[#allocation2 + $0x146c] ss:$20 sps:$4 sm:$0xff]  }
 0xf77   :  { %10600 = vmatprep.subr.bf16.mxu1 %v15364_v30  ;;  %v15394_v30 = vld [vmem:[#allocation2 + $0x1448] ss:$20 sps:$4 sm:$0xff]  }
 0xf78   :  { %v8859_v36 = vpop.f32.mrf.mxu0  ;;  %10496 = vmatmul.mubr.bf16.vlgmr.msra.gmra.mxu0 %v17403_v37 }
 0xf79   :  { %v8860_v39 = vadd.f32 %v8859_v36, %v8819_v28  ;;  %10546 = vmatpush1.bf16.msra.mxu0 %v10449_v32  ;;  %10577 = vmatprep.mubr.bf16.mxu0 %v16625_v42  ;;  %v15389_v32 = vld [vmem:[#allocation2 + $0x17d4] ss:$20 sps:$4 sm:$0xff]   ;;  %v10891_v36 = vmul.f32 %v15697_v17, %v10876_v19  ;;  %v15429_v17 = vld [vmem:[#allocation2 + $0x1858] ss:$20 sps:$4 sm:$0xff]  }
 0xf7a   :  { %10601 = vmatpush1.bf16.msra.mxu1 %v15362_v11  ;;  %v8861_v44 = vpop.f32.mrf.mxu0  ;;  %10547 = vmatprep.subr.bf16.mxu0 %v15367_v23  ;;  %v15392_v11 = vld [vmem:[#allocation2 + $0x1444] ss:$20 sps:$4 sm:$0xff]  }
 0xf7b   :  { %v8901_v45 = vadd.f32 %v17633_v5, %v8860_v39  ;;  %v8862_v57 = vadd.f32 %v8861_v44, %v8821_v31  ;;  %10602 = vmatprep.subr.bf16.mxu1 %v15370_v20  ;;  %v15377_v5 = vld [vmem:[#allocation2 + $0x1824] ss:$20 sps:$4 sm:$0xff]   ;;  %v15400_v20 = vld [vmem:[#allocation2 + $0x1420] ss:$20 sps:$4 sm:$0xff]   ;;  %v15403_v44 = vld [vmem:[#allocation2 + $0x1788] ss:$20 sps:$4 sm:$0xff]  }
 0xf7c   :  { %v8863_v25 = vpop.f32.mrf.mxu0  ;;  %v15397_v23 = vld [vmem:[#allocation2 + $0x17b0] ss:$20 sps:$4 sm:$0xff]  }
 0xf7d   :  { %15698 = vtanh.f32 %v8901_v45  ;;  %v8903_v0 = vadd.f32 %v17637_v24, %v8862_v57  ;;  %10548 = vmatpush1.bf16.msra.mxu0 %v15365_v61  ;;  %v15388_v24 = vld [vmem:[#allocation2 + $0x1470] ss:$20 sps:$4 sm:$0xff]   ;;  %v15395_v61 = vld [vmem:[#allocation2 + $0x17ac] ss:$20 sps:$4 sm:$0xff]   ;;  %v15404_v25 = vld [vmem:[#allocation2 + $0x13f4] ss:$20 sps:$4 sm:$0xff]  }
 0xf7e   :  { %15700 = vrcp.f32 %v5758_v29  ;;  %10603 = vmatpush2.bf16.msra.mxu1 %v15368_v40  ;;  %v8864_v47 = vpop.f32.mrf.mxu0  ;;  %10549 = vmatprep.subr.bf16.mxu0 %v15373_v10  ;;  %v15398_v29 = vld [vmem:[#allocation2 + $0x141c] ss:$20 sps:$4 sm:$0xff]   ;;  %v15406_v10 = vld [vmem:[#allocation2 + $0x13f8] ss:$20 sps:$4 sm:$0xff]   ;;  %v9391_v45 = vld [vmem:[#allocation2 + $0x18a4] sm:$0x11] }
 0xf7f   :  { %15702 = vtanh.f32 %v8903_v0  ;;  %10604 = vmatprep.subr.bf16.mxu1 %v15376_v33  ;;  %v15401_v33 = vld [vmem:[#allocation2 + $0x1784] ss:$20 sps:$4 sm:$0xff]   ;;  %v15412_v0 = vld [vmem:[#allocation2 + $0x1628] ss:$20 sps:$4 sm:$0xff]   ;;  %v13252_v47 = vcombine.high %v9391_v45, %v9391_v45 }
 0xf81   :  { %10550 = vmatpush1.bf16.msra.mxu0 %v15371_v55  ;;  %v15409_v55 = vld [vmem:[#allocation2 + $0x13d0] ss:$20 sps:$4 sm:$0xff]  }
 0xf82   :  { %10605 = vmatpush2.bf16.msra.mxu1 %v15374_v43  ;;  %10551 = vmatprep.subr.bf16.mxu0 %v15379_v50  ;;  %v15410_v43 = vld [vmem:[#allocation2 + $0x1624] ss:$20 sps:$4 sm:$0xff]   ;;  %v15407_v50 = vld [vmem:[#allocation2 + $0x13cc] ss:$20 sps:$4 sm:$0xff]  }
 0xf83   :  { %10606 = vmatprep.subr.bf16.mxu1 %v15382_v51  ;;  %v15415_v51 = vld [vmem:[#allocation2 + $0x1600] ss:$20 sps:$4 sm:$0xff]  }
 0xf85   :  { %10552 = vmatpush1.bf16.msra.mxu0 %v15377_v5  ;;  %v13251_v5 = vcombine.low %v9391_v45, %v9391_v45  ;;  %v15450_v45 = vld [vmem:[#allocation2 + $0x1510] ss:$20 sps:$4 sm:$0xff]  }
 0xf86   :  { %10607 = vmatpush2.bf16.msra.mxu1 %v15380_v54  ;;  %10553 = vmatprep.subr.bf16.mxu0 %v15385_v58  ;;  %v10458_v54 = vand.u32 %v13252_v47, %v16982_v26  ;;  %v15413_v58 = vld [vmem:[#allocation2 + $0x15fc] ss:$20 sps:$4 sm:$0xff]  }
 0xf87   :  { %10608 = vmatprep.subr.bf16.mxu1 %v15388_v24  ;;  %v10455_v24 = vand.u32 %v13251_v5, %v16982_v26  ;;  %v15459_v47 = vld [vmem:[#allocation2 + $0x1790] ss:$20 sps:$4 sm:$0xff]   ;;  %v15463_v5 = vld [vmem:[#allocation2 + $0x176c] ss:$20 sps:$4 sm:$0xff]  }
 0xf89   :  { %10554 = vmatpush1.bf16.msra.mxu0 %v15383_v60  ;;  %v15423_v60 = vld [vmem:[#allocation2 + $0x1880] ss:$20 sps:$4 sm:$0xff]  }
 0xf8a   :  { %v15699_v21 = vpop.eup %15698  ;;  %10609 = vmatpush2.bf16.msra.mxu1 %v15386_v3  ;;  %10555 = vmatprep.subr.bf16.mxu0 %v15391_v7  ;;  %v15418_v7 = vld [vmem:[#allocation2 + $0x15d4] ss:$20 sps:$4 sm:$0xff]  }
 0xf8b   :  { %v15701_v8 = vpop.eup %15700  ;;  %v10895_v28 = vmul.f32 %v15699_v21, %v15693_v9  ;;  %10610 = vmatprep.subr.bf16.mxu1 %v15394_v30  ;;  %v15421_v9 = vld [vmem:[#allocation2 + $0x187c] ss:$20 sps:$4 sm:$0xff]   ;;  %v15427_v21 = vld [vmem:[#allocation2 + $0x1854] ss:$20 sps:$4 sm:$0xff]  }
 0xf8c   :  { %v15703_v34 = vpop.eup %15702  ;;  %v15426_v30 = vld [vmem:[#allocation2 + $0x15b0] ss:$20 sps:$4 sm:$0xff]  }
 0xf8d   :  { %v17661_v31 = vadd.f32 %v10895_v28, %v10890_v27  ;;  %v10896_v39 = vmul.f32 %v15703_v34, %v15701_v8  ;;  %10556 = vmatpush1.bf16.msra.mxu0 %v15389_v32  ;;  %v15424_v32 = vld [vmem:[#allocation2 + $0x15ac] ss:$20 sps:$4 sm:$0xff]   ;;  %v15435_v8 = vld [vmem:[#allocation2 + $0x1830] ss:$20 sps:$4 sm:$0xff]   ;;  %v15441_v34 = vld [vmem:[#allocation2 + $0x1808] ss:$20 sps:$4 sm:$0xff]  }
 0xf8e   :  { %10611 = vmatpush2.bf16.msra.mxu1 %v15392_v11  ;;  %10557 = vmatprep.subr.bf16.mxu0 %v15397_v23  ;;  %v15432_v11 = vld [vmem:[#allocation2 + $0x1588] ss:$20 sps:$4 sm:$0xff]   ;;  %v15430_v27 = vld [vmem:[#allocation2 + $0x1584] ss:$20 sps:$4 sm:$0xff]   ;;  %v15433_v28 = vld [vmem:[#allocation2 + $0x182c] ss:$20 sps:$4 sm:$0xff]  }
 0xf8f   :  { %v17663_v40 = vadd.f32 %v10896_v39, %v10891_v36  ;;  %10612 = vmatprep.subr.bf16.mxu1 %v15400_v20  ;;  %v15438_v20 = vld [vmem:[#allocation2 + $0x1560] ss:$20 sps:$4 sm:$0xff]   ;;  %v15436_v36 = vld [vmem:[#allocation2 + $0x155c] ss:$20 sps:$4 sm:$0xff]   ;;  %v15439_v39 = vld [vmem:[#allocation2 + $0x1804] ss:$20 sps:$4 sm:$0xff]  }
 0xf91   :  { %v10954_v57 = vcombine.low %v17661_v31, %v17663_v40  ;;  %10558 = vmatpush1.bf16.msra.mxu0 %v15395_v61  ;;  %v15444_v61 = vld [vmem:[#allocation2 + $0x1538] ss:$20 sps:$4 sm:$0xff]  }
 0xf92   :  { %10613 = vmatpush2.bf16.msra.mxu1 %v15398_v29  ;;  %10559 = vmatprep.subr.bf16.mxu0 %v15403_v44  ;;  %v15447_v29 = vld [vmem:[#allocation2 + $0x17e0] ss:$20 sps:$4 sm:$0xff]  }
 0xf93   :  { %10614 = vmatprep.subr.bf16.mxu1 %v15406_v10  ;;  %v15442_v44 = vld [vmem:[#allocation2 + $0x1534] ss:$20 sps:$4 sm:$0xff]   ;;  %v15445_v10 = vld [vmem:[#allocation2 + $0x17dc] ss:$20 sps:$4 sm:$0xff]  }
 0xf95   :  { %10560 = vmatpush1.bf16.msra.mxu0 %v15401_v33  ;;  %v15453_v33 = vld [vmem:[#allocation2 + $0x17b8] ss:$20 sps:$4 sm:$0xff]  }
 0xf96   :  { %10615 = vmatpush2.bf16.msra.mxu1 %v15404_v25  ;;  %10627 = vmatprep.subr.bf16.mxu0 %v15412_v0  ;;  %v15448_v25 = vld [vmem:[#allocation2 + $0x150c] ss:$20 sps:$4 sm:$0xff]   ;;  %v15451_v0 = vld [vmem:[#allocation2 + $0x17b4] ss:$20 sps:$4 sm:$0xff]  }
 0xf97   :  { %10616 = vmatprep.subr.bf16.mxu1 %v15409_v55  ;;  %v15456_v55 = vld [vmem:[#allocation2 + $0x1768] ss:$20 sps:$4 sm:$0xff]  }
 0xf98   :  { %13254 = vmatmul.mubr.msk.bf16.vlgmr.msra.gmra.mxu0 %vm5357_vm4, %v17425_v18 }
 0xf99   :  { %10628 = vmatpush1.bf16.msra.mxu0 %v15410_v43  ;;  %10659 = vmatprep.mubr.bf16.mxu0 %v17415_v46  ;;  %v15454_v43 = vld [vmem:[#allocation2 + $0x1764] ss:$20 sps:$4 sm:$0xff]  }
 0xf9a   :  { %10617 = vmatpush2.bf16.msra.mxu1 %v15407_v50  ;;  %10629 = vmatprep.subr.bf16.mxu0 %v15415_v51  ;;  %v15457_v50 = vld [vmem:[#allocation2 + $0x178c] ss:$20 sps:$4 sm:$0xff]  }
 0xf9b   :  { %10668 = vmatprep.subr.bf16.mxu1 %v10458_v54  ;;  %v15462_v51 = vld [vmem:[#allocation2 + $0x1740] ss:$20 sps:$4 sm:$0xff]  }
 0xf9d   :  { %v17672_v3 = vpop.f32.mrf.mxu1  ;;  %10619 = vmatmul.mubr.bf16.vlgmr.msra.gmra.mxu1 %v17403_v37  ;;  %10630 = vmatpush1.bf16.msra.mxu0 %v15413_v58  ;;  %v15460_v58 = vld [vmem:[#allocation2 + $0x173c] ss:$20 sps:$4 sm:$0xff]  }
 0xf9e   :  { %10669 = vmatpush1.bf16.msra.mxu1 %v10455_v24  ;;  %10631 = vmatprep.subr.bf16.mxu0 %v15420_v59  ;;  %v15464_v59 = vld [vmem:[#allocation2 + $0x162c] ss:$20 sps:$4 sm:$0xff]  }
 0xf9f   :  { %v17675_v15 = vpop.f32.mrf.mxu1  ;;  %10670 = vmatprep.subr.bf16.mxu1 %v15423_v60  ;;  %10700 = vmatprep.mubr.bf16.mxu1 %v16625_v42  ;;  %v15467_v60 = vld [vmem:[#allocation2 + $0x1718] ss:$20 sps:$4 sm:$0xff]  }
 0xfa1   :  { %v8986_v19 = vpop.f32.mrf.mxu1  ;;  %10632 = vmatpush1.bf16.msra.mxu0 %v15418_v7  ;;  %v15468_v7 = vld [vmem:[#allocation2 + $0x1744] ss:$20 sps:$4 sm:$0xff]  }
 0xfa2   :  { %10671 = vmatpush1.bf16.msra.mxu1 %v15421_v9  ;;  %10633 = vmatprep.subr.bf16.mxu0 %v15426_v30 }
 0xfa3   :  { %v8987_v23 = vpop.f32.mrf.mxu1  ;;  %10672 = vmatprep.subr.bf16.mxu1 %v15429_v17  ;;  %v15465_v17 = vld [vmem:[#allocation2 + $0x1714] ss:$20 sps:$4 sm:$0xff]  }
 0xfa4   :  { %v15473_v23 = vld [vmem:[#allocation2 + $0x171c] ss:$20 sps:$4 sm:$0xff]  }
 0xfa5   :  { %10634 = vmatpush1.bf16.msra.mxu0 %v15424_v32  ;;  %v15469_v32 = vld [vmem:[#allocation2 + $0x1604] ss:$20 sps:$4 sm:$0xff]  }
 0xfa6   :  { %10673 = vmatpush1.bf16.msra.mxu1 %v15427_v21  ;;  %10635 = vmatprep.subr.bf16.mxu0 %v15432_v11  ;;  %v15472_v21 = vld [vmem:[#allocation2 + $0x16f0] ss:$20 sps:$4 sm:$0xff]  }
 0xfa7   :  { %10674 = vmatprep.subr.bf16.mxu1 %v15435_v8  ;;  %v12640_v8 = vmul.f32 -1.442695, %v17512_v14  ;;  %v15475_v14 = vld [vmem:[#allocation2 + $0x16c4] ss:$20 sps:$4 sm:$0xff]  }
 0xfa9   :  { %10636 = vmatpush1.bf16.msra.mxu0 %v15430_v27  ;;  %v12848_v27 = vmul.f32 -1.442695, %v17598_v12  ;;  %15704 = vpow2.f32 %v12640_v8  ;;  %v15479_v12 = vld [vmem:[#allocation2 + $0x15b4] ss:$20 sps:$4 sm:$0xff]   ;;  %v15498_v8 = vld [vmem:[#allocation2 + $0x13ac] ss:$20 sps:$4 sm:$0xff]  }
 0xfaa   :  { %10675 = vmatpush1.bf16.msra.mxu1 %v15433_v28  ;;  %10637 = vmatprep.subr.bf16.mxu0 %v15438_v20  ;;  %v15470_v20 = vld [vmem:[#allocation2 + $0x16ec] ss:$20 sps:$4 sm:$0xff]  }
 0xfab   :  { %10676 = vmatprep.subr.bf16.mxu1 %v15441_v34  ;;  %v12849_v34 = vmul.f32 -1.442695, %v17602_v13  ;;  %15706 = vpow2.f32 %v12848_v27  ;;  %v15483_v13 = vld [vmem:[#allocation2 + $0x16cc] ss:$20 sps:$4 sm:$0xff]  }
 0xfad   :  { %10638 = vmatpush1.bf16.msra.mxu0 %v15436_v36  ;;  %v15477_v36 = vld [vmem:[#allocation2 + $0x16c8] ss:$20 sps:$4 sm:$0xff]   ;;  %15708 = vpow2.f32 %v12849_v34 }
 0xfae   :  { %10677 = vmatpush1.bf16.msra.mxu1 %v15439_v39  ;;  %10639 = vmatprep.subr.bf16.mxu0 %v15444_v61  ;;  %v15478_v61 = vld [vmem:[#allocation2 + $0x16f4] ss:$20 sps:$4 sm:$0xff]  }
 0xfaf   :  { %10678 = vmatprep.subr.bf16.mxu1 %v15447_v29  ;;  %v12641_v29 = vmul.f32 -1.442695, %v17516_v16  ;;  %v15485_v16 = vld [vmem:[#allocation2 + $0x1674] ss:$20 sps:$4 sm:$0xff]  }
 0xfb1   :  { %10640 = vmatpush1.bf16.msra.mxu0 %v15442_v44  ;;  %v15482_v44 = vld [vmem:[#allocation2 + $0x16a0] ss:$20 sps:$4 sm:$0xff]   ;;  %15710 = vpow2.f32 %v12641_v29 }
 0xfb2   :  { %10679 = vmatpush1.bf16.msra.mxu1 %v15445_v10  ;;  %10641 = vmatprep.subr.bf16.mxu0 %v15450_v45  ;;  %v15480_v10 = vld [vmem:[#allocation2 + $0x169c] ss:$20 sps:$4 sm:$0xff]   ;;  %v15484_v45 = vld [vmem:[#allocation2 + $0x158c] ss:$20 sps:$4 sm:$0xff]  }
 0xfb3   :  { %10680 = vmatprep.subr.bf16.mxu1 %v15453_v33  ;;  %v15487_v33 = vld [vmem:[#allocation2 + $0x1678] ss:$20 sps:$4 sm:$0xff]  }
 0xfb5   :  { %10642 = vmatpush1.bf16.msra.mxu0 %v15448_v25  ;;  %v15488_v25 = vld [vmem:[#allocation2 + $0x16a4] ss:$20 sps:$4 sm:$0xff]  }
 0xfb6   :  { %10681 = vmatpush1.bf16.msra.mxu1 %v15451_v0  ;;  %10643 = vmatprep.subr.bf16.mxu0 %v15456_v55  ;;  %v15489_v0 = vld [vmem:[#allocation2 + $0x1564] ss:$20 sps:$4 sm:$0xff]  }
 0xfb7   :  { %10682 = vmatprep.subr.bf16.mxu1 %v15459_v47  ;;  %v15492_v55 = vld [vmem:[#allocation2 + $0x1650] ss:$20 sps:$4 sm:$0xff]   ;;  %v7728_v47 = vrot.slane %v17643_v56, %v17490_v1 }
 0xfb8   :  { %v17678_v54 = vpop.f32.mrf.mxu0 }
 0xfb9   :  { %10644 = vmatpush2.bf16.msra.mxu0 %v15454_v43  ;;  %v15493_v43 = vld [vmem:[#allocation2 + $0x167c] ss:$20 sps:$4 sm:$0xff]  }
 0xfba   :  { %10683 = vmatpush1.bf16.msra.mxu1 %v15457_v50  ;;  %v17680_v24 = vpop.f32.mrf.mxu0  ;;  %10645 = vmatprep.subr.bf16.mxu0 %v15462_v51  ;;  %v15705_v50 = vpop.eup %15704  ;;  %v7732_v51 = vrot.slane %v17643_v56, %v17493_v6 }
 0xfbb   :  { %13685 = vmatprep.subr.bf16.mxu1 %v15463_v5  ;;  %v15490_v5 = vld [vmem:[#allocation2 + $0x164c] ss:$20 sps:$4 sm:$0xff]  }
 0xfbc   :  { %v8945_v9 = vpop.f32.mrf.mxu0 }
 0xfbd   :  { %v17682_v30 = vpop.f32.mrf.mxu1  ;;  %13255 = vmatmul.mubr.msk.bf16.vlgmr.msra.gmra.mxu1 %vm5357_vm4, %v17425_v18  ;;  %10646 = vmatpush2.bf16.msra.mxu0 %v15460_v58  ;;  %v15707_v58 = vpop.eup %15706  ;;  %v8942_v9 = vadd.f32 %v17678_v54, %v7728_v47  ;;  %v15505_v47 = vld [vmem:[#allocation2 + $0x1334] ss:$20 sps:$4 sm:$0xff]  }
 0xfbe   :  { %13686 = vmatpush3.bf16.msra.mxu1 %v15464_v59  ;;  %10781 = vmatprep.mubr.bf16.mxu1 %v17415_v46  ;;  %v8946_v19 = vpop.f32.mrf.mxu0  ;;  %v15474_v46 = vld [vmem:[#allocation2 + $0x15dc] ss:$20 sps:$4 sm:$0xff]  }
 0xfbf   :  { %v17687_v11 = vpop.f32.mrf.mxu1  ;;  %10647 = vmatprep.subr.bf16.mxu0 %v15467_v60  ;;  %13687 = vmatprep.subr.bf16.mxu1 %v15468_v7  ;;  %v15494_v59 = vld [vmem:[#allocation2 + $0x153c] ss:$20 sps:$4 sm:$0xff]   ;;  %v15496_v60 = vld [vmem:[#allocation2 + $0x14ec] ss:$20 sps:$4 sm:$0xff]   ;;  %v15709_v7 = vpop.eup %15708  ;;  %v5759_v19 = vadd.f32 1.0, %v15705_v50  ;;  %v8983_v34 = vadd.f32 %v17672_v3, %v8942_v9 }
 0xfc0   :  { %v7464_v27 = vadd.f32 1.0, %v15709_v7  ;;  %v15502_v3 = vld [vmem:[#allocation2 + $0x149c] ss:$20 sps:$4 sm:$0xff]   ;;  %v15531_v7 = vld [vmem:[#allocation34 + $0x40] ss:$8 sps:$4 sm:$0xff]  }
 0xfc1   :  { %v13629_v28 = vpop.f32.mrf.mxu1  ;;  %10648 = vmatpush2.bf16.msra.mxu0 %v15465_v17  ;;  %v15497_v17 = vld [vmem:[#allocation2 + $0x1654] ss:$20 sps:$4 sm:$0xff]   ;;  %15712 = vrcp.f32 %v5759_v19 }
 0xfc2   :  { %13688 = vmatpush3.bf16.msra.mxu1 %v15469_v32  ;;  %10649 = vmatprep.subr.bf16.mxu0 %v15472_v21  ;;  %v15711_v32 = vpop.eup %15710  ;;  %v7463_v21 = vadd.f32 1.0, %v15707_v58  ;;  %v15499_v28 = vld [vmem:[#allocation2 + $0x1514] ss:$20 sps:$4 sm:$0xff]  }
 0xfc3   :  { %v13630_v39 = vpop.f32.mrf.mxu1  ;;  %13689 = vmatprep.subr.bf16.mxu1 %v15473_v23  ;;  %v8944_v23 = vadd.f32 %v17680_v24, %v7732_v51  ;;  %v5760_v54 = vadd.f32 1.0, %v15711_v32  ;;  %v15536_v32 = vld [vmem:[#allocation34 + $0x34] ss:$8 sps:$4 sm:$0xff]  }
 0xfc4   :  { %15714 = vrcp.f32 %v7463_v21 }
 0xfc5   :  { %10650 = vmatpush2.bf16.msra.mxu0 %v15470_v20  ;;  %v15500_v20 = vld [vmem:[#allocation2 + $0x14c4] ss:$20 sps:$4 sm:$0xff]   ;;  %v8985_v24 = vadd.f32 %v17675_v15, %v8944_v23  ;;  %15716 = vrcp.f32 %v7464_v27  ;;  %v12642_v23 = vmul.f32 -1.442695, %v17535_v22  ;;  %v15511_v22 = vld [vmem:[#allocation2 + $0x12bc] ss:$20 sps:$4 sm:$0xff]  }
 0xfc6   :  { %13690 = vmatpush3.bf16.msra.mxu1 %v15474_v46  ;;  %10651 = vmatprep.subr.bf16.mxu0 %v15477_v36  ;;  %v15524_v46 = vld [vmem:[#allocation34 + $0x74] ss:$8 sps:$4 sm:$0xff]  }
 0xfc7   :  { %13691 = vmatprep.subr.bf16.mxu1 %v15478_v61  ;;  %v15501_v61 = vld [vmem:[#allocation2 + $0x1384] ss:$20 sps:$4 sm:$0xff]  }
 0xfc9   :  { %10652 = vmatpush2.bf16.msra.mxu0 %v15475_v14  ;;  %v15522_v14 = vld [vmem:[#allocation34 + $0x70] ss:$8 sps:$4 sm:$0xff]  }
 0xfca   :  { %13692 = vmatpush3.bf16.msra.mxu1 %v15479_v12  ;;  %10653 = vmatprep.subr.bf16.mxu0 %v15482_v44  ;;  %v15527_v44 = vld [vmem:[#allocation34 + $0x64] ss:$8 sps:$4 sm:$0xff]  }
 0xfcb   :  { %13693 = vmatprep.subr.bf16.mxu1 %v15483_v13 }
 0xfcd   :  { %10654 = vmatpush2.bf16.msra.mxu0 %v15480_v10 }
 0xfce   :  { %13694 = vmatpush3.bf16.msra.mxu1 %v15484_v45  ;;  %10655 = vmatprep.subr.bf16.mxu0 %v15487_v33  ;;  %v15504_v45 = vld [vmem:[#allocation2 + $0x1474] ss:$20 sps:$4 sm:$0xff]   ;;  %v15713_v58 = vpop.eup %15712 }
 0xfcf   :  { %13695 = vmatprep.subr.bf16.mxu1 %v15488_v25  ;;  %v15525_v33 = vld [vmem:[#allocation34 + $0x60] ss:$8 sps:$4 sm:$0xff]   ;;  %v10861_v25 = vcombine.high %v17657_v53, %v17657_v53  ;;  %v15508_v53 = vld [vmem:[#allocation2 + $0x1424] ss:$20 sps:$4 sm:$0xff]  }
 0xfd1   :  { %10656 = vmatpush2.bf16.msra.mxu0 %v15485_v16  ;;  %v10875_v50 = vrot.slane %v10861_v25, %v16920_v35  ;;  %v15545_v25 = vld [vmem:[#allocation34 + $0x4] ss:$8 sps:$4 sm:$0xff]  }
 0xfd2   :  { %13696 = vmatpush3.bf16.msra.mxu1 %v15489_v0  ;;  %10657 = vmatprep.subr.bf16.mxu0 %v15492_v55  ;;  %v15530_v0 = vld [vmem:[#allocation34 + $0x54] ss:$8 sps:$4 sm:$0xff]  }
 0xfd3   :  { %13697 = vmatprep.subr.bf16.mxu1 %v15493_v43  ;;  %v15506_v43 = vld [vmem:[#allocation2 + $0x144c] ss:$20 sps:$4 sm:$0xff]   ;;  %v10877_v19 = vcombine.high %v10875_v50, %v10875_v50 }
 0xfd5   :  { %10658 = vmatpush2.bf16.msra.mxu0 %v15490_v5  ;;  %v15533_v5 = vld [vmem:[#allocation34 + $0x44] ss:$8 sps:$4 sm:$0xff]  }
 0xfd6   :  { %13698 = vmatpush3.bf16.msra.mxu1 %v15494_v59  ;;  %13663 = vmatprep.subr.bf16.mxu0 %v15496_v60  ;;  %v15507_v59 = vld [vmem:[#allocation2 + $0x130c] ss:$20 sps:$4 sm:$0xff]   ;;  %v15715_v60 = vpop.eup %15714 }
 0xfd7   :  { %13699 = vmatprep.subr.bf16.mxu1 %v15497_v17  ;;  %v15717_v9 = vpop.eup %15716  ;;  %v12850_v17 = vmul.f32 -1.442695, %v17626_v4  ;;  %v10892_v27 = vmul.f32 %v15715_v60, %v10875_v50 }
 0xfd8   :  { %v9023_v36 = vpop.f32.mrf.mxu0  ;;  %10660 = vmatmul.mubr.bf16.vlgmr.msra.gmra.mxu0 %v17418_v48  ;;  %v10893_v4 = vmul.f32 %v15717_v9, %v10877_v19  ;;  %v15549_v9 = vld [vmem:[#allocation34 + $0xe0] ss:$8 sps:$4 sm:$0xff]   ;;  %v15554_v19 = vld [vmem:[#allocation34 + $0xd4] ss:$8 sps:$4 sm:$0xff]  }
 0xfd9   :  { %v9024_v39 = vadd.f32 %v9023_v36, %v8983_v34  ;;  %13664 = vmatpush3.bf16.msra.mxu0 %v15498_v8  ;;  %10741 = vmatprep.mubr.bf16.mxu0 %v17405_v38  ;;  %v15503_v38 = vld [vmem:[#allocation2 + $0x135c] ss:$20 sps:$4 sm:$0xff]  }
 0xfda   :  { %13700 = vmatpush3.bf16.msra.mxu1 %v15499_v28  ;;  %v9025_v29 = vpop.f32.mrf.mxu0  ;;  %13665 = vmatprep.subr.bf16.mxu0 %v15500_v20  ;;  %v15509_v20 = vld [vmem:[#allocation2 + $0x12e4] ss:$20 sps:$4 sm:$0xff]  }
 0xfdb   :  { %15718 = vtanh.f32 %v9024_v39  ;;  %v9026_v12 = vadd.f32 %v9025_v29, %v8985_v24  ;;  %11448 = vmatprep.subr.bf16.mxu1 %v15524_v46  ;;  %v15510_v46 = vld [vmem:[#allocation2 + $0x13fc] ss:$20 sps:$4 sm:$0xff]   ;;  %v15512_v29 = vld [vmem:[#allocation2 + $0x13d4] ss:$20 sps:$4 sm:$0xff]  }
 0xfdc   :  { %15720 = vrcp.f32 %v5760_v54  ;;  %v9027_v13 = vpop.f32.mrf.mxu0  ;;  %v15534_v54 = vld [vmem:[#allocation34 + $0x30] ss:$8 sps:$4 sm:$0xff]   ;;  %v15539_v24 = vld [vmem:[#allocation34 + $0x24] ss:$8 sps:$4 sm:$0xff]  }
 0xfdd   :  { %15722 = vtanh.f32 %v9026_v12  ;;  %v17703_v10 = vpop.f32.mrf.mxu1  ;;  %10782 = vmatmul.mubr.bf16.vlgmr.msra.gmra.mxu1 %v17418_v48  ;;  %13666 = vmatpush3.bf16.msra.mxu0 %v15501_v61  ;;  %v15528_v48 = vld [vmem:[#allocation34 + $0x50] ss:$8 sps:$4 sm:$0xff]   ;;  %v15542_v12 = vld [vmem:[#allocation34 + $0x14] ss:$8 sps:$4 sm:$0xff]  }
 0xfde   :  { %v9028_v15 = vpop.f32.mrf.mxu0  ;;  %13667 = vmatprep.subr.bf16.mxu0 %v15502_v3  ;;  %11449 = vmatpush1.bf16.msra.mxu1 %v15522_v14  ;;  %15724 = vpow2.f32 %v12850_v17  ;;  %v15537_v3 = vld [vmem:[#allocation34 + $0x20] ss:$8 sps:$4 sm:$0xff]  }
 0xfdf   :  { %v13983_v16 = vpop.f32.mrf.mxu1  ;;  %11450 = vmatprep.subr.bf16.mxu1 %v15527_v44  ;;  %15726 = vpow2.f32 %v12642_v23  ;;  %v10962_v44 = vrot.slane %v10954_v57, %v16920_v35  ;;  %v15514_v15 = vld [vmem:[#allocation2 + $0x18ac] ss:$0 sps:$4 sm:$0x11]   ;;  %v7736_v57 = vrot.slane %v17643_v56, %v17523_v2  ;;  %v15546_v56 = vld [vmem:[#allocation34 + $0xf0] ss:$8 sps:$4 sm:$0xff]  }
 0xfe0   :  { %v10461_v16 = vand.u32 %v15514_v15, %v16982_v26  ;;  %v15557_v23 = vld [vmem:[#allocation34 + $0xc4] ss:$8 sps:$4 sm:$0xff]  }
 0xfe1   :  { %v9147_v55 = vpop.f32.mrf.mxu1  ;;  %13668 = vmatpush3.bf16.msra.mxu0 %v15503_v38  ;;  %v15513_v38 = vld [vmem:[#allocation2 + $0x1294] ss:$20 sps:$4 sm:$0xff]  }
 0xfe2   :  { %13669 = vmatprep.subr.bf16.mxu0 %v15504_v45  ;;  %11451 = vmatpush1.bf16.msra.mxu1 %v15525_v33  ;;  %v15540_v45 = vld [vmem:[#allocation34 + $0x10] ss:$8 sps:$4 sm:$0xff]   ;;  %v13628_v55 = vadd.f32 %v17687_v11, %v17682_v30  ;;  %v15551_v11 = vld [vmem:[#allocation34 + $0xe4] ss:$8 sps:$4 sm:$0xff]  }
 0xfe3   :  { %v13984_v51 = vpop.f32.mrf.mxu1  ;;  %11452 = vmatprep.subr.bf16.mxu1 %v15530_v0  ;;  %v15543_v0 = vld [vmem:[#allocation34] ss:$8 sps:$4 sm:$0xff]  }
 0xfe4   :  { %v15515_v51 = vld [vmem:[#allocation2 + $0x1884] ss:$20 sps:$4 sm:$0xff]  }
 0xfe5   :  { %13670 = vmatpush3.bf16.msra.mxu0 %v15505_v47  ;;  %v15548_v47 = vld [vmem:[#allocation34 + $0xf4] ss:$8 sps:$4 sm:$0xff]  }
 0xfe6   :  { %13671 = vmatprep.subr.bf16.mxu0 %v15506_v43  ;;  %11453 = vmatpush1.bf16.msra.mxu1 %v15528_v48 }
 0xfe7   :  { %11454 = vmatprep.subr.bf16.mxu1 %v15533_v5 }
 0xfe8   :  { %v15719_v21 = vpop.eup %15718 }
 0xfe9   :  { %v15721_v8 = vpop.eup %15720  ;;  %v10897_v28 = vmul.f32 %v15719_v21, %v15713_v58  ;;  %13672 = vmatpush3.bf16.msra.mxu0 %v15507_v59  ;;  %v9065_v58 = vadd.f32 %v13628_v55, %v7736_v57  ;;  %v15552_v21 = vld [vmem:[#allocation34 + $0xd0] ss:$8 sps:$4 sm:$0xff]   ;;  %v15578_v57 = vld [vmem:[#allocation34 + $0x154] ss:$8 sps:$4 sm:$0xff]  }
 0xfea   :  { %v15723_v34 = vpop.eup %15722  ;;  %13673 = vmatprep.subr.bf16.mxu0 %v15508_v53  ;;  %11455 = vmatpush1.bf16.msra.mxu1 %v15531_v7 }
 0xfeb   :  { %v17711_v36 = vadd.f32 %v10897_v28, %v10892_v27  ;;  %v10898_v39 = vmul.f32 %v15723_v34, %v15721_v8  ;;  %11456 = vmatprep.subr.bf16.mxu1 %v15536_v32  ;;  %v15725_v43 = vpop.eup %15724  ;;  %v15517_v32 = vld [vmem:[#allocation2 + $0x1834] ss:$20 sps:$4 sm:$0xff]   ;;  %v15518_v8 = vld [vmem:[#allocation2 + $0x180c] ss:$20 sps:$4 sm:$0xff]   ;;  %v15519_v28 = vld [vmem:[#allocation2 + $0x17e4] ss:$20 sps:$4 sm:$0xff]  }
 0xfec   :  { %v15727_v50 = vpop.eup %15726  ;;  %v7465_v5 = vadd.f32 1.0, %v15725_v43  ;;  %v15555_v27 = vld [vmem:[#allocation34 + $0xc0] ss:$8 sps:$4 sm:$0xff]   ;;  %v15563_v34 = vld [vmem:[#allocation34 + $0xa4] ss:$8 sps:$4 sm:$0xff]  }
 0xfed   :  { %v17713_v61 = vadd.f32 %v10898_v39, %v10893_v4  ;;  %13674 = vmatpush3.bf16.msra.mxu0 %v15509_v20  ;;  %v5761_v59 = vadd.f32 1.0, %v15727_v50  ;;  %v15558_v20 = vld [vmem:[#allocation34 + $0xb0] ss:$8 sps:$4 sm:$0xff]   ;;  %v15581_v43 = vld [vmem:[#allocation34 + $0x144] ss:$8 sps:$4 sm:$0xff]  }
 0xfee   :  { %13675 = vmatprep.subr.bf16.mxu0 %v15510_v46  ;;  %11457 = vmatpush1.bf16.msra.mxu1 %v15534_v54  ;;  %15728 = vrcp.f32 %v7465_v5  ;;  %v13262_v54 = vld.sshfl [vmem:[#allocation11 + $0x8] sm:$0x3 pattern:$0x76325410]  ;;  %v15520_v39 = vld [vmem:[#allocation2 + $0x17bc] ss:$20 sps:$4 sm:$0xff]  }
 0xfef   :  { %v10955_v14 = vcombine.low %v17711_v36, %v17713_v61  ;;  %11458 = vmatprep.subr.bf16.mxu1 %v15539_v24  ;;  %15730 = vrcp.f32 %v5761_v59  ;;  %v15587_v5 = vld [vmem:[#allocation34 + $0x124] ss:$8 sps:$4 sm:$0xff]  }
 0xff0   :  { %v15593_v59 = vld [vmem:[#allocation34 + $0x104] ss:$8 sps:$4 sm:$0xff]  }
 0xff1   :  { %v10969_v13 = vrot.slane %v10955_v14, %v16920_v35  ;;  %13676 = vmatpush3.bf16.msra.mxu0 %v15511_v22  ;;  %v15561_v22 = vld [vmem:[#allocation34 + $0xa0] ss:$8 sps:$4 sm:$0xff]   ;;  %v15566_v14 = vld [vmem:[#allocation34 + $0x94] ss:$8 sps:$4 sm:$0xff]  }
 0xff2   :  { %13677 = vmatprep.subr.bf16.mxu0 %v15512_v29  ;;  %11459 = vmatpush1.bf16.msra.mxu1 %v15537_v3 }
 0xff3   :  { %v10970_v33 = vcombine.low %v10962_v44, %v10969_v13  ;;  %11460 = vmatprep.subr.bf16.mxu1 %v15542_v12  ;;  %v15521_v44 = vld [vmem:[#allocation2 + $0x1794] ss:$20 sps:$4 sm:$0xff]   ;;  %v15564_v13 = vld [vmem:[#allocation34 + $0x90] ss:$8 sps:$4 sm:$0xff]  }
 0xff5   :  { %10980 = vst [vmem:[#allocation56] sm:$0xff] %v10970_v33  ;;  %13678 = vmatpush3.bf16.msra.mxu0 %v15513_v38  ;;  %v15572_v38 = vld [vmem:[#allocation34 + $0x174] ss:$8 sps:$4 sm:$0xff]   ;;  %v15570_v33 = vld [vmem:[#allocation34 + $0x170] ss:$8 sps:$4 sm:$0xff]  }
 0xff6   :  { %13985 = vmatprep.subr.bf16.mxu0 %v16624_v41  ;;  %11461 = vmatpush1.bf16.msra.mxu1 %v15540_v45  ;;  %v15569_v45 = vld [vmem:[#allocation34 + $0x84] ss:$8 sps:$4 sm:$0xff]  }
 0xff7   :  { %11462 = vmatprep.subr.bf16.mxu1 %v15545_v25  ;;  %v15567_v25 = vld [vmem:[#allocation34 + $0x80] ss:$8 sps:$4 sm:$0xff]  }
 0xff8   :  { %v13648_v48 = vpop.f32.mrf.mxu0  ;;  %10742 = vmatmul.mubr.bf16.vlgmr.msra.gmra.mxu0 %v17403_v37  ;;  %v15516_v37 = vld [vmem:[#allocation2 + $0x185c] ss:$20 sps:$4 sm:$0xff]  }
 0xff9   :  { %13986 = vmatpush3.bf16.msra.mxu0 %v10461_v16  ;;  %14001 = vmatprep.mubr.msk.bf16.mxu0 %vm16626_vm0, %v16624_v41  ;;  %v15575_v16 = vld [vmem:[#allocation34 + $0x164] ss:$8 sps:$4 sm:$0xff]  }
 0xffa   :  { %v13649_v26 = vpop.f32.mrf.mxu0  ;;  %13987 = vmatprep.subr.bf16.mxu0 %v16624_v41  ;;  %11463 = vmatpush1.bf16.msra.mxu1 %v15543_v0  ;;  %v15573_v0 = vld [vmem:[#allocation34 + $0x160] ss:$8 sps:$4 sm:$0xff]  }
 0xffb   :  { %v13650_v30 = vadd.f32 %v13649_v26, %v13648_v48  ;;  %11464 = vmatprep.subr.bf16.mxu1 %v15548_v47  ;;  %v15729_v46 = vpop.eup %15728  ;;  %v15576_v47 = vld [vmem:[#allocation34 + $0x150] ss:$8 sps:$4 sm:$0xff]   ;;  %v15584_v26 = vld [vmem:[#allocation34 + $0x134] ss:$8 sps:$4 sm:$0xff]  }
 0xffc   :  { %v13651_v60 = vpop.f32.mrf.mxu0  ;;  %v15731_v4 = vpop.eup %15730  ;;  %v10894_v29 = vmul.f32 %v15729_v46, %v13262_v54  ;;  %v15609_v46 = vld [vmem:[#allocation34 + $0x1a0] ss:$8 sps:$4 sm:$0xff]   ;;  %v15614_v54 = vld [vmem:[#allocation34 + $0x194] ss:$8 sps:$4 sm:$0xff]  }
 0xffd   :  { %v9105_v53 = vadd.f32 %v13650_v30, %v9065_v58  ;;  %13988 = vmatpush3.bf16.msra.mxu0 %v15515_v51  ;;  %v15579_v51 = vld [vmem:[#allocation34 + $0x140] ss:$8 sps:$4 sm:$0xff]   ;;  %v15590_v30 = vld [vmem:[#allocation34 + $0x114] ss:$8 sps:$4 sm:$0xff]  }
 0xffe   :  { %v13652_v7 = vpop.f32.mrf.mxu0  ;;  %13989 = vmatprep.subr.bf16.mxu0 %v16624_v41  ;;  %11465 = vmatpush2.bf16.msra.mxu1 %v15546_v56  ;;  %v15585_v58 = vld [vmem:[#allocation34 + $0x120] ss:$8 sps:$4 sm:$0xff]  }
 0xfff   :  { %v9145_v17 = vadd.f32 %v17703_v10, %v9105_v53  ;;  %11466 = vmatprep.subr.bf16.mxu1 %v15551_v11  ;;  %v15560_v10 = vld [vmem:[#allocation34 + $0xb4] ss:$8 sps:$4 sm:$0xff]   ;;  %v15588_v11 = vld [vmem:[#allocation34 + $0x110] ss:$8 sps:$4 sm:$0xff]   ;;  %v15591_v60 = vld [vmem:[#allocation34 + $0x100] ss:$8 sps:$4 sm:$0xff]  }
0x1000   :  { %v15596_v53 = vld [vmem:[#allocation34 + $0x1f4] ss:$8 sps:$4 sm:$0xff]   ;;  %v15599_v7 = vld [vmem:[#allocation34 + $0x1e4] ss:$8 sps:$4 sm:$0xff]  }
0x1001   :  { %15732 = vtanh.f32 %v9145_v17  ;;  %13990 = vmatpush3.bf16.msra.mxu0 %v15516_v37  ;;  %v15594_v37 = vld [vmem:[#allocation34 + $0x1f0] ss:$8 sps:$4 sm:$0xff]   ;;  %v15597_v17 = vld [vmem:[#allocation34 + $0x1e0] ss:$8 sps:$4 sm:$0xff]  }
0x1002   :  { %13991 = vmatprep.subr.bf16.mxu0 %v16624_v41  ;;  %11467 = vmatpush2.bf16.msra.mxu1 %v15549_v9 }
0x1003   :  { %11468 = vmatprep.subr.bf16.mxu1 %v15554_v19 }
0x1005   :  { %13992 = vmatpush3.bf16.msra.mxu0 %v15517_v32  ;;  %v15602_v32 = vld [vmem:[#allocation34 + $0x1d4] ss:$8 sps:$4 sm:$0xff]  }
0x1006   :  { %13993 = vmatprep.subr.bf16.mxu0 %v16624_v41  ;;  %11469 = vmatpush2.bf16.msra.mxu1 %v15552_v21 }
0x1007   :  { %11470 = vmatprep.subr.bf16.mxu1 %v15557_v23  ;;  %v15600_v23 = vld [vmem:[#allocation34 + $0x1d0] ss:$8 sps:$4 sm:$0xff]  }
0x1009   :  { %13994 = vmatpush3.bf16.msra.mxu0 %v15518_v8 }
0x100a   :  { %13995 = vmatprep.subr.bf16.mxu0 %v16624_v41  ;;  %11471 = vmatpush2.bf16.msra.mxu1 %v15555_v27  ;;  %v15605_v27 = vld [vmem:[#allocation34 + $0x1c4] ss:$8 sps:$4 sm:$0xff]  }
0x100b   :  { %11472 = vmatprep.subr.bf16.mxu1 %v15560_v10  ;;  %v15603_v10 = vld [vmem:[#allocation34 + $0x1c0] ss:$8 sps:$4 sm:$0xff]  }
0x100d   :  { %13996 = vmatpush3.bf16.msra.mxu0 %v15519_v28  ;;  %v15608_v28 = vld [vmem:[#allocation34 + $0x1b4] ss:$8 sps:$4 sm:$0xff]  }
0x100e   :  { %v15733_v24 = vpop.eup %15732  ;;  %13997 = vmatprep.subr.bf16.mxu0 %v16624_v41  ;;  %11473 = vmatpush2.bf16.msra.mxu1 %v15558_v20  ;;  %v15606_v20 = vld [vmem:[#allocation34 + $0x1b0] ss:$8 sps:$4 sm:$0xff]  }
0x100f   :  { %v10899_v3 = vmul.f32 %v15733_v24, %v15731_v4  ;;  %11474 = vmatprep.subr.bf16.mxu1 %v15563_v34  ;;  %v15611_v34 = vld [vmem:[#allocation34 + $0x1a4] ss:$8 sps:$4 sm:$0xff]  }
0x1010   :  { %v17750_v4 = vld [vmem:[#allocation25 + $0xf] sm:$0x1f] }
0x1011   :  { %v17738_v12 = vadd.f32 %v10899_v3, %v10894_v29  ;;  %13998 = vmatpush3.bf16.msra.mxu0 %v15520_v39  ;;  %v15612_v39 = vld [vmem:[#allocation34 + $0x190] ss:$8 sps:$4 sm:$0xff]   ;;  %v15617_v24 = vld [vmem:[#allocation34 + $0x184] ss:$8 sps:$4 sm:$0xff]   ;;  %v9403_v29 = vrot.slane %v17750_v4, %v17378_v52  ;;  %v15615_v3 = vld [vmem:[#allocation34 + $0x180] ss:$8 sps:$4 sm:$0xff]  }
0x1012   :  { %13999 = vmatprep.subr.bf16.mxu0 %v16624_v41  ;;  %11475 = vmatpush2.bf16.msra.mxu1 %v15561_v22  ;;  %v9399_v22 = vrot.slane %v17750_v4, %v17375_v49 }
0x1013   :  { %v10977_v15 = vrot.slane %v17738_v12, %v16920_v35  ;;  %11476 = vmatprep.subr.bf16.mxu1 %v15566_v14 }
0x1015   :  { %14000 = vmatpush3.bf16.msra.mxu0 %v15521_v44  ;;  %10981 = vst.msk [vmem:[#allocation56 + $0x8] sm:$0x3] %vm10947_vm5, %v10977_v15 }
0x1016   :  { %11477 = vmatpush2.bf16.msra.mxu1 %v15564_v13  ;;  %11489 = vmatprep.subr.bf16.mxu0 %v15572_v38 }
0x1017   :  { %11478 = vmatprep.subr.bf16.mxu1 %v15569_v45 }
0x1018   :  { %14002 = vmatmul.mubr.msk.bf16.vlgmr.msra.gmra.mxu0 %vm5357_vm4, %v17425_v18  ;;  %v15582_v18 = vld [vmem:[#allocation34 + $0x130] ss:$8 sps:$4 sm:$0xff]  }
0x1019   :  { %11490 = vmatpush1.bf16.msra.mxu0 %v15570_v33 }
0x101a   :  { %11479 = vmatpush2.bf16.msra.mxu1 %v15567_v25  ;;  %11491 = vmatprep.subr.bf16.mxu0 %v15575_v16 }
0x101d   :  { %v17746_v55 = vpop.f32.mrf.mxu1  ;;  %11492 = vmatpush1.bf16.msra.mxu0 %v15573_v0 }
0x101e   :  { %11493 = vmatprep.subr.bf16.mxu0 %v15578_v57 }
0x101f   :  { %v17748_v48 = vpop.f32.mrf.mxu1 }
0x1021   :  { %v10542_v50 = vpop.f32.mrf.mxu1  ;;  %11494 = vmatpush1.bf16.msra.mxu0 %v15576_v47 }
0x1022   :  { %11495 = vmatprep.subr.bf16.mxu0 %v15581_v43 }
0x1023   :  { %v10543_v56 = vpop.f32.mrf.mxu1 }
0x1025   :  { %11496 = vmatpush1.bf16.msra.mxu0 %v15579_v51 }
0x1026   :  { %11497 = vmatprep.subr.bf16.mxu0 %v15584_v26 }
0x1029   :  { %11498 = vmatpush1.bf16.msra.mxu0 %v15582_v18 }
0x102a   :  { %11499 = vmatprep.subr.bf16.mxu0 %v15587_v5 }
0x102d   :  { %11500 = vmatpush1.bf16.msra.mxu0 %v15585_v58 }
0x102e   :  { %11501 = vmatprep.subr.bf16.mxu0 %v15590_v30 }
0x1031   :  { %11502 = vmatpush1.bf16.msra.mxu0 %v15588_v11 }
0x1032   :  { %11503 = vmatprep.subr.bf16.mxu0 %v15593_v59 }
0x1035   :  { %11504 = vmatpush1.bf16.msra.mxu0 %v15591_v60 }
0x1036   :  { %11505 = vmatprep.subr.bf16.mxu0 %v15596_v53 }
0x1038   :  { %v10497_v9 = vpop.f32.mrf.mxu0 }
0x1039   :  { %11506 = vmatpush2.bf16.msra.mxu0 %v15594_v37  ;;  %v10498_v14 = vadd.f32 %v10497_v9, %v9399_v22 }
0x103a   :  { %v10499_v19 = vpop.f32.mrf.mxu0  ;;  %11507 = vmatprep.subr.bf16.mxu0 %v15599_v7 }
0x103b   :  { %v10500_v44 = vadd.f32 %v10499_v19, %v9403_v29  ;;  %v10539_v13 = vadd.f32 %v17746_v55, %v10498_v14  ;;  %v15623_v19 = vld [vmem:[#allocation34 + $0x224] ss:$8 sps:$4 sm:$0xff]  }
0x103c   :  { %v10501_v21 = vpop.f32.mrf.mxu0 }
0x103d   :  { %11508 = vmatpush2.bf16.msra.mxu0 %v15597_v17  ;;  %v10541_v45 = vadd.f32 %v17748_v48, %v10500_v44  ;;  %v15620_v48 = vld [vmem:[#allocation34 + $0x234] ss:$8 sps:$4 sm:$0xff]   ;;  %v15618_v17 = vld [vmem:[#allocation34 + $0x230] ss:$8 sps:$4 sm:$0xff]  }
0x103e   :  { %v10502_v8 = vpop.f32.mrf.mxu0  ;;  %11509 = vmatprep.subr.bf16.mxu0 %v15602_v32  ;;  %11538 = vmatprep.subr.bf16.mxu1 %v15620_v48 }
0x103f   :  { %v15626_v8 = vld [vmem:[#allocation34 + $0x214] ss:$8 sps:$4 sm:$0xff]  }
0x1041   :  { %11510 = vmatpush2.bf16.msra.mxu0 %v15600_v23  ;;  %v15621_v23 = vld [vmem:[#allocation34 + $0x220] ss:$8 sps:$4 sm:$0xff]  }
0x1042   :  { %11511 = vmatprep.subr.bf16.mxu0 %v15605_v27  ;;  %v15624_v27 = vld [vmem:[#allocation34 + $0x210] ss:$8 sps:$4 sm:$0xff]  }
0x1045   :  { %11512 = vmatpush2.bf16.msra.mxu0 %v15603_v10  ;;  %v15629_v10 = vld [vmem:[#allocation34 + $0x204] ss:$8 sps:$4 sm:$0xff]  }
0x1046   :  { %11513 = vmatprep.subr.bf16.mxu0 %v15608_v28  ;;  %v15627_v28 = vld [vmem:[#allocation34 + $0x200] ss:$8 sps:$4 sm:$0xff]  }
0x1049   :  { %11514 = vmatpush2.bf16.msra.mxu0 %v15606_v20  ;;  %v15632_v20 = vld [vmem:[#allocation32 + $0x74] ss:$8 sps:$4 sm:$0xff]  }
0x104a   :  { %11515 = vmatprep.subr.bf16.mxu0 %v15611_v34  ;;  %v9407_v34 = vrot.slane %v17750_v4, %v17490_v1 }
0x104d   :  { %11516 = vmatpush2.bf16.msra.mxu0 %v15609_v46  ;;  %v9411_v46 = vrot.slane %v17750_v4, %v17493_v6 }
0x104e   :  { %11517 = vmatprep.subr.bf16.mxu0 %v15614_v54 }
0x1051   :  { %11518 = vmatpush2.bf16.msra.mxu0 %v15612_v39 }
0x1052   :  { %11519 = vmatprep.subr.bf16.mxu0 %v15617_v24 }
0x1055   :  { %11520 = vmatpush2.bf16.msra.mxu0 %v15615_v3 }
0x1058   :  { %v10579_v38 = vpop.f32.mrf.mxu0 }
0x1059   :  { %v10580_v15 = vadd.f32 %v10579_v38, %v10539_v13 }
0x105a   :  { %v10581_v33 = vpop.f32.mrf.mxu0 }
0x105b   :  { %v13257_v25 = vmul.f32 -1.442695, %v10580_v15  ;;  %v10582_v16 = vadd.f32 %v10581_v33, %v10541_v45 }
0x105c   :  { %v10583_v0 = vpop.f32.mrf.mxu0 }
0x105d   :  { %15734 = vpow2.f32 %v13257_v25  ;;  %v13258_v57 = vmul.f32 -1.442695, %v10582_v16  ;;  %v10620_v47 = vpop.f32.mrf.mxu1 }
0x105e   :  { %v10584_v43 = vpop.f32.mrf.mxu0  ;;  %v10621_v54 = vadd.f32 %v10620_v47, %v9407_v34 }
0x105f   :  { %15736 = vpow2.f32 %v13258_v57  ;;  %v10622_v50 = vpop.f32.mrf.mxu1 }
0x1060   :  { %15738 = vtanh.f32 %v17661_v31  ;;  %v10623_v39 = vadd.f32 %v10622_v50, %v9411_v46  ;;  %v15635_v46 = vld [vmem:[#allocation32 + $0x64] ss:$8 sps:$4 sm:$0xff]  }
0x1061   :  { %v10624_v51 = vpop.f32.mrf.mxu1 }
0x1063   :  { %v10625_v26 = vpop.f32.mrf.mxu1 }
0x106a   :  { %v15735_v56 = vpop.eup %15734 }
0x106b   :  { %v10844_v18 = vadd.f32 1.0, %v15735_v56 }
0x106c   :  { %v15737_v5 = vpop.eup %15736 }
0x106d   :  { %15740 = vrcp.f32 %v10844_v18  ;;  %v10845_v55 = vadd.f32 1.0, %v15737_v5  ;;  %v15739_v58 = vpop.eup %15738 }
0x106e   :  { %15742 = vtanh.f32 %v17663_v40 }
0x106f   :  { %15744 = vrcp.f32 %v10845_v55 }
0x107a   :  { %v15741_v30 = vpop.eup %15740 }
0x107b   :  { %v15743_v11 = vpop.eup %15742  ;;  %v17760_v60 = vmul.f32 %v15741_v30, %v15739_v58 }
0x107c   :  { %v15745_v59 = vpop.eup %15744 }
0x107d   :  { %v10702_v53 = vpop.f32.mrf.mxu1  ;;  %v17762_v37 = vmul.f32 %v15745_v59, %v15743_v11  ;;  %v11080_v40 = vpack.c.bf16 %v17760_v60, %v17760_v60 }
0x107f   :  { %v10704_v7 = vpop.f32.mrf.mxu1  ;;  %v10920_v31 = vcombine.low %v17760_v60, %v17762_v37  ;;  %v11081_v9 = vpack.c.bf16 %v17762_v37, %v17762_v37 }
0x1081   :  { %v10706_v32 = vpop.f32.mrf.mxu1  ;;  %11480 = vmatprep.mubr.bf16.mxu1 %v11081_v9 }
0x1082   :  { %11481 = vmatmul.mubr.bf16.vlgmr.msra.gmra.mxu1 %v11080_v40 }
0x1083   :  { %v10707_v21 = vpop.f32.mrf.mxu1  ;;  %11539 = vmatpush1.bf16.msra.mxu1 %v15618_v17  ;;  %11562 = vmatprep.mubr.bf16.mxu1 %v16625_v42 }
0x1084   :  { %11540 = vmatprep.subr.bf16.mxu1 %v15623_v19 }
0x1087   :  { %11541 = vmatpush1.bf16.msra.mxu1 %v15621_v23 }
0x1088   :  { %11542 = vmatprep.subr.bf16.mxu1 %v15626_v8 }
0x108b   :  { %11543 = vmatpush1.bf16.msra.mxu1 %v15624_v27 }
0x108c   :  { %11544 = vmatprep.subr.bf16.mxu1 %v15629_v10 }
0x108f   :  { %11545 = vmatpush1.bf16.msra.mxu1 %v15627_v28 }
0x1090   :  { %11694 = vmatprep.subr.bf16.mxu1 %v15632_v20 }
0x1098   :  { %v10661_v42 = vpop.f32.mrf.mxu0 }
0x1099   :  { %v10662_v24 = vadd.f32 %v10661_v42, %v10621_v54  ;;  %v15633_v54 = vld [vmem:[#allocation32 + $0x60] ss:$8 sps:$4 sm:$0xff]   ;;  %v15636_v42 = vld [vmem:[#allocation32 + $0x50] ss:$8 sps:$4 sm:$0xff]  }
0x109a   :  { %v10663_v22 = vpop.f32.mrf.mxu0 }
0x109b   :  { %v10703_v29 = vadd.f32 %v10702_v53, %v10662_v24  ;;  %v10664_v3 = vadd.f32 %v10663_v22, %v10623_v39  ;;  %v9415_v53 = vrot.slane %v17750_v4, %v17523_v2  ;;  %v15630_v2 = vld [vmem:[#allocation32 + $0x70] ss:$8 sps:$4 sm:$0xff]   ;;  %v11007_v4 = vpack.c.bf16 %v17392_v63, %v17392_v63  ;;  %v15641_v39 = vld [vmem:[#allocation32 + $0x44] ss:$8 sps:$4 sm:$0xff]   ;;  %v15639_v63 = vld [vmem:[#allocation32 + $0x40] ss:$8 sps:$4 sm:$0xff]  }
0x109c   :  { %v10665_v14 = vpop.f32.mrf.mxu0  ;;  %v15642_v24 = vld [vmem:[#allocation32 + $0x30] ss:$8 sps:$4 sm:$0xff]   ;;  %v15647_v22 = vld [vmem:[#allocation32 + $0x24] ss:$8 sps:$4 sm:$0xff]  }
0x109d   :  { %v13259_v44 = vmul.f32 -1.442695, %v10703_v29  ;;  %v10705_v13 = vadd.f32 %v10704_v7, %v10664_v3  ;;  %v13701_v38 = vpop.f32.mrf.mxu1  ;;  %v15645_v29 = vld [vmem:[#allocation32 + $0x20] ss:$8 sps:$4 sm:$0xff]   ;;  %v15650_v3 = vld [vmem:[#allocation32 + $0x14] ss:$8 sps:$4 sm:$0xff]  }
0x109e   :  { %v10666_v15 = vpop.f32.mrf.mxu0  ;;  %v15648_v14 = vld [vmem:[#allocation32 + $0x10] ss:$8 sps:$4 sm:$0xff]  }
0x109f   :  { %15746 = vpow2.f32 %v13259_v44  ;;  %v13260_v45 = vmul.f32 -1.442695, %v10705_v13  ;;  %v13702_v33 = vpop.f32.mrf.mxu1  ;;  %v15653_v44 = vld [vmem:[#allocation32 + $0x4] ss:$8 sps:$4 sm:$0xff]   ;;  %v15651_v13 = vld [vmem:[#allocation32] ss:$8 sps:$4 sm:$0xff]  }
0x10a0   :  { %v13703_v17 = vadd.f32 %v13702_v33, %v13701_v38  ;;  %v15656_v38 = vld [vmem:[#allocation32 + $0xb4] ss:$8 sps:$4 sm:$0xff]   ;;  %v15654_v15 = vld [vmem:[#allocation32 + $0xb0] ss:$8 sps:$4 sm:$0xff]   ;;  %v15657_v33 = vld [vmem:[#allocation32 + $0xa0] ss:$8 sps:$4 sm:$0xff]  }
0x10a1   :  { %15748 = vpow2.f32 %v13260_v45  ;;  %v13704_v1 = vpop.f32.mrf.mxu1  ;;  %v15659_v45 = vld [vmem:[#allocation32 + $0xa4] ss:$8 sps:$4 sm:$0xff]  }
0x10a2   :  { %15750 = vtanh.f32 %v17711_v36  ;;  %v10928_v36 = vrot.slane %v10920_v31, %v16920_v35  ;;  %v15662_v1 = vld [vmem:[#allocation32 + $0x94] ss:$8 sps:$4 sm:$0xff]  }
0x10a3   :  { %v13705_v25 = vpop.f32.mrf.mxu1 }
0x10a4   :  { %v15660_v25 = vld [vmem:[#allocation32 + $0x90] ss:$8 sps:$4 sm:$0xff]  }
0x10ac   :  { %v15747_v16 = vpop.eup %15746 }
0x10ad   :  { %v10846_v6 = vadd.f32 1.0, %v15747_v16  ;;  %v15665_v16 = vld [vmem:[#allocation32 + $0x84] ss:$8 sps:$4 sm:$0xff]  }
0x10ae   :  { %v15749_v0 = vpop.eup %15748 }
0x10af   :  { %15752 = vrcp.f32 %v10846_v6  ;;  %v10847_v57 = vadd.f32 1.0, %v15749_v0  ;;  %v15751_v50 = vpop.eup %15750  ;;  %v15663_v6 = vld [vmem:[#allocation32 + $0x80] ss:$8 sps:$4 sm:$0xff]   ;;  %v11006_v0 = vpack.c.bf16 %v17390_v62, %v17390_v62 }
0x10b0   :  { %15754 = vtanh.f32 %v17713_v61  ;;  %v15673_v62 = vld [vmem:[#allocation37 + $0x20] sm:$0xff]  }
0x10b1   :  { %15756 = vrcp.f32 %v10847_v57 }
0x10b8   :  { %v13679_v47 = vpop.f32.mrf.mxu0 }
0x10ba   :  { %v13680_v43 = vpop.f32.mrf.mxu0 }
0x10bb   :  { %v13681_v7 = vadd.f32 %v13680_v43, %v13679_v47  ;;  %v15666_v43 = vld [vmem:[#allocation37 + $0x78] sm:$0xff]  }
0x10bc   :  { %v15753_v51 = vpop.eup %15752  ;;  %v13682_v26 = vpop.f32.mrf.mxu0  ;;  %13716 = vmatprep.subr.bf16.mxu0 %v15666_v43 }
0x10bd   :  { %v15755_v56 = vpop.eup %15754  ;;  %v10912_v55 = vmul.f32 %v15753_v51, %v15751_v50  ;;  %v10744_v9 = vadd.f32 %v13681_v7, %v9415_v53  ;;  %v15667_v50 = vld [vmem:[#allocation37 + $0x38] sm:$0xff]   ;;  %v15668_v51 = vld [vmem:[#allocation37 + $0x70] sm:$0xff]   ;;  %v15680_v53 = vld [vmem:[#allocation37 + $0x40] sm:$0xff]  }
0x10be   :  { %v15757_v18 = vpop.eup %15756  ;;  %v13683_v5 = vpop.f32.mrf.mxu0  ;;  %v15681_v7 = vld [vmem:[#allocation37] sm:$0xff]  }
0x10bf   :  { %v10913_v48 = vmul.f32 %v15757_v18, %v15755_v56  ;;  %v11082_v11 = vpack.c.bf16 %v10912_v55, %v10912_v55  ;;  %v10784_v40 = vadd.f32 %v13703_v17, %v10744_v9  ;;  %v15669_v18 = vld [vmem:[#allocation37 + $0x30] sm:$0xff]   ;;  %v15670_v5 = vld [vmem:[#allocation37 + $0x68] sm:$0xff]  }
0x10c1   :  { %v10921_v58 = vcombine.low %v10912_v55, %v10913_v48  ;;  %v11083_v30 = vpack.c.bf16 %v10913_v48, %v10913_v48  ;;  %v15671_v55 = vld [vmem:[#allocation37 + $0x28] sm:$0xff]   ;;  %v15672_v48 = vld [vmem:[#allocation37 + $0x60] sm:$0xff]  }
0x10c3   :  { %v10935_v61 = vrot.slane %v10921_v58, %v16920_v35  ;;  %11521 = vmatprep.mubr.bf16.mxu0 %v11083_v30  ;;  %v15674_v58 = vld [vmem:[#allocation37 + $0x58] sm:$0xff]  }
0x10c4   :  { %11522 = vmatmul.mubr.bf16.vlgmr.msra.gmra.mxu0 %v11082_v11  ;;  %v15675_v30 = vld [vmem:[#allocation37 + $0x18] sm:$0xff]   ;;  %v15676_v11 = vld [vmem:[#allocation37 + $0x50] sm:$0xff]  }
0x10c5   :  { %v10936_v59 = vcombine.low %v10928_v36, %v10935_v61  ;;  %13717 = vmatpush3.bf16.msra.mxu0 %v15667_v50  ;;  %v15677_v36 = vld [vmem:[#allocation37 + $0x10] sm:$0xff]   ;;  %v15678_v61 = vld [vmem:[#allocation37 + $0x48] sm:$0xff]  }
0x10c6   :  { %13718 = vmatprep.subr.bf16.mxu0 %v15668_v51 }
0x10c7   :  { %10946 = vst [vmem:[#allocation55] sm:$0xff] %v10936_v59  ;;  %v15679_v59 = vld [vmem:[#allocation37 + $0x8] sm:$0xff]  }
0x10c9   :  { %13719 = vmatpush3.bf16.msra.mxu0 %v15669_v18 }
0x10ca   :  { %13720 = vmatprep.subr.bf16.mxu0 %v15670_v5 }
0x10cd   :  { %13721 = vmatpush3.bf16.msra.mxu0 %v15671_v55 }
0x10ce   :  { %13722 = vmatprep.subr.bf16.mxu0 %v15672_v48 }
0x10d1   :  { %13723 = vmatpush3.bf16.msra.mxu0 %v15673_v62 }
0x10d2   :  { %13724 = vmatprep.subr.bf16.mxu0 %v15674_v58 }
0x10d5   :  { %13725 = vmatpush3.bf16.msra.mxu0 %v15675_v30 }
0x10d6   :  { %13726 = vmatprep.subr.bf16.mxu0 %v15676_v11 }
0x10d8   :  { %v10823_v19 = vpop.f32.mrf.mxu0 }
0x10d9   :  { %v10824_v32 = vadd.f32 %v10823_v19, %v10784_v40  ;;  %13727 = vmatpush3.bf16.msra.mxu0 %v15677_v36 }
0x10da   :  { %v14003_v21 = vpop.f32.mrf.mxu0  ;;  %13728 = vmatprep.subr.bf16.mxu0 %v15678_v61 }
0x10db   :  { %v13261_v23 = vmul.f32 -1.442695, %v10824_v32 }
0x10dc   :  { %v10826_v8 = vpop.f32.mrf.mxu0 }
0x10dd   :  { %15758 = vpow2.f32 %v13261_v23  ;;  %13729 = vmatpush3.bf16.msra.mxu0 %v15679_v59 }
0x10de   :  { %v14004_v60 = vpop.f32.mrf.mxu0  ;;  %15760 = vtanh.f32 %v17738_v12  ;;  %v15638_v12 = vld [vmem:[#allocation32 + $0x54] ss:$8 sps:$4 sm:$0xff]   ;;  %13730 = vmatprep.subr.bf16.mxu0 %v15680_v53 }
0x10df   :  { %v11735_v60 = vld [vmem:[#allocation35] sm:$0x3] }
0x10e1   :  { %13731 = vmatpush3.bf16.msra.mxu0 %v15681_v7 }
0x10e2   :  { %14005 = vmatprep.subr.bf16.mxu0 %v16624_v41 }
0x10ea   :  { %v15759_v37 = vpop.eup %15758 }
0x10eb   :  { %v10848_v31 = vadd.f32 1.0, %v15759_v37  ;;  %v15761_v27 = vpop.eup %15760 }
0x10ed   :  { %15762 = vrcp.f32 %v10848_v31 }
0x10fa   :  { %v15763_v10 = vpop.eup %15762 }
0x10fb   :  { %v10914_v28 = vmul.f32 %v15763_v10, %v15761_v27  ;;  %v11740_v10 = vrot.slane %v11735_v60, %v17375_v49  ;;  %v15682_v49 = vld [vmem:[#allocation40 + $0x8] sm:$0xff]  }
0x10fd   :  { %v10943_v20 = vrot.slane %v10914_v28, %v16920_v35  ;;  %v11084_v34 = vpack.c.bf16 %v10914_v28, %v10914_v28  ;;  %v15644_v35 = vld [vmem:[#allocation32 + $0x34] ss:$8 sps:$4 sm:$0xff]  }
0x10ff   :  { %10948 = vst.msk [vmem:[#allocation55 + $0x8] sm:$0x3] %vm10947_vm5, %v10943_v20  ;;  %13335 = vmatmul.mubr.msk.bf16.vlgmr.msra.gmra.mxu1 %vm904_vm2, %v11084_v34  ;;  %v11744_v20 = vrot.slane %v11735_v60, %v17378_v52  ;;  %v15683_v52 = vld [vmem:[#allocation40] sm:$0xff]  }
0x1100   :  { %11695 = vmatpush1.bf16.msra.mxu1 %v15630_v2  ;;  %13360 = vmatprep.mubr.msk.bf16.mxu1 %vm904_vm2, %v11007_v4 }
0x1101   :  { %11696 = vmatprep.subr.bf16.mxu1 %v15635_v46 }
0x1104   :  { %11697 = vmatpush1.bf16.msra.mxu1 %v15633_v54 }
0x1105   :  { %11698 = vmatprep.subr.bf16.mxu1 %v15638_v12 }
0x1108   :  { %11699 = vmatpush1.bf16.msra.mxu1 %v15636_v42 }
0x1109   :  { %11700 = vmatprep.subr.bf16.mxu1 %v15641_v39 }
0x110c   :  { %11701 = vmatpush1.bf16.msra.mxu1 %v15639_v63 }
0x110d   :  { %11702 = vmatprep.subr.bf16.mxu1 %v15644_v35 }
0x1110   :  { %11703 = vmatpush1.bf16.msra.mxu1 %v15642_v24 }
0x1111   :  { %11704 = vmatprep.subr.bf16.mxu1 %v15647_v22 }
0x1114   :  { %11705 = vmatpush1.bf16.msra.mxu1 %v15645_v29 }
0x1115   :  { %11706 = vmatprep.subr.bf16.mxu1 %v15650_v3  ;;  %v13361_v3 = vld [vmem:[#allocation38] ss:$0 sm:$0xff] }
0x1118   :  { %11707 = vmatpush1.bf16.msra.mxu1 %v15648_v14 }
0x1119   :  { %11708 = vmatprep.subr.bf16.mxu1 %v15653_v44 }
0x111c   :  { %11709 = vmatpush1.bf16.msra.mxu1 %v15651_v13 }
0x111d   :  { %11718 = vmatprep.subr.bf16.mxu1 %v15656_v38 }
0x1120   :  { %11719 = vmatpush2.bf16.msra.mxu1 %v15654_v15 }
0x1121   :  { %11720 = vmatprep.subr.bf16.mxu1 %v15659_v45 }
0x1124   :  { %11721 = vmatpush2.bf16.msra.mxu1 %v15657_v33 }
0x1125   :  { %11722 = vmatprep.subr.bf16.mxu1 %v15662_v1  ;;  %v13378_v1 = vld [vmem:[#allocation41] ss:$0 sm:$0xff] }
0x1128   :  { %11723 = vmatpush2.bf16.msra.mxu1 %v15660_v25 }
0x1129   :  { %11724 = vmatprep.subr.bf16.mxu1 %v15665_v16 }
0x112c   :  { %11725 = vmatpush2.bf16.msra.mxu1 %v15663_v6 }
0x112f   :  { %11727 = vmatmul.mubr.bf16.vlgmr.msra.gmra.mxu1 %v11006_v0 }
0x1142   :  { %v11482_v57 = vpop.f32.mrf.mxu1 }
0x1144   :  { %v11484_v47 = vpop.f32.mrf.mxu1 }
0x1146   :  { %v11486_v26 = vpop.f32.mrf.mxu1 }
0x1148   :  { %v11487_v56 = vpop.f32.mrf.mxu1 }
0x1184   :  { %v11523_v9 = vpop.f32.mrf.mxu0 }
0x1185   :  { %v11524_v37 = vadd.f32 %v11523_v9, %v11482_v57 }
0x1186   :  { %v11525_v17 = vpop.f32.mrf.mxu0 }
0x1187   :  { %v11526_v31 = vadd.f32 %v11525_v17, %v11484_v47 }
0x1188   :  { %v11527_v40 = vpop.f32.mrf.mxu0 }
0x118a   :  { %v11528_v19 = vpop.f32.mrf.mxu0 }
0x11bf   :  { %v11564_v32 = vpop.f32.mrf.mxu1 }
0x11c0   :  { %v11565_v27 = vadd.f32 %v11564_v32, %v11524_v37 }
0x11c1   :  { %v11566_v21 = vpop.f32.mrf.mxu1 }
0x11c2   :  { %v11567_v2 = vadd.f32 %v11566_v21, %v11526_v31 }
0x11c3   :  { %v11568_v23 = vpop.f32.mrf.mxu1 }
0x11c5   :  { %v11569_v8 = vpop.f32.mrf.mxu1 }
0x11ef   :  { %v11728_v28 = vpop.f32.mrf.mxu1 }
0x11f0   :  { %v11729_v4 = vadd.f32 %v11728_v28, %v11565_v27 }
0x11f1   :  { %v11730_v34 = vpop.f32.mrf.mxu1 }
0x11f2   :  { %v11747_v46 = vadd.f32 %v11740_v10, %v11729_v4  ;;  %v11731_v54 = vadd.f32 %v11730_v34, %v11567_v2 }
0x11f3   :  { %v11732_v12 = vpop.f32.mrf.mxu1 }
0x11f4   :  { %v11748_v42 = vadd.f32 %v11744_v20, %v11731_v54  ;;  %v11749_v39 = vmax.f32 %v11747_v46, 0.0 }
0x11f5   :  { %v11733_v63 = vpop.f32.mrf.mxu1 }
0x11f6   :  { %v11750_v35 = vmax.f32 %v11748_v42, 0.0  ;;  %v11783_v22 = vpack.c.bf16 %v11749_v39, %v11749_v39 }
0x11f8   :  { %v11784_v24 = vpack.c.bf16 %v11750_v35, %v11750_v35 }
0x11fa   :  { %11920 = vmatprep.mubr.bf16.mxu0 %v11784_v24 }
0x11fb   :  { %11921 = vmatmul.mubr.bf16.vlgmr.msra.gmra.mxu0 %v11783_v22 }
0x11fc   :  { %14009 = vmatprep.mubr.msk.bf16.mxu0 %vm16626_vm0, %v16624_v41  ;;  %14006 = vmatpush3.bf16.msra.mxu0 %v15682_v49  ;;  %vm11996_vm0 = vcmask 25600  }
0x11fd   :  { %14007 = vmatprep.subr.bf16.mxu0 %v16624_v41 }
0x1200   :  { %14008 = vmatpush3.bf16.msra.mxu0 %v15683_v52 }
0x12bb   :  { %v13732_v29 = vpop.f32.mrf.mxu0 }
0x12bd   :  { %v13733_v14 = vpop.f32.mrf.mxu0 }
0x12be   :  { %v13734_v44 = vadd.f32 %v13733_v14, %v13732_v29 }
0x12bf   :  { %v13735_v13 = vpop.f32.mrf.mxu0 }
0x12c0   :  { %v11923_v38 = vadd.f32 %v13734_v44, %v13361_v3 }
0x12c1   :  { %v13736_v15 = vpop.f32.mrf.mxu0 }
0x12c2   :  { %v11928_v45 = vmax.f32 %v11923_v38, 0.0 }
0x12c4   :  { %v11933_v33 = vpack.c.bf16 %v11928_v45, %v11928_v45 }
0x12c6   :  { %14010 = vmatmul.mubr.msk.bf16.vlgmr.msra.gmra.mxu0 %vm3021_vm14, %v11933_v33 }
0x1386   :  { %v11990_v25 = vpop.f32.mrf.mxu0 }
0x1387   :  { %v11991_v16 = vadd.f32 %v13378_v1, %v11990_v25 }
0x1388   :  { %v14011_v6 = vpop.f32.mrf.mxu0 }
0x1389   :  { %11997 = vst.msk [vmem:[#allocation58] sm:$0x3] %vm11996_vm0, %v11991_v16 }
0x138a   :  { %v11993_v41 = vpop.f32.mrf.mxu0 }
0x138c   :  { %v14012_v0 = vpop.f32.mrf.mxu0 }
0x138d   :  { %16539 = dma.done.wait [#allocation4 + $0x1], 14336 }
0x138e   :  { %16540 = vsyncadd [#allocation4 + $0x1], 4294952960  ;;  %s16636_s5 = smov [#allocation53]   ;;  %s16637_s20 = smov [#allocation56]  }
0x138f   :  { %s12019_s14 = sshll.u32 %s16636_s5, 4  ;;  %s12039_s28 = sshll.u32 %s16637_s20, 4  ;;  %s12020_s14 = int_to_ptr.vmem [resolvable:$true] %s12019_s14  ;;  %s12040_s28 = int_to_ptr.vmem [resolvable:$true] %s12039_s28 }
0x1390   :  { %s16405_s1 = scalar_lea.vmem %s12020_s14, 64  ;;  %p16410_p7 = scmp.lt.s32.totalorder %s12020_s14, %s12020_s14 }
0x1391   :  { %p16406_p6 = scmp.ne.s32.totalorder %s12020_s14, %s16405_s1  ;;  %p16411_p8 = scmp.lt.s32.totalorder %s16405_s1, %s16405_s1 }
0x1393   :  { %p16412_p9 = por %p16411_p8, %p16410_p7 }
0x1395   :  { %p16413_p10 = pnand %p16412_p9, %p16406_p6 }
0x1397   :  { %16416 = shalt.err (!%p16413_p10)
}
0x1398   :  { %s17847_s2 = sld [smem:[#allocation106_spill]]  ;;  %s16425_s7 = scalar_lea.vmem %s12040_s28, 160 }
0x1399   :  { %p16426_p11 = scmp.ne.s32.totalorder %s12040_s28, %s16425_s7  ;;  %p16430_p12 = scmp.lt.s32.totalorder %s12040_s28, %s12040_s28 }
0x139a   :  { %p16431_p13 = scmp.lt.s32.totalorder %s16425_s7, %s16425_s7 }
0x139c   :  { %p16432_p0 = por %p16431_p13, %p16430_p12 }
0x139e   :  { %12022 = dma.vmem_to_hbm [thread:$0]  %s12020_s14, 64, %s17847_s2, [#allocation54]  }
0x139f   :  { %p16433_p1 = pnand %p16432_p0, %p16426_p11 }
0x13a1   :  { %16436 = shalt.err (!%p16433_p1)
}
0x13a2   :  { %12042 = dma.vmem_to_hbm [thread:$0]  %s12040_s28, 160, %s16829_s21, [#allocation57]  }
0x13a3   :  { %s16638_s30 = smov [#allocation52]   ;;  %s16639_s19 = smov [#allocation55]  }
0x13a4   :  { %s12009_s10 = sshll.u32 %s16638_s30, 4  ;;  %s12029_s27 = sshll.u32 %s16639_s19, 4  ;;  %s12010_s10 = int_to_ptr.vmem [resolvable:$true] %s12009_s10  ;;  %s12030_s27 = int_to_ptr.vmem [resolvable:$true] %s12029_s27 }
0x13a5   :  { %s16445_s25 = scalar_lea.vmem %s12010_s10, 64  ;;  %p16450_p3 = scmp.lt.s32.totalorder %s12010_s10, %s12010_s10 }
0x13a6   :  { %p16446_p2 = scmp.ne.s32.totalorder %s12010_s10, %s16445_s25  ;;  %p16451_p4 = scmp.lt.s32.totalorder %s16445_s25, %s16445_s25 }
0x13a8   :  { %p16452_p5 = por %p16451_p4, %p16450_p3 }
0x13aa   :  { %p16453_p6 = pnand %p16452_p5, %p16446_p2 }
0x13ac   :  { %16456 = shalt.err (!%p16453_p6)
}
0x13ad   :  { %s17848_s15 = sld [smem:[#allocation105_spill]]  ;;  %s16465_s6 = scalar_lea.vmem %s12030_s27, 160 }
0x13ae   :  { %p16466_p7 = scmp.ne.s32.totalorder %s12030_s27, %s16465_s6  ;;  %p16470_p8 = scmp.lt.s32.totalorder %s12030_s27, %s12030_s27 }
0x13af   :  { %p16471_p9 = scmp.lt.s32.totalorder %s16465_s6, %s16465_s6 }
0x13b1   :  { %p16472_p10 = por %p16471_p9, %p16470_p8 }
0x13b3   :  { %12012 = dma.vmem_to_hbm [thread:$0]  %s12010_s10, 64, %s17848_s15, [#allocation7]  }
0x13b4   :  { %p16473_p11 = pnand %p16472_p10, %p16466_p7 }
0x13b6   :  { %16476 = shalt.err (!%p16473_p11)
}
0x13b7   :  { %12032 = dma.vmem_to_hbm [thread:$0]  %s12030_s27, 160, %s16824_s9, [#allocation54]  }
0x13b8   :  { %s16640_s21 = smov [#allocation58]  }
0x13b9   :  { %s12049_s17 = sshll.u32 %s16640_s21, 4  ;;  %s12050_s17 = int_to_ptr.vmem [resolvable:$true] %s12049_s17 }
0x13ba   :  { %s16485_s11 = scalar_lea.vmem %s12050_s17, 32  ;;  %p16490_p13 = scmp.lt.s32.totalorder %s12050_s17, %s12050_s17 }
0x13bb   :  { %p16486_p12 = scmp.ne.s32.totalorder %s12050_s17, %s16485_s11  ;;  %p16491_p0 = scmp.lt.s32.totalorder %s16485_s11, %s16485_s11 }
0x13bd   :  { %p16492_p1 = por %p16491_p0, %p16490_p13 }
0x13bf   :  { %p16493_p2 = pnand %p16492_p1, %p16486_p12 }
0x13c1   :  { %16496 = shalt.err (!%p16493_p2)
}
0x13c2   :  { %12052 = dma.vmem_to_hbm [thread:$0]  %s12050_s17, 32, %s16834_s4, [#allocation57]  }
0x13c3   :  { %16541 = dma.done.wait [#allocation7], 64  }
0x13c4   :  { %16542 = vsyncadd [#allocation7], 4294967232 }
0x13c5   :  { %16543 = dma.done.wait [#allocation54], 224  }
0x13c6   :  { %16544 = vsyncadd [#allocation54], 4294967072 }
0x13c7   :  { %16545 = dma.done.wait [#allocation57], 192  }
0x13c8   :  { %16546 = vsyncadd [#allocation57], 4294967104 }
0x13c9   :  { %12068 = vsyncpa [#allocation6], 1 }
0x13ca   :  { %12069 = vsyncpa [#allocation9], 1 }
0x13cb   :  { %12070 = vsyncpa [#allocation12], 1 }
0x13cc   :  { %12071 = vsyncpa [#allocation15], 1 }
0x13cd   :  { %12072 = vsyncpa [#allocation18], 1 }
0x13ce   :  { %12073 = vsyncpa [#allocation21], 1 }
0x13cf   :  { %12074 = vsyncpa [#allocation24], 1 }
0x13d0   :  { %12075 = vsyncpa [#allocation27], 1 }
0x13d1   :  { %12076 = vsyncpa [#allocation30], 1 }
0x13d2   :  { %12077 = vsyncpa [#allocation33], 1 }
0x13d3   :  { %12078 = vsyncpa [#allocation36], 1 }
0x13d4   :  { %12079 = vsyncpa [#allocation39], 1 }
0x13d5   :  { %12080 = vsyncpa [#allocation42], 1 }
0x13d6   :  { %12081 = vsyncpa [#allocation45], 1 }
0x13d7   :  { %12082 = vsyncpa [#allocation48], 1 }
0x13d8   :  { %12083 = vsyncpa [#allocation51], 1 }
0x13d9   :  { %12084 = vsyncpa [#allocation7], 1 }
0x13da   :  { %12085 = vsyncpa [#allocation54], 1 }
0x13db   :  { %12086 = vsyncpa [#allocation57], 1 }
0x13dc   :  { %12087 = vsyncmov [#allocation4] }
0x13df   :  { %s12088_s9 = vpop.sfrf %12087 }
0x13e0   :  { %p13382_p3 = scmp.ne.s32.totalorder %s12088_s9, 0 }
0x13e2   :  { %12092 = shalt.err (%p13382_p3)  }
0x13e3   :  { %12094 = vsyncmov [#allocation4 + $0x1] }
0x13e6   :  { %s12095_s4 = vpop.sfrf %12094 }
0x13e7   :  { %p13383_p4 = scmp.ne.s32.totalorder %s12095_s4, 0 }
0x13e9   :  { %12099 = shalt.err (%p13383_p4)  }

</bundles_post_ra>
